<compile_context>
chip_gen: v7x
topology: tpu7x:2x2x1
jax: 0.10.0
libtpu: 0.0.40
codegen_flags: <defaults>
</compile_context>

<pallas_src>
import jax
import jax.numpy as jnp
from jax.experimental import pallas as pl
from jax.experimental.pallas import tpu as pltpu

# ----- small, TPU-friendly config (consistent with the module's shapes) -----
B = 2           # batch
S = 8           # encoder sequence length
H = 32          # hidden_size
V = 128         # vocab_size
N_UPDATE = 3    # number of slots
MAX_LEN = 4     # decode length
PAD_IDX = 0
NEG_INF = -1.0e9


def decoder_kernel(x_ref, dec_ref, enc_ref, h0_ref, emb_ref,
                   wf_ref, bf_ref, wgen_ref, bgen_ref, out_ref):
    x = x_ref[...]                                   # (B, S) int32
    enc = enc_ref[...]                               # (B, S, H)
    emb = emb_ref[...]                               # (V, H)
    emb_t = emb.T                                    # (H, V) built once, reused 12x
    wf = wf_ref[...]                                 # (2H, 6H) block-diag GRU weight
    bf = bf_ref[...]                                 # (1, 6H)  [b_ih | b_hh]
    wg = wgen_ref[...]                               # (1, 3H)
    bg = bgen_ref[0]                                 # scalar from SMEM

    maskq = (x == PAD_IDX)[:, None, :]               # (B, 1, S)
    # one-hot of input tokens -> scatter_add (copy) distribution via MXU matmul
    vocab_iota3 = jax.lax.broadcasted_iota(jnp.int32, (B, S, V), 2)
    onehot_x = (x[:, :, None] == vocab_iota3).astype(jnp.float32)       # (B, S, V)
    vocab_iota2 = jax.lax.broadcasted_iota(jnp.int32, (B, V), 1)

    h = h0_ref[...]                                  # (B, H), carried across all steps

    for j in range(N_UPDATE):                        # slots (fully unrolled)
        w = dec_ref[j]                               # (B, H) slot embedding
        slot_probs = []
        for k in range(MAX_LEN):                     # decode steps (fully unrolled)
            # TODO(synk): nn.Dropout treated as identity (eval mode).
            # ---- fused GRU cell: one (B,2H)@(2H,6H) MXU matmul ----
            wh = jnp.concatenate([w, h], axis=-1)                        # (B, 2H)
            g = jnp.dot(wh, wf, preferred_element_type=jnp.float32) + bf  # (B, 6H)
            r = jax.nn.sigmoid(g[:, 0:H] + g[:, 3 * H:4 * H])
            z = jax.nn.sigmoid(g[:, H:2 * H] + g[:, 4 * H:5 * H])
            n = jnp.tanh(g[:, 2 * H:3 * H] + r * g[:, 5 * H:6 * H])
            h = (1.0 - z) * n + z * h                                    # (B, H)

            # ---- attention over encoder outputs (batched MXU matmuls) ----
            hq = h[:, None, :]                                           # (B, 1, H)
            attn_e = jnp.einsum('bqh,bsh->bqs', hq, enc,
                                preferred_element_type=jnp.float32)      # (B, 1, S)
            attn_e = jnp.where(maskq, NEG_INF, attn_e)
            attn_hist = jax.nn.softmax(attn_e, axis=-1)                  # (B, 1, S)

            # vocab distribution  (B,H) @ (H,V)
            attn_v = jnp.dot(h, emb_t, preferred_element_type=jnp.float32)
            attn_vocab = jax.nn.softmax(attn_v, axis=-1)                 # (B, V)

            # context vector and copy distribution on the MXU
            context = jnp.einsum('bqs,bsh->bqh', attn_hist, enc,
                                 preferred_element_type=jnp.float32)[:, 0, :]   # (B, H)
            p_ctx = jnp.einsum('bqs,bsv->bqv', attn_hist, onehot_x,
                               preferred_element_type=jnp.float32)[:, 0, :]     # (B, V)

            # p_gen = sigmoid(Linear([w ; h ; context])) (split-sum, SMEM bias)
            logit = (jnp.sum(w * wg[:, :H], axis=-1, keepdims=True)
                     + jnp.sum(h * wg[:, H:2 * H], axis=-1, keepdims=True)
                     + jnp.sum(context * wg[:, 2 * H:], axis=-1, keepdims=True)
                     + bg)                                               # (B, 1)
            p_gen = jax.nn.sigmoid(logit)

            p_final = p_gen * attn_vocab + (1.0 - p_gen) * p_ctx         # (B, V)
            slot_probs.append(p_final)

            # argmax feedback (skipped on the last step: value would be unused)
            if k + 1 < MAX_LEN:
                m = jnp.max(p_final, axis=-1, keepdims=True)
                w_idx = jnp.min(jnp.where(p_final >= m, vocab_iota2, V),
                                axis=-1, keepdims=True)                  # (B, 1)
                sel = (vocab_iota2 == w_idx).astype(jnp.float32)         # (B, V)
                w = jnp.dot(sel, emb, preferred_element_type=jnp.float32)  # (B, H)

        # single (MAX_LEN*B, V) = (8, 128) full-tile store for this slot
        out_ref[j] = jnp.concatenate(slot_probs, axis=0)


def decoder_pallas(x, decoder_input, encoder_output, hidden,
                   emb, w_ih, w_hh, b_ih, b_hh, w_gen_w, w_gen_b):
    """Wrapper: parameter/layout glue + pallas_call."""
    dec_t = jnp.transpose(decoder_input, (1, 0, 2))          # (N_UPDATE, B, H)
    h0 = hidden.reshape(B, H)                                # (B, H)

    # fused block-diagonal GRU weight: [w ; h] @ [[Wih^T, 0],[0, Whh^T]] = [gi | gh]
    wf = jnp.zeros((2 * H, 6 * H), jnp.float32)
    wf = wf.at[:H, :3 * H].set(w_ih.T)
    wf = wf.at[H:, 3 * H:].set(w_hh.T)
    bf = jnp.concatenate([b_ih, b_hh]).reshape(1, 6 * H)
    # NOTE: for v6e/v7x, wf / emb could be cast to bf16 here (f32 MXU multi-pass
    # penalty), but that perturbs the argmax feedback path and the 1e-5 check.

    wgen = w_gen_w.reshape(1, 3 * H)
    bgen = w_gen_b.reshape(1).astype(jnp.float32)            # scalar -> SMEM

    vmem = pl.BlockSpec(memory_space=pltpu.MemorySpace.VMEM)
    smem = pl.BlockSpec(memory_space=pltpu.MemorySpace.SMEM)

    out = pl.pallas_call(
        decoder_kernel,
        out_shape=jax.ShapeDtypeStruct((N_UPDATE, MAX_LEN * B, V), jnp.float32),
        in_specs=[
            vmem,   # x
            vmem,   # decoder_input (N_UPDATE, B, H)
            vmem,   # encoder_output
            vmem,   # h0
            vmem,   # embedding (V, H)  (transpose built in-kernel)
            vmem,   # fused GRU weight (2H, 6H)
            vmem,   # fused GRU bias   (1, 6H)
            vmem,   # w_gen weight     (1, 3H)
            smem,   # w_gen bias scalar
        ],
        out_specs=vmem,
    )(x, dec_t, encoder_output, h0, emb, wf, bf, wgen, bgen)

    # (N_UPDATE, MAX_LEN*B, V) -> (B, N_UPDATE, MAX_LEN, V) == torch return layout
    out = out.reshape(N_UPDATE, MAX_LEN, B, V)
    return jnp.transpose(out, (2, 0, 1, 3))


# --------------------------- pure-JAX reference -----------------------------
def _gru_ref(w, h, w_ih, w_hh, b_ih, b_hh):
    gi = w @ w_ih.T + b_ih[None, :]
    gh = h @ w_hh.T + b_hh[None, :]
    r = jax.nn.sigmoid(gi[:, :H] + gh[:, :H])
    z = jax.nn.sigmoid(gi[:, H:2 * H] + gh[:, H:2 * H])
    n = jnp.tanh(gi[:, 2 * H:] + r * gh[:, 2 * H:])
    return (1.0 - z) * n + z * h


def decoder_reference(x, decoder_input, encoder_output, hidden,
                      emb, w_ih, w_hh, b_ih, b_hh, w_gen_w, w_gen_b):
    mask = (x == PAD_IDX)
    h = hidden.reshape(B, H)
    slots = []
    for j in range(N_UPDATE):
        w = decoder_input[:, j, :]
        steps = []
        for _ in range(MAX_LEN):
            h = _gru_ref(w, h, w_ih, w_hh, b_ih, b_hh)
            attn_e = jnp.einsum('bsh,bh->bs', encoder_output, h)
            attn_e = jnp.where(mask, NEG_INF, attn_e)
            attn_hist = jax.nn.softmax(attn_e, -1)
            attn_vocab = jax.nn.softmax(h @ emb.T, -1)
            context = jnp.einsum('bs,bsh->bh', attn_hist, encoder_output)
            cat = jnp.concatenate([w, h, context], -1)
            p_gen = jax.nn.sigmoid(cat @ w_gen_w.reshape(3 * H, 1) + w_gen_b)  # (B,1)
            p_ctx = jnp.zeros((B, V)).at[jnp.arange(B)[:, None], x].add(attn_hist)
            p_final = p_gen * attn_vocab + (1.0 - p_gen) * p_ctx
            w_idx = jnp.argmax(p_final, -1)
            w = emb[w_idx]
            steps.append(p_final)
        slots.append(jnp.stack(steps, axis=1))
    return jnp.stack(slots, axis=1)       # (B, N_UPDATE, MAX_LEN, V)


if __name__ == "__main__":
    key = jax.random.PRNGKey(0)
    ks = jax.random.split(key, 10)

    # deterministic inputs
    x = jax.random.randint(ks[0], (B, S), 1, V, dtype=jnp.int32)
    x = x.at[:, -2:].set(PAD_IDX)                                   # pad positions
    decoder_input = jax.random.normal(ks[1], (B, N_UPDATE, H), jnp.float32)
    encoder_output = jax.random.normal(ks[2], (B, S, H), jnp.float32)
    hidden = jax.random.normal(ks[3], (1, B, H), jnp.float32)

    # deterministic parameters (synthetic, matching torch shapes)
    init_range = 0.02
    emb = jax.random.normal(ks[4], (V, H), jnp.float32) * init_range   # embed.weight
    w_ih = jax.random.normal(ks[5], (3 * H, H), jnp.float32) * init_range
    w_hh = jax.random.normal(ks[6], (3 * H, H), jnp.float32) * init_range
    b_ih = jax.random.normal(ks[7], (3 * H,), jnp.float32) * init_range
    b_hh = jax.random.normal(ks[8], (3 * H,), jnp.float32) * init_range
    w_gen_w = jax.random.normal(ks[9], (1, 3 * H), jnp.float32) * 0.1  # Linear(3H, 1)
    w_gen_b = jnp.zeros((1,), jnp.float32)

    out = decoder_pallas(x, decoder_input, encoder_output, hidden,
                         emb, w_ih, w_hh, b_ih, b_hh, w_gen_w, w_gen_b)
    out = jax.block_until_ready(out)
    assert out.shape == (B, N_UPDATE, MAX_LEN, V)

    ref = decoder_reference(x, decoder_input, encoder_output, hidden,
                            emb, w_ih, w_hh, b_ih, b_hh, w_gen_w, w_gen_b)
    ref = jax.block_until_ready(ref)
    assert jnp.allclose(out, ref, atol=1e-5, rtol=1e-5), \
        f"max abs diff {jnp.max(jnp.abs(out - ref))}"

    print("KERNEL_OK")
</pallas_src>

<mosaic_0001>
module attributes {stable_mosaic.version = 11 : i64} {
  func.func @decoder_kernel(%arg0: memref<2x8xi32, #tpu.memory_space<vmem>>, %arg1: memref<3x2x32xf32, #tpu.memory_space<vmem>>, %arg2: memref<2x8x32xf32, #tpu.memory_space<vmem>>, %arg3: memref<2x32xf32, #tpu.memory_space<vmem>>, %arg4: memref<128x32xf32, #tpu.memory_space<vmem>>, %arg5: memref<64x192xf32, #tpu.memory_space<vmem>>, %arg6: memref<1x192xf32, #tpu.memory_space<vmem>>, %arg7: memref<1x96xf32, #tpu.memory_space<vmem>>, %arg8: memref<1xf32, #tpu.memory_space<smem>>, %arg9: memref<3x8x128xf32, #tpu.memory_space<vmem>>) attributes {dimension_semantics = [], scalar_prefetch = 0 : i64, scratch_operands = 0 : i64, tpu.core_type = #tpu.core_type<tc>} {
    %c0 = arith.constant 0 : index
    %c0_0 = arith.constant 0 : index
    %0 = vector.load %arg0[%c0, %c0_0] : memref<2x8xi32, #tpu.memory_space<vmem>>, vector<2x8xi32>
    %c0_1 = arith.constant 0 : index
    %c0_2 = arith.constant 0 : index
    %c0_3 = arith.constant 0 : index
    %1 = vector.load %arg2[%c0_1, %c0_2, %c0_3] : memref<2x8x32xf32, #tpu.memory_space<vmem>>, vector<2x8x32xf32>
    %c0_4 = arith.constant 0 : index
    %c0_5 = arith.constant 0 : index
    %2 = vector.load %arg4[%c0_4, %c0_5] : memref<128x32xf32, #tpu.memory_space<vmem>>, vector<128x32xf32>
    %3 = tpu.transpose %2, [1, 0] : vector<128x32xf32> -> vector<32x128xf32>
    %c0_6 = arith.constant 0 : index
    %c0_7 = arith.constant 0 : index
    %4 = vector.load %arg5[%c0_6, %c0_7] : memref<64x192xf32, #tpu.memory_space<vmem>>, vector<64x192xf32>
    %c0_8 = arith.constant 0 : index
    %c0_9 = arith.constant 0 : index
    %5 = vector.load %arg6[%c0_8, %c0_9] : memref<1x192xf32, #tpu.memory_space<vmem>>, vector<1x192xf32>
    %c0_10 = arith.constant 0 : index
    %c0_11 = arith.constant 0 : index
    %6 = vector.load %arg7[%c0_10, %c0_11] : memref<1x96xf32, #tpu.memory_space<vmem>>, vector<1x96xf32>
    %c0_12 = arith.constant 0 : index
    %7 = memref.load %arg8[%c0_12] : memref<1xf32, #tpu.memory_space<smem>>
    %c0_i32 = arith.constant 0 : i32
    %8 = vector.broadcast %c0_i32 : i32 to vector<2x8xi32>
    %9 = arith.cmpi eq, %0, %8 : vector<2x8xi32>
    %10 = vector.shape_cast %9 : vector<2x8xi1> to vector<2x1x8xi1>
    %11 = tpu.iota {dimensions = array<i32: 2>} : vector<2x8x128xi32>
    %12 = vector.shape_cast %0 : vector<2x8xi32> to vector<2x8x1xi32>
    %13 = vector.broadcast %12 : vector<2x8x1xi32> to vector<2x8x128xi32>
    %14 = arith.cmpi eq, %13, %11 : vector<2x8x128xi32>
    %15 = arith.extui %14 : vector<2x8x128xi1> to vector<2x8x128xi32>
    %16 = arith.sitofp %15 : vector<2x8x128xi32> to vector<2x8x128xf32>
    %17 = tpu.iota {dimensions = array<i32: 1>} : vector<2x128xi32>
    %c0_13 = arith.constant 0 : index
    %c0_14 = arith.constant 0 : index
    %18 = vector.load %arg3[%c0_13, %c0_14] : memref<2x32xf32, #tpu.memory_space<vmem>>, vector<2x32xf32>
    %c0_15 = arith.constant 0 : index
    %c0_16 = arith.constant 0 : index
    %c0_17 = arith.constant 0 : index
    %19 = vector.load %arg1[%c0_15, %c0_16, %c0_17] : memref<3x2x32xf32, #tpu.memory_space<vmem>>, vector<1x2x32xf32>
    %20 = vector.shape_cast %19 : vector<1x2x32xf32> to vector<2x32xf32>
    %21 = tpu.concatenate %20, %18 in 1 : vector<2x32xf32>, vector<2x32xf32> -> vector<2x64xf32>
    %cst = arith.constant dense<0.000000e+00> : vector<2x192xf32>
    %22 = tpu.matmul %21, %4, %cst {dimension_numbers = #tpu.dot_dimension_numbers<[1], [0], [0], [1], [0, 0, 1, 1], [], []>} : vector<2x64xf32>, vector<64x192xf32>, vector<2x192xf32> -> vector<2x192xf32>
    %23 = vector.broadcast %5 : vector<1x192xf32> to vector<2x192xf32>
    %24 = arith.addf %22, %23 : vector<2x192xf32>
    %25 = vector.extract_strided_slice %24 {offsets = [0, 0], sizes = [2, 32], strides = [1, 1]} : vector<2x192xf32> to vector<2x32xf32>
    %26 = vector.extract_strided_slice %24 {offsets = [0, 96], sizes = [2, 32], strides = [1, 1]} : vector<2x192xf32> to vector<2x32xf32>
    %27 = arith.addf %25, %26 : vector<2x32xf32>
    %28 = arith.negf %27 : vector<2x32xf32>
    %29 = math.exp %28 : vector<2x32xf32>
    %cst_18 = arith.constant 1.000000e+00 : f32
    %30 = vector.broadcast %cst_18 : f32 to vector<2x32xf32>
    %31 = arith.addf %30, %29 : vector<2x32xf32>
    %32 = arith.divf %30, %31 : vector<2x32xf32>
    %33 = vector.extract_strided_slice %24 {offsets = [0, 32], sizes = [2, 32], strides = [1, 1]} : vector<2x192xf32> to vector<2x32xf32>
    %34 = vector.extract_strided_slice %24 {offsets = [0, 128], sizes = [2, 32], strides = [1, 1]} : vector<2x192xf32> to vector<2x32xf32>
    %35 = arith.addf %33, %34 : vector<2x32xf32>
    %36 = arith.negf %35 : vector<2x32xf32>
    %37 = math.exp %36 : vector<2x32xf32>
    %cst_19 = arith.constant 1.000000e+00 : f32
    %38 = vector.broadcast %cst_19 : f32 to vector<2x32xf32>
    %39 = arith.addf %38, %37 : vector<2x32xf32>
    %40 = arith.divf %38, %39 : vector<2x32xf32>
    %41 = vector.extract_strided_slice %24 {offsets = [0, 64], sizes = [2, 32], strides = [1, 1]} : vector<2x192xf32> to vector<2x32xf32>
    %42 = vector.extract_strided_slice %24 {offsets = [0, 160], sizes = [2, 32], strides = [1, 1]} : vector<2x192xf32> to vector<2x32xf32>
    %43 = arith.mulf %32, %42 : vector<2x32xf32>
    %44 = arith.addf %41, %43 : vector<2x32xf32>
    %45 = math.tanh %44 : vector<2x32xf32>
    %cst_20 = arith.constant 1.000000e+00 : f32
    %46 = vector.broadcast %cst_20 : f32 to vector<2x32xf32>
    %47 = arith.subf %46, %40 : vector<2x32xf32>
    %48 = arith.mulf %47, %45 : vector<2x32xf32>
    %49 = arith.mulf %40, %18 : vector<2x32xf32>
    %50 = arith.addf %48, %49 : vector<2x32xf32>
    %51 = vector.shape_cast %50 : vector<2x32xf32> to vector<2x1x32xf32>
    "tpu.trace_start"() <{level = 10 : i32, message = "bqh,bsh->bqs"}> : () -> ()
    %cst_21 = arith.constant dense<0.000000e+00> : vector<2x1x8xf32>
    %52 = tpu.matmul %51, %1, %cst_21 {dimension_numbers = #tpu.dot_dimension_numbers<[2], [2], [1], [1], [0, 0, 0, 1, 1, 1], [0], [0]>} : vector<2x1x32xf32>, vector<2x8x32xf32>, vector<2x1x8xf32> -> vector<2x1x8xf32>
    %cst_22 = arith.constant -1.000000e+09 : f32
    "tpu.trace_stop"() : () -> ()
    %53 = vector.broadcast %cst_22 : f32 to vector<2x1x8xf32>
    %54 = arith.select %10, %53, %52 : vector<2x1x8xi1>, vector<2x1x8xf32>
    %cst_23 = arith.constant dense<0xFF800000> : vector<2x1xf32>
    %55 = vector.multi_reduction <maximumf>, %54, %cst_23 [2] : vector<2x1x8xf32> to vector<2x1xf32>
    %cst_24 = arith.constant 0xFF800000 : f32
    %56 = vector.broadcast %cst_24 : f32 to vector<2x1xf32>
    %57 = arith.maximumf %56, %55 : vector<2x1xf32>
    %58 = vector.shape_cast %57 : vector<2x1xf32> to vector<2x1x1xf32>
    %59 = vector.broadcast %58 : vector<2x1x1xf32> to vector<2x1x8xf32>
    %60 = arith.subf %54, %59 : vector<2x1x8xf32>
    %61 = math.exp %60 : vector<2x1x8xf32>
    %cst_25 = arith.constant dense<0.000000e+00> : vector<2x1xf32>
    %62 = vector.multi_reduction <add>, %61, %cst_25 [2] : vector<2x1x8xf32> to vector<2x1xf32>
    %63 = vector.shape_cast %62 : vector<2x1xf32> to vector<2x1x1xf32>
    %64 = vector.broadcast %63 : vector<2x1x1xf32> to vector<2x1x8xf32>
    %65 = arith.divf %61, %64 : vector<2x1x8xf32>
    %cst_26 = arith.constant dense<0.000000e+00> : vector<2x128xf32>
    %66 = tpu.matmul %50, %3, %cst_26 {dimension_numbers = #tpu.dot_dimension_numbers<[1], [0], [0], [1], [0, 0, 1, 1], [], []>} : vector<2x32xf32>, vector<32x128xf32>, vector<2x128xf32> -> vector<2x128xf32>
    %cst_27 = arith.constant dense<0xFF800000> : vector<2xf32>
    %67 = vector.multi_reduction <maximumf>, %66, %cst_27 [1] : vector<2x128xf32> to vector<2xf32>
    %cst_28 = arith.constant 0xFF800000 : f32
    %68 = vector.broadcast %cst_28 : f32 to vector<2xf32>
    %69 = arith.maximumf %68, %67 : vector<2xf32>
    %70 = vector.shape_cast %69 : vector<2xf32> to vector<2x1xf32>
    %71 = vector.broadcast %70 : vector<2x1xf32> to vector<2x128xf32>
    %72 = arith.subf %66, %71 : vector<2x128xf32>
    %73 = math.exp %72 : vector<2x128xf32>
    %cst_29 = arith.constant dense<0.000000e+00> : vector<2xf32>
    %74 = vector.multi_reduction <add>, %73, %cst_29 [1] : vector<2x128xf32> to vector<2xf32>
    %75 = vector.shape_cast %74 : vector<2xf32> to vector<2x1xf32>
    %76 = vector.broadcast %75 : vector<2x1xf32> to vector<2x128xf32>
    %77 = arith.divf %73, %76 : vector<2x128xf32>
    "tpu.trace_start"() <{level = 10 : i32, message = "bqs,bsh->bqh"}> : () -> ()
    %cst_30 = arith.constant dense<0.000000e+00> : vector<2x1x32xf32>
    %78 = tpu.matmul %65, %1, %cst_30 {dimension_numbers = #tpu.dot_dimension_numbers<[2], [1], [1], [2], [0, 0, 0, 1, 1, 2], [0], [0]>} : vector<2x1x8xf32>, vector<2x8x32xf32>, vector<2x1x32xf32> -> vector<2x1x32xf32>
    "tpu.trace_stop"() : () -> ()
    %79 = vector.shape_cast %78 : vector<2x1x32xf32> to vector<2x32xf32>
    "tpu.trace_start"() <{level = 10 : i32, message = "bqs,bsv->bqv"}> : () -> ()
    %cst_31 = arith.constant dense<0.000000e+00> : vector<2x1x128xf32>
    %80 = tpu.matmul %65, %16, %cst_31 {dimension_numbers = #tpu.dot_dimension_numbers<[2], [1], [1], [2], [0, 0, 0, 1, 1, 2], [0], [0]>} : vector<2x1x8xf32>, vector<2x8x128xf32>, vector<2x1x128xf32> -> vector<2x1x128xf32>
    "tpu.trace_stop"() : () -> ()
    %81 = vector.shape_cast %80 : vector<2x1x128xf32> to vector<2x128xf32>
    %82 = vector.extract_strided_slice %6 {offsets = [0, 0], sizes = [1, 32], strides = [1, 1]} : vector<1x96xf32> to vector<1x32xf32>
    %83 = vector.broadcast %82 : vector<1x32xf32> to vector<2x32xf32>
    %84 = arith.mulf %20, %83 : vector<2x32xf32>
    %cst_32 = arith.constant dense<0.000000e+00> : vector<2xf32>
    %85 = vector.multi_reduction <add>, %84, %cst_32 [1] : vector<2x32xf32> to vector<2xf32>
    %86 = vector.shape_cast %85 : vector<2xf32> to vector<2x1xf32>
    %87 = vector.extract_strided_slice %6 {offsets = [0, 32], sizes = [1, 32], strides = [1, 1]} : vector<1x96xf32> to vector<1x32xf32>
    %88 = vector.broadcast %87 : vector<1x32xf32> to vector<2x32xf32>
    %89 = arith.mulf %50, %88 : vector<2x32xf32>
    %cst_33 = arith.constant dense<0.000000e+00> : vector<2xf32>
    %90 = vector.multi_reduction <add>, %89, %cst_33 [1] : vector<2x32xf32> to vector<2xf32>
    %91 = vector.shape_cast %90 : vector<2xf32> to vector<2x1xf32>
    %92 = arith.addf %86, %91 : vector<2x1xf32>
    %93 = vector.extract_strided_slice %6 {offsets = [0, 64], sizes = [1, 32], strides = [1, 1]} : vector<1x96xf32> to vector<1x32xf32>
    %94 = vector.broadcast %93 : vector<1x32xf32> to vector<2x32xf32>
    %95 = arith.mulf %79, %94 : vector<2x32xf32>
    %cst_34 = arith.constant dense<0.000000e+00> : vector<2xf32>
    %96 = vector.multi_reduction <add>, %95, %cst_34 [1] : vector<2x32xf32> to vector<2xf32>
    %97 = vector.shape_cast %96 : vector<2xf32> to vector<2x1xf32>
    %98 = arith.addf %92, %97 : vector<2x1xf32>
    %99 = vector.broadcast %7 : f32 to vector<2x1xf32>
    %100 = arith.addf %98, %99 : vector<2x1xf32>
    %101 = arith.negf %100 : vector<2x1xf32>
    %102 = math.exp %101 : vector<2x1xf32>
    %cst_35 = arith.constant 1.000000e+00 : f32
    %103 = vector.broadcast %cst_35 : f32 to vector<2x1xf32>
    %104 = arith.addf %103, %102 : vector<2x1xf32>
    %105 = arith.divf %103, %104 : vector<2x1xf32>
    %106 = vector.broadcast %105 : vector<2x1xf32> to vector<2x128xf32>
    %107 = arith.mulf %106, %77 : vector<2x128xf32>
    %cst_36 = arith.constant 1.000000e+00 : f32
    %108 = vector.broadcast %cst_36 : f32 to vector<2x1xf32>
    %109 = arith.subf %108, %105 : vector<2x1xf32>
    %110 = vector.broadcast %109 : vector<2x1xf32> to vector<2x128xf32>
    %111 = arith.mulf %110, %81 : vector<2x128xf32>
    %112 = arith.addf %107, %111 : vector<2x128xf32>
    %cst_37 = arith.constant dense<0xFF800000> : vector<2xf32>
    %113 = vector.multi_reduction <maximumf>, %112, %cst_37 [1] : vector<2x128xf32> to vector<2xf32>
    %114 = vector.shape_cast %113 : vector<2xf32> to vector<2x1xf32>
    %115 = vector.broadcast %114 : vector<2x1xf32> to vector<2x128xf32>
    %116 = arith.cmpf oge, %112, %115 : vector<2x128xf32>
    %c128_i32 = arith.constant 128 : i32
    %117 = vector.broadcast %c128_i32 : i32 to vector<2x128xi32>
    %118 = arith.select %116, %17, %117 : vector<2x128xi1>, vector<2x128xi32>
    %cst_38 = arith.constant dense<2147483647> : vector<2xi32>
    %119 = vector.multi_reduction <minsi>, %118, %cst_38 [1] : vector<2x128xi32> to vector<2xi32>
    %120 = vector.shape_cast %119 : vector<2xi32> to vector<2x1xi32>
    %121 = vector.broadcast %120 : vector<2x1xi32> to vector<2x128xi32>
    %122 = arith.cmpi eq, %17, %121 : vector<2x128xi32>
    %123 = arith.extui %122 : vector<2x128xi1> to vector<2x128xi32>
    %124 = arith.sitofp %123 : vector<2x128xi32> to vector<2x128xf32>
    %cst_39 = arith.constant dense<0.000000e+00> : vector<2x32xf32>
    %125 = tpu.matmul %124, %2, %cst_39 {dimension_numbers = #tpu.dot_dimension_numbers<[1], [0], [0], [1], [0, 0, 1, 1], [], []>} : vector<2x128xf32>, vector<128x32xf32>, vector<2x32xf32> -> vector<2x32xf32>
    %126 = tpu.concatenate %125, %50 in 1 : vector<2x32xf32>, vector<2x32xf32> -> vector<2x64xf32>
    %cst_40 = arith.constant dense<0.000000e+00> : vector<2x192xf32>
    %127 = tpu.matmul %126, %4, %cst_40 {dimension_numbers = #tpu.dot_dimension_numbers<[1], [0], [0], [1], [0, 0, 1, 1], [], []>} : vector<2x64xf32>, vector<64x192xf32>, vector<2x192xf32> -> vector<2x192xf32>
    %128 = vector.broadcast %5 : vector<1x192xf32> to vector<2x192xf32>
    %129 = arith.addf %127, %128 : vector<2x192xf32>
    %130 = vector.extract_strided_slice %129 {offsets = [0, 0], sizes = [2, 32], strides = [1, 1]} : vector<2x192xf32> to vector<2x32xf32>
    %131 = vector.extract_strided_slice %129 {offsets = [0, 96], sizes = [2, 32], strides = [1, 1]} : vector<2x192xf32> to vector<2x32xf32>
    %132 = arith.addf %130, %131 : vector<2x32xf32>
    %133 = arith.negf %132 : vector<2x32xf32>
    %134 = math.exp %133 : vector<2x32xf32>
    %cst_41 = arith.constant 1.000000e+00 : f32
    %135 = vector.broadcast %cst_41 : f32 to vector<2x32xf32>
    %136 = arith.addf %135, %134 : vector<2x32xf32>
    %137 = arith.divf %135, %136 : vector<2x32xf32>
    %138 = vector.extract_strided_slice %129 {offsets = [0, 32], sizes = [2, 32], strides = [1, 1]} : vector<2x192xf32> to vector<2x32xf32>
    %139 = vector.extract_strided_slice %129 {offsets = [0, 128], sizes = [2, 32], strides = [1, 1]} : vector<2x192xf32> to vector<2x32xf32>
    %140 = arith.addf %138, %139 : vector<2x32xf32>
    %141 = arith.negf %140 : vector<2x32xf32>
    %142 = math.exp %141 : vector<2x32xf32>
    %cst_42 = arith.constant 1.000000e+00 : f32
    %143 = vector.broadcast %cst_42 : f32 to vector<2x32xf32>
    %144 = arith.addf %143, %142 : vector<2x32xf32>
    %145 = arith.divf %143, %144 : vector<2x32xf32>
    %146 = vector.extract_strided_slice %129 {offsets = [0, 64], sizes = [2, 32], strides = [1, 1]} : vector<2x192xf32> to vector<2x32xf32>
    %147 = vector.extract_strided_slice %129 {offsets = [0, 160], sizes = [2, 32], strides = [1, 1]} : vector<2x192xf32> to vector<2x32xf32>
    %148 = arith.mulf %137, %147 : vector<2x32xf32>
    %149 = arith.addf %146, %148 : vector<2x32xf32>
    %150 = math.tanh %149 : vector<2x32xf32>
    %cst_43 = arith.constant 1.000000e+00 : f32
    %151 = vector.broadcast %cst_43 : f32 to vector<2x32xf32>
    %152 = arith.subf %151, %145 : vector<2x32xf32>
    %153 = arith.mulf %152, %150 : vector<2x32xf32>
    %154 = arith.mulf %145, %50 : vector<2x32xf32>
    %155 = arith.addf %153, %154 : vector<2x32xf32>
    %156 = vector.shape_cast %155 : vector<2x32xf32> to vector<2x1x32xf32>
    "tpu.trace_start"() <{level = 10 : i32, message = "bqh,bsh->bqs"}> : () -> ()
    %cst_44 = arith.constant dense<0.000000e+00> : vector<2x1x8xf32>
    %157 = tpu.matmul %156, %1, %cst_44 {dimension_numbers = #tpu.dot_dimension_numbers<[2], [2], [1], [1], [0, 0, 0, 1, 1, 1], [0], [0]>} : vector<2x1x32xf32>, vector<2x8x32xf32>, vector<2x1x8xf32> -> vector<2x1x8xf32>
    %cst_45 = arith.constant -1.000000e+09 : f32
    "tpu.trace_stop"() : () -> ()
    %158 = vector.broadcast %cst_45 : f32 to vector<2x1x8xf32>
    %159 = arith.select %10, %158, %157 : vector<2x1x8xi1>, vector<2x1x8xf32>
    %cst_46 = arith.constant dense<0xFF800000> : vector<2x1xf32>
    %160 = vector.multi_reduction <maximumf>, %159, %cst_46 [2] : vector<2x1x8xf32> to vector<2x1xf32>
    %cst_47 = arith.constant 0xFF800000 : f32
    %161 = vector.broadcast %cst_47 : f32 to vector<2x1xf32>
    %162 = arith.maximumf %161, %160 : vector<2x1xf32>
    %163 = vector.shape_cast %162 : vector<2x1xf32> to vector<2x1x1xf32>
    %164 = vector.broadcast %163 : vector<2x1x1xf32> to vector<2x1x8xf32>
    %165 = arith.subf %159, %164 : vector<2x1x8xf32>
    %166 = math.exp %165 : vector<2x1x8xf32>
    %cst_48 = arith.constant dense<0.000000e+00> : vector<2x1xf32>
    %167 = vector.multi_reduction <add>, %166, %cst_48 [2] : vector<2x1x8xf32> to vector<2x1xf32>
    %168 = vector.shape_cast %167 : vector<2x1xf32> to vector<2x1x1xf32>
    %169 = vector.broadcast %168 : vector<2x1x1xf32> to vector<2x1x8xf32>
    %170 = arith.divf %166, %169 : vector<2x1x8xf32>
    %cst_49 = arith.constant dense<0.000000e+00> : vector<2x128xf32>
    %171 = tpu.matmul %155, %3, %cst_49 {dimension_numbers = #tpu.dot_dimension_numbers<[1], [0], [0], [1], [0, 0, 1, 1], [], []>} : vector<2x32xf32>, vector<32x128xf32>, vector<2x128xf32> -> vector<2x128xf32>
    %cst_50 = arith.constant dense<0xFF800000> : vector<2xf32>
    %172 = vector.multi_reduction <maximumf>, %171, %cst_50 [1] : vector<2x128xf32> to vector<2xf32>
    %cst_51 = arith.constant 0xFF800000 : f32
    %173 = vector.broadcast %cst_51 : f32 to vector<2xf32>
    %174 = arith.maximumf %173, %172 : vector<2xf32>
    %175 = vector.shape_cast %174 : vector<2xf32> to vector<2x1xf32>
    %176 = vector.broadcast %175 : vector<2x1xf32> to vector<2x128xf32>
    %177 = arith.subf %171, %176 : vector<2x128xf32>
    %178 = math.exp %177 : vector<2x128xf32>
    %cst_52 = arith.constant dense<0.000000e+00> : vector<2xf32>
    %179 = vector.multi_reduction <add>, %178, %cst_52 [1] : vector<2x128xf32> to vector<2xf32>
    %180 = vector.shape_cast %179 : vector<2xf32> to vector<2x1xf32>
    %181 = vector.broadcast %180 : vector<2x1xf32> to vector<2x128xf32>
    %182 = arith.divf %178, %181 : vector<2x128xf32>
    "tpu.trace_start"() <{level = 10 : i32, message = "bqs,bsh->bqh"}> : () -> ()
    %cst_53 = arith.constant dense<0.000000e+00> : vector<2x1x32xf32>
    %183 = tpu.matmul %170, %1, %cst_53 {dimension_numbers = #tpu.dot_dimension_numbers<[2], [1], [1], [2], [0, 0, 0, 1, 1, 2], [0], [0]>} : vector<2x1x8xf32>, vector<2x8x32xf32>, vector<2x1x32xf32> -> vector<2x1x32xf32>
    "tpu.trace_stop"() : () -> ()
    %184 = vector.shape_cast %183 : vector<2x1x32xf32> to vector<2x32xf32>
    "tpu.trace_start"() <{level = 10 : i32, message = "bqs,bsv->bqv"}> : () -> ()
    %cst_54 = arith.constant dense<0.000000e+00> : vector<2x1x128xf32>
    %185 = tpu.matmul %170, %16, %cst_54 {dimension_numbers = #tpu.dot_dimension_numbers<[2], [1], [1], [2], [0, 0, 0, 1, 1, 2], [0], [0]>} : vector<2x1x8xf32>, vector<2x8x128xf32>, vector<2x1x128xf32> -> vector<2x1x128xf32>
    "tpu.trace_stop"() : () -> ()
    %186 = vector.shape_cast %185 : vector<2x1x128xf32> to vector<2x128xf32>
    %187 = vector.extract_strided_slice %6 {offsets = [0, 0], sizes = [1, 32], strides = [1, 1]} : vector<1x96xf32> to vector<1x32xf32>
    %188 = vector.broadcast %187 : vector<1x32xf32> to vector<2x32xf32>
    %189 = arith.mulf %125, %188 : vector<2x32xf32>
    %cst_55 = arith.constant dense<0.000000e+00> : vector<2xf32>
    %190 = vector.multi_reduction <add>, %189, %cst_55 [1] : vector<2x32xf32> to vector<2xf32>
    %191 = vector.shape_cast %190 : vector<2xf32> to vector<2x1xf32>
    %192 = vector.extract_strided_slice %6 {offsets = [0, 32], sizes = [1, 32], strides = [1, 1]} : vector<1x96xf32> to vector<1x32xf32>
    %193 = vector.broadcast %192 : vector<1x32xf32> to vector<2x32xf32>
    %194 = arith.mulf %155, %193 : vector<2x32xf32>
    %cst_56 = arith.constant dense<0.000000e+00> : vector<2xf32>
    %195 = vector.multi_reduction <add>, %194, %cst_56 [1] : vector<2x32xf32> to vector<2xf32>
    %196 = vector.shape_cast %195 : vector<2xf32> to vector<2x1xf32>
    %197 = arith.addf %191, %196 : vector<2x1xf32>
    %198 = vector.extract_strided_slice %6 {offsets = [0, 64], sizes = [1, 32], strides = [1, 1]} : vector<1x96xf32> to vector<1x32xf32>
    %199 = vector.broadcast %198 : vector<1x32xf32> to vector<2x32xf32>
    %200 = arith.mulf %184, %199 : vector<2x32xf32>
    %cst_57 = arith.constant dense<0.000000e+00> : vector<2xf32>
    %201 = vector.multi_reduction <add>, %200, %cst_57 [1] : vector<2x32xf32> to vector<2xf32>
    %202 = vector.shape_cast %201 : vector<2xf32> to vector<2x1xf32>
    %203 = arith.addf %197, %202 : vector<2x1xf32>
    %204 = vector.broadcast %7 : f32 to vector<2x1xf32>
    %205 = arith.addf %203, %204 : vector<2x1xf32>
    %206 = arith.negf %205 : vector<2x1xf32>
    %207 = math.exp %206 : vector<2x1xf32>
    %cst_58 = arith.constant 1.000000e+00 : f32
    %208 = vector.broadcast %cst_58 : f32 to vector<2x1xf32>
    %209 = arith.addf %208, %207 : vector<2x1xf32>
    %210 = arith.divf %208, %209 : vector<2x1xf32>
    %211 = vector.broadcast %210 : vector<2x1xf32> to vector<2x128xf32>
    %212 = arith.mulf %211, %182 : vector<2x128xf32>
    %cst_59 = arith.constant 1.000000e+00 : f32
    %213 = vector.broadcast %cst_59 : f32 to vector<2x1xf32>
    %214 = arith.subf %213, %210 : vector<2x1xf32>
    %215 = vector.broadcast %214 : vector<2x1xf32> to vector<2x128xf32>
    %216 = arith.mulf %215, %186 : vector<2x128xf32>
    %217 = arith.addf %212, %216 : vector<2x128xf32>
    %cst_60 = arith.constant dense<0xFF800000> : vector<2xf32>
    %218 = vector.multi_reduction <maximumf>, %217, %cst_60 [1] : vector<2x128xf32> to vector<2xf32>
    %219 = vector.shape_cast %218 : vector<2xf32> to vector<2x1xf32>
    %220 = vector.broadcast %219 : vector<2x1xf32> to vector<2x128xf32>
    %221 = arith.cmpf oge, %217, %220 : vector<2x128xf32>
    %c128_i32_61 = arith.constant 128 : i32
    %222 = vector.broadcast %c128_i32_61 : i32 to vector<2x128xi32>
    %223 = arith.select %221, %17, %222 : vector<2x128xi1>, vector<2x128xi32>
    %cst_62 = arith.constant dense<2147483647> : vector<2xi32>
    %224 = vector.multi_reduction <minsi>, %223, %cst_62 [1] : vector<2x128xi32> to vector<2xi32>
    %225 = vector.shape_cast %224 : vector<2xi32> to vector<2x1xi32>
    %226 = vector.broadcast %225 : vector<2x1xi32> to vector<2x128xi32>
    %227 = arith.cmpi eq, %17, %226 : vector<2x128xi32>
    %228 = arith.extui %227 : vector<2x128xi1> to vector<2x128xi32>
    %229 = arith.sitofp %228 : vector<2x128xi32> to vector<2x128xf32>
    %cst_63 = arith.constant dense<0.000000e+00> : vector<2x32xf32>
    %230 = tpu.matmul %229, %2, %cst_63 {dimension_numbers = #tpu.dot_dimension_numbers<[1], [0], [0], [1], [0, 0, 1, 1], [], []>} : vector<2x128xf32>, vector<128x32xf32>, vector<2x32xf32> -> vector<2x32xf32>
    %231 = tpu.concatenate %230, %155 in 1 : vector<2x32xf32>, vector<2x32xf32> -> vector<2x64xf32>
    %cst_64 = arith.constant dense<0.000000e+00> : vector<2x192xf32>
    %232 = tpu.matmul %231, %4, %cst_64 {dimension_numbers = #tpu.dot_dimension_numbers<[1], [0], [0], [1], [0, 0, 1, 1], [], []>} : vector<2x64xf32>, vector<64x192xf32>, vector<2x192xf32> -> vector<2x192xf32>
    %233 = vector.broadcast %5 : vector<1x192xf32> to vector<2x192xf32>
    %234 = arith.addf %232, %233 : vector<2x192xf32>
    %235 = vector.extract_strided_slice %234 {offsets = [0, 0], sizes = [2, 32], strides = [1, 1]} : vector<2x192xf32> to vector<2x32xf32>
    %236 = vector.extract_strided_slice %234 {offsets = [0, 96], sizes = [2, 32], strides = [1, 1]} : vector<2x192xf32> to vector<2x32xf32>
    %237 = arith.addf %235, %236 : vector<2x32xf32>
    %238 = arith.negf %237 : vector<2x32xf32>
    %239 = math.exp %238 : vector<2x32xf32>
    %cst_65 = arith.constant 1.000000e+00 : f32
    %240 = vector.broadcast %cst_65 : f32 to vector<2x32xf32>
    %241 = arith.addf %240, %239 : vector<2x32xf32>
    %242 = arith.divf %240, %241 : vector<2x32xf32>
    %243 = vector.extract_strided_slice %234 {offsets = [0, 32], sizes = [2, 32], strides = [1, 1]} : vector<2x192xf32> to vector<2x32xf32>
    %244 = vector.extract_strided_slice %234 {offsets = [0, 128], sizes = [2, 32], strides = [1, 1]} : vector<2x192xf32> to vector<2x32xf32>
    %245 = arith.addf %243, %244 : vector<2x32xf32>
    %246 = arith.negf %245 : vector<2x32xf32>
    %247 = math.exp %246 : vector<2x32xf32>
    %cst_66 = arith.constant 1.000000e+00 : f32
    %248 = vector.broadcast %cst_66 : f32 to vector<2x32xf32>
    %249 = arith.addf %248, %247 : vector<2x32xf32>
    %250 = arith.divf %248, %249 : vector<2x32xf32>
    %251 = vector.extract_strided_slice %234 {offsets = [0, 64], sizes = [2, 32], strides = [1, 1]} : vector<2x192xf32> to vector<2x32xf32>
    %252 = vector.extract_strided_slice %234 {offsets = [0, 160], sizes = [2, 32], strides = [1, 1]} : vector<2x192xf32> to vector<2x32xf32>
    %253 = arith.mulf %242, %252 : vector<2x32xf32>
    %254 = arith.addf %251, %253 : vector<2x32xf32>
    %255 = math.tanh %254 : vector<2x32xf32>
    %cst_67 = arith.constant 1.000000e+00 : f32
    %256 = vector.broadcast %cst_67 : f32 to vector<2x32xf32>
    %257 = arith.subf %256, %250 : vector<2x32xf32>
    %258 = arith.mulf %257, %255 : vector<2x32xf32>
    %259 = arith.mulf %250, %155 : vector<2x32xf32>
    %260 = arith.addf %258, %259 : vector<2x32xf32>
    %261 = vector.shape_cast %260 : vector<2x32xf32> to vector<2x1x32xf32>
    "tpu.trace_start"() <{level = 10 : i32, message = "bqh,bsh->bqs"}> : () -> ()
    %cst_68 = arith.constant dense<0.000000e+00> : vector<2x1x8xf32>
    %262 = tpu.matmul %261, %1, %cst_68 {dimension_numbers = #tpu.dot_dimension_numbers<[2], [2], [1], [1], [0, 0, 0, 1, 1, 1], [0], [0]>} : vector<2x1x32xf32>, vector<2x8x32xf32>, vector<2x1x8xf32> -> vector<2x1x8xf32>
    %cst_69 = arith.constant -1.000000e+09 : f32
    "tpu.trace_stop"() : () -> ()
    %263 = vector.broadcast %cst_69 : f32 to vector<2x1x8xf32>
    %264 = arith.select %10, %263, %262 : vector<2x1x8xi1>, vector<2x1x8xf32>
    %cst_70 = arith.constant dense<0xFF800000> : vector<2x1xf32>
    %265 = vector.multi_reduction <maximumf>, %264, %cst_70 [2] : vector<2x1x8xf32> to vector<2x1xf32>
    %cst_71 = arith.constant 0xFF800000 : f32
    %266 = vector.broadcast %cst_71 : f32 to vector<2x1xf32>
    %267 = arith.maximumf %266, %265 : vector<2x1xf32>
    %268 = vector.shape_cast %267 : vector<2x1xf32> to vector<2x1x1xf32>
    %269 = vector.broadcast %268 : vector<2x1x1xf32> to vector<2x1x8xf32>
    %270 = arith.subf %264, %269 : vector<2x1x8xf32>
    %271 = math.exp %270 : vector<2x1x8xf32>
    %cst_72 = arith.constant dense<0.000000e+00> : vector<2x1xf32>
    %272 = vector.multi_reduction <add>, %271, %cst_72 [2] : vector<2x1x8xf32> to vector<2x1xf32>
    %273 = vector.shape_cast %272 : vector<2x1xf32> to vector<2x1x1xf32>
    %274 = vector.broadcast %273 : vector<2x1x1xf32> to vector<2x1x8xf32>
    %275 = arith.divf %271, %274 : vector<2x1x8xf32>
    %cst_73 = arith.constant dense<0.000000e+00> : vector<2x128xf32>
    %276 = tpu.matmul %260, %3, %cst_73 {dimension_numbers = #tpu.dot_dimension_numbers<[1], [0], [0], [1], [0, 0, 1, 1], [], []>} : vector<2x32xf32>, vector<32x128xf32>, vector<2x128xf32> -> vector<2x128xf32>
    %cst_74 = arith.constant dense<0xFF800000> : vector<2xf32>
    %277 = vector.multi_reduction <maximumf>, %276, %cst_74 [1] : vector<2x128xf32> to vector<2xf32>
    %cst_75 = arith.constant 0xFF800000 : f32
    %278 = vector.broadcast %cst_75 : f32 to vector<2xf32>
    %279 = arith.maximumf %278, %277 : vector<2xf32>
    %280 = vector.shape_cast %279 : vector<2xf32> to vector<2x1xf32>
    %281 = vector.broadcast %280 : vector<2x1xf32> to vector<2x128xf32>
    %282 = arith.subf %276, %281 : vector<2x128xf32>
    %283 = math.exp %282 : vector<2x128xf32>
    %cst_76 = arith.constant dense<0.000000e+00> : vector<2xf32>
    %284 = vector.multi_reduction <add>, %283, %cst_76 [1] : vector<2x128xf32> to vector<2xf32>
    %285 = vector.shape_cast %284 : vector<2xf32> to vector<2x1xf32>
    %286 = vector.broadcast %285 : vector<2x1xf32> to vector<2x128xf32>
    %287 = arith.divf %283, %286 : vector<2x128xf32>
    "tpu.trace_start"() <{level = 10 : i32, message = "bqs,bsh->bqh"}> : () -> ()
    %cst_77 = arith.constant dense<0.000000e+00> : vector<2x1x32xf32>
    %288 = tpu.matmul %275, %1, %cst_77 {dimension_numbers = #tpu.dot_dimension_numbers<[2], [1], [1], [2], [0, 0, 0, 1, 1, 2], [0], [0]>} : vector<2x1x8xf32>, vector<2x8x32xf32>, vector<2x1x32xf32> -> vector<2x1x32xf32>
    "tpu.trace_stop"() : () -> ()
    %289 = vector.shape_cast %288 : vector<2x1x32xf32> to vector<2x32xf32>
    "tpu.trace_start"() <{level = 10 : i32, message = "bqs,bsv->bqv"}> : () -> ()
    %cst_78 = arith.constant dense<0.000000e+00> : vector<2x1x128xf32>
    %290 = tpu.matmul %275, %16, %cst_78 {dimension_numbers = #tpu.dot_dimension_numbers<[2], [1], [1], [2], [0, 0, 0, 1, 1, 2], [0], [0]>} : vector<2x1x8xf32>, vector<2x8x128xf32>, vector<2x1x128xf32> -> vector<2x1x128xf32>
    "tpu.trace_stop"() : () -> ()
    %291 = vector.shape_cast %290 : vector<2x1x128xf32> to vector<2x128xf32>
    %292 = vector.extract_strided_slice %6 {offsets = [0, 0], sizes = [1, 32], strides = [1, 1]} : vector<1x96xf32> to vector<1x32xf32>
    %293 = vector.broadcast %292 : vector<1x32xf32> to vector<2x32xf32>
    %294 = arith.mulf %230, %293 : vector<2x32xf32>
    %cst_79 = arith.constant dense<0.000000e+00> : vector<2xf32>
    %295 = vector.multi_reduction <add>, %294, %cst_79 [1] : vector<2x32xf32> to vector<2xf32>
    %296 = vector.shape_cast %295 : vector<2xf32> to vector<2x1xf32>
    %297 = vector.extract_strided_slice %6 {offsets = [0, 32], sizes = [1, 32], strides = [1, 1]} : vector<1x96xf32> to vector<1x32xf32>
    %298 = vector.broadcast %297 : vector<1x32xf32> to vector<2x32xf32>
    %299 = arith.mulf %260, %298 : vector<2x32xf32>
    %cst_80 = arith.constant dense<0.000000e+00> : vector<2xf32>
    %300 = vector.multi_reduction <add>, %299, %cst_80 [1] : vector<2x32xf32> to vector<2xf32>
    %301 = vector.shape_cast %300 : vector<2xf32> to vector<2x1xf32>
    %302 = arith.addf %296, %301 : vector<2x1xf32>
    %303 = vector.extract_strided_slice %6 {offsets = [0, 64], sizes = [1, 32], strides = [1, 1]} : vector<1x96xf32> to vector<1x32xf32>
    %304 = vector.broadcast %303 : vector<1x32xf32> to vector<2x32xf32>
    %305 = arith.mulf %289, %304 : vector<2x32xf32>
    %cst_81 = arith.constant dense<0.000000e+00> : vector<2xf32>
    %306 = vector.multi_reduction <add>, %305, %cst_81 [1] : vector<2x32xf32> to vector<2xf32>
    %307 = vector.shape_cast %306 : vector<2xf32> to vector<2x1xf32>
    %308 = arith.addf %302, %307 : vector<2x1xf32>
    %309 = vector.broadcast %7 : f32 to vector<2x1xf32>
    %310 = arith.addf %308, %309 : vector<2x1xf32>
    %311 = arith.negf %310 : vector<2x1xf32>
    %312 = math.exp %311 : vector<2x1xf32>
    %cst_82 = arith.constant 1.000000e+00 : f32
    %313 = vector.broadcast %cst_82 : f32 to vector<2x1xf32>
    %314 = arith.addf %313, %312 : vector<2x1xf32>
    %315 = arith.divf %313, %314 : vector<2x1xf32>
    %316 = vector.broadcast %315 : vector<2x1xf32> to vector<2x128xf32>
    %317 = arith.mulf %316, %287 : vector<2x128xf32>
    %cst_83 = arith.constant 1.000000e+00 : f32
    %318 = vector.broadcast %cst_83 : f32 to vector<2x1xf32>
    %319 = arith.subf %318, %315 : vector<2x1xf32>
    %320 = vector.broadcast %319 : vector<2x1xf32> to vector<2x128xf32>
    %321 = arith.mulf %320, %291 : vector<2x128xf32>
    %322 = arith.addf %317, %321 : vector<2x128xf32>
    %cst_84 = arith.constant dense<0xFF800000> : vector<2xf32>
    %323 = vector.multi_reduction <maximumf>, %322, %cst_84 [1] : vector<2x128xf32> to vector<2xf32>
    %324 = vector.shape_cast %323 : vector<2xf32> to vector<2x1xf32>
    %325 = vector.broadcast %324 : vector<2x1xf32> to vector<2x128xf32>
    %326 = arith.cmpf oge, %322, %325 : vector<2x128xf32>
    %c128_i32_85 = arith.constant 128 : i32
    %327 = vector.broadcast %c128_i32_85 : i32 to vector<2x128xi32>
    %328 = arith.select %326, %17, %327 : vector<2x128xi1>, vector<2x128xi32>
    %cst_86 = arith.constant dense<2147483647> : vector<2xi32>
    %329 = vector.multi_reduction <minsi>, %328, %cst_86 [1] : vector<2x128xi32> to vector<2xi32>
    %330 = vector.shape_cast %329 : vector<2xi32> to vector<2x1xi32>
    %331 = vector.broadcast %330 : vector<2x1xi32> to vector<2x128xi32>
    %332 = arith.cmpi eq, %17, %331 : vector<2x128xi32>
    %333 = arith.extui %332 : vector<2x128xi1> to vector<2x128xi32>
    %334 = arith.sitofp %333 : vector<2x128xi32> to vector<2x128xf32>
    %cst_87 = arith.constant dense<0.000000e+00> : vector<2x32xf32>
    %335 = tpu.matmul %334, %2, %cst_87 {dimension_numbers = #tpu.dot_dimension_numbers<[1], [0], [0], [1], [0, 0, 1, 1], [], []>} : vector<2x128xf32>, vector<128x32xf32>, vector<2x32xf32> -> vector<2x32xf32>
    %336 = tpu.concatenate %335, %260 in 1 : vector<2x32xf32>, vector<2x32xf32> -> vector<2x64xf32>
    %cst_88 = arith.constant dense<0.000000e+00> : vector<2x192xf32>
    %337 = tpu.matmul %336, %4, %cst_88 {dimension_numbers = #tpu.dot_dimension_numbers<[1], [0], [0], [1], [0, 0, 1, 1], [], []>} : vector<2x64xf32>, vector<64x192xf32>, vector<2x192xf32> -> vector<2x192xf32>
    %338 = vector.broadcast %5 : vector<1x192xf32> to vector<2x192xf32>
    %339 = arith.addf %337, %338 : vector<2x192xf32>
    %340 = vector.extract_strided_slice %339 {offsets = [0, 0], sizes = [2, 32], strides = [1, 1]} : vector<2x192xf32> to vector<2x32xf32>
    %341 = vector.extract_strided_slice %339 {offsets = [0, 96], sizes = [2, 32], strides = [1, 1]} : vector<2x192xf32> to vector<2x32xf32>
    %342 = arith.addf %340, %341 : vector<2x32xf32>
    %343 = arith.negf %342 : vector<2x32xf32>
    %344 = math.exp %343 : vector<2x32xf32>
    %cst_89 = arith.constant 1.000000e+00 : f32
    %345 = vector.broadcast %cst_89 : f32 to vector<2x32xf32>
    %346 = arith.addf %345, %344 : vector<2x32xf32>
    %347 = arith.divf %345, %346 : vector<2x32xf32>
    %348 = vector.extract_strided_slice %339 {offsets = [0, 32], sizes = [2, 32], strides = [1, 1]} : vector<2x192xf32> to vector<2x32xf32>
    %349 = vector.extract_strided_slice %339 {offsets = [0, 128], sizes = [2, 32], strides = [1, 1]} : vector<2x192xf32> to vector<2x32xf32>
    %350 = arith.addf %348, %349 : vector<2x32xf32>
    %351 = arith.negf %350 : vector<2x32xf32>
    %352 = math.exp %351 : vector<2x32xf32>
    %cst_90 = arith.constant 1.000000e+00 : f32
    %353 = vector.broadcast %cst_90 : f32 to vector<2x32xf32>
    %354 = arith.addf %353, %352 : vector<2x32xf32>
    %355 = arith.divf %353, %354 : vector<2x32xf32>
    %356 = vector.extract_strided_slice %339 {offsets = [0, 64], sizes = [2, 32], strides = [1, 1]} : vector<2x192xf32> to vector<2x32xf32>
    %357 = vector.extract_strided_slice %339 {offsets = [0, 160], sizes = [2, 32], strides = [1, 1]} : vector<2x192xf32> to vector<2x32xf32>
    %358 = arith.mulf %347, %357 : vector<2x32xf32>
    %359 = arith.addf %356, %358 : vector<2x32xf32>
    %360 = math.tanh %359 : vector<2x32xf32>
    %cst_91 = arith.constant 1.000000e+00 : f32
    %361 = vector.broadcast %cst_91 : f32 to vector<2x32xf32>
    %362 = arith.subf %361, %355 : vector<2x32xf32>
    %363 = arith.mulf %362, %360 : vector<2x32xf32>
    %364 = arith.mulf %355, %260 : vector<2x32xf32>
    %365 = arith.addf %363, %364 : vector<2x32xf32>
    %366 = vector.shape_cast %365 : vector<2x32xf32> to vector<2x1x32xf32>
    "tpu.trace_start"() <{level = 10 : i32, message = "bqh,bsh->bqs"}> : () -> ()
    %cst_92 = arith.constant dense<0.000000e+00> : vector<2x1x8xf32>
    %367 = tpu.matmul %366, %1, %cst_92 {dimension_numbers = #tpu.dot_dimension_numbers<[2], [2], [1], [1], [0, 0, 0, 1, 1, 1], [0], [0]>} : vector<2x1x32xf32>, vector<2x8x32xf32>, vector<2x1x8xf32> -> vector<2x1x8xf32>
    %cst_93 = arith.constant -1.000000e+09 : f32
    "tpu.trace_stop"() : () -> ()
    %368 = vector.broadcast %cst_93 : f32 to vector<2x1x8xf32>
    %369 = arith.select %10, %368, %367 : vector<2x1x8xi1>, vector<2x1x8xf32>
    %cst_94 = arith.constant dense<0xFF800000> : vector<2x1xf32>
    %370 = vector.multi_reduction <maximumf>, %369, %cst_94 [2] : vector<2x1x8xf32> to vector<2x1xf32>
    %cst_95 = arith.constant 0xFF800000 : f32
    %371 = vector.broadcast %cst_95 : f32 to vector<2x1xf32>
    %372 = arith.maximumf %371, %370 : vector<2x1xf32>
    %373 = vector.shape_cast %372 : vector<2x1xf32> to vector<2x1x1xf32>
    %374 = vector.broadcast %373 : vector<2x1x1xf32> to vector<2x1x8xf32>
    %375 = arith.subf %369, %374 : vector<2x1x8xf32>
    %376 = math.exp %375 : vector<2x1x8xf32>
    %cst_96 = arith.constant dense<0.000000e+00> : vector<2x1xf32>
    %377 = vector.multi_reduction <add>, %376, %cst_96 [2] : vector<2x1x8xf32> to vector<2x1xf32>
    %378 = vector.shape_cast %377 : vector<2x1xf32> to vector<2x1x1xf32>
    %379 = vector.broadcast %378 : vector<2x1x1xf32> to vector<2x1x8xf32>
    %380 = arith.divf %376, %379 : vector<2x1x8xf32>
    %cst_97 = arith.constant dense<0.000000e+00> : vector<2x128xf32>
    %381 = tpu.matmul %365, %3, %cst_97 {dimension_numbers = #tpu.dot_dimension_numbers<[1], [0], [0], [1], [0, 0, 1, 1], [], []>} : vector<2x32xf32>, vector<32x128xf32>, vector<2x128xf32> -> vector<2x128xf32>
    %cst_98 = arith.constant dense<0xFF800000> : vector<2xf32>
    %382 = vector.multi_reduction <maximumf>, %381, %cst_98 [1] : vector<2x128xf32> to vector<2xf32>
    %cst_99 = arith.constant 0xFF800000 : f32
    %383 = vector.broadcast %cst_99 : f32 to vector<2xf32>
    %384 = arith.maximumf %383, %382 : vector<2xf32>
    %385 = vector.shape_cast %384 : vector<2xf32> to vector<2x1xf32>
    %386 = vector.broadcast %385 : vector<2x1xf32> to vector<2x128xf32>
    %387 = arith.subf %381, %386 : vector<2x128xf32>
    %388 = math.exp %387 : vector<2x128xf32>
    %cst_100 = arith.constant dense<0.000000e+00> : vector<2xf32>
    %389 = vector.multi_reduction <add>, %388, %cst_100 [1] : vector<2x128xf32> to vector<2xf32>
    %390 = vector.shape_cast %389 : vector<2xf32> to vector<2x1xf32>
    %391 = vector.broadcast %390 : vector<2x1xf32> to vector<2x128xf32>
    %392 = arith.divf %388, %391 : vector<2x128xf32>
    "tpu.trace_start"() <{level = 10 : i32, message = "bqs,bsh->bqh"}> : () -> ()
    %cst_101 = arith.constant dense<0.000000e+00> : vector<2x1x32xf32>
    %393 = tpu.matmul %380, %1, %cst_101 {dimension_numbers = #tpu.dot_dimension_numbers<[2], [1], [1], [2], [0, 0, 0, 1, 1, 2], [0], [0]>} : vector<2x1x8xf32>, vector<2x8x32xf32>, vector<2x1x32xf32> -> vector<2x1x32xf32>
    "tpu.trace_stop"() : () -> ()
    %394 = vector.shape_cast %393 : vector<2x1x32xf32> to vector<2x32xf32>
    "tpu.trace_start"() <{level = 10 : i32, message = "bqs,bsv->bqv"}> : () -> ()
    %cst_102 = arith.constant dense<0.000000e+00> : vector<2x1x128xf32>
    %395 = tpu.matmul %380, %16, %cst_102 {dimension_numbers = #tpu.dot_dimension_numbers<[2], [1], [1], [2], [0, 0, 0, 1, 1, 2], [0], [0]>} : vector<2x1x8xf32>, vector<2x8x128xf32>, vector<2x1x128xf32> -> vector<2x1x128xf32>
    "tpu.trace_stop"() : () -> ()
    %396 = vector.shape_cast %395 : vector<2x1x128xf32> to vector<2x128xf32>
    %397 = vector.extract_strided_slice %6 {offsets = [0, 0], sizes = [1, 32], strides = [1, 1]} : vector<1x96xf32> to vector<1x32xf32>
    %398 = vector.broadcast %397 : vector<1x32xf32> to vector<2x32xf32>
    %399 = arith.mulf %335, %398 : vector<2x32xf32>
    %cst_103 = arith.constant dense<0.000000e+00> : vector<2xf32>
    %400 = vector.multi_reduction <add>, %399, %cst_103 [1] : vector<2x32xf32> to vector<2xf32>
    %401 = vector.shape_cast %400 : vector<2xf32> to vector<2x1xf32>
    %402 = vector.extract_strided_slice %6 {offsets = [0, 32], sizes = [1, 32], strides = [1, 1]} : vector<1x96xf32> to vector<1x32xf32>
    %403 = vector.broadcast %402 : vector<1x32xf32> to vector<2x32xf32>
    %404 = arith.mulf %365, %403 : vector<2x32xf32>
    %cst_104 = arith.constant dense<0.000000e+00> : vector<2xf32>
    %405 = vector.multi_reduction <add>, %404, %cst_104 [1] : vector<2x32xf32> to vector<2xf32>
    %406 = vector.shape_cast %405 : vector<2xf32> to vector<2x1xf32>
    %407 = arith.addf %401, %406 : vector<2x1xf32>
    %408 = vector.extract_strided_slice %6 {offsets = [0, 64], sizes = [1, 32], strides = [1, 1]} : vector<1x96xf32> to vector<1x32xf32>
    %409 = vector.broadcast %408 : vector<1x32xf32> to vector<2x32xf32>
    %410 = arith.mulf %394, %409 : vector<2x32xf32>
    %cst_105 = arith.constant dense<0.000000e+00> : vector<2xf32>
    %411 = vector.multi_reduction <add>, %410, %cst_105 [1] : vector<2x32xf32> to vector<2xf32>
    %412 = vector.shape_cast %411 : vector<2xf32> to vector<2x1xf32>
    %413 = arith.addf %407, %412 : vector<2x1xf32>
    %414 = vector.broadcast %7 : f32 to vector<2x1xf32>
    %415 = arith.addf %413, %414 : vector<2x1xf32>
    %416 = arith.negf %415 : vector<2x1xf32>
    %417 = math.exp %416 : vector<2x1xf32>
    %cst_106 = arith.constant 1.000000e+00 : f32
    %418 = vector.broadcast %cst_106 : f32 to vector<2x1xf32>
    %419 = arith.addf %418, %417 : vector<2x1xf32>
    %420 = arith.divf %418, %419 : vector<2x1xf32>
    %421 = vector.broadcast %420 : vector<2x1xf32> to vector<2x128xf32>
    %422 = arith.mulf %421, %392 : vector<2x128xf32>
    %cst_107 = arith.constant 1.000000e+00 : f32
    %423 = vector.broadcast %cst_107 : f32 to vector<2x1xf32>
    %424 = arith.subf %423, %420 : vector<2x1xf32>
    %425 = vector.broadcast %424 : vector<2x1xf32> to vector<2x128xf32>
    %426 = arith.mulf %425, %396 : vector<2x128xf32>
    %427 = arith.addf %422, %426 : vector<2x128xf32>
    %428 = tpu.concatenate %112, %217, %322, %427 in 0 : vector<2x128xf32>, vector<2x128xf32>, vector<2x128xf32>, vector<2x128xf32> -> vector<8x128xf32>
    %c0_108 = arith.constant 0 : index
    %c0_109 = arith.constant 0 : index
    %c0_110 = arith.constant 0 : index
    %429 = vector.load %arg9[%c0_108, %c0_109, %c0_110] : memref<3x8x128xf32, #tpu.memory_space<vmem>>, vector<1x8x128xf32>
    %430 = vector.shape_cast %429 : vector<1x8x128xf32> to vector<8x128xf32>
    %431 = vector.shape_cast %428 : vector<8x128xf32> to vector<1x8x128xf32>
    tpu.vector_store %arg9[%c0_108, %c0_109, %c0_110], %431 {strides = array<i32>} : memref<3x8x128xf32, #tpu.memory_space<vmem>>, vector<1x8x128xf32>,
    %c1 = arith.constant 1 : index
    %c0_111 = arith.constant 0 : index
    %c0_112 = arith.constant 0 : index
    %432 = vector.load %arg1[%c1, %c0_111, %c0_112] : memref<3x2x32xf32, #tpu.memory_space<vmem>>, vector<1x2x32xf32>
    %433 = vector.shape_cast %432 : vector<1x2x32xf32> to vector<2x32xf32>
    %434 = tpu.concatenate %433, %365 in 1 : vector<2x32xf32>, vector<2x32xf32> -> vector<2x64xf32>
    %cst_113 = arith.constant dense<0.000000e+00> : vector<2x192xf32>
    %435 = tpu.matmul %434, %4, %cst_113 {dimension_numbers = #tpu.dot_dimension_numbers<[1], [0], [0], [1], [0, 0, 1, 1], [], []>} : vector<2x64xf32>, vector<64x192xf32>, vector<2x192xf32> -> vector<2x192xf32>
    %436 = vector.broadcast %5 : vector<1x192xf32> to vector<2x192xf32>
    %437 = arith.addf %435, %436 : vector<2x192xf32>
    %438 = vector.extract_strided_slice %437 {offsets = [0, 0], sizes = [2, 32], strides = [1, 1]} : vector<2x192xf32> to vector<2x32xf32>
    %439 = vector.extract_strided_slice %437 {offsets = [0, 96], sizes = [2, 32], strides = [1, 1]} : vector<2x192xf32> to vector<2x32xf32>
    %440 = arith.addf %438, %439 : vector<2x32xf32>
    %441 = arith.negf %440 : vector<2x32xf32>
    %442 = math.exp %441 : vector<2x32xf32>
    %cst_114 = arith.constant 1.000000e+00 : f32
    %443 = vector.broadcast %cst_114 : f32 to vector<2x32xf32>
    %444 = arith.addf %443, %442 : vector<2x32xf32>
    %445 = arith.divf %443, %444 : vector<2x32xf32>
    %446 = vector.extract_strided_slice %437 {offsets = [0, 32], sizes = [2, 32], strides = [1, 1]} : vector<2x192xf32> to vector<2x32xf32>
    %447 = vector.extract_strided_slice %437 {offsets = [0, 128], sizes = [2, 32], strides = [1, 1]} : vector<2x192xf32> to vector<2x32xf32>
    %448 = arith.addf %446, %447 : vector<2x32xf32>
    %449 = arith.negf %448 : vector<2x32xf32>
    %450 = math.exp %449 : vector<2x32xf32>
    %cst_115 = arith.constant 1.000000e+00 : f32
    %451 = vector.broadcast %cst_115 : f32 to vector<2x32xf32>
    %452 = arith.addf %451, %450 : vector<2x32xf32>
    %453 = arith.divf %451, %452 : vector<2x32xf32>
    %454 = vector.extract_strided_slice %437 {offsets = [0, 64], sizes = [2, 32], strides = [1, 1]} : vector<2x192xf32> to vector<2x32xf32>
    %455 = vector.extract_strided_slice %437 {offsets = [0, 160], sizes = [2, 32], strides = [1, 1]} : vector<2x192xf32> to vector<2x32xf32>
    %456 = arith.mulf %445, %455 : vector<2x32xf32>
    %457 = arith.addf %454, %456 : vector<2x32xf32>
    %458 = math.tanh %457 : vector<2x32xf32>
    %cst_116 = arith.constant 1.000000e+00 : f32
    %459 = vector.broadcast %cst_116 : f32 to vector<2x32xf32>
    %460 = arith.subf %459, %453 : vector<2x32xf32>
    %461 = arith.mulf %460, %458 : vector<2x32xf32>
    %462 = arith.mulf %453, %365 : vector<2x32xf32>
    %463 = arith.addf %461, %462 : vector<2x32xf32>
    %464 = vector.shape_cast %463 : vector<2x32xf32> to vector<2x1x32xf32>
    "tpu.trace_start"() <{level = 10 : i32, message = "bqh,bsh->bqs"}> : () -> ()
    %cst_117 = arith.constant dense<0.000000e+00> : vector<2x1x8xf32>
    %465 = tpu.matmul %464, %1, %cst_117 {dimension_numbers = #tpu.dot_dimension_numbers<[2], [2], [1], [1], [0, 0, 0, 1, 1, 1], [0], [0]>} : vector<2x1x32xf32>, vector<2x8x32xf32>, vector<2x1x8xf32> -> vector<2x1x8xf32>
    %cst_118 = arith.constant -1.000000e+09 : f32
    "tpu.trace_stop"() : () -> ()
    %466 = vector.broadcast %cst_118 : f32 to vector<2x1x8xf32>
    %467 = arith.select %10, %466, %465 : vector<2x1x8xi1>, vector<2x1x8xf32>
    %cst_119 = arith.constant dense<0xFF800000> : vector<2x1xf32>
    %468 = vector.multi_reduction <maximumf>, %467, %cst_119 [2] : vector<2x1x8xf32> to vector<2x1xf32>
    %cst_120 = arith.constant 0xFF800000 : f32
    %469 = vector.broadcast %cst_120 : f32 to vector<2x1xf32>
    %470 = arith.maximumf %469, %468 : vector<2x1xf32>
    %471 = vector.shape_cast %470 : vector<2x1xf32> to vector<2x1x1xf32>
    %472 = vector.broadcast %471 : vector<2x1x1xf32> to vector<2x1x8xf32>
    %473 = arith.subf %467, %472 : vector<2x1x8xf32>
    %474 = math.exp %473 : vector<2x1x8xf32>
    %cst_121 = arith.constant dense<0.000000e+00> : vector<2x1xf32>
    %475 = vector.multi_reduction <add>, %474, %cst_121 [2] : vector<2x1x8xf32> to vector<2x1xf32>
    %476 = vector.shape_cast %475 : vector<2x1xf32> to vector<2x1x1xf32>
    %477 = vector.broadcast %476 : vector<2x1x1xf32> to vector<2x1x8xf32>
    %478 = arith.divf %474, %477 : vector<2x1x8xf32>
    %cst_122 = arith.constant dense<0.000000e+00> : vector<2x128xf32>
    %479 = tpu.matmul %463, %3, %cst_122 {dimension_numbers = #tpu.dot_dimension_numbers<[1], [0], [0], [1], [0, 0, 1, 1], [], []>} : vector<2x32xf32>, vector<32x128xf32>, vector<2x128xf32> -> vector<2x128xf32>
    %cst_123 = arith.constant dense<0xFF800000> : vector<2xf32>
    %480 = vector.multi_reduction <maximumf>, %479, %cst_123 [1] : vector<2x128xf32> to vector<2xf32>
    %cst_124 = arith.constant 0xFF800000 : f32
    %481 = vector.broadcast %cst_124 : f32 to vector<2xf32>
    %482 = arith.maximumf %481, %480 : vector<2xf32>
    %483 = vector.shape_cast %482 : vector<2xf32> to vector<2x1xf32>
    %484 = vector.broadcast %483 : vector<2x1xf32> to vector<2x128xf32>
    %485 = arith.subf %479, %484 : vector<2x128xf32>
    %486 = math.exp %485 : vector<2x128xf32>
    %cst_125 = arith.constant dense<0.000000e+00> : vector<2xf32>
    %487 = vector.multi_reduction <add>, %486, %cst_125 [1] : vector<2x128xf32> to vector<2xf32>
    %488 = vector.shape_cast %487 : vector<2xf32> to vector<2x1xf32>
    %489 = vector.broadcast %488 : vector<2x1xf32> to vector<2x128xf32>
    %490 = arith.divf %486, %489 : vector<2x128xf32>
    "tpu.trace_start"() <{level = 10 : i32, message = "bqs,bsh->bqh"}> : () -> ()
    %cst_126 = arith.constant dense<0.000000e+00> : vector<2x1x32xf32>
    %491 = tpu.matmul %478, %1, %cst_126 {dimension_numbers = #tpu.dot_dimension_numbers<[2], [1], [1], [2], [0, 0, 0, 1, 1, 2], [0], [0]>} : vector<2x1x8xf32>, vector<2x8x32xf32>, vector<2x1x32xf32> -> vector<2x1x32xf32>
    "tpu.trace_stop"() : () -> ()
    %492 = vector.shape_cast %491 : vector<2x1x32xf32> to vector<2x32xf32>
    "tpu.trace_start"() <{level = 10 : i32, message = "bqs,bsv->bqv"}> : () -> ()
    %cst_127 = arith.constant dense<0.000000e+00> : vector<2x1x128xf32>
    %493 = tpu.matmul %478, %16, %cst_127 {dimension_numbers = #tpu.dot_dimension_numbers<[2], [1], [1], [2], [0, 0, 0, 1, 1, 2], [0], [0]>} : vector<2x1x8xf32>, vector<2x8x128xf32>, vector<2x1x128xf32> -> vector<2x1x128xf32>
    "tpu.trace_stop"() : () -> ()
    %494 = vector.shape_cast %493 : vector<2x1x128xf32> to vector<2x128xf32>
    %495 = vector.extract_strided_slice %6 {offsets = [0, 0], sizes = [1, 32], strides = [1, 1]} : vector<1x96xf32> to vector<1x32xf32>
    %496 = vector.broadcast %495 : vector<1x32xf32> to vector<2x32xf32>
    %497 = arith.mulf %433, %496 : vector<2x32xf32>
    %cst_128 = arith.constant dense<0.000000e+00> : vector<2xf32>
    %498 = vector.multi_reduction <add>, %497, %cst_128 [1] : vector<2x32xf32> to vector<2xf32>
    %499 = vector.shape_cast %498 : vector<2xf32> to vector<2x1xf32>
    %500 = vector.extract_strided_slice %6 {offsets = [0, 32], sizes = [1, 32], strides = [1, 1]} : vector<1x96xf32> to vector<1x32xf32>
    %501 = vector.broadcast %500 : vector<1x32xf32> to vector<2x32xf32>
    %502 = arith.mulf %463, %501 : vector<2x32xf32>
    %cst_129 = arith.constant dense<0.000000e+00> : vector<2xf32>
    %503 = vector.multi_reduction <add>, %502, %cst_129 [1] : vector<2x32xf32> to vector<2xf32>
    %504 = vector.shape_cast %503 : vector<2xf32> to vector<2x1xf32>
    %505 = arith.addf %499, %504 : vector<2x1xf32>
    %506 = vector.extract_strided_slice %6 {offsets = [0, 64], sizes = [1, 32], strides = [1, 1]} : vector<1x96xf32> to vector<1x32xf32>
    %507 = vector.broadcast %506 : vector<1x32xf32> to vector<2x32xf32>
    %508 = arith.mulf %492, %507 : vector<2x32xf32>
    %cst_130 = arith.constant dense<0.000000e+00> : vector<2xf32>
    %509 = vector.multi_reduction <add>, %508, %cst_130 [1] : vector<2x32xf32> to vector<2xf32>
    %510 = vector.shape_cast %509 : vector<2xf32> to vector<2x1xf32>
    %511 = arith.addf %505, %510 : vector<2x1xf32>
    %512 = vector.broadcast %7 : f32 to vector<2x1xf32>
    %513 = arith.addf %511, %512 : vector<2x1xf32>
    %514 = arith.negf %513 : vector<2x1xf32>
    %515 = math.exp %514 : vector<2x1xf32>
    %cst_131 = arith.constant 1.000000e+00 : f32
    %516 = vector.broadcast %cst_131 : f32 to vector<2x1xf32>
    %517 = arith.addf %516, %515 : vector<2x1xf32>
    %518 = arith.divf %516, %517 : vector<2x1xf32>
    %519 = vector.broadcast %518 : vector<2x1xf32> to vector<2x128xf32>
    %520 = arith.mulf %519, %490 : vector<2x128xf32>
    %cst_132 = arith.constant 1.000000e+00 : f32
    %521 = vector.broadcast %cst_132 : f32 to vector<2x1xf32>
    %522 = arith.subf %521, %518 : vector<2x1xf32>
    %523 = vector.broadcast %522 : vector<2x1xf32> to vector<2x128xf32>
    %524 = arith.mulf %523, %494 : vector<2x128xf32>
    %525 = arith.addf %520, %524 : vector<2x128xf32>
    %cst_133 = arith.constant dense<0xFF800000> : vector<2xf32>
    %526 = vector.multi_reduction <maximumf>, %525, %cst_133 [1] : vector<2x128xf32> to vector<2xf32>
    %527 = vector.shape_cast %526 : vector<2xf32> to vector<2x1xf32>
    %528 = vector.broadcast %527 : vector<2x1xf32> to vector<2x128xf32>
    %529 = arith.cmpf oge, %525, %528 : vector<2x128xf32>
    %c128_i32_134 = arith.constant 128 : i32
    %530 = vector.broadcast %c128_i32_134 : i32 to vector<2x128xi32>
    %531 = arith.select %529, %17, %530 : vector<2x128xi1>, vector<2x128xi32>
    %cst_135 = arith.constant dense<2147483647> : vector<2xi32>
    %532 = vector.multi_reduction <minsi>, %531, %cst_135 [1] : vector<2x128xi32> to vector<2xi32>
    %533 = vector.shape_cast %532 : vector<2xi32> to vector<2x1xi32>
    %534 = vector.broadcast %533 : vector<2x1xi32> to vector<2x128xi32>
    %535 = arith.cmpi eq, %17, %534 : vector<2x128xi32>
    %536 = arith.extui %535 : vector<2x128xi1> to vector<2x128xi32>
    %537 = arith.sitofp %536 : vector<2x128xi32> to vector<2x128xf32>
    %cst_136 = arith.constant dense<0.000000e+00> : vector<2x32xf32>
    %538 = tpu.matmul %537, %2, %cst_136 {dimension_numbers = #tpu.dot_dimension_numbers<[1], [0], [0], [1], [0, 0, 1, 1], [], []>} : vector<2x128xf32>, vector<128x32xf32>, vector<2x32xf32> -> vector<2x32xf32>
    %539 = tpu.concatenate %538, %463 in 1 : vector<2x32xf32>, vector<2x32xf32> -> vector<2x64xf32>
    %cst_137 = arith.constant dense<0.000000e+00> : vector<2x192xf32>
    %540 = tpu.matmul %539, %4, %cst_137 {dimension_numbers = #tpu.dot_dimension_numbers<[1], [0], [0], [1], [0, 0, 1, 1], [], []>} : vector<2x64xf32>, vector<64x192xf32>, vector<2x192xf32> -> vector<2x192xf32>
    %541 = vector.broadcast %5 : vector<1x192xf32> to vector<2x192xf32>
    %542 = arith.addf %540, %541 : vector<2x192xf32>
    %543 = vector.extract_strided_slice %542 {offsets = [0, 0], sizes = [2, 32], strides = [1, 1]} : vector<2x192xf32> to vector<2x32xf32>
    %544 = vector.extract_strided_slice %542 {offsets = [0, 96], sizes = [2, 32], strides = [1, 1]} : vector<2x192xf32> to vector<2x32xf32>
    %545 = arith.addf %543, %544 : vector<2x32xf32>
    %546 = arith.negf %545 : vector<2x32xf32>
    %547 = math.exp %546 : vector<2x32xf32>
    %cst_138 = arith.constant 1.000000e+00 : f32
    %548 = vector.broadcast %cst_138 : f32 to vector<2x32xf32>
    %549 = arith.addf %548, %547 : vector<2x32xf32>
    %550 = arith.divf %548, %549 : vector<2x32xf32>
    %551 = vector.extract_strided_slice %542 {offsets = [0, 32], sizes = [2, 32], strides = [1, 1]} : vector<2x192xf32> to vector<2x32xf32>
    %552 = vector.extract_strided_slice %542 {offsets = [0, 128], sizes = [2, 32], strides = [1, 1]} : vector<2x192xf32> to vector<2x32xf32>
    %553 = arith.addf %551, %552 : vector<2x32xf32>
    %554 = arith.negf %553 : vector<2x32xf32>
    %555 = math.exp %554 : vector<2x32xf32>
    %cst_139 = arith.constant 1.000000e+00 : f32
    %556 = vector.broadcast %cst_139 : f32 to vector<2x32xf32>
    %557 = arith.addf %556, %555 : vector<2x32xf32>
    %558 = arith.divf %556, %557 : vector<2x32xf32>
    %559 = vector.extract_strided_slice %542 {offsets = [0, 64], sizes = [2, 32], strides = [1, 1]} : vector<2x192xf32> to vector<2x32xf32>
    %560 = vector.extract_strided_slice %542 {offsets = [0, 160], sizes = [2, 32], strides = [1, 1]} : vector<2x192xf32> to vector<2x32xf32>
    %561 = arith.mulf %550, %560 : vector<2x32xf32>
    %562 = arith.addf %559, %561 : vector<2x32xf32>
    %563 = math.tanh %562 : vector<2x32xf32>
    %cst_140 = arith.constant 1.000000e+00 : f32
    %564 = vector.broadcast %cst_140 : f32 to vector<2x32xf32>
    %565 = arith.subf %564, %558 : vector<2x32xf32>
    %566 = arith.mulf %565, %563 : vector<2x32xf32>
    %567 = arith.mulf %558, %463 : vector<2x32xf32>
    %568 = arith.addf %566, %567 : vector<2x32xf32>
    %569 = vector.shape_cast %568 : vector<2x32xf32> to vector<2x1x32xf32>
    "tpu.trace_start"() <{level = 10 : i32, message = "bqh,bsh->bqs"}> : () -> ()
    %cst_141 = arith.constant dense<0.000000e+00> : vector<2x1x8xf32>
    %570 = tpu.matmul %569, %1, %cst_141 {dimension_numbers = #tpu.dot_dimension_numbers<[2], [2], [1], [1], [0, 0, 0, 1, 1, 1], [0], [0]>} : vector<2x1x32xf32>, vector<2x8x32xf32>, vector<2x1x8xf32> -> vector<2x1x8xf32>
    %cst_142 = arith.constant -1.000000e+09 : f32
    "tpu.trace_stop"() : () -> ()
    %571 = vector.broadcast %cst_142 : f32 to vector<2x1x8xf32>
    %572 = arith.select %10, %571, %570 : vector<2x1x8xi1>, vector<2x1x8xf32>
    %cst_143 = arith.constant dense<0xFF800000> : vector<2x1xf32>
    %573 = vector.multi_reduction <maximumf>, %572, %cst_143 [2] : vector<2x1x8xf32> to vector<2x1xf32>
    %cst_144 = arith.constant 0xFF800000 : f32
    %574 = vector.broadcast %cst_144 : f32 to vector<2x1xf32>
    %575 = arith.maximumf %574, %573 : vector<2x1xf32>
    %576 = vector.shape_cast %575 : vector<2x1xf32> to vector<2x1x1xf32>
    %577 = vector.broadcast %576 : vector<2x1x1xf32> to vector<2x1x8xf32>
    %578 = arith.subf %572, %577 : vector<2x1x8xf32>
    %579 = math.exp %578 : vector<2x1x8xf32>
    %cst_145 = arith.constant dense<0.000000e+00> : vector<2x1xf32>
    %580 = vector.multi_reduction <add>, %579, %cst_145 [2] : vector<2x1x8xf32> to vector<2x1xf32>
    %581 = vector.shape_cast %580 : vector<2x1xf32> to vector<2x1x1xf32>
    %582 = vector.broadcast %581 : vector<2x1x1xf32> to vector<2x1x8xf32>
    %583 = arith.divf %579, %582 : vector<2x1x8xf32>
    %cst_146 = arith.constant dense<0.000000e+00> : vector<2x128xf32>
    %584 = tpu.matmul %568, %3, %cst_146 {dimension_numbers = #tpu.dot_dimension_numbers<[1], [0], [0], [1], [0, 0, 1, 1], [], []>} : vector<2x32xf32>, vector<32x128xf32>, vector<2x128xf32> -> vector<2x128xf32>
    %cst_147 = arith.constant dense<0xFF800000> : vector<2xf32>
    %585 = vector.multi_reduction <maximumf>, %584, %cst_147 [1] : vector<2x128xf32> to vector<2xf32>
    %cst_148 = arith.constant 0xFF800000 : f32
    %586 = vector.broadcast %cst_148 : f32 to vector<2xf32>
    %587 = arith.maximumf %586, %585 : vector<2xf32>
    %588 = vector.shape_cast %587 : vector<2xf32> to vector<2x1xf32>
    %589 = vector.broadcast %588 : vector<2x1xf32> to vector<2x128xf32>
    %590 = arith.subf %584, %589 : vector<2x128xf32>
    %591 = math.exp %590 : vector<2x128xf32>
    %cst_149 = arith.constant dense<0.000000e+00> : vector<2xf32>
    %592 = vector.multi_reduction <add>, %591, %cst_149 [1] : vector<2x128xf32> to vector<2xf32>
    %593 = vector.shape_cast %592 : vector<2xf32> to vector<2x1xf32>
    %594 = vector.broadcast %593 : vector<2x1xf32> to vector<2x128xf32>
    %595 = arith.divf %591, %594 : vector<2x128xf32>
    "tpu.trace_start"() <{level = 10 : i32, message = "bqs,bsh->bqh"}> : () -> ()
    %cst_150 = arith.constant dense<0.000000e+00> : vector<2x1x32xf32>
    %596 = tpu.matmul %583, %1, %cst_150 {dimension_numbers = #tpu.dot_dimension_numbers<[2], [1], [1], [2], [0, 0, 0, 1, 1, 2], [0], [0]>} : vector<2x1x8xf32>, vector<2x8x32xf32>, vector<2x1x32xf32> -> vector<2x1x32xf32>
    "tpu.trace_stop"() : () -> ()
    %597 = vector.shape_cast %596 : vector<2x1x32xf32> to vector<2x32xf32>
    "tpu.trace_start"() <{level = 10 : i32, message = "bqs,bsv->bqv"}> : () -> ()
    %cst_151 = arith.constant dense<0.000000e+00> : vector<2x1x128xf32>
    %598 = tpu.matmul %583, %16, %cst_151 {dimension_numbers = #tpu.dot_dimension_numbers<[2], [1], [1], [2], [0, 0, 0, 1, 1, 2], [0], [0]>} : vector<2x1x8xf32>, vector<2x8x128xf32>, vector<2x1x128xf32> -> vector<2x1x128xf32>
    "tpu.trace_stop"() : () -> ()
    %599 = vector.shape_cast %598 : vector<2x1x128xf32> to vector<2x128xf32>
    %600 = vector.extract_strided_slice %6 {offsets = [0, 0], sizes = [1, 32], strides = [1, 1]} : vector<1x96xf32> to vector<1x32xf32>
    %601 = vector.broadcast %600 : vector<1x32xf32> to vector<2x32xf32>
    %602 = arith.mulf %538, %601 : vector<2x32xf32>
    %cst_152 = arith.constant dense<0.000000e+00> : vector<2xf32>
    %603 = vector.multi_reduction <add>, %602, %cst_152 [1] : vector<2x32xf32> to vector<2xf32>
    %604 = vector.shape_cast %603 : vector<2xf32> to vector<2x1xf32>
    %605 = vector.extract_strided_slice %6 {offsets = [0, 32], sizes = [1, 32], strides = [1, 1]} : vector<1x96xf32> to vector<1x32xf32>
    %606 = vector.broadcast %605 : vector<1x32xf32> to vector<2x32xf32>
    %607 = arith.mulf %568, %606 : vector<2x32xf32>
    %cst_153 = arith.constant dense<0.000000e+00> : vector<2xf32>
    %608 = vector.multi_reduction <add>, %607, %cst_153 [1] : vector<2x32xf32> to vector<2xf32>
    %609 = vector.shape_cast %608 : vector<2xf32> to vector<2x1xf32>
    %610 = arith.addf %604, %609 : vector<2x1xf32>
    %611 = vector.extract_strided_slice %6 {offsets = [0, 64], sizes = [1, 32], strides = [1, 1]} : vector<1x96xf32> to vector<1x32xf32>
    %612 = vector.broadcast %611 : vector<1x32xf32> to vector<2x32xf32>
    %613 = arith.mulf %597, %612 : vector<2x32xf32>
    %cst_154 = arith.constant dense<0.000000e+00> : vector<2xf32>
    %614 = vector.multi_reduction <add>, %613, %cst_154 [1] : vector<2x32xf32> to vector<2xf32>
    %615 = vector.shape_cast %614 : vector<2xf32> to vector<2x1xf32>
    %616 = arith.addf %610, %615 : vector<2x1xf32>
    %617 = vector.broadcast %7 : f32 to vector<2x1xf32>
    %618 = arith.addf %616, %617 : vector<2x1xf32>
    %619 = arith.negf %618 : vector<2x1xf32>
    %620 = math.exp %619 : vector<2x1xf32>
    %cst_155 = arith.constant 1.000000e+00 : f32
    %621 = vector.broadcast %cst_155 : f32 to vector<2x1xf32>
    %622 = arith.addf %621, %620 : vector<2x1xf32>
    %623 = arith.divf %621, %622 : vector<2x1xf32>
    %624 = vector.broadcast %623 : vector<2x1xf32> to vector<2x128xf32>
    %625 = arith.mulf %624, %595 : vector<2x128xf32>
    %cst_156 = arith.constant 1.000000e+00 : f32
    %626 = vector.broadcast %cst_156 : f32 to vector<2x1xf32>
    %627 = arith.subf %626, %623 : vector<2x1xf32>
    %628 = vector.broadcast %627 : vector<2x1xf32> to vector<2x128xf32>
    %629 = arith.mulf %628, %599 : vector<2x128xf32>
    %630 = arith.addf %625, %629 : vector<2x128xf32>
    %cst_157 = arith.constant dense<0xFF800000> : vector<2xf32>
    %631 = vector.multi_reduction <maximumf>, %630, %cst_157 [1] : vector<2x128xf32> to vector<2xf32>
    %632 = vector.shape_cast %631 : vector<2xf32> to vector<2x1xf32>
    %633 = vector.broadcast %632 : vector<2x1xf32> to vector<2x128xf32>
    %634 = arith.cmpf oge, %630, %633 : vector<2x128xf32>
    %c128_i32_158 = arith.constant 128 : i32
    %635 = vector.broadcast %c128_i32_158 : i32 to vector<2x128xi32>
    %636 = arith.select %634, %17, %635 : vector<2x128xi1>, vector<2x128xi32>
    %cst_159 = arith.constant dense<2147483647> : vector<2xi32>
    %637 = vector.multi_reduction <minsi>, %636, %cst_159 [1] : vector<2x128xi32> to vector<2xi32>
    %638 = vector.shape_cast %637 : vector<2xi32> to vector<2x1xi32>
    %639 = vector.broadcast %638 : vector<2x1xi32> to vector<2x128xi32>
    %640 = arith.cmpi eq, %17, %639 : vector<2x128xi32>
    %641 = arith.extui %640 : vector<2x128xi1> to vector<2x128xi32>
    %642 = arith.sitofp %641 : vector<2x128xi32> to vector<2x128xf32>
    %cst_160 = arith.constant dense<0.000000e+00> : vector<2x32xf32>
    %643 = tpu.matmul %642, %2, %cst_160 {dimension_numbers = #tpu.dot_dimension_numbers<[1], [0], [0], [1], [0, 0, 1, 1], [], []>} : vector<2x128xf32>, vector<128x32xf32>, vector<2x32xf32> -> vector<2x32xf32>
    %644 = tpu.concatenate %643, %568 in 1 : vector<2x32xf32>, vector<2x32xf32> -> vector<2x64xf32>
    %cst_161 = arith.constant dense<0.000000e+00> : vector<2x192xf32>
    %645 = tpu.matmul %644, %4, %cst_161 {dimension_numbers = #tpu.dot_dimension_numbers<[1], [0], [0], [1], [0, 0, 1, 1], [], []>} : vector<2x64xf32>, vector<64x192xf32>, vector<2x192xf32> -> vector<2x192xf32>
    %646 = vector.broadcast %5 : vector<1x192xf32> to vector<2x192xf32>
    %647 = arith.addf %645, %646 : vector<2x192xf32>
    %648 = vector.extract_strided_slice %647 {offsets = [0, 0], sizes = [2, 32], strides = [1, 1]} : vector<2x192xf32> to vector<2x32xf32>
    %649 = vector.extract_strided_slice %647 {offsets = [0, 96], sizes = [2, 32], strides = [1, 1]} : vector<2x192xf32> to vector<2x32xf32>
    %650 = arith.addf %648, %649 : vector<2x32xf32>
    %651 = arith.negf %650 : vector<2x32xf32>
    %652 = math.exp %651 : vector<2x32xf32>
    %cst_162 = arith.constant 1.000000e+00 : f32
    %653 = vector.broadcast %cst_162 : f32 to vector<2x32xf32>
    %654 = arith.addf %653, %652 : vector<2x32xf32>
    %655 = arith.divf %653, %654 : vector<2x32xf32>
    %656 = vector.extract_strided_slice %647 {offsets = [0, 32], sizes = [2, 32], strides = [1, 1]} : vector<2x192xf32> to vector<2x32xf32>
    %657 = vector.extract_strided_slice %647 {offsets = [0, 128], sizes = [2, 32], strides = [1, 1]} : vector<2x192xf32> to vector<2x32xf32>
    %658 = arith.addf %656, %657 : vector<2x32xf32>
    %659 = arith.negf %658 : vector<2x32xf32>
    %660 = math.exp %659 : vector<2x32xf32>
    %cst_163 = arith.constant 1.000000e+00 : f32
    %661 = vector.broadcast %cst_163 : f32 to vector<2x32xf32>
    %662 = arith.addf %661, %660 : vector<2x32xf32>
    %663 = arith.divf %661, %662 : vector<2x32xf32>
    %664 = vector.extract_strided_slice %647 {offsets = [0, 64], sizes = [2, 32], strides = [1, 1]} : vector<2x192xf32> to vector<2x32xf32>
    %665 = vector.extract_strided_slice %647 {offsets = [0, 160], sizes = [2, 32], strides = [1, 1]} : vector<2x192xf32> to vector<2x32xf32>
    %666 = arith.mulf %655, %665 : vector<2x32xf32>
    %667 = arith.addf %664, %666 : vector<2x32xf32>
    %668 = math.tanh %667 : vector<2x32xf32>
    %cst_164 = arith.constant 1.000000e+00 : f32
    %669 = vector.broadcast %cst_164 : f32 to vector<2x32xf32>
    %670 = arith.subf %669, %663 : vector<2x32xf32>
    %671 = arith.mulf %670, %668 : vector<2x32xf32>
    %672 = arith.mulf %663, %568 : vector<2x32xf32>
    %673 = arith.addf %671, %672 : vector<2x32xf32>
    %674 = vector.shape_cast %673 : vector<2x32xf32> to vector<2x1x32xf32>
    "tpu.trace_start"() <{level = 10 : i32, message = "bqh,bsh->bqs"}> : () -> ()
    %cst_165 = arith.constant dense<0.000000e+00> : vector<2x1x8xf32>
    %675 = tpu.matmul %674, %1, %cst_165 {dimension_numbers = #tpu.dot_dimension_numbers<[2], [2], [1], [1], [0, 0, 0, 1, 1, 1], [0], [0]>} : vector<2x1x32xf32>, vector<2x8x32xf32>, vector<2x1x8xf32> -> vector<2x1x8xf32>
    %cst_166 = arith.constant -1.000000e+09 : f32
    "tpu.trace_stop"() : () -> ()
    %676 = vector.broadcast %cst_166 : f32 to vector<2x1x8xf32>
    %677 = arith.select %10, %676, %675 : vector<2x1x8xi1>, vector<2x1x8xf32>
    %cst_167 = arith.constant dense<0xFF800000> : vector<2x1xf32>
    %678 = vector.multi_reduction <maximumf>, %677, %cst_167 [2] : vector<2x1x8xf32> to vector<2x1xf32>
    %cst_168 = arith.constant 0xFF800000 : f32
    %679 = vector.broadcast %cst_168 : f32 to vector<2x1xf32>
    %680 = arith.maximumf %679, %678 : vector<2x1xf32>
    %681 = vector.shape_cast %680 : vector<2x1xf32> to vector<2x1x1xf32>
    %682 = vector.broadcast %681 : vector<2x1x1xf32> to vector<2x1x8xf32>
    %683 = arith.subf %677, %682 : vector<2x1x8xf32>
    %684 = math.exp %683 : vector<2x1x8xf32>
    %cst_169 = arith.constant dense<0.000000e+00> : vector<2x1xf32>
    %685 = vector.multi_reduction <add>, %684, %cst_169 [2] : vector<2x1x8xf32> to vector<2x1xf32>
    %686 = vector.shape_cast %685 : vector<2x1xf32> to vector<2x1x1xf32>
    %687 = vector.broadcast %686 : vector<2x1x1xf32> to vector<2x1x8xf32>
    %688 = arith.divf %684, %687 : vector<2x1x8xf32>
    %cst_170 = arith.constant dense<0.000000e+00> : vector<2x128xf32>
    %689 = tpu.matmul %673, %3, %cst_170 {dimension_numbers = #tpu.dot_dimension_numbers<[1], [0], [0], [1], [0, 0, 1, 1], [], []>} : vector<2x32xf32>, vector<32x128xf32>, vector<2x128xf32> -> vector<2x128xf32>
    %cst_171 = arith.constant dense<0xFF800000> : vector<2xf32>
    %690 = vector.multi_reduction <maximumf>, %689, %cst_171 [1] : vector<2x128xf32> to vector<2xf32>
    %cst_172 = arith.constant 0xFF800000 : f32
    %691 = vector.broadcast %cst_172 : f32 to vector<2xf32>
    %692 = arith.maximumf %691, %690 : vector<2xf32>
    %693 = vector.shape_cast %692 : vector<2xf32> to vector<2x1xf32>
    %694 = vector.broadcast %693 : vector<2x1xf32> to vector<2x128xf32>
    %695 = arith.subf %689, %694 : vector<2x128xf32>
    %696 = math.exp %695 : vector<2x128xf32>
    %cst_173 = arith.constant dense<0.000000e+00> : vector<2xf32>
    %697 = vector.multi_reduction <add>, %696, %cst_173 [1] : vector<2x128xf32> to vector<2xf32>
    %698 = vector.shape_cast %697 : vector<2xf32> to vector<2x1xf32>
    %699 = vector.broadcast %698 : vector<2x1xf32> to vector<2x128xf32>
    %700 = arith.divf %696, %699 : vector<2x128xf32>
    "tpu.trace_start"() <{level = 10 : i32, message = "bqs,bsh->bqh"}> : () -> ()
    %cst_174 = arith.constant dense<0.000000e+00> : vector<2x1x32xf32>
    %701 = tpu.matmul %688, %1, %cst_174 {dimension_numbers = #tpu.dot_dimension_numbers<[2], [1], [1], [2], [0, 0, 0, 1, 1, 2], [0], [0]>} : vector<2x1x8xf32>, vector<2x8x32xf32>, vector<2x1x32xf32> -> vector<2x1x32xf32>
    "tpu.trace_stop"() : () -> ()
    %702 = vector.shape_cast %701 : vector<2x1x32xf32> to vector<2x32xf32>
    "tpu.trace_start"() <{level = 10 : i32, message = "bqs,bsv->bqv"}> : () -> ()
    %cst_175 = arith.constant dense<0.000000e+00> : vector<2x1x128xf32>
    %703 = tpu.matmul %688, %16, %cst_175 {dimension_numbers = #tpu.dot_dimension_numbers<[2], [1], [1], [2], [0, 0, 0, 1, 1, 2], [0], [0]>} : vector<2x1x8xf32>, vector<2x8x128xf32>, vector<2x1x128xf32> -> vector<2x1x128xf32>
    "tpu.trace_stop"() : () -> ()
    %704 = vector.shape_cast %703 : vector<2x1x128xf32> to vector<2x128xf32>
    %705 = vector.extract_strided_slice %6 {offsets = [0, 0], sizes = [1, 32], strides = [1, 1]} : vector<1x96xf32> to vector<1x32xf32>
    %706 = vector.broadcast %705 : vector<1x32xf32> to vector<2x32xf32>
    %707 = arith.mulf %643, %706 : vector<2x32xf32>
    %cst_176 = arith.constant dense<0.000000e+00> : vector<2xf32>
    %708 = vector.multi_reduction <add>, %707, %cst_176 [1] : vector<2x32xf32> to vector<2xf32>
    %709 = vector.shape_cast %708 : vector<2xf32> to vector<2x1xf32>
    %710 = vector.extract_strided_slice %6 {offsets = [0, 32], sizes = [1, 32], strides = [1, 1]} : vector<1x96xf32> to vector<1x32xf32>
    %711 = vector.broadcast %710 : vector<1x32xf32> to vector<2x32xf32>
    %712 = arith.mulf %673, %711 : vector<2x32xf32>
    %cst_177 = arith.constant dense<0.000000e+00> : vector<2xf32>
    %713 = vector.multi_reduction <add>, %712, %cst_177 [1] : vector<2x32xf32> to vector<2xf32>
    %714 = vector.shape_cast %713 : vector<2xf32> to vector<2x1xf32>
    %715 = arith.addf %709, %714 : vector<2x1xf32>
    %716 = vector.extract_strided_slice %6 {offsets = [0, 64], sizes = [1, 32], strides = [1, 1]} : vector<1x96xf32> to vector<1x32xf32>
    %717 = vector.broadcast %716 : vector<1x32xf32> to vector<2x32xf32>
    %718 = arith.mulf %702, %717 : vector<2x32xf32>
    %cst_178 = arith.constant dense<0.000000e+00> : vector<2xf32>
    %719 = vector.multi_reduction <add>, %718, %cst_178 [1] : vector<2x32xf32> to vector<2xf32>
    %720 = vector.shape_cast %719 : vector<2xf32> to vector<2x1xf32>
    %721 = arith.addf %715, %720 : vector<2x1xf32>
    %722 = vector.broadcast %7 : f32 to vector<2x1xf32>
    %723 = arith.addf %721, %722 : vector<2x1xf32>
    %724 = arith.negf %723 : vector<2x1xf32>
    %725 = math.exp %724 : vector<2x1xf32>
    %cst_179 = arith.constant 1.000000e+00 : f32
    %726 = vector.broadcast %cst_179 : f32 to vector<2x1xf32>
    %727 = arith.addf %726, %725 : vector<2x1xf32>
    %728 = arith.divf %726, %727 : vector<2x1xf32>
    %729 = vector.broadcast %728 : vector<2x1xf32> to vector<2x128xf32>
    %730 = arith.mulf %729, %700 : vector<2x128xf32>
    %cst_180 = arith.constant 1.000000e+00 : f32
    %731 = vector.broadcast %cst_180 : f32 to vector<2x1xf32>
    %732 = arith.subf %731, %728 : vector<2x1xf32>
    %733 = vector.broadcast %732 : vector<2x1xf32> to vector<2x128xf32>
    %734 = arith.mulf %733, %704 : vector<2x128xf32>
    %735 = arith.addf %730, %734 : vector<2x128xf32>
    %cst_181 = arith.constant dense<0xFF800000> : vector<2xf32>
    %736 = vector.multi_reduction <maximumf>, %735, %cst_181 [1] : vector<2x128xf32> to vector<2xf32>
    %737 = vector.shape_cast %736 : vector<2xf32> to vector<2x1xf32>
    %738 = vector.broadcast %737 : vector<2x1xf32> to vector<2x128xf32>
    %739 = arith.cmpf oge, %735, %738 : vector<2x128xf32>
    %c128_i32_182 = arith.constant 128 : i32
    %740 = vector.broadcast %c128_i32_182 : i32 to vector<2x128xi32>
    %741 = arith.select %739, %17, %740 : vector<2x128xi1>, vector<2x128xi32>
    %cst_183 = arith.constant dense<2147483647> : vector<2xi32>
    %742 = vector.multi_reduction <minsi>, %741, %cst_183 [1] : vector<2x128xi32> to vector<2xi32>
    %743 = vector.shape_cast %742 : vector<2xi32> to vector<2x1xi32>
    %744 = vector.broadcast %743 : vector<2x1xi32> to vector<2x128xi32>
    %745 = arith.cmpi eq, %17, %744 : vector<2x128xi32>
    %746 = arith.extui %745 : vector<2x128xi1> to vector<2x128xi32>
    %747 = arith.sitofp %746 : vector<2x128xi32> to vector<2x128xf32>
    %cst_184 = arith.constant dense<0.000000e+00> : vector<2x32xf32>
    %748 = tpu.matmul %747, %2, %cst_184 {dimension_numbers = #tpu.dot_dimension_numbers<[1], [0], [0], [1], [0, 0, 1, 1], [], []>} : vector<2x128xf32>, vector<128x32xf32>, vector<2x32xf32> -> vector<2x32xf32>
    %749 = tpu.concatenate %748, %673 in 1 : vector<2x32xf32>, vector<2x32xf32> -> vector<2x64xf32>
    %cst_185 = arith.constant dense<0.000000e+00> : vector<2x192xf32>
    %750 = tpu.matmul %749, %4, %cst_185 {dimension_numbers = #tpu.dot_dimension_numbers<[1], [0], [0], [1], [0, 0, 1, 1], [], []>} : vector<2x64xf32>, vector<64x192xf32>, vector<2x192xf32> -> vector<2x192xf32>
    %751 = vector.broadcast %5 : vector<1x192xf32> to vector<2x192xf32>
    %752 = arith.addf %750, %751 : vector<2x192xf32>
    %753 = vector.extract_strided_slice %752 {offsets = [0, 0], sizes = [2, 32], strides = [1, 1]} : vector<2x192xf32> to vector<2x32xf32>
    %754 = vector.extract_strided_slice %752 {offsets = [0, 96], sizes = [2, 32], strides = [1, 1]} : vector<2x192xf32> to vector<2x32xf32>
    %755 = arith.addf %753, %754 : vector<2x32xf32>
    %756 = arith.negf %755 : vector<2x32xf32>
    %757 = math.exp %756 : vector<2x32xf32>
    %cst_186 = arith.constant 1.000000e+00 : f32
    %758 = vector.broadcast %cst_186 : f32 to vector<2x32xf32>
    %759 = arith.addf %758, %757 : vector<2x32xf32>
    %760 = arith.divf %758, %759 : vector<2x32xf32>
    %761 = vector.extract_strided_slice %752 {offsets = [0, 32], sizes = [2, 32], strides = [1, 1]} : vector<2x192xf32> to vector<2x32xf32>
    %762 = vector.extract_strided_slice %752 {offsets = [0, 128], sizes = [2, 32], strides = [1, 1]} : vector<2x192xf32> to vector<2x32xf32>
    %763 = arith.addf %761, %762 : vector<2x32xf32>
    %764 = arith.negf %763 : vector<2x32xf32>
    %765 = math.exp %764 : vector<2x32xf32>
    %cst_187 = arith.constant 1.000000e+00 : f32
    %766 = vector.broadcast %cst_187 : f32 to vector<2x32xf32>
    %767 = arith.addf %766, %765 : vector<2x32xf32>
    %768 = arith.divf %766, %767 : vector<2x32xf32>
    %769 = vector.extract_strided_slice %752 {offsets = [0, 64], sizes = [2, 32], strides = [1, 1]} : vector<2x192xf32> to vector<2x32xf32>
    %770 = vector.extract_strided_slice %752 {offsets = [0, 160], sizes = [2, 32], strides = [1, 1]} : vector<2x192xf32> to vector<2x32xf32>
    %771 = arith.mulf %760, %770 : vector<2x32xf32>
    %772 = arith.addf %769, %771 : vector<2x32xf32>
    %773 = math.tanh %772 : vector<2x32xf32>
    %cst_188 = arith.constant 1.000000e+00 : f32
    %774 = vector.broadcast %cst_188 : f32 to vector<2x32xf32>
    %775 = arith.subf %774, %768 : vector<2x32xf32>
    %776 = arith.mulf %775, %773 : vector<2x32xf32>
    %777 = arith.mulf %768, %673 : vector<2x32xf32>
    %778 = arith.addf %776, %777 : vector<2x32xf32>
    %779 = vector.shape_cast %778 : vector<2x32xf32> to vector<2x1x32xf32>
    "tpu.trace_start"() <{level = 10 : i32, message = "bqh,bsh->bqs"}> : () -> ()
    %cst_189 = arith.constant dense<0.000000e+00> : vector<2x1x8xf32>
    %780 = tpu.matmul %779, %1, %cst_189 {dimension_numbers = #tpu.dot_dimension_numbers<[2], [2], [1], [1], [0, 0, 0, 1, 1, 1], [0], [0]>} : vector<2x1x32xf32>, vector<2x8x32xf32>, vector<2x1x8xf32> -> vector<2x1x8xf32>
    %cst_190 = arith.constant -1.000000e+09 : f32
    "tpu.trace_stop"() : () -> ()
    %781 = vector.broadcast %cst_190 : f32 to vector<2x1x8xf32>
    %782 = arith.select %10, %781, %780 : vector<2x1x8xi1>, vector<2x1x8xf32>
    %cst_191 = arith.constant dense<0xFF800000> : vector<2x1xf32>
    %783 = vector.multi_reduction <maximumf>, %782, %cst_191 [2] : vector<2x1x8xf32> to vector<2x1xf32>
    %cst_192 = arith.constant 0xFF800000 : f32
    %784 = vector.broadcast %cst_192 : f32 to vector<2x1xf32>
    %785 = arith.maximumf %784, %783 : vector<2x1xf32>
    %786 = vector.shape_cast %785 : vector<2x1xf32> to vector<2x1x1xf32>
    %787 = vector.broadcast %786 : vector<2x1x1xf32> to vector<2x1x8xf32>
    %788 = arith.subf %782, %787 : vector<2x1x8xf32>
    %789 = math.exp %788 : vector<2x1x8xf32>
    %cst_193 = arith.constant dense<0.000000e+00> : vector<2x1xf32>
    %790 = vector.multi_reduction <add>, %789, %cst_193 [2] : vector<2x1x8xf32> to vector<2x1xf32>
    %791 = vector.shape_cast %790 : vector<2x1xf32> to vector<2x1x1xf32>
    %792 = vector.broadcast %791 : vector<2x1x1xf32> to vector<2x1x8xf32>
    %793 = arith.divf %789, %792 : vector<2x1x8xf32>
    %cst_194 = arith.constant dense<0.000000e+00> : vector<2x128xf32>
    %794 = tpu.matmul %778, %3, %cst_194 {dimension_numbers = #tpu.dot_dimension_numbers<[1], [0], [0], [1], [0, 0, 1, 1], [], []>} : vector<2x32xf32>, vector<32x128xf32>, vector<2x128xf32> -> vector<2x128xf32>
    %cst_195 = arith.constant dense<0xFF800000> : vector<2xf32>
    %795 = vector.multi_reduction <maximumf>, %794, %cst_195 [1] : vector<2x128xf32> to vector<2xf32>
    %cst_196 = arith.constant 0xFF800000 : f32
    %796 = vector.broadcast %cst_196 : f32 to vector<2xf32>
    %797 = arith.maximumf %796, %795 : vector<2xf32>
    %798 = vector.shape_cast %797 : vector<2xf32> to vector<2x1xf32>
    %799 = vector.broadcast %798 : vector<2x1xf32> to vector<2x128xf32>
    %800 = arith.subf %794, %799 : vector<2x128xf32>
    %801 = math.exp %800 : vector<2x128xf32>
    %cst_197 = arith.constant dense<0.000000e+00> : vector<2xf32>
    %802 = vector.multi_reduction <add>, %801, %cst_197 [1] : vector<2x128xf32> to vector<2xf32>
    %803 = vector.shape_cast %802 : vector<2xf32> to vector<2x1xf32>
    %804 = vector.broadcast %803 : vector<2x1xf32> to vector<2x128xf32>
    %805 = arith.divf %801, %804 : vector<2x128xf32>
    "tpu.trace_start"() <{level = 10 : i32, message = "bqs,bsh->bqh"}> : () -> ()
    %cst_198 = arith.constant dense<0.000000e+00> : vector<2x1x32xf32>
    %806 = tpu.matmul %793, %1, %cst_198 {dimension_numbers = #tpu.dot_dimension_numbers<[2], [1], [1], [2], [0, 0, 0, 1, 1, 2], [0], [0]>} : vector<2x1x8xf32>, vector<2x8x32xf32>, vector<2x1x32xf32> -> vector<2x1x32xf32>
    "tpu.trace_stop"() : () -> ()
    %807 = vector.shape_cast %806 : vector<2x1x32xf32> to vector<2x32xf32>
    "tpu.trace_start"() <{level = 10 : i32, message = "bqs,bsv->bqv"}> : () -> ()
    %cst_199 = arith.constant dense<0.000000e+00> : vector<2x1x128xf32>
    %808 = tpu.matmul %793, %16, %cst_199 {dimension_numbers = #tpu.dot_dimension_numbers<[2], [1], [1], [2], [0, 0, 0, 1, 1, 2], [0], [0]>} : vector<2x1x8xf32>, vector<2x8x128xf32>, vector<2x1x128xf32> -> vector<2x1x128xf32>
    "tpu.trace_stop"() : () -> ()
    %809 = vector.shape_cast %808 : vector<2x1x128xf32> to vector<2x128xf32>
    %810 = vector.extract_strided_slice %6 {offsets = [0, 0], sizes = [1, 32], strides = [1, 1]} : vector<1x96xf32> to vector<1x32xf32>
    %811 = vector.broadcast %810 : vector<1x32xf32> to vector<2x32xf32>
    %812 = arith.mulf %748, %811 : vector<2x32xf32>
    %cst_200 = arith.constant dense<0.000000e+00> : vector<2xf32>
    %813 = vector.multi_reduction <add>, %812, %cst_200 [1] : vector<2x32xf32> to vector<2xf32>
    %814 = vector.shape_cast %813 : vector<2xf32> to vector<2x1xf32>
    %815 = vector.extract_strided_slice %6 {offsets = [0, 32], sizes = [1, 32], strides = [1, 1]} : vector<1x96xf32> to vector<1x32xf32>
    %816 = vector.broadcast %815 : vector<1x32xf32> to vector<2x32xf32>
    %817 = arith.mulf %778, %816 : vector<2x32xf32>
    %cst_201 = arith.constant dense<0.000000e+00> : vector<2xf32>
    %818 = vector.multi_reduction <add>, %817, %cst_201 [1] : vector<2x32xf32> to vector<2xf32>
    %819 = vector.shape_cast %818 : vector<2xf32> to vector<2x1xf32>
    %820 = arith.addf %814, %819 : vector<2x1xf32>
    %821 = vector.extract_strided_slice %6 {offsets = [0, 64], sizes = [1, 32], strides = [1, 1]} : vector<1x96xf32> to vector<1x32xf32>
    %822 = vector.broadcast %821 : vector<1x32xf32> to vector<2x32xf32>
    %823 = arith.mulf %807, %822 : vector<2x32xf32>
    %cst_202 = arith.constant dense<0.000000e+00> : vector<2xf32>
    %824 = vector.multi_reduction <add>, %823, %cst_202 [1] : vector<2x32xf32> to vector<2xf32>
    %825 = vector.shape_cast %824 : vector<2xf32> to vector<2x1xf32>
    %826 = arith.addf %820, %825 : vector<2x1xf32>
    %827 = vector.broadcast %7 : f32 to vector<2x1xf32>
    %828 = arith.addf %826, %827 : vector<2x1xf32>
    %829 = arith.negf %828 : vector<2x1xf32>
    %830 = math.exp %829 : vector<2x1xf32>
    %cst_203 = arith.constant 1.000000e+00 : f32
    %831 = vector.broadcast %cst_203 : f32 to vector<2x1xf32>
    %832 = arith.addf %831, %830 : vector<2x1xf32>
    %833 = arith.divf %831, %832 : vector<2x1xf32>
    %834 = vector.broadcast %833 : vector<2x1xf32> to vector<2x128xf32>
    %835 = arith.mulf %834, %805 : vector<2x128xf32>
    %cst_204 = arith.constant 1.000000e+00 : f32
    %836 = vector.broadcast %cst_204 : f32 to vector<2x1xf32>
    %837 = arith.subf %836, %833 : vector<2x1xf32>
    %838 = vector.broadcast %837 : vector<2x1xf32> to vector<2x128xf32>
    %839 = arith.mulf %838, %809 : vector<2x128xf32>
    %840 = arith.addf %835, %839 : vector<2x128xf32>
    %841 = tpu.concatenate %525, %630, %735, %840 in 0 : vector<2x128xf32>, vector<2x128xf32>, vector<2x128xf32>, vector<2x128xf32> -> vector<8x128xf32>
    %c1_205 = arith.constant 1 : index
    %c0_206 = arith.constant 0 : index
    %c0_207 = arith.constant 0 : index
    %842 = vector.load %arg9[%c1_205, %c0_206, %c0_207] : memref<3x8x128xf32, #tpu.memory_space<vmem>>, vector<1x8x128xf32>
    %843 = vector.shape_cast %842 : vector<1x8x128xf32> to vector<8x128xf32>
    %844 = vector.shape_cast %841 : vector<8x128xf32> to vector<1x8x128xf32>
    tpu.vector_store %arg9[%c1_205, %c0_206, %c0_207], %844 {strides = array<i32>} : memref<3x8x128xf32, #tpu.memory_space<vmem>>, vector<1x8x128xf32>,
    %c2 = arith.constant 2 : index
    %c0_208 = arith.constant 0 : index
    %c0_209 = arith.constant 0 : index
    %845 = vector.load %arg1[%c2, %c0_208, %c0_209] : memref<3x2x32xf32, #tpu.memory_space<vmem>>, vector<1x2x32xf32>
    %846 = vector.shape_cast %845 : vector<1x2x32xf32> to vector<2x32xf32>
    %847 = tpu.concatenate %846, %778 in 1 : vector<2x32xf32>, vector<2x32xf32> -> vector<2x64xf32>
    %cst_210 = arith.constant dense<0.000000e+00> : vector<2x192xf32>
    %848 = tpu.matmul %847, %4, %cst_210 {dimension_numbers = #tpu.dot_dimension_numbers<[1], [0], [0], [1], [0, 0, 1, 1], [], []>} : vector<2x64xf32>, vector<64x192xf32>, vector<2x192xf32> -> vector<2x192xf32>
    %849 = vector.broadcast %5 : vector<1x192xf32> to vector<2x192xf32>
    %850 = arith.addf %848, %849 : vector<2x192xf32>
    %851 = vector.extract_strided_slice %850 {offsets = [0, 0], sizes = [2, 32], strides = [1, 1]} : vector<2x192xf32> to vector<2x32xf32>
    %852 = vector.extract_strided_slice %850 {offsets = [0, 96], sizes = [2, 32], strides = [1, 1]} : vector<2x192xf32> to vector<2x32xf32>
    %853 = arith.addf %851, %852 : vector<2x32xf32>
    %854 = arith.negf %853 : vector<2x32xf32>
    %855 = math.exp %854 : vector<2x32xf32>
    %cst_211 = arith.constant 1.000000e+00 : f32
    %856 = vector.broadcast %cst_211 : f32 to vector<2x32xf32>
    %857 = arith.addf %856, %855 : vector<2x32xf32>
    %858 = arith.divf %856, %857 : vector<2x32xf32>
    %859 = vector.extract_strided_slice %850 {offsets = [0, 32], sizes = [2, 32], strides = [1, 1]} : vector<2x192xf32> to vector<2x32xf32>
    %860 = vector.extract_strided_slice %850 {offsets = [0, 128], sizes = [2, 32], strides = [1, 1]} : vector<2x192xf32> to vector<2x32xf32>
    %861 = arith.addf %859, %860 : vector<2x32xf32>
    %862 = arith.negf %861 : vector<2x32xf32>
    %863 = math.exp %862 : vector<2x32xf32>
    %cst_212 = arith.constant 1.000000e+00 : f32
    %864 = vector.broadcast %cst_212 : f32 to vector<2x32xf32>
    %865 = arith.addf %864, %863 : vector<2x32xf32>
    %866 = arith.divf %864, %865 : vector<2x32xf32>
    %867 = vector.extract_strided_slice %850 {offsets = [0, 64], sizes = [2, 32], strides = [1, 1]} : vector<2x192xf32> to vector<2x32xf32>
    %868 = vector.extract_strided_slice %850 {offsets = [0, 160], sizes = [2, 32], strides = [1, 1]} : vector<2x192xf32> to vector<2x32xf32>
    %869 = arith.mulf %858, %868 : vector<2x32xf32>
    %870 = arith.addf %867, %869 : vector<2x32xf32>
    %871 = math.tanh %870 : vector<2x32xf32>
    %cst_213 = arith.constant 1.000000e+00 : f32
    %872 = vector.broadcast %cst_213 : f32 to vector<2x32xf32>
    %873 = arith.subf %872, %866 : vector<2x32xf32>
    %874 = arith.mulf %873, %871 : vector<2x32xf32>
    %875 = arith.mulf %866, %778 : vector<2x32xf32>
    %876 = arith.addf %874, %875 : vector<2x32xf32>
    %877 = vector.shape_cast %876 : vector<2x32xf32> to vector<2x1x32xf32>
    "tpu.trace_start"() <{level = 10 : i32, message = "bqh,bsh->bqs"}> : () -> ()
    %cst_214 = arith.constant dense<0.000000e+00> : vector<2x1x8xf32>
    %878 = tpu.matmul %877, %1, %cst_214 {dimension_numbers = #tpu.dot_dimension_numbers<[2], [2], [1], [1], [0, 0, 0, 1, 1, 1], [0], [0]>} : vector<2x1x32xf32>, vector<2x8x32xf32>, vector<2x1x8xf32> -> vector<2x1x8xf32>
    %cst_215 = arith.constant -1.000000e+09 : f32
    "tpu.trace_stop"() : () -> ()
    %879 = vector.broadcast %cst_215 : f32 to vector<2x1x8xf32>
    %880 = arith.select %10, %879, %878 : vector<2x1x8xi1>, vector<2x1x8xf32>
    %cst_216 = arith.constant dense<0xFF800000> : vector<2x1xf32>
    %881 = vector.multi_reduction <maximumf>, %880, %cst_216 [2] : vector<2x1x8xf32> to vector<2x1xf32>
    %cst_217 = arith.constant 0xFF800000 : f32
    %882 = vector.broadcast %cst_217 : f32 to vector<2x1xf32>
    %883 = arith.maximumf %882, %881 : vector<2x1xf32>
    %884 = vector.shape_cast %883 : vector<2x1xf32> to vector<2x1x1xf32>
    %885 = vector.broadcast %884 : vector<2x1x1xf32> to vector<2x1x8xf32>
    %886 = arith.subf %880, %885 : vector<2x1x8xf32>
    %887 = math.exp %886 : vector<2x1x8xf32>
    %cst_218 = arith.constant dense<0.000000e+00> : vector<2x1xf32>
    %888 = vector.multi_reduction <add>, %887, %cst_218 [2] : vector<2x1x8xf32> to vector<2x1xf32>
    %889 = vector.shape_cast %888 : vector<2x1xf32> to vector<2x1x1xf32>
    %890 = vector.broadcast %889 : vector<2x1x1xf32> to vector<2x1x8xf32>
    %891 = arith.divf %887, %890 : vector<2x1x8xf32>
    %cst_219 = arith.constant dense<0.000000e+00> : vector<2x128xf32>
    %892 = tpu.matmul %876, %3, %cst_219 {dimension_numbers = #tpu.dot_dimension_numbers<[1], [0], [0], [1], [0, 0, 1, 1], [], []>} : vector<2x32xf32>, vector<32x128xf32>, vector<2x128xf32> -> vector<2x128xf32>
    %cst_220 = arith.constant dense<0xFF800000> : vector<2xf32>
    %893 = vector.multi_reduction <maximumf>, %892, %cst_220 [1] : vector<2x128xf32> to vector<2xf32>
    %cst_221 = arith.constant 0xFF800000 : f32
    %894 = vector.broadcast %cst_221 : f32 to vector<2xf32>
    %895 = arith.maximumf %894, %893 : vector<2xf32>
    %896 = vector.shape_cast %895 : vector<2xf32> to vector<2x1xf32>
    %897 = vector.broadcast %896 : vector<2x1xf32> to vector<2x128xf32>
    %898 = arith.subf %892, %897 : vector<2x128xf32>
    %899 = math.exp %898 : vector<2x128xf32>
    %cst_222 = arith.constant dense<0.000000e+00> : vector<2xf32>
    %900 = vector.multi_reduction <add>, %899, %cst_222 [1] : vector<2x128xf32> to vector<2xf32>
    %901 = vector.shape_cast %900 : vector<2xf32> to vector<2x1xf32>
    %902 = vector.broadcast %901 : vector<2x1xf32> to vector<2x128xf32>
    %903 = arith.divf %899, %902 : vector<2x128xf32>
    "tpu.trace_start"() <{level = 10 : i32, message = "bqs,bsh->bqh"}> : () -> ()
    %cst_223 = arith.constant dense<0.000000e+00> : vector<2x1x32xf32>
    %904 = tpu.matmul %891, %1, %cst_223 {dimension_numbers = #tpu.dot_dimension_numbers<[2], [1], [1], [2], [0, 0, 0, 1, 1, 2], [0], [0]>} : vector<2x1x8xf32>, vector<2x8x32xf32>, vector<2x1x32xf32> -> vector<2x1x32xf32>
    "tpu.trace_stop"() : () -> ()
    %905 = vector.shape_cast %904 : vector<2x1x32xf32> to vector<2x32xf32>
    "tpu.trace_start"() <{level = 10 : i32, message = "bqs,bsv->bqv"}> : () -> ()
    %cst_224 = arith.constant dense<0.000000e+00> : vector<2x1x128xf32>
    %906 = tpu.matmul %891, %16, %cst_224 {dimension_numbers = #tpu.dot_dimension_numbers<[2], [1], [1], [2], [0, 0, 0, 1, 1, 2], [0], [0]>} : vector<2x1x8xf32>, vector<2x8x128xf32>, vector<2x1x128xf32> -> vector<2x1x128xf32>
    "tpu.trace_stop"() : () -> ()
    %907 = vector.shape_cast %906 : vector<2x1x128xf32> to vector<2x128xf32>
    %908 = vector.extract_strided_slice %6 {offsets = [0, 0], sizes = [1, 32], strides = [1, 1]} : vector<1x96xf32> to vector<1x32xf32>
    %909 = vector.broadcast %908 : vector<1x32xf32> to vector<2x32xf32>
    %910 = arith.mulf %846, %909 : vector<2x32xf32>
    %cst_225 = arith.constant dense<0.000000e+00> : vector<2xf32>
    %911 = vector.multi_reduction <add>, %910, %cst_225 [1] : vector<2x32xf32> to vector<2xf32>
    %912 = vector.shape_cast %911 : vector<2xf32> to vector<2x1xf32>
    %913 = vector.extract_strided_slice %6 {offsets = [0, 32], sizes = [1, 32], strides = [1, 1]} : vector<1x96xf32> to vector<1x32xf32>
    %914 = vector.broadcast %913 : vector<1x32xf32> to vector<2x32xf32>
    %915 = arith.mulf %876, %914 : vector<2x32xf32>
    %cst_226 = arith.constant dense<0.000000e+00> : vector<2xf32>
    %916 = vector.multi_reduction <add>, %915, %cst_226 [1] : vector<2x32xf32> to vector<2xf32>
    %917 = vector.shape_cast %916 : vector<2xf32> to vector<2x1xf32>
    %918 = arith.addf %912, %917 : vector<2x1xf32>
    %919 = vector.extract_strided_slice %6 {offsets = [0, 64], sizes = [1, 32], strides = [1, 1]} : vector<1x96xf32> to vector<1x32xf32>
    %920 = vector.broadcast %919 : vector<1x32xf32> to vector<2x32xf32>
    %921 = arith.mulf %905, %920 : vector<2x32xf32>
    %cst_227 = arith.constant dense<0.000000e+00> : vector<2xf32>
    %922 = vector.multi_reduction <add>, %921, %cst_227 [1] : vector<2x32xf32> to vector<2xf32>
    %923 = vector.shape_cast %922 : vector<2xf32> to vector<2x1xf32>
    %924 = arith.addf %918, %923 : vector<2x1xf32>
    %925 = vector.broadcast %7 : f32 to vector<2x1xf32>
    %926 = arith.addf %924, %925 : vector<2x1xf32>
    %927 = arith.negf %926 : vector<2x1xf32>
    %928 = math.exp %927 : vector<2x1xf32>
    %cst_228 = arith.constant 1.000000e+00 : f32
    %929 = vector.broadcast %cst_228 : f32 to vector<2x1xf32>
    %930 = arith.addf %929, %928 : vector<2x1xf32>
    %931 = arith.divf %929, %930 : vector<2x1xf32>
    %932 = vector.broadcast %931 : vector<2x1xf32> to vector<2x128xf32>
    %933 = arith.mulf %932, %903 : vector<2x128xf32>
    %cst_229 = arith.constant 1.000000e+00 : f32
    %934 = vector.broadcast %cst_229 : f32 to vector<2x1xf32>
    %935 = arith.subf %934, %931 : vector<2x1xf32>
    %936 = vector.broadcast %935 : vector<2x1xf32> to vector<2x128xf32>
    %937 = arith.mulf %936, %907 : vector<2x128xf32>
    %938 = arith.addf %933, %937 : vector<2x128xf32>
    %cst_230 = arith.constant dense<0xFF800000> : vector<2xf32>
    %939 = vector.multi_reduction <maximumf>, %938, %cst_230 [1] : vector<2x128xf32> to vector<2xf32>
    %940 = vector.shape_cast %939 : vector<2xf32> to vector<2x1xf32>
    %941 = vector.broadcast %940 : vector<2x1xf32> to vector<2x128xf32>
    %942 = arith.cmpf oge, %938, %941 : vector<2x128xf32>
    %c128_i32_231 = arith.constant 128 : i32
    %943 = vector.broadcast %c128_i32_231 : i32 to vector<2x128xi32>
    %944 = arith.select %942, %17, %943 : vector<2x128xi1>, vector<2x128xi32>
    %cst_232 = arith.constant dense<2147483647> : vector<2xi32>
    %945 = vector.multi_reduction <minsi>, %944, %cst_232 [1] : vector<2x128xi32> to vector<2xi32>
    %946 = vector.shape_cast %945 : vector<2xi32> to vector<2x1xi32>
    %947 = vector.broadcast %946 : vector<2x1xi32> to vector<2x128xi32>
    %948 = arith.cmpi eq, %17, %947 : vector<2x128xi32>
    %949 = arith.extui %948 : vector<2x128xi1> to vector<2x128xi32>
    %950 = arith.sitofp %949 : vector<2x128xi32> to vector<2x128xf32>
    %cst_233 = arith.constant dense<0.000000e+00> : vector<2x32xf32>
    %951 = tpu.matmul %950, %2, %cst_233 {dimension_numbers = #tpu.dot_dimension_numbers<[1], [0], [0], [1], [0, 0, 1, 1], [], []>} : vector<2x128xf32>, vector<128x32xf32>, vector<2x32xf32> -> vector<2x32xf32>
    %952 = tpu.concatenate %951, %876 in 1 : vector<2x32xf32>, vector<2x32xf32> -> vector<2x64xf32>
    %cst_234 = arith.constant dense<0.000000e+00> : vector<2x192xf32>
    %953 = tpu.matmul %952, %4, %cst_234 {dimension_numbers = #tpu.dot_dimension_numbers<[1], [0], [0], [1], [0, 0, 1, 1], [], []>} : vector<2x64xf32>, vector<64x192xf32>, vector<2x192xf32> -> vector<2x192xf32>
    %954 = vector.broadcast %5 : vector<1x192xf32> to vector<2x192xf32>
    %955 = arith.addf %953, %954 : vector<2x192xf32>
    %956 = vector.extract_strided_slice %955 {offsets = [0, 0], sizes = [2, 32], strides = [1, 1]} : vector<2x192xf32> to vector<2x32xf32>
    %957 = vector.extract_strided_slice %955 {offsets = [0, 96], sizes = [2, 32], strides = [1, 1]} : vector<2x192xf32> to vector<2x32xf32>
    %958 = arith.addf %956, %957 : vector<2x32xf32>
    %959 = arith.negf %958 : vector<2x32xf32>
    %960 = math.exp %959 : vector<2x32xf32>
    %cst_235 = arith.constant 1.000000e+00 : f32
    %961 = vector.broadcast %cst_235 : f32 to vector<2x32xf32>
    %962 = arith.addf %961, %960 : vector<2x32xf32>
    %963 = arith.divf %961, %962 : vector<2x32xf32>
    %964 = vector.extract_strided_slice %955 {offsets = [0, 32], sizes = [2, 32], strides = [1, 1]} : vector<2x192xf32> to vector<2x32xf32>
    %965 = vector.extract_strided_slice %955 {offsets = [0, 128], sizes = [2, 32], strides = [1, 1]} : vector<2x192xf32> to vector<2x32xf32>
    %966 = arith.addf %964, %965 : vector<2x32xf32>
    %967 = arith.negf %966 : vector<2x32xf32>
    %968 = math.exp %967 : vector<2x32xf32>
    %cst_236 = arith.constant 1.000000e+00 : f32
    %969 = vector.broadcast %cst_236 : f32 to vector<2x32xf32>
    %970 = arith.addf %969, %968 : vector<2x32xf32>
    %971 = arith.divf %969, %970 : vector<2x32xf32>
    %972 = vector.extract_strided_slice %955 {offsets = [0, 64], sizes = [2, 32], strides = [1, 1]} : vector<2x192xf32> to vector<2x32xf32>
    %973 = vector.extract_strided_slice %955 {offsets = [0, 160], sizes = [2, 32], strides = [1, 1]} : vector<2x192xf32> to vector<2x32xf32>
    %974 = arith.mulf %963, %973 : vector<2x32xf32>
    %975 = arith.addf %972, %974 : vector<2x32xf32>
    %976 = math.tanh %975 : vector<2x32xf32>
    %cst_237 = arith.constant 1.000000e+00 : f32
    %977 = vector.broadcast %cst_237 : f32 to vector<2x32xf32>
    %978 = arith.subf %977, %971 : vector<2x32xf32>
    %979 = arith.mulf %978, %976 : vector<2x32xf32>
    %980 = arith.mulf %971, %876 : vector<2x32xf32>
    %981 = arith.addf %979, %980 : vector<2x32xf32>
    %982 = vector.shape_cast %981 : vector<2x32xf32> to vector<2x1x32xf32>
    "tpu.trace_start"() <{level = 10 : i32, message = "bqh,bsh->bqs"}> : () -> ()
    %cst_238 = arith.constant dense<0.000000e+00> : vector<2x1x8xf32>
    %983 = tpu.matmul %982, %1, %cst_238 {dimension_numbers = #tpu.dot_dimension_numbers<[2], [2], [1], [1], [0, 0, 0, 1, 1, 1], [0], [0]>} : vector<2x1x32xf32>, vector<2x8x32xf32>, vector<2x1x8xf32> -> vector<2x1x8xf32>
    %cst_239 = arith.constant -1.000000e+09 : f32
    "tpu.trace_stop"() : () -> ()
    %984 = vector.broadcast %cst_239 : f32 to vector<2x1x8xf32>
    %985 = arith.select %10, %984, %983 : vector<2x1x8xi1>, vector<2x1x8xf32>
    %cst_240 = arith.constant dense<0xFF800000> : vector<2x1xf32>
    %986 = vector.multi_reduction <maximumf>, %985, %cst_240 [2] : vector<2x1x8xf32> to vector<2x1xf32>
    %cst_241 = arith.constant 0xFF800000 : f32
    %987 = vector.broadcast %cst_241 : f32 to vector<2x1xf32>
    %988 = arith.maximumf %987, %986 : vector<2x1xf32>
    %989 = vector.shape_cast %988 : vector<2x1xf32> to vector<2x1x1xf32>
    %990 = vector.broadcast %989 : vector<2x1x1xf32> to vector<2x1x8xf32>
    %991 = arith.subf %985, %990 : vector<2x1x8xf32>
    %992 = math.exp %991 : vector<2x1x8xf32>
    %cst_242 = arith.constant dense<0.000000e+00> : vector<2x1xf32>
    %993 = vector.multi_reduction <add>, %992, %cst_242 [2] : vector<2x1x8xf32> to vector<2x1xf32>
    %994 = vector.shape_cast %993 : vector<2x1xf32> to vector<2x1x1xf32>
    %995 = vector.broadcast %994 : vector<2x1x1xf32> to vector<2x1x8xf32>
    %996 = arith.divf %992, %995 : vector<2x1x8xf32>
    %cst_243 = arith.constant dense<0.000000e+00> : vector<2x128xf32>
    %997 = tpu.matmul %981, %3, %cst_243 {dimension_numbers = #tpu.dot_dimension_numbers<[1], [0], [0], [1], [0, 0, 1, 1], [], []>} : vector<2x32xf32>, vector<32x128xf32>, vector<2x128xf32> -> vector<2x128xf32>
    %cst_244 = arith.constant dense<0xFF800000> : vector<2xf32>
    %998 = vector.multi_reduction <maximumf>, %997, %cst_244 [1] : vector<2x128xf32> to vector<2xf32>
    %cst_245 = arith.constant 0xFF800000 : f32
    %999 = vector.broadcast %cst_245 : f32 to vector<2xf32>
    %1000 = arith.maximumf %999, %998 : vector<2xf32>
    %1001 = vector.shape_cast %1000 : vector<2xf32> to vector<2x1xf32>
    %1002 = vector.broadcast %1001 : vector<2x1xf32> to vector<2x128xf32>
    %1003 = arith.subf %997, %1002 : vector<2x128xf32>
    %1004 = math.exp %1003 : vector<2x128xf32>
    %cst_246 = arith.constant dense<0.000000e+00> : vector<2xf32>
    %1005 = vector.multi_reduction <add>, %1004, %cst_246 [1] : vector<2x128xf32> to vector<2xf32>
    %1006 = vector.shape_cast %1005 : vector<2xf32> to vector<2x1xf32>
    %1007 = vector.broadcast %1006 : vector<2x1xf32> to vector<2x128xf32>
    %1008 = arith.divf %1004, %1007 : vector<2x128xf32>
    "tpu.trace_start"() <{level = 10 : i32, message = "bqs,bsh->bqh"}> : () -> ()
    %cst_247 = arith.constant dense<0.000000e+00> : vector<2x1x32xf32>
    %1009 = tpu.matmul %996, %1, %cst_247 {dimension_numbers = #tpu.dot_dimension_numbers<[2], [1], [1], [2], [0, 0, 0, 1, 1, 2], [0], [0]>} : vector<2x1x8xf32>, vector<2x8x32xf32>, vector<2x1x32xf32> -> vector<2x1x32xf32>
    "tpu.trace_stop"() : () -> ()
    %1010 = vector.shape_cast %1009 : vector<2x1x32xf32> to vector<2x32xf32>
    "tpu.trace_start"() <{level = 10 : i32, message = "bqs,bsv->bqv"}> : () -> ()
    %cst_248 = arith.constant dense<0.000000e+00> : vector<2x1x128xf32>
    %1011 = tpu.matmul %996, %16, %cst_248 {dimension_numbers = #tpu.dot_dimension_numbers<[2], [1], [1], [2], [0, 0, 0, 1, 1, 2], [0], [0]>} : vector<2x1x8xf32>, vector<2x8x128xf32>, vector<2x1x128xf32> -> vector<2x1x128xf32>
    "tpu.trace_stop"() : () -> ()
    %1012 = vector.shape_cast %1011 : vector<2x1x128xf32> to vector<2x128xf32>
    %1013 = vector.extract_strided_slice %6 {offsets = [0, 0], sizes = [1, 32], strides = [1, 1]} : vector<1x96xf32> to vector<1x32xf32>
    %1014 = vector.broadcast %1013 : vector<1x32xf32> to vector<2x32xf32>
    %1015 = arith.mulf %951, %1014 : vector<2x32xf32>
    %cst_249 = arith.constant dense<0.000000e+00> : vector<2xf32>
    %1016 = vector.multi_reduction <add>, %1015, %cst_249 [1] : vector<2x32xf32> to vector<2xf32>
    %1017 = vector.shape_cast %1016 : vector<2xf32> to vector<2x1xf32>
    %1018 = vector.extract_strided_slice %6 {offsets = [0, 32], sizes = [1, 32], strides = [1, 1]} : vector<1x96xf32> to vector<1x32xf32>
    %1019 = vector.broadcast %1018 : vector<1x32xf32> to vector<2x32xf32>
    %1020 = arith.mulf %981, %1019 : vector<2x32xf32>
    %cst_250 = arith.constant dense<0.000000e+00> : vector<2xf32>
    %1021 = vector.multi_reduction <add>, %1020, %cst_250 [1] : vector<2x32xf32> to vector<2xf32>
    %1022 = vector.shape_cast %1021 : vector<2xf32> to vector<2x1xf32>
    %1023 = arith.addf %1017, %1022 : vector<2x1xf32>
    %1024 = vector.extract_strided_slice %6 {offsets = [0, 64], sizes = [1, 32], strides = [1, 1]} : vector<1x96xf32> to vector<1x32xf32>
    %1025 = vector.broadcast %1024 : vector<1x32xf32> to vector<2x32xf32>
    %1026 = arith.mulf %1010, %1025 : vector<2x32xf32>
    %cst_251 = arith.constant dense<0.000000e+00> : vector<2xf32>
    %1027 = vector.multi_reduction <add>, %1026, %cst_251 [1] : vector<2x32xf32> to vector<2xf32>
    %1028 = vector.shape_cast %1027 : vector<2xf32> to vector<2x1xf32>
    %1029 = arith.addf %1023, %1028 : vector<2x1xf32>
    %1030 = vector.broadcast %7 : f32 to vector<2x1xf32>
    %1031 = arith.addf %1029, %1030 : vector<2x1xf32>
    %1032 = arith.negf %1031 : vector<2x1xf32>
    %1033 = math.exp %1032 : vector<2x1xf32>
    %cst_252 = arith.constant 1.000000e+00 : f32
    %1034 = vector.broadcast %cst_252 : f32 to vector<2x1xf32>
    %1035 = arith.addf %1034, %1033 : vector<2x1xf32>
    %1036 = arith.divf %1034, %1035 : vector<2x1xf32>
    %1037 = vector.broadcast %1036 : vector<2x1xf32> to vector<2x128xf32>
    %1038 = arith.mulf %1037, %1008 : vector<2x128xf32>
    %cst_253 = arith.constant 1.000000e+00 : f32
    %1039 = vector.broadcast %cst_253 : f32 to vector<2x1xf32>
    %1040 = arith.subf %1039, %1036 : vector<2x1xf32>
    %1041 = vector.broadcast %1040 : vector<2x1xf32> to vector<2x128xf32>
    %1042 = arith.mulf %1041, %1012 : vector<2x128xf32>
    %1043 = arith.addf %1038, %1042 : vector<2x128xf32>
    %cst_254 = arith.constant dense<0xFF800000> : vector<2xf32>
    %1044 = vector.multi_reduction <maximumf>, %1043, %cst_254 [1] : vector<2x128xf32> to vector<2xf32>
    %1045 = vector.shape_cast %1044 : vector<2xf32> to vector<2x1xf32>
    %1046 = vector.broadcast %1045 : vector<2x1xf32> to vector<2x128xf32>
    %1047 = arith.cmpf oge, %1043, %1046 : vector<2x128xf32>
    %c128_i32_255 = arith.constant 128 : i32
    %1048 = vector.broadcast %c128_i32_255 : i32 to vector<2x128xi32>
    %1049 = arith.select %1047, %17, %1048 : vector<2x128xi1>, vector<2x128xi32>
    %cst_256 = arith.constant dense<2147483647> : vector<2xi32>
    %1050 = vector.multi_reduction <minsi>, %1049, %cst_256 [1] : vector<2x128xi32> to vector<2xi32>
    %1051 = vector.shape_cast %1050 : vector<2xi32> to vector<2x1xi32>
    %1052 = vector.broadcast %1051 : vector<2x1xi32> to vector<2x128xi32>
    %1053 = arith.cmpi eq, %17, %1052 : vector<2x128xi32>
    %1054 = arith.extui %1053 : vector<2x128xi1> to vector<2x128xi32>
    %1055 = arith.sitofp %1054 : vector<2x128xi32> to vector<2x128xf32>
    %cst_257 = arith.constant dense<0.000000e+00> : vector<2x32xf32>
    %1056 = tpu.matmul %1055, %2, %cst_257 {dimension_numbers = #tpu.dot_dimension_numbers<[1], [0], [0], [1], [0, 0, 1, 1], [], []>} : vector<2x128xf32>, vector<128x32xf32>, vector<2x32xf32> -> vector<2x32xf32>
    %1057 = tpu.concatenate %1056, %981 in 1 : vector<2x32xf32>, vector<2x32xf32> -> vector<2x64xf32>
    %cst_258 = arith.constant dense<0.000000e+00> : vector<2x192xf32>
    %1058 = tpu.matmul %1057, %4, %cst_258 {dimension_numbers = #tpu.dot_dimension_numbers<[1], [0], [0], [1], [0, 0, 1, 1], [], []>} : vector<2x64xf32>, vector<64x192xf32>, vector<2x192xf32> -> vector<2x192xf32>
    %1059 = vector.broadcast %5 : vector<1x192xf32> to vector<2x192xf32>
    %1060 = arith.addf %1058, %1059 : vector<2x192xf32>
    %1061 = vector.extract_strided_slice %1060 {offsets = [0, 0], sizes = [2, 32], strides = [1, 1]} : vector<2x192xf32> to vector<2x32xf32>
    %1062 = vector.extract_strided_slice %1060 {offsets = [0, 96], sizes = [2, 32], strides = [1, 1]} : vector<2x192xf32> to vector<2x32xf32>
    %1063 = arith.addf %1061, %1062 : vector<2x32xf32>
    %1064 = arith.negf %1063 : vector<2x32xf32>
    %1065 = math.exp %1064 : vector<2x32xf32>
    %cst_259 = arith.constant 1.000000e+00 : f32
    %1066 = vector.broadcast %cst_259 : f32 to vector<2x32xf32>
    %1067 = arith.addf %1066, %1065 : vector<2x32xf32>
    %1068 = arith.divf %1066, %1067 : vector<2x32xf32>
    %1069 = vector.extract_strided_slice %1060 {offsets = [0, 32], sizes = [2, 32], strides = [1, 1]} : vector<2x192xf32> to vector<2x32xf32>
    %1070 = vector.extract_strided_slice %1060 {offsets = [0, 128], sizes = [2, 32], strides = [1, 1]} : vector<2x192xf32> to vector<2x32xf32>
    %1071 = arith.addf %1069, %1070 : vector<2x32xf32>
    %1072 = arith.negf %1071 : vector<2x32xf32>
    %1073 = math.exp %1072 : vector<2x32xf32>
    %cst_260 = arith.constant 1.000000e+00 : f32
    %1074 = vector.broadcast %cst_260 : f32 to vector<2x32xf32>
    %1075 = arith.addf %1074, %1073 : vector<2x32xf32>
    %1076 = arith.divf %1074, %1075 : vector<2x32xf32>
    %1077 = vector.extract_strided_slice %1060 {offsets = [0, 64], sizes = [2, 32], strides = [1, 1]} : vector<2x192xf32> to vector<2x32xf32>
    %1078 = vector.extract_strided_slice %1060 {offsets = [0, 160], sizes = [2, 32], strides = [1, 1]} : vector<2x192xf32> to vector<2x32xf32>
    %1079 = arith.mulf %1068, %1078 : vector<2x32xf32>
    %1080 = arith.addf %1077, %1079 : vector<2x32xf32>
    %1081 = math.tanh %1080 : vector<2x32xf32>
    %cst_261 = arith.constant 1.000000e+00 : f32
    %1082 = vector.broadcast %cst_261 : f32 to vector<2x32xf32>
    %1083 = arith.subf %1082, %1076 : vector<2x32xf32>
    %1084 = arith.mulf %1083, %1081 : vector<2x32xf32>
    %1085 = arith.mulf %1076, %981 : vector<2x32xf32>
    %1086 = arith.addf %1084, %1085 : vector<2x32xf32>
    %1087 = vector.shape_cast %1086 : vector<2x32xf32> to vector<2x1x32xf32>
    "tpu.trace_start"() <{level = 10 : i32, message = "bqh,bsh->bqs"}> : () -> ()
    %cst_262 = arith.constant dense<0.000000e+00> : vector<2x1x8xf32>
    %1088 = tpu.matmul %1087, %1, %cst_262 {dimension_numbers = #tpu.dot_dimension_numbers<[2], [2], [1], [1], [0, 0, 0, 1, 1, 1], [0], [0]>} : vector<2x1x32xf32>, vector<2x8x32xf32>, vector<2x1x8xf32> -> vector<2x1x8xf32>
    %cst_263 = arith.constant -1.000000e+09 : f32
    "tpu.trace_stop"() : () -> ()
    %1089 = vector.broadcast %cst_263 : f32 to vector<2x1x8xf32>
    %1090 = arith.select %10, %1089, %1088 : vector<2x1x8xi1>, vector<2x1x8xf32>
    %cst_264 = arith.constant dense<0xFF800000> : vector<2x1xf32>
    %1091 = vector.multi_reduction <maximumf>, %1090, %cst_264 [2] : vector<2x1x8xf32> to vector<2x1xf32>
    %cst_265 = arith.constant 0xFF800000 : f32
    %1092 = vector.broadcast %cst_265 : f32 to vector<2x1xf32>
    %1093 = arith.maximumf %1092, %1091 : vector<2x1xf32>
    %1094 = vector.shape_cast %1093 : vector<2x1xf32> to vector<2x1x1xf32>
    %1095 = vector.broadcast %1094 : vector<2x1x1xf32> to vector<2x1x8xf32>
    %1096 = arith.subf %1090, %1095 : vector<2x1x8xf32>
    %1097 = math.exp %1096 : vector<2x1x8xf32>
    %cst_266 = arith.constant dense<0.000000e+00> : vector<2x1xf32>
    %1098 = vector.multi_reduction <add>, %1097, %cst_266 [2] : vector<2x1x8xf32> to vector<2x1xf32>
    %1099 = vector.shape_cast %1098 : vector<2x1xf32> to vector<2x1x1xf32>
    %1100 = vector.broadcast %1099 : vector<2x1x1xf32> to vector<2x1x8xf32>
    %1101 = arith.divf %1097, %1100 : vector<2x1x8xf32>
    %cst_267 = arith.constant dense<0.000000e+00> : vector<2x128xf32>
    %1102 = tpu.matmul %1086, %3, %cst_267 {dimension_numbers = #tpu.dot_dimension_numbers<[1], [0], [0], [1], [0, 0, 1, 1], [], []>} : vector<2x32xf32>, vector<32x128xf32>, vector<2x128xf32> -> vector<2x128xf32>
    %cst_268 = arith.constant dense<0xFF800000> : vector<2xf32>
    %1103 = vector.multi_reduction <maximumf>, %1102, %cst_268 [1] : vector<2x128xf32> to vector<2xf32>
    %cst_269 = arith.constant 0xFF800000 : f32
    %1104 = vector.broadcast %cst_269 : f32 to vector<2xf32>
    %1105 = arith.maximumf %1104, %1103 : vector<2xf32>
    %1106 = vector.shape_cast %1105 : vector<2xf32> to vector<2x1xf32>
    %1107 = vector.broadcast %1106 : vector<2x1xf32> to vector<2x128xf32>
    %1108 = arith.subf %1102, %1107 : vector<2x128xf32>
    %1109 = math.exp %1108 : vector<2x128xf32>
    %cst_270 = arith.constant dense<0.000000e+00> : vector<2xf32>
    %1110 = vector.multi_reduction <add>, %1109, %cst_270 [1] : vector<2x128xf32> to vector<2xf32>
    %1111 = vector.shape_cast %1110 : vector<2xf32> to vector<2x1xf32>
    %1112 = vector.broadcast %1111 : vector<2x1xf32> to vector<2x128xf32>
    %1113 = arith.divf %1109, %1112 : vector<2x128xf32>
    "tpu.trace_start"() <{level = 10 : i32, message = "bqs,bsh->bqh"}> : () -> ()
    %cst_271 = arith.constant dense<0.000000e+00> : vector<2x1x32xf32>
    %1114 = tpu.matmul %1101, %1, %cst_271 {dimension_numbers = #tpu.dot_dimension_numbers<[2], [1], [1], [2], [0, 0, 0, 1, 1, 2], [0], [0]>} : vector<2x1x8xf32>, vector<2x8x32xf32>, vector<2x1x32xf32> -> vector<2x1x32xf32>
    "tpu.trace_stop"() : () -> ()
    %1115 = vector.shape_cast %1114 : vector<2x1x32xf32> to vector<2x32xf32>
    "tpu.trace_start"() <{level = 10 : i32, message = "bqs,bsv->bqv"}> : () -> ()
    %cst_272 = arith.constant dense<0.000000e+00> : vector<2x1x128xf32>
    %1116 = tpu.matmul %1101, %16, %cst_272 {dimension_numbers = #tpu.dot_dimension_numbers<[2], [1], [1], [2], [0, 0, 0, 1, 1, 2], [0], [0]>} : vector<2x1x8xf32>, vector<2x8x128xf32>, vector<2x1x128xf32> -> vector<2x1x128xf32>
    "tpu.trace_stop"() : () -> ()
    %1117 = vector.shape_cast %1116 : vector<2x1x128xf32> to vector<2x128xf32>
    %1118 = vector.extract_strided_slice %6 {offsets = [0, 0], sizes = [1, 32], strides = [1, 1]} : vector<1x96xf32> to vector<1x32xf32>
    %1119 = vector.broadcast %1118 : vector<1x32xf32> to vector<2x32xf32>
    %1120 = arith.mulf %1056, %1119 : vector<2x32xf32>
    %cst_273 = arith.constant dense<0.000000e+00> : vector<2xf32>
    %1121 = vector.multi_reduction <add>, %1120, %cst_273 [1] : vector<2x32xf32> to vector<2xf32>
    %1122 = vector.shape_cast %1121 : vector<2xf32> to vector<2x1xf32>
    %1123 = vector.extract_strided_slice %6 {offsets = [0, 32], sizes = [1, 32], strides = [1, 1]} : vector<1x96xf32> to vector<1x32xf32>
    %1124 = vector.broadcast %1123 : vector<1x32xf32> to vector<2x32xf32>
    %1125 = arith.mulf %1086, %1124 : vector<2x32xf32>
    %cst_274 = arith.constant dense<0.000000e+00> : vector<2xf32>
    %1126 = vector.multi_reduction <add>, %1125, %cst_274 [1] : vector<2x32xf32> to vector<2xf32>
    %1127 = vector.shape_cast %1126 : vector<2xf32> to vector<2x1xf32>
    %1128 = arith.addf %1122, %1127 : vector<2x1xf32>
    %1129 = vector.extract_strided_slice %6 {offsets = [0, 64], sizes = [1, 32], strides = [1, 1]} : vector<1x96xf32> to vector<1x32xf32>
    %1130 = vector.broadcast %1129 : vector<1x32xf32> to vector<2x32xf32>
    %1131 = arith.mulf %1115, %1130 : vector<2x32xf32>
    %cst_275 = arith.constant dense<0.000000e+00> : vector<2xf32>
    %1132 = vector.multi_reduction <add>, %1131, %cst_275 [1] : vector<2x32xf32> to vector<2xf32>
    %1133 = vector.shape_cast %1132 : vector<2xf32> to vector<2x1xf32>
    %1134 = arith.addf %1128, %1133 : vector<2x1xf32>
    %1135 = vector.broadcast %7 : f32 to vector<2x1xf32>
    %1136 = arith.addf %1134, %1135 : vector<2x1xf32>
    %1137 = arith.negf %1136 : vector<2x1xf32>
    %1138 = math.exp %1137 : vector<2x1xf32>
    %cst_276 = arith.constant 1.000000e+00 : f32
    %1139 = vector.broadcast %cst_276 : f32 to vector<2x1xf32>
    %1140 = arith.addf %1139, %1138 : vector<2x1xf32>
    %1141 = arith.divf %1139, %1140 : vector<2x1xf32>
    %1142 = vector.broadcast %1141 : vector<2x1xf32> to vector<2x128xf32>
    %1143 = arith.mulf %1142, %1113 : vector<2x128xf32>
    %cst_277 = arith.constant 1.000000e+00 : f32
    %1144 = vector.broadcast %cst_277 : f32 to vector<2x1xf32>
    %1145 = arith.subf %1144, %1141 : vector<2x1xf32>
    %1146 = vector.broadcast %1145 : vector<2x1xf32> to vector<2x128xf32>
    %1147 = arith.mulf %1146, %1117 : vector<2x128xf32>
    %1148 = arith.addf %1143, %1147 : vector<2x128xf32>
    %cst_278 = arith.constant dense<0xFF800000> : vector<2xf32>
    %1149 = vector.multi_reduction <maximumf>, %1148, %cst_278 [1] : vector<2x128xf32> to vector<2xf32>
    %1150 = vector.shape_cast %1149 : vector<2xf32> to vector<2x1xf32>
    %1151 = vector.broadcast %1150 : vector<2x1xf32> to vector<2x128xf32>
    %1152 = arith.cmpf oge, %1148, %1151 : vector<2x128xf32>
    %c128_i32_279 = arith.constant 128 : i32
    %1153 = vector.broadcast %c128_i32_279 : i32 to vector<2x128xi32>
    %1154 = arith.select %1152, %17, %1153 : vector<2x128xi1>, vector<2x128xi32>
    %cst_280 = arith.constant dense<2147483647> : vector<2xi32>
    %1155 = vector.multi_reduction <minsi>, %1154, %cst_280 [1] : vector<2x128xi32> to vector<2xi32>
    %1156 = vector.shape_cast %1155 : vector<2xi32> to vector<2x1xi32>
    %1157 = vector.broadcast %1156 : vector<2x1xi32> to vector<2x128xi32>
    %1158 = arith.cmpi eq, %17, %1157 : vector<2x128xi32>
    %1159 = arith.extui %1158 : vector<2x128xi1> to vector<2x128xi32>
    %1160 = arith.sitofp %1159 : vector<2x128xi32> to vector<2x128xf32>
    %cst_281 = arith.constant dense<0.000000e+00> : vector<2x32xf32>
    %1161 = tpu.matmul %1160, %2, %cst_281 {dimension_numbers = #tpu.dot_dimension_numbers<[1], [0], [0], [1], [0, 0, 1, 1], [], []>} : vector<2x128xf32>, vector<128x32xf32>, vector<2x32xf32> -> vector<2x32xf32>
    %1162 = tpu.concatenate %1161, %1086 in 1 : vector<2x32xf32>, vector<2x32xf32> -> vector<2x64xf32>
    %cst_282 = arith.constant dense<0.000000e+00> : vector<2x192xf32>
    %1163 = tpu.matmul %1162, %4, %cst_282 {dimension_numbers = #tpu.dot_dimension_numbers<[1], [0], [0], [1], [0, 0, 1, 1], [], []>} : vector<2x64xf32>, vector<64x192xf32>, vector<2x192xf32> -> vector<2x192xf32>
    %1164 = vector.broadcast %5 : vector<1x192xf32> to vector<2x192xf32>
    %1165 = arith.addf %1163, %1164 : vector<2x192xf32>
    %1166 = vector.extract_strided_slice %1165 {offsets = [0, 0], sizes = [2, 32], strides = [1, 1]} : vector<2x192xf32> to vector<2x32xf32>
    %1167 = vector.extract_strided_slice %1165 {offsets = [0, 96], sizes = [2, 32], strides = [1, 1]} : vector<2x192xf32> to vector<2x32xf32>
    %1168 = arith.addf %1166, %1167 : vector<2x32xf32>
    %1169 = arith.negf %1168 : vector<2x32xf32>
    %1170 = math.exp %1169 : vector<2x32xf32>
    %cst_283 = arith.constant 1.000000e+00 : f32
    %1171 = vector.broadcast %cst_283 : f32 to vector<2x32xf32>
    %1172 = arith.addf %1171, %1170 : vector<2x32xf32>
    %1173 = arith.divf %1171, %1172 : vector<2x32xf32>
    %1174 = vector.extract_strided_slice %1165 {offsets = [0, 32], sizes = [2, 32], strides = [1, 1]} : vector<2x192xf32> to vector<2x32xf32>
    %1175 = vector.extract_strided_slice %1165 {offsets = [0, 128], sizes = [2, 32], strides = [1, 1]} : vector<2x192xf32> to vector<2x32xf32>
    %1176 = arith.addf %1174, %1175 : vector<2x32xf32>
    %1177 = arith.negf %1176 : vector<2x32xf32>
    %1178 = math.exp %1177 : vector<2x32xf32>
    %cst_284 = arith.constant 1.000000e+00 : f32
    %1179 = vector.broadcast %cst_284 : f32 to vector<2x32xf32>
    %1180 = arith.addf %1179, %1178 : vector<2x32xf32>
    %1181 = arith.divf %1179, %1180 : vector<2x32xf32>
    %1182 = vector.extract_strided_slice %1165 {offsets = [0, 64], sizes = [2, 32], strides = [1, 1]} : vector<2x192xf32> to vector<2x32xf32>
    %1183 = vector.extract_strided_slice %1165 {offsets = [0, 160], sizes = [2, 32], strides = [1, 1]} : vector<2x192xf32> to vector<2x32xf32>
    %1184 = arith.mulf %1173, %1183 : vector<2x32xf32>
    %1185 = arith.addf %1182, %1184 : vector<2x32xf32>
    %1186 = math.tanh %1185 : vector<2x32xf32>
    %cst_285 = arith.constant 1.000000e+00 : f32
    %1187 = vector.broadcast %cst_285 : f32 to vector<2x32xf32>
    %1188 = arith.subf %1187, %1181 : vector<2x32xf32>
    %1189 = arith.mulf %1188, %1186 : vector<2x32xf32>
    %1190 = arith.mulf %1181, %1086 : vector<2x32xf32>
    %1191 = arith.addf %1189, %1190 : vector<2x32xf32>
    %1192 = vector.shape_cast %1191 : vector<2x32xf32> to vector<2x1x32xf32>
    "tpu.trace_start"() <{level = 10 : i32, message = "bqh,bsh->bqs"}> : () -> ()
    %cst_286 = arith.constant dense<0.000000e+00> : vector<2x1x8xf32>
    %1193 = tpu.matmul %1192, %1, %cst_286 {dimension_numbers = #tpu.dot_dimension_numbers<[2], [2], [1], [1], [0, 0, 0, 1, 1, 1], [0], [0]>} : vector<2x1x32xf32>, vector<2x8x32xf32>, vector<2x1x8xf32> -> vector<2x1x8xf32>
    %cst_287 = arith.constant -1.000000e+09 : f32
    "tpu.trace_stop"() : () -> ()
    %1194 = vector.broadcast %cst_287 : f32 to vector<2x1x8xf32>
    %1195 = arith.select %10, %1194, %1193 : vector<2x1x8xi1>, vector<2x1x8xf32>
    %cst_288 = arith.constant dense<0xFF800000> : vector<2x1xf32>
    %1196 = vector.multi_reduction <maximumf>, %1195, %cst_288 [2] : vector<2x1x8xf32> to vector<2x1xf32>
    %cst_289 = arith.constant 0xFF800000 : f32
    %1197 = vector.broadcast %cst_289 : f32 to vector<2x1xf32>
    %1198 = arith.maximumf %1197, %1196 : vector<2x1xf32>
    %1199 = vector.shape_cast %1198 : vector<2x1xf32> to vector<2x1x1xf32>
    %1200 = vector.broadcast %1199 : vector<2x1x1xf32> to vector<2x1x8xf32>
    %1201 = arith.subf %1195, %1200 : vector<2x1x8xf32>
    %1202 = math.exp %1201 : vector<2x1x8xf32>
    %cst_290 = arith.constant dense<0.000000e+00> : vector<2x1xf32>
    %1203 = vector.multi_reduction <add>, %1202, %cst_290 [2] : vector<2x1x8xf32> to vector<2x1xf32>
    %1204 = vector.shape_cast %1203 : vector<2x1xf32> to vector<2x1x1xf32>
    %1205 = vector.broadcast %1204 : vector<2x1x1xf32> to vector<2x1x8xf32>
    %1206 = arith.divf %1202, %1205 : vector<2x1x8xf32>
    %cst_291 = arith.constant dense<0.000000e+00> : vector<2x128xf32>
    %1207 = tpu.matmul %1191, %3, %cst_291 {dimension_numbers = #tpu.dot_dimension_numbers<[1], [0], [0], [1], [0, 0, 1, 1], [], []>} : vector<2x32xf32>, vector<32x128xf32>, vector<2x128xf32> -> vector<2x128xf32>
    %cst_292 = arith.constant dense<0xFF800000> : vector<2xf32>
    %1208 = vector.multi_reduction <maximumf>, %1207, %cst_292 [1] : vector<2x128xf32> to vector<2xf32>
    %cst_293 = arith.constant 0xFF800000 : f32
    %1209 = vector.broadcast %cst_293 : f32 to vector<2xf32>
    %1210 = arith.maximumf %1209, %1208 : vector<2xf32>
    %1211 = vector.shape_cast %1210 : vector<2xf32> to vector<2x1xf32>
    %1212 = vector.broadcast %1211 : vector<2x1xf32> to vector<2x128xf32>
    %1213 = arith.subf %1207, %1212 : vector<2x128xf32>
    %1214 = math.exp %1213 : vector<2x128xf32>
    %cst_294 = arith.constant dense<0.000000e+00> : vector<2xf32>
    %1215 = vector.multi_reduction <add>, %1214, %cst_294 [1] : vector<2x128xf32> to vector<2xf32>
    %1216 = vector.shape_cast %1215 : vector<2xf32> to vector<2x1xf32>
    %1217 = vector.broadcast %1216 : vector<2x1xf32> to vector<2x128xf32>
    %1218 = arith.divf %1214, %1217 : vector<2x128xf32>
    "tpu.trace_start"() <{level = 10 : i32, message = "bqs,bsh->bqh"}> : () -> ()
    %cst_295 = arith.constant dense<0.000000e+00> : vector<2x1x32xf32>
    %1219 = tpu.matmul %1206, %1, %cst_295 {dimension_numbers = #tpu.dot_dimension_numbers<[2], [1], [1], [2], [0, 0, 0, 1, 1, 2], [0], [0]>} : vector<2x1x8xf32>, vector<2x8x32xf32>, vector<2x1x32xf32> -> vector<2x1x32xf32>
    "tpu.trace_stop"() : () -> ()
    %1220 = vector.shape_cast %1219 : vector<2x1x32xf32> to vector<2x32xf32>
    "tpu.trace_start"() <{level = 10 : i32, message = "bqs,bsv->bqv"}> : () -> ()
    %cst_296 = arith.constant dense<0.000000e+00> : vector<2x1x128xf32>
    %1221 = tpu.matmul %1206, %16, %cst_296 {dimension_numbers = #tpu.dot_dimension_numbers<[2], [1], [1], [2], [0, 0, 0, 1, 1, 2], [0], [0]>} : vector<2x1x8xf32>, vector<2x8x128xf32>, vector<2x1x128xf32> -> vector<2x1x128xf32>
    "tpu.trace_stop"() : () -> ()
    %1222 = vector.shape_cast %1221 : vector<2x1x128xf32> to vector<2x128xf32>
    %1223 = vector.extract_strided_slice %6 {offsets = [0, 0], sizes = [1, 32], strides = [1, 1]} : vector<1x96xf32> to vector<1x32xf32>
    %1224 = vector.broadcast %1223 : vector<1x32xf32> to vector<2x32xf32>
    %1225 = arith.mulf %1161, %1224 : vector<2x32xf32>
    %cst_297 = arith.constant dense<0.000000e+00> : vector<2xf32>
    %1226 = vector.multi_reduction <add>, %1225, %cst_297 [1] : vector<2x32xf32> to vector<2xf32>
    %1227 = vector.shape_cast %1226 : vector<2xf32> to vector<2x1xf32>
    %1228 = vector.extract_strided_slice %6 {offsets = [0, 32], sizes = [1, 32], strides = [1, 1]} : vector<1x96xf32> to vector<1x32xf32>
    %1229 = vector.broadcast %1228 : vector<1x32xf32> to vector<2x32xf32>
    %1230 = arith.mulf %1191, %1229 : vector<2x32xf32>
    %cst_298 = arith.constant dense<0.000000e+00> : vector<2xf32>
    %1231 = vector.multi_reduction <add>, %1230, %cst_298 [1] : vector<2x32xf32> to vector<2xf32>
    %1232 = vector.shape_cast %1231 : vector<2xf32> to vector<2x1xf32>
    %1233 = arith.addf %1227, %1232 : vector<2x1xf32>
    %1234 = vector.extract_strided_slice %6 {offsets = [0, 64], sizes = [1, 32], strides = [1, 1]} : vector<1x96xf32> to vector<1x32xf32>
    %1235 = vector.broadcast %1234 : vector<1x32xf32> to vector<2x32xf32>
    %1236 = arith.mulf %1220, %1235 : vector<2x32xf32>
    %cst_299 = arith.constant dense<0.000000e+00> : vector<2xf32>
    %1237 = vector.multi_reduction <add>, %1236, %cst_299 [1] : vector<2x32xf32> to vector<2xf32>
    %1238 = vector.shape_cast %1237 : vector<2xf32> to vector<2x1xf32>
    %1239 = arith.addf %1233, %1238 : vector<2x1xf32>
    %1240 = vector.broadcast %7 : f32 to vector<2x1xf32>
    %1241 = arith.addf %1239, %1240 : vector<2x1xf32>
    %1242 = arith.negf %1241 : vector<2x1xf32>
    %1243 = math.exp %1242 : vector<2x1xf32>
    %cst_300 = arith.constant 1.000000e+00 : f32
    %1244 = vector.broadcast %cst_300 : f32 to vector<2x1xf32>
    %1245 = arith.addf %1244, %1243 : vector<2x1xf32>
    %1246 = arith.divf %1244, %1245 : vector<2x1xf32>
    %1247 = vector.broadcast %1246 : vector<2x1xf32> to vector<2x128xf32>
    %1248 = arith.mulf %1247, %1218 : vector<2x128xf32>
    %cst_301 = arith.constant 1.000000e+00 : f32
    %1249 = vector.broadcast %cst_301 : f32 to vector<2x1xf32>
    %1250 = arith.subf %1249, %1246 : vector<2x1xf32>
    %1251 = vector.broadcast %1250 : vector<2x1xf32> to vector<2x128xf32>
    %1252 = arith.mulf %1251, %1222 : vector<2x128xf32>
    %1253 = arith.addf %1248, %1252 : vector<2x128xf32>
    %1254 = tpu.concatenate %938, %1043, %1148, %1253 in 0 : vector<2x128xf32>, vector<2x128xf32>, vector<2x128xf32>, vector<2x128xf32> -> vector<8x128xf32>
    %c2_302 = arith.constant 2 : index
    %c0_303 = arith.constant 0 : index
    %c0_304 = arith.constant 0 : index
    %1255 = vector.load %arg9[%c2_302, %c0_303, %c0_304] : memref<3x8x128xf32, #tpu.memory_space<vmem>>, vector<1x8x128xf32>
    %1256 = vector.shape_cast %1255 : vector<1x8x128xf32> to vector<8x128xf32>
    %1257 = vector.shape_cast %1254 : vector<8x128xf32> to vector<1x8x128xf32>
    tpu.vector_store %arg9[%c2_302, %c0_303, %c0_304], %1257 {strides = array<i32>} : memref<3x8x128xf32, #tpu.memory_space<vmem>>, vector<1x8x128xf32>,
    return
  }
}

</mosaic_0001>

<bundles_post_ra>
// kernel: tpu_custom_call.1
= control target key start
LH: loop header
LB: loop body
LE: loop exit
PB: predicated region body
PF: predicated region fallthrough
CT: control target
= control target key end

     0   :  { %s12999_s15 = smov 32   ;;  %v15200_v7 = vmov 0.0   ;;  %s15186_s0 = inlined_call_operand.vmem [shape: s32[2,8], index: 0, kind: input, shape index: {}]   ;;  %s15187_s1 = inlined_call_operand.vmem [shape: f32[3,2,32], index: 1, kind: input, shape index: {}]   ;;  %s15188_s2 = inlined_call_operand.vmem [shape: f32[2,8,32], index: 2, kind: input, shape index: {}]   ;;  %s15189_s3 = inlined_call_operand.vmem [shape: f32[2,32], index: 3, kind: input, shape index: {}]   ;;  %s15190_s4 = inlined_call_operand.vmem [shape: f32[128,32], index: 4, kind: input, shape index: {}]   ;;  %s15191_s5 = inlined_call_operand.vmem [shape: f32[64,192], index: 5, kind: input, shape index: {}]   ;;  %s15192_s6 = inlined_call_operand.vmem [shape: f32[1,192], index: 6, kind: input, shape index: {}]   ;;  %s15193_s7 = inlined_call_operand.vmem [shape: f32[1,96], index: 7, kind: input, shape index: {}]   ;;  %s15194_s8 = inlined_call_operand.<no memory space> [shape: f32[1], index: 8, kind: input, shape index: {}]   ;;  %s15195_s9 = inlined_call_operand.hbm [shape: f32[3,8,128], index: 9, kind: output, shape index: {}]  }
   0x1   :  { %v120_v0 = vld [vmem:[%s15189_s3] sm:$0x3]  ;;  %v54_v1 = vld [vmem:[%s15191_s5 + $0x8] sm:$0xff]  ;;  %v56_v2 = vld [vmem:[%s15191_s5 + $0x18] sm:$0xff]  ;;  %207 = vmatprep.mubr.f32.mxu1 %v15200_v7  ;;  %10807 = vmatprep.subr.mxu0 %v15200_v7 }
   0x2   :  { %123 = vrot.lane.b32.xlu0 %v120_v0, %s12999_s15  ;;  %v13071_v3 = vpack.c.bf16 %v56_v2, %v54_v1  ;;  %v53_v4 = vld [vmem:[%s15191_s5] sm:$0xff]  ;;  %v55_v5 = vld [vmem:[%s15191_s5 + $0x10] sm:$0xff]  ;;  %v58_v6 = vld [vmem:[%s15191_s5 + $0x28] sm:$0xff] }
   0x3   :  { %v13083_v8 = vpack.c.bf16 %v55_v5, %v53_v4  ;;  %v60_v9 = vld [vmem:[%s15191_s5 + $0x38] sm:$0xff]  ;;  %v57_v10 = vld [vmem:[%s15191_s5 + $0x20] sm:$0xff]  ;;  %v59_v11 = vld [vmem:[%s15191_s5 + $0x30] sm:$0xff] }
   0x4   :  { %11848 = vmatprep.subr.bf16.mxu1 %v13071_v3  ;;  %v13096_v12 = vpack.c.bf16 %v60_v9, %v58_v6  ;;  %v62_v13 = vld [vmem:[%s15191_s5 + $0x48] sm:$0xff]  ;;  %v64_v14 = vld [vmem:[%s15191_s5 + $0x58] sm:$0xff]  ;;  %v13105_v15 = vpack.c.bf16 %v59_v11, %v57_v10  ;;  %v61_v17 = vld [vmem:[%s15191_s5 + $0x40] sm:$0xff] }
   0x5   :  { %11850 = vmatpush1.bf16.msra.mxu1 %v13083_v8  ;;  %v13108_v16 = vpack.c.bf16 %v64_v14, %v62_v13  ;;  %v63_v18 = vld [vmem:[%s15191_s5 + $0x50] sm:$0xff]  ;;  %v66_v19 = vld [vmem:[%s15191_s5 + $0x68] sm:$0xff]  ;;  %v68_v20 = vld [vmem:[%s15191_s5 + $0x78] sm:$0xff] }
   0x6   :  { %11852 = vmatprep.subr.bf16.mxu1 %v13096_v12 }
   0x7   :  { %15 = vsyncpa [#allocation4], 0  ;;  %v13123_v21 = vpack.c.bf16 %v63_v18, %v61_v17  ;;  %v13126_v22 = vpack.c.bf16 %v68_v20, %v66_v19  ;;  %v65_v23 = vld [vmem:[%s15191_s5 + $0x60] sm:$0xff]  ;;  %v67_v24 = vld [vmem:[%s15191_s5 + $0x70] sm:$0xff]  ;;  %vm126_vm0 = vcmask 261120   ;;  %vm139_vm1 = vcmask 523264  }
   0x8   :  { %v13135_v25 = vpack.c.bf16 %v67_v24, %v65_v23  ;;  %v13143_v26 = vld [vmem:[%s15187_s1] sm:$0x3]  ;;  %v77_v29 = vlaneseq  ;;  %s13001_s25 = smov 96   ;;  %vm13003_vm2 = vmmov 0   ;;  %v13004_v57 = vmov 1966171168   ;;  %vm13218_vm3 = vmpackc.low %vm126_vm0, %vm126_vm0 }
   0x9   :  { %11854 = vmatpush1.bf16.msra.mxu1 %v13105_v15  ;;  %v69_v32 = vld [vmem:[%s15192_s6] sm:$0x3]  ;;  %s13002_s6 = smov 64   ;;  %10809 = vmatprep.mubr.msk.f32.mxu0 %vm13003_vm2, %v15200_v7  ;;  %v75_v58 = vunpack.c.l.s4 %v13004_v57  ;;  %v13200_v13 = vld [vmem:[%s15188_s2 + $0x8] sm:$0xff]  ;;  %v15198_v23 = vmov 0.0|0.0   ;;  %vm441_vm6 = vcmask 57344  }
   0xa   :  { %11856 = vmatprep.subr.bf16.mxu1 %v13108_v16  ;;  %v13149_v30 = vshrl.u32 %v77_v29, 7  ;;  %v13174_v51 = vld [vmem:[%s15188_s2] sm:$0xff]  ;;  %v38_v19 = vld [vmem:[%s15190_s4 + $0x8] sm:$0xff]  ;;  %vm892_vm8 = vcmask 254976   ;;  %vm598_vm10 = vcmask 64512   ;;  %vm586_vm12 = vcmask 1041408  }
   0xb   :  { %v76_v60 = vunpack.c.0.s8 %v75_v58  ;;  %v37_v18 = vld [vmem:[%s15190_s4] sm:$0xff]  ;;  %vm913_vm13 = vcmask 1041409  }
   0xc   :  { %v13152_v31 = vsub.s32 0, %v13149_v30  ;;  %v109_v33 = vsub.s32 1, %v13149_v30  ;;  %v13223_v24 = vpack.c.bf16 %v38_v19, %v37_v18  ;;  %v15077_v20 = vld [vmem:[%s15193_s7] ss:$0 sm:$0xff] }
   0xd   :  { %11858 = vmatpush1.bf16.msra.mxu1 %v13123_v21  ;;  %v13185_v63 = vsub.s32 %v76_v60, %v13149_v30 }
   0xe   :  { %11860 = vmatprep.subr.bf16.mxu1 %v13126_v22  ;;  %v13159_v34 = vrot.slane %v69_v32, %v13152_v31  ;;  %v13163_v35 = vrot.slane %v69_v32, %v109_v33 }
  0x11   :  { %11862 = vmatpush1.bf16.msra.mxu1 %v13135_v25 }
  0x12   :  { %10752 = vmatprep.subr.mxu1 %v15200_v7 }
  0x74   :  { %v124_v27 = vpop.permute.xlu0 %123 }
  0x75   :  { %v127_v28 = vsel %vm126_vm0, %v13143_v26, %v124_v27 }
  0x76   :  { %9858 = vmatmul.mubr.msk.f32.vlgmr.msra.gmra.mrb[0].mxu1 %vm139_vm1, %v127_v28  ;;  %v40_v28 = vld [vmem:[%s15190_s4 + $0x18] sm:$0xff] }
  0x77   :  { %10753 = vmatpush3.xpose.msk.msra.mxu1 %vm126_vm0, %v13174_v51  ;;  %10754 = vmatprep.mubr.msk.f32.mxu1 %vm13003_vm2, %v15200_v7 }
  0x78   :  { %10757 = vmatprep.subr.mxu1 %v15200_v7 }
 0x149   :  { %v209_v36 = vpop.f32.mrb[0].mxu1 }
 0x14a   :  { %v210_v37 = vadd.f32 %v209_v36, %v13159_v34  ;;  %v211_v38 = vpop.f32.mrb[1].mxu1  ;;  %v41_v36 = vld [vmem:[%s15190_s4 + $0x20] sm:$0xff] }
 0x14b   :  { %v212_v39 = vadd.f32 %v211_v38, %v13163_v35 }
 0x14c   :  { %215 = vrot.lane.b32.xlu0 %v210_v37, %s12999_s15 }
 0x14d   :  { %236 = vrot.lane.b32.xlu1 %v212_v39, %s13001_s25 }
 0x150   :  { %226 = vrot.lane.b32.xlu0 %v212_v39, %s12999_s15  ;;  %v43_v39 = vld [vmem:[%s15190_s4 + $0x30] sm:$0xff] }
 0x1be   :  { %v216_v40 = vpop.permute.xlu0 %215 }
 0x1bf   :  { %v218_v41 = vadd.f32 %v216_v40, %v210_v37  ;;  %v237_v46 = vpop.permute.xlu1 %236  ;;  %v44_v40 = vld [vmem:[%s15190_s4 + $0x38] sm:$0xff] }
 0x1c1   :  { %v9859_v42 = vmul.f32 -1.442695, %v218_v41  ;;  %v13259_v41 = vpack.c.bf16 %v44_v40, %v43_v39 }
 0x1c2   :  { %v227_v52 = vpop.permute.xlu0 %226 }
 0x1c3   :  { %12651 = vpow2.f32 %v9859_v42  ;;  %v229_v53 = vadd.f32 %v227_v52, %v210_v37  ;;  %v45_v42 = vld [vmem:[%s15190_s4 + $0x40] sm:$0xff]  ;;  %v51_v52 = vld [vmem:[%s15190_s4 + $0x70] sm:$0xff] }
 0x1c5   :  { %v9860_v54 = vmul.f32 -1.442695, %v229_v53  ;;  %v52_v53 = vld [vmem:[%s15190_s4 + $0x78] sm:$0xff] }
 0x1cd   :  { %v12652_v43 = vpop.eup %12651 }
 0x1ce   :  { %v222_v44 = vadd.f32 1.0, %v12652_v43  ;;  %v46_v43 = vld [vmem:[%s15190_s4 + $0x48] sm:$0xff] }
 0x1d0   :  { %12653 = vrcp.f32 %v222_v44  ;;  %v13271_v44 = vpack.c.bf16 %v46_v43, %v45_v42  ;;  %v13347_v43 = vld [vmem:[%s15193_s7] ss:$0 sm:$0xff] }
 0x1da   :  { %v12654_v45 = vpop.eup %12653 }
 0x1db   :  { %v239_v47 = vmul.f32 %v12654_v45, %v237_v46  ;;  %v47_v45 = vld [vmem:[%s15190_s4 + $0x50] sm:$0xff]  ;;  %v48_v46 = vld [vmem:[%s15190_s4 + $0x58] sm:$0xff] }
 0x1dd   :  { %241 = vrot.lane.b32.xlu1 %v239_v47, %s13002_s6  ;;  %v13283_v47 = vpack.c.bf16 %v48_v46, %v47_v45  ;;  %v891_v46 = vmul.f32 %v13347_v43, %v13143_v26 }
 0x24f   :  { %v242_v48 = vpop.permute.xlu1 %241 }
 0x250   :  { %v244_v49 = vadd.f32 %v242_v48, %v210_v37  ;;  %v42_v37 = vld [vmem:[%s15190_s4 + $0x28] sm:$0xff]  ;;  %v49_v48 = vld [vmem:[%s15190_s4 + $0x60] sm:$0xff] }
 0x251   :  { %v13247_v38 = vpack.c.bf16 %v42_v37, %v41_v36 }
 0x252   :  { %12655 = vtanh.f32 %v244_v49  ;;  %v50_v49 = vld [vmem:[%s15190_s4 + $0x68] sm:$0xff] }
 0x253   :  { %12657 = vpow2.f32 %v9860_v54  ;;  %v13307_v54 = vpack.c.bf16 %v52_v53, %v51_v52  ;;  %v13358_v53 = vand.u32 127, %v77_v29 }
 0x25c   :  { %v12656_v50 = vpop.eup %12655 }
 0x25d   :  { %248 = vrot.lane.b32.xlu1 %v12656_v50, %s13001_s25  ;;  %v12658_v55 = vpop.eup %12657  ;;  %v13295_v50 = vpack.c.bf16 %v50_v49, %v49_v48  ;;  %v893_v48 = vsel %vm892_vm8, %v891_v46, 0.0 }
 0x25e   :  { %v233_v56 = vadd.f32 1.0, %v12658_v55  ;;  %v34_v55 = vld [vmem:[%s15186_s0] sm:$0x3] }
 0x25f   :  { %vm72_vm4 = vcmp.eq.s32.totalorder %v34_v55, 0  ;;  %v103_v42 = vrot.slane %v34_v55, %v13152_v31 }
 0x260   :  { %12659 = vrcp.f32 %v233_v56  ;;  %v13006_v56 = vmov 0  }
 0x261   :  { %v73_v57 = vsel %vm72_vm4, 1, %v13006_v56 }
 0x262   :  { %v80_v58 = vrot.slane %v73_v57, %v13185_v63  ;;  %v15196_v57 = vmov 1.0  }
 0x264   :  { %v81_v60 = vcombine.high %v80_v58, %v80_v58 }
 0x26a   :  { %v12660_v59 = vpop.eup %12659 }
 0x26b   :  { %v246_v61 = vsub.f32 1.0, %v12660_v59  ;;  %v252_v1 = vmul.f32 %v12660_v59, %v124_v27  ;;  %v39_v27 = vld [vmem:[%s15190_s4 + $0x10] sm:$0xff]  ;;  %v88_v59 = vrot.slane %v80_v58, %v13185_v63 }
 0x26c   :  { %v13235_v32 = vpack.c.bf16 %v40_v28, %v39_v27 }
 0x26d   :  { %vm13318_vm5 = vcmp.ne.s32.totalorder %v88_v59, 0 }
 0x2cf   :  { %v249_v62 = vpop.permute.xlu1 %248 }
 0x2d0   :  { %v251_v0 = vmul.f32 %v249_v62, %v246_v61  ;;  %v13323_v62 = vrot.slane %v81_v60, %v13185_v63 }
 0x2d2   :  { %v13187_v2 = vadd.f32 %v252_v1, %v251_v0  ;;  %vm97_vm7 = vcmp.ne.s32.totalorder %v13323_v62, 0 }
 0x2d4   :  { %v261_v4 = vrot.slane %v13187_v2, %v13185_v63  ;;  %v896_v45 = vmul.f32 %v13347_v43, %v13187_v2 }
 0x2d6   :  { %v269_v5 = vrot.slane %v261_v4, %v13185_v63  ;;  %v262_v6 = vcombine.high %v261_v4, %v261_v4 }
 0x2d8   :  { %v280_v9 = vrot.slane %v269_v5, %v13152_v31  ;;  %v276_v10 = vrot.slane %v262_v6, %v13185_v63 }
 0x2da   :  { %281 = vrot.lane.b32.xlu0 %v280_v9, %s13001_s25  ;;  %v361_v11 = vrot.slane %v276_v10, %v13152_v31 }
 0x2dc   :  { %362 = vrot.lane.b32.xlu1 %v361_v11, %s13001_s25 }
 0x34c   :  { %v282_v14 = vpop.permute.xlu0 %281 }
 0x34d   :  { %10755 = vmatmul.mubr.msk.f32.vlgmr.msra.gmra.mrb[2].mxu1 %vm126_vm0, %v282_v14  ;;  %v110_v14 = vrot.slane %v34_v55, %v109_v33 }
 0x34e   :  { %10758 = vmatpush3.xpose.msk.msra.mxu1 %vm126_vm0, %v13200_v13  ;;  %10759 = vmatprep.mubr.msk.f32.mxu1 %vm13003_vm2, %v15200_v7  ;;  %v363_v17 = vpop.permute.xlu1 %362 }
 0x34f   :  { %11863 = vmatprep.subr.bf16.mxu1 %v15198_v23 }
 0x351   :  { %10760 = vmatmul.mubr.msk.f32.vlgmr.msra.gmra.mrb[4].mxu1 %vm126_vm0, %v363_v17 }
 0x352   :  { %10794 = vmatprep.mubr.msk.f32.mxu1 %vm13003_vm2, %v15200_v7  ;;  %11866 = vmatpush3.bf16.xpose.msk.msra.mxu1 %vm13218_vm3, %v13223_v24 }
 0x353   :  { %11867 = vmatprep.subr.bf16.mxu1 %v15198_v23 }
 0x35a   :  { %11870 = vmatpush3.bf16.xpose.msk.msra.mxu1 %vm13218_vm3, %v13235_v32 }
 0x35b   :  { %11871 = vmatprep.subr.bf16.mxu1 %v15198_v23 }
 0x362   :  { %11874 = vmatpush3.bf16.xpose.msk.msra.mxu1 %vm13218_vm3, %v13247_v38 }
 0x363   :  { %11875 = vmatprep.subr.bf16.mxu1 %v15198_v23 }
 0x36a   :  { %11878 = vmatpush3.bf16.xpose.msk.msra.mxu1 %vm13218_vm3, %v13259_v41 }
 0x36b   :  { %11879 = vmatprep.subr.bf16.mxu1 %v15198_v23 }
 0x372   :  { %11882 = vmatpush3.bf16.xpose.msk.msra.mxu1 %vm13218_vm3, %v13271_v44 }
 0x373   :  { %11883 = vmatprep.subr.bf16.mxu1 %v15198_v23 }
 0x37a   :  { %11886 = vmatpush3.bf16.xpose.msk.msra.mxu1 %vm13218_vm3, %v13283_v47 }
 0x37b   :  { %11887 = vmatprep.subr.bf16.mxu1 %v15198_v23 }
 0x382   :  { %11890 = vmatpush3.bf16.xpose.msk.msra.mxu1 %vm13218_vm3, %v13295_v50 }
 0x383   :  { %11891 = vmatprep.subr.bf16.mxu1 %v15198_v23 }
 0x38a   :  { %11894 = vmatpush3.bf16.xpose.msk.msra.mxu1 %vm13218_vm3, %v13307_v54 }
 0x38b   :  { %10797 = vmatprep.subr.mxu1 %v15200_v7 }
 0x420   :  { %v354_v0 = vpop.f32.mrb[2].mxu1 }
 0x421   :  { %v439_v1 = vsel %vm13318_vm5, -1e+09, %v354_v0  ;;  %v10756_v4 = vpop.f32.mrb[3].mxu1 }
 0x422   :  { %v442_v5 = vsel %vm441_vm6, %v439_v1, -inf }
 0x423   :  { %443 = vmax.xlane.f32.xlu0 %v442_v5 }
 0x424   :  { %v435_v6 = vpop.f32.mrb[4].mxu1 }
 0x425   :  { %v440_v9 = vsel %vm97_vm7, -1e+09, %v435_v6  ;;  %v10761_v10 = vpop.f32.mrb[5].mxu1 }
 0x426   :  { %v445_v11 = vsel %vm441_vm6, %v440_v9, -inf }
 0x427   :  { %446 = vmax.xlane.f32.xlu1 %v445_v11 }
 0x439   :  { %464 = vrot.lane.b32.xlu0 %v13187_v2, %s13001_s25 }
 0x43d   :  { %112 = vbcast.lane.b32.xlu0 %v110_v14, 256 }
 0x4b0   :  { %v444_v17 = vpop.xlane.xlu0 %443 }
 0x4b1   :  { %v448_v18 = vsub.f32 %v439_v1, %v444_v17 }
 0x4b3   :  { %v450_v19 = vmul.f32 1.442695, %v448_v18 }
 0x4b4   :  { %v465_v27 = vpop.permute.xlu0 %464  ;;  %v447_v28 = vpop.xlane.xlu1 %446 }
 0x4b5   :  { %12661 = vpow2.f32 %v450_v19  ;;  %v449_v36 = vsub.f32 %v440_v9, %v447_v28  ;;  %10795 = vmatmul.mubr.msk.f32.vlgmr.msra.gmra.mrb[6].mxu1 %vm126_vm0, %v465_v27 }
 0x4b6   :  { %10798 = vmatpush3.msra.mxu1 %v13174_v51  ;;  %10799 = vmatprep.mubr.msk.f32.mxu1 %vm13003_vm2, %v15200_v7 }
 0x4b7   :  { %v452_v37 = vmul.f32 1.442695, %v449_v36  ;;  %10802 = vmatprep.subr.mxu1 %v15200_v7 }
 0x4b8   :  { %v113_v26 = vpop.permute.xlu0 %112 }
 0x4b9   :  { %12663 = vpow2.f32 %v452_v37  ;;  %vm13370_vm11 = vcmp.eq.s32.totalorder %v113_v26, %v13358_v53 }
 0x4bf   :  { %v12662_v30 = vpop.eup %12661 }
 0x4c0   :  { %v454_v33 = vsel %vm441_vm6, %v12662_v30, 0.0 }
 0x4c1   :  { %455 = vadd.xlane.f32.xlu1 %v454_v33 }
 0x4c3   :  { %v12664_v39 = vpop.eup %12663 }
 0x4c4   :  { %v457_v40 = vsel %vm441_vm6, %v12664_v39, 0.0 }
 0x4c5   :  { %458 = vadd.xlane.f32.xlu1 %v457_v40 }
 0x4d6   :  { %105 = vbcast.lane.b32.xlu1 %v103_v42, 256 }
 0x4da   :  { %905 = vrot.lane.b32.xlu1 %v13347_v43, %s13002_s6 }
 0x4de   :  { %898 = vrot.lane.b32.xlu1 %v896_v45, %s13001_s25 }
 0x502   :  { %894 = vadd.xlane.f32.xlu1 %v893_v48 }
 0x54e   :  { %v456_v49 = vpop.xlane.xlu1 %455 }
 0x54f   :  { %12665 = vrcp.f32 %v456_v49 }
 0x552   :  { %v459_v52 = vpop.xlane.xlu1 %458 }
 0x553   :  { %12667 = vrcp.f32 %v459_v52 }
 0x556   :  { %v106_v55 = vpop.permute.xlu1 %105 }
 0x557   :  { %vm13361_vm9 = vcmp.eq.s32.totalorder %v106_v55, %v13358_v53 }
 0x558   :  { %10808 = vmatpush3.msk.msra.mxu0 %vm13361_vm9, %v15196_v57 }
 0x559   :  { %v12666_v58 = vpop.eup %12665  ;;  %10812 = vmatprep.subr.mxu0 %v15200_v7 }
 0x55a   :  { %v461_v59 = vmul.f32 %v12666_v58, %v12662_v30  ;;  %v13411_v1 = vpop.permute.xlu1 %905 }
 0x55c   :  { %10800 = vmatmul.mubr.msk.f32.vlgmr.msra.gmra.mrb[8].mxu1 %vm598_vm10, %v461_v59  ;;  %10810 = vmatmul.mubr.msk.f32.vlgmr.msra.gmra.mrb[0].mxu0 %vm598_vm10, %v461_v59 }
 0x55d   :  { %v12668_v60 = vpop.eup %12667  ;;  %10803 = vmatpush3.msra.mxu1 %v13200_v13  ;;  %10804 = vmatprep.mubr.msk.f32.mxu1 %vm13003_vm2, %v15200_v7 }
 0x55e   :  { %10813 = vmatpush3.msk.msra.mxu0 %vm13370_vm11, %v15196_v57  ;;  %10814 = vmatprep.mubr.msk.f32.mxu0 %vm13003_vm2, %v15200_v7  ;;  %v463_v0 = vmul.f32 %v12668_v60, %v12664_v39  ;;  %v899_v9 = vpop.permute.xlu1 %898  ;;  %v13424_v60 = vstv %s15194_s8 }
 0x55f   :  { %11895 = vmatprep.subr.bf16.mxu0 %v15198_v23  ;;  %10852 = vmatprep.subr.mxu1 %v15200_v7  ;;  %v901_v10 = vsel %vm892_vm8, %v899_v9, 0.0 }
 0x560   :  { %10805 = vmatmul.mubr.msk.f32.vlgmr.msra.gmra.mrb[10].mxu1 %vm598_vm10, %v463_v0  ;;  %10815 = vmatmul.mubr.msk.f32.vlgmr.msra.gmra.mrb[2].mxu0 %vm598_vm10, %v463_v0 }
 0x561   :  { %11897 = vmatpush3.bf16.msra.mxu0 %v13223_v24  ;;  %10849 = vmatprep.mubr.msk.f32.mxu0 %vm13003_vm2, %v15200_v7 }
 0x562   :  { %11898 = vmatprep.subr.bf16.mxu0 %v15198_v23  ;;  %10854 = vmatprep.mubr.msk.f32.mxu1 %vm13003_vm2, %v15200_v7 }
 0x564   :  { %10853 = vmatpush3.xpose.msk.msra.mxu1 %vm126_vm0, %v13174_v51 }
 0x565   :  { %11900 = vmatpush3.bf16.msra.mxu0 %v13235_v32  ;;  %10857 = vmatprep.subr.mxu1 %v15200_v7 }
 0x566   :  { %11901 = vmatprep.subr.bf16.mxu0 %v15198_v23 }
 0x569   :  { %11903 = vmatpush3.bf16.msra.mxu0 %v13247_v38 }
 0x56a   :  { %11904 = vmatprep.subr.bf16.mxu0 %v15198_v23 }
 0x56d   :  { %11906 = vmatpush3.bf16.msra.mxu0 %v13259_v41 }
 0x56e   :  { %11907 = vmatprep.subr.bf16.mxu0 %v15198_v23 }
 0x571   :  { %11909 = vmatpush3.bf16.msra.mxu0 %v13271_v44 }
 0x572   :  { %11910 = vmatprep.subr.bf16.mxu0 %v15198_v23 }
 0x575   :  { %11912 = vmatpush3.bf16.msra.mxu0 %v13283_v47 }
 0x576   :  { %11913 = vmatprep.subr.bf16.mxu0 %v15198_v23 }
 0x579   :  { %11915 = vmatpush3.bf16.msra.mxu0 %v13295_v50 }
 0x57a   :  { %11916 = vmatprep.subr.bf16.mxu0 %v15198_v23 }
 0x57d   :  { %11918 = vmatpush3.bf16.msra.mxu0 %v13307_v54 }
 0x57e   :  { %11920 = vmatprep.subr.bf16.mxu0 %v13071_v3 }
 0x588   :  { %v582_v4 = vpop.f32.mrb[6].mxu1 }
 0x589   :  { %v10796_v5 = vpop.f32.mrb[7].mxu1  ;;  %v587_v6 = vsel %vm586_vm12, %v582_v4, -inf }
 0x58a   :  { %588 = vmax.xlane.f32.xlu0 %v587_v6 }
 0x58e   :  { %902 = vadd.xlane.f32.xlu0 %v901_v10 }
 0x58f   :  { %v895_v58 = vpop.xlane.xlu1 %894 }
 0x617   :  { %v589_v11 = vpop.xlane.xlu0 %588 }
 0x618   :  { %v590_v14 = vsub.f32 %v582_v4, %v589_v11 }
 0x61a   :  { %v591_v17 = vmul.f32 1.442695, %v590_v14 }
 0x61b   :  { %v903_v26 = vpop.xlane.xlu0 %902 }
 0x61c   :  { %12669 = vpow2.f32 %v591_v17  ;;  %v904_v59 = vadd.f32 %v903_v26, %v895_v58 }
 0x626   :  { %v12670_v52 = vpop.eup %12669 }
 0x627   :  { %v593_v55 = vsel %vm586_vm12, %v12670_v52, 0.0 }
 0x62f   :  { %v668_v18 = vpop.f32.mrb[8].mxu1  ;;  %v811_v19 = vpop.f32.mrb[0].mxu0 }
 0x630   :  { %v10801_v27 = vpop.f32.mrb[9].mxu1  ;;  %v10811_v28 = vpop.f32.mrb[1].mxu0  ;;  %v908_v42 = vmul.f32 %v13411_v1, %v668_v18 }
 0x633   :  { %v741_v36 = vpop.f32.mrb[10].mxu1  ;;  %v881_v37 = vpop.f32.mrb[2].mxu0 }
 0x634   :  { %v909_v30 = vmul.f32 %v13411_v1, %v741_v36  ;;  %v932_v33 = vrot.slane %v881_v37, 7  ;;  %v10806_v39 = vpop.f32.mrb[11].mxu1  ;;  %v10816_v40 = vpop.f32.mrb[3].mxu0 }
 0x636   :  { %v912_v45 = vrot.slane %v909_v30, 7  ;;  %v933_v46 = vsel %vm913_vm13, %v932_v33, %v811_v19 }
 0x638   :  { %v914_v48 = vsel %vm913_vm13, %v912_v45, %v908_v42 }
 0x639   :  { %v916_v49 = vsel %vm892_vm8, %v914_v48, 0.0 }
 0x63a   :  { %917 = vadd.xlane.f32.xlu0 %v916_v49 }
 0x63e   :  { %594 = vadd.xlane.f32.xlu0 %v593_v55 }
 0x6c7   :  { %v918_v0 = vpop.xlane.xlu0 %917 }
 0x6c8   :  { %v919_v4 = vadd.f32 %v918_v0, %v904_v59 }
 0x6ca   :  { %v921_v5 = vadd.f32 %v13424_v60, %v919_v4 }
 0x6cb   :  { %v595_v9 = vpop.xlane.xlu0 %594 }
 0x6cc   :  { %v9889_v6 = vmul.f32 -1.442695, %v921_v5 }
 0x6ce   :  { %12671 = vpow2.f32 %v9889_v6 }
 0x6cf   :  { %12673 = vrcp.f32 %v595_v9 }
 0x6d8   :  { %v12672_v10 = vpop.eup %12671 }
 0x6d9   :  { %v925_v11 = vadd.f32 1.0, %v12672_v10  ;;  %v12674_v14 = vpop.eup %12673 }
 0x6da   :  { %v597_v18 = vmul.f32 %v12674_v14, %v12670_v52 }
 0x6db   :  { %12675 = vrcp.f32 %v925_v11 }
 0x6e5   :  { %v12676_v17 = vpop.eup %12675 }
 0x6e6   :  { %v929_v19 = vsub.f32 1.0, %v12676_v17  ;;  %v928_v27 = vmul.f32 %v12676_v17, %v597_v18 }
 0x6e8   :  { %v935_v28 = vmul.f32 %v933_v46, %v929_v19 }
 0x6ea   :  { %v13427_v36 = vadd.f32 %v935_v28, %v928_v27 }
 0x6ec   :  { %15215 = vst [vmem:[#allocation6_spill] sm:$0xff] %v13427_v36  ;;  %v937_v37 = vsel %vm586_vm12, %v13427_v36, -inf }
 0x6ed   :  { %938 = vmax.xlane.f32.xlu0 %v937_v37 }
 0x77a   :  { %v939_v30 = vpop.xlane.xlu0 %938 }
 0x77b   :  { %vm940_vm14 = vcmp.ge.f32.partialorder %v13427_v36, %v939_v30 }
 0x77c   :  { %v941_v33 = vsel %vm940_vm14, %v13358_v53, 128 }
 0x77d   :  { %v942_v39 = vsel %vm586_vm12, %v941_v33, 2147483647 }
 0x77e   :  { %v944_v40 = vshra.s32 %v942_v39, 16  ;;  %v943_v45 = vand.u32 65535, %v942_v39 }
 0x780   :  { %v946_v42 = vcvt.s32.f32 %v944_v40  ;;  %v945_v49 = vcvt.s32.f32 %v943_v45 }
 0x782   :  { %947 = vmin.xlane.f32.xlu0 %v946_v42 }
 0x80f   :  { %v948_v48 = vpop.xlane.xlu0 %947 }
 0x810   :  { %vm949_vm15 = vcmp.eq.f32.partialorder %v946_v42, %v948_v48  ;;  %v954_v52 = vcvt.f32.s32 %v948_v48 }
 0x811   :  { %v950_v46 = vsel %vm949_vm15, %v945_v49, inf }
 0x812   :  { %951 = vmin.xlane.f32.xlu1 %v950_v46  ;;  %v955_v26 = vshll.u32 %v954_v52, 16 }
 0x89f   :  { %v952_v55 = vpop.xlane.xlu1 %951 }
 0x8a0   :  { %v953_v58 = vcvt.f32.s32 %v952_v55 }
 0x8a2   :  { %v956_v59 = vadd.s32 %v955_v26, %v953_v58 }
 0x8a4   :  { %vm957_vm4 = vcmp.eq.s32.totalorder %v13358_v53, %v956_v59 }
 0x8a5   :  { %10850 = vmatmul.mubr.msk.f32.vlgmr.msra.gmra.mrb[4].mxu0 %vm957_vm4, %v15196_v57 }
 0x8a6   :  { %11922 = vmatpush1.bf16.msra.mxu0 %v13083_v8  ;;  %1098 = vmatprep.mubr.f32.mxu0 %v15200_v7 }
 0x8a7   :  { %11924 = vmatprep.subr.bf16.mxu0 %v13096_v12 }
 0x8aa   :  { %11926 = vmatpush1.bf16.msra.mxu0 %v13105_v15 }
 0x8ab   :  { %11928 = vmatprep.subr.bf16.mxu0 %v13108_v16 }
 0x8ae   :  { %11930 = vmatpush1.bf16.msra.mxu0 %v13123_v21 }
 0x8af   :  { %11932 = vmatprep.subr.bf16.mxu0 %v13126_v22 }
 0x8b2   :  { %11934 = vmatpush1.bf16.msra.mxu0 %v13135_v25 }
 0x8b3   :  { %11935 = vmatprep.subr.bf16.mxu0 %v15198_v23 }
 0x978   :  { %v13445_v0 = vpop.f32.mrb[4].mxu0 }
 0x979   :  { %v1030_v4 = vsel %vm126_vm0, %v13445_v0, %v13187_v2  ;;  %v10851_v5 = vpop.f32.mrb[5].mxu0 }
 0x97a   :  { %9892 = vmatmul.mubr.msk.f32.vlgmr.msra.gmra.mrb[6].mxu0 %vm139_vm1, %v1030_v4 }
 0x97b   :  { %11938 = vmatpush3.bf16.xpose.msk.msra.mxu0 %vm13218_vm3, %v13223_v24  ;;  %10894 = vmatprep.mubr.msk.f32.mxu0 %vm13003_vm2, %v15200_v7 }
 0x97c   :  { %11939 = vmatprep.subr.bf16.mxu0 %v15198_v23 }
 0x983   :  { %11942 = vmatpush3.bf16.xpose.msk.msra.mxu0 %vm13218_vm3, %v13235_v32 }
 0x984   :  { %11943 = vmatprep.subr.bf16.mxu0 %v15198_v23 }
 0x98b   :  { %11946 = vmatpush3.bf16.xpose.msk.msra.mxu0 %vm13218_vm3, %v13247_v38 }
 0x98c   :  { %11947 = vmatprep.subr.bf16.mxu0 %v15198_v23 }
 0x993   :  { %11950 = vmatpush3.bf16.xpose.msk.msra.mxu0 %vm13218_vm3, %v13259_v41 }
 0x994   :  { %11951 = vmatprep.subr.bf16.mxu0 %v15198_v23 }
 0x99b   :  { %11954 = vmatpush3.bf16.xpose.msk.msra.mxu0 %vm13218_vm3, %v13271_v44 }
 0x99c   :  { %11955 = vmatprep.subr.bf16.mxu0 %v15198_v23 }
 0x9a3   :  { %11958 = vmatpush3.bf16.xpose.msk.msra.mxu0 %vm13218_vm3, %v13283_v47 }
 0x9a4   :  { %11959 = vmatprep.subr.bf16.mxu0 %v15198_v23 }
 0x9ab   :  { %11962 = vmatpush3.bf16.xpose.msk.msra.mxu0 %vm13218_vm3, %v13295_v50 }
 0x9ac   :  { %11963 = vmatprep.subr.bf16.mxu0 %v15198_v23 }
 0x9b3   :  { %11966 = vmatpush3.bf16.xpose.msk.msra.mxu0 %vm13218_vm3, %v13307_v54 }
 0x9b4   :  { %10952 = vmatprep.subr.mxu0 %v15200_v7 }
 0xa4d   :  { %v1100_v6 = vpop.f32.mrb[6].mxu0 }
 0xa4e   :  { %v1101_v9 = vadd.f32 %v1100_v6, %v13159_v34  ;;  %v1102_v10 = vpop.f32.mrb[7].mxu0 }
 0xa4f   :  { %v1103_v11 = vadd.f32 %v1102_v10, %v13163_v35 }
 0xa50   :  { %1106 = vrot.lane.b32.xlu0 %v1101_v9, %s12999_s15 }
 0xa51   :  { %1127 = vrot.lane.b32.xlu1 %v1103_v11, %s13001_s25 }
 0xa54   :  { %1117 = vrot.lane.b32.xlu0 %v1103_v11, %s12999_s15 }
 0xac2   :  { %v1107_v14 = vpop.permute.xlu0 %1106 }
 0xac3   :  { %v1109_v17 = vadd.f32 %v1107_v14, %v1101_v9  ;;  %v1128_v37 = vpop.permute.xlu1 %1127 }
 0xac5   :  { %v9893_v18 = vmul.f32 -1.442695, %v1109_v17 }
 0xac6   :  { %v1118_v42 = vpop.permute.xlu0 %1117 }
 0xac7   :  { %12677 = vpow2.f32 %v9893_v18  ;;  %v1120_v45 = vadd.f32 %v1118_v42, %v1101_v9 }
 0xac9   :  { %v9894_v48 = vmul.f32 -1.442695, %v1120_v45 }
 0xad1   :  { %v12678_v19 = vpop.eup %12677 }
 0xad2   :  { %v1113_v27 = vadd.f32 1.0, %v12678_v19 }
 0xad4   :  { %12679 = vrcp.f32 %v1113_v27 }
 0xade   :  { %v12680_v28 = vpop.eup %12679 }
 0xadf   :  { %v1130_v30 = vmul.f32 %v12680_v28, %v1128_v37 }
 0xae1   :  { %1132 = vrot.lane.b32.xlu1 %v1130_v30, %s13002_s6 }
 0xb53   :  { %v1133_v33 = vpop.permute.xlu1 %1132 }
 0xb54   :  { %v1135_v39 = vadd.f32 %v1133_v33, %v1101_v9 }
 0xb56   :  { %12681 = vtanh.f32 %v1135_v39 }
 0xb57   :  { %12683 = vpow2.f32 %v9894_v48 }
 0xb60   :  { %v12682_v40 = vpop.eup %12681 }
 0xb61   :  { %1139 = vrot.lane.b32.xlu1 %v12682_v40, %s13001_s25  ;;  %v12684_v49 = vpop.eup %12683  ;;  %v1719_v40 = vmul.f32 %v13347_v43, %v13445_v0 }
 0xb62   :  { %v1124_v46 = vadd.f32 1.0, %v12684_v49 }
 0xb63   :  { %v1720_v42 = vsel %vm892_vm8, %v1719_v40, 0.0 }
 0xb64   :  { %12685 = vrcp.f32 %v1124_v46 }
 0xb6e   :  { %v12686_v52 = vpop.eup %12685 }
 0xb6f   :  { %v1137_v55 = vsub.f32 1.0, %v12686_v52  ;;  %v1143_v59 = vmul.f32 %v12686_v52, %v13187_v2 }
 0xbd3   :  { %v1140_v26 = vpop.permute.xlu1 %1139 }
 0xbd4   :  { %v1142_v58 = vmul.f32 %v1140_v26, %v1137_v55 }
 0xbd6   :  { %v13493_v4 = vadd.f32 %v1143_v59, %v1142_v58 }
 0xbd8   :  { %v1152_v5 = vrot.slane %v13493_v4, %v13185_v63 }
 0xbda   :  { %v1160_v6 = vrot.slane %v1152_v5, %v13185_v63  ;;  %v1153_v10 = vcombine.high %v1152_v5, %v1152_v5 }
 0xbdc   :  { %v1171_v9 = vrot.slane %v1160_v6, %v13152_v31  ;;  %v1167_v11 = vrot.slane %v1153_v10, %v13185_v63 }
 0xbde   :  { %1172 = vrot.lane.b32.xlu0 %v1171_v9, %s13001_s25  ;;  %v1249_v14 = vrot.slane %v1167_v11, %v13152_v31 }
 0xbe0   :  { %1250 = vrot.lane.b32.xlu1 %v1249_v14, %s13001_s25 }
 0xc50   :  { %v1173_v17 = vpop.permute.xlu0 %1172 }
 0xc51   :  { %10855 = vmatmul.mubr.msk.f32.vlgmr.msra.gmra.mrb[12].mxu1 %vm126_vm0, %v1173_v17 }
 0xc52   :  { %10858 = vmatpush3.xpose.msk.msra.mxu1 %vm126_vm0, %v13200_v13  ;;  %10859 = vmatprep.mubr.msk.f32.mxu1 %vm13003_vm2, %v15200_v7  ;;  %v1251_v2 = vpop.permute.xlu1 %1250 }
 0xc53   :  { %10897 = vmatprep.subr.mxu1 %v15200_v7 }
 0xc55   :  { %10860 = vmatmul.mubr.msk.f32.vlgmr.msra.gmra.mrb[14].mxu1 %vm126_vm0, %v1251_v2 }
 0xc56   :  { %10898 = vmatpush3.msra.mxu1 %v13174_v51  ;;  %10899 = vmatprep.mubr.msk.f32.mxu1 %vm13003_vm2, %v15200_v7 }
 0xc57   :  { %10902 = vmatprep.subr.mxu1 %v15200_v7 }
 0xd24   :  { %v1242_v18 = vpop.f32.mrb[12].mxu1 }
 0xd25   :  { %v1324_v19 = vsel %vm13318_vm5, -1e+09, %v1242_v18  ;;  %v10856_v27 = vpop.f32.mrb[13].mxu1 }
 0xd26   :  { %v1326_v28 = vsel %vm441_vm6, %v1324_v19, -inf }
 0xd27   :  { %1327 = vmax.xlane.f32.xlu0 %v1326_v28 }
 0xd28   :  { %v1320_v37 = vpop.f32.mrb[14].mxu1 }
 0xd29   :  { %v1325_v30 = vsel %vm97_vm7, -1e+09, %v1320_v37  ;;  %v10861_v33 = vpop.f32.mrb[15].mxu1 }
 0xd2a   :  { %v1329_v39 = vsel %vm441_vm6, %v1325_v30, -inf }
 0xd2b   :  { %1330 = vmax.xlane.f32.xlu1 %v1329_v39 }
 0xd3d   :  { %1348 = vrot.lane.b32.xlu0 %v13493_v4, %s13001_s25 }
 0xd5c   :  { %1721 = vadd.xlane.f32.xlu0 %v1720_v42 }
 0xdb4   :  { %v1328_v45 = vpop.xlane.xlu0 %1327 }
 0xdb5   :  { %v1332_v48 = vsub.f32 %v1324_v19, %v1328_v45  ;;  %v1723_v19 = vmul.f32 %v13347_v43, %v13493_v4 }
 0xdb7   :  { %v1334_v49 = vmul.f32 1.442695, %v1332_v48 }
 0xdb8   :  { %v1349_v46 = vpop.permute.xlu0 %1348  ;;  %v1331_v52 = vpop.xlane.xlu1 %1330 }
 0xdb9   :  { %12687 = vpow2.f32 %v1334_v49  ;;  %v1333_v55 = vsub.f32 %v1325_v30, %v1331_v52  ;;  %10895 = vmatmul.mubr.msk.f32.vlgmr.msra.gmra.mrb[8].mxu0 %vm126_vm0, %v1349_v46 }
 0xdba   :  { %10953 = vmatpush3.xpose.msk.msra.mxu0 %vm126_vm0, %v13174_v51  ;;  %10954 = vmatprep.mubr.msk.f32.mxu0 %vm13003_vm2, %v15200_v7 }
 0xdbb   :  { %v1336_v26 = vmul.f32 1.442695, %v1333_v55  ;;  %12007 = vmatprep.subr.bf16.mxu0 %v15198_v23 }
 0xdbd   :  { %12689 = vpow2.f32 %v1336_v26 }
 0xdc3   :  { %v12688_v0 = vpop.eup %12687 }
 0xdc4   :  { %v1338_v58 = vsel %vm441_vm6, %v12688_v0, 0.0 }
 0xdc5   :  { %1339 = vadd.xlane.f32.xlu1 %v1338_v58 }
 0xdc7   :  { %v12690_v59 = vpop.eup %12689 }
 0xdc8   :  { %v1341_v5 = vsel %vm441_vm6, %v12690_v59, 0.0 }
 0xdc9   :  { %1342 = vadd.xlane.f32.xlu1 %v1341_v5 }
 0xe52   :  { %v1340_v6 = vpop.xlane.xlu1 %1339 }
 0xe53   :  { %12691 = vrcp.f32 %v1340_v6 }
 0xe56   :  { %v1343_v10 = vpop.xlane.xlu1 %1342 }
 0xe57   :  { %12693 = vrcp.f32 %v1343_v10 }
 0xe5d   :  { %v12692_v51 = vpop.eup %12691 }
 0xe5e   :  { %v1345_v9 = vmul.f32 %v12692_v51, %v12688_v0 }
 0xe60   :  { %10900 = vmatmul.mubr.msk.f32.vlgmr.msra.gmra.mrb[16].mxu1 %vm598_vm10, %v1345_v9 }
 0xe61   :  { %v12694_v11 = vpop.eup %12693  ;;  %10903 = vmatpush3.msra.mxu1 %v13200_v13  ;;  %10904 = vmatprep.mubr.msk.f32.mxu1 %vm13003_vm2, %v15200_v7 }
 0xe62   :  { %10907 = vmatprep.subr.mxu1 %v15200_v7  ;;  %v1347_v14 = vmul.f32 %v12694_v11, %v12690_v59 }
 0xe64   :  { %10905 = vmatmul.mubr.msk.f32.vlgmr.msra.gmra.mrb[18].mxu1 %vm598_vm10, %v1347_v14 }
 0xe65   :  { %10908 = vmatpush3.msk.msra.mxu1 %vm13361_vm9, %v15196_v57  ;;  %10909 = vmatprep.mubr.msk.f32.mxu1 %vm13003_vm2, %v15200_v7 }
 0xe66   :  { %10912 = vmatprep.subr.mxu1 %v15200_v7 }
 0xe68   :  { %10910 = vmatmul.mubr.msk.f32.vlgmr.msra.gmra.mrb[20].mxu1 %vm598_vm10, %v1345_v9  ;;  %v1722_v9 = vpop.xlane.xlu0 %1721 }
 0xe69   :  { %10913 = vmatpush3.msk.msra.mxu1 %vm13370_vm11, %v15196_v57  ;;  %10914 = vmatprep.mubr.msk.f32.mxu1 %vm13003_vm2, %v15200_v7 }
 0xe6a   :  { %11967 = vmatprep.subr.bf16.mxu1 %v15198_v23 }
 0xe6c   :  { %10915 = vmatmul.mubr.msk.f32.vlgmr.msra.gmra.mrb[22].mxu1 %vm598_vm10, %v1347_v14 }
 0xe6d   :  { %11969 = vmatpush3.bf16.msra.mxu1 %v13223_v24  ;;  %10949 = vmatprep.mubr.msk.f32.mxu1 %vm13003_vm2, %v15200_v7 }
 0xe6e   :  { %11970 = vmatprep.subr.bf16.mxu1 %v15198_v23 }
 0xe71   :  { %11972 = vmatpush3.bf16.msra.mxu1 %v13235_v32 }
 0xe72   :  { %11973 = vmatprep.subr.bf16.mxu1 %v15198_v23 }
 0xe75   :  { %11975 = vmatpush3.bf16.msra.mxu1 %v13247_v38 }
 0xe76   :  { %11976 = vmatprep.subr.bf16.mxu1 %v15198_v23 }
 0xe79   :  { %11978 = vmatpush3.bf16.msra.mxu1 %v13259_v41 }
 0xe7a   :  { %11979 = vmatprep.subr.bf16.mxu1 %v15198_v23 }
 0xe7d   :  { %11981 = vmatpush3.bf16.msra.mxu1 %v13271_v44 }
 0xe7e   :  { %11982 = vmatprep.subr.bf16.mxu1 %v15198_v23 }
 0xe81   :  { %11984 = vmatpush3.bf16.msra.mxu1 %v13283_v47 }
 0xe82   :  { %11985 = vmatprep.subr.bf16.mxu1 %v15198_v23 }
 0xe85   :  { %11987 = vmatpush3.bf16.msra.mxu1 %v13295_v50 }
 0xe86   :  { %11988 = vmatprep.subr.bf16.mxu1 %v15198_v23 }
 0xe89   :  { %11990 = vmatpush3.bf16.msra.mxu1 %v13307_v54 }
 0xe8a   :  { %11992 = vmatprep.subr.bf16.mxu1 %v13071_v3 }
 0xe8c   :  { %v1418_v17 = vpop.f32.mrb[8].mxu0 }
 0xe8d   :  { %v10896_v2 = vpop.f32.mrb[9].mxu0  ;;  %v1422_v18 = vsel %vm586_vm12, %v1418_v17, -inf }
 0xe8e   :  { %1423 = vmax.xlane.f32.xlu1 %v1422_v18 }
 0xe9f   :  { %1725 = vrot.lane.b32.xlu1 %v1723_v19, %s13001_s25 }
 0xf1b   :  { %v1424_v27 = vpop.xlane.xlu1 %1423 }
 0xf1c   :  { %v1425_v30 = vsub.f32 %v1418_v17, %v1424_v27 }
 0xf1e   :  { %v1426_v33 = vmul.f32 1.442695, %v1425_v30 }
 0xf1f   :  { %v1726_v28 = vpop.permute.xlu1 %1725 }
 0xf20   :  { %v1728_v37 = vsel %vm892_vm8, %v1726_v28, 0.0  ;;  %12695 = vpow2.f32 %v1426_v33 }
 0xf21   :  { %1729 = vadd.xlane.f32.xlu1 %v1728_v37 }
 0xf2a   :  { %v12696_v58 = vpop.eup %12695 }
 0xf2b   :  { %v1428_v10 = vsel %vm586_vm12, %v12696_v58, 0.0 }
 0xf33   :  { %v1502_v39 = vpop.f32.mrb[16].mxu1 }
 0xf34   :  { %v10901_v40 = vpop.f32.mrb[17].mxu1  ;;  %v1732_v49 = vmul.f32 %v1502_v39, %v13411_v1 }
 0xf37   :  { %v1575_v42 = vpop.f32.mrb[18].mxu1 }
 0xf38   :  { %v1733_v45 = vmul.f32 %v1575_v42, %v13411_v1  ;;  %v10906_v48 = vpop.f32.mrb[19].mxu1 }
 0xf3a   :  { %v1736_v46 = vrot.slane %v1733_v45, 7 }
 0xf3b   :  { %v1645_v52 = vpop.f32.mrb[20].mxu1 }
 0xf3c   :  { %v10911_v55 = vpop.f32.mrb[21].mxu1  ;;  %v1737_v26 = vsel %vm913_vm13, %v1736_v46, %v1732_v49 }
 0xf3d   :  { %v1739_v0 = vsel %vm892_vm8, %v1737_v26, 0.0 }
 0xf3e   :  { %1740 = vadd.xlane.f32.xlu0 %v1739_v0 }
 0xf3f   :  { %v1715_v59 = vpop.f32.mrb[22].mxu1 }
 0xf40   :  { %v1754_v5 = vrot.slane %v1715_v59, 7  ;;  %v10916_v6 = vpop.f32.mrb[23].mxu1 }
 0xf42   :  { %v1755_v51 = vsel %vm913_vm13, %v1754_v5, %v1645_v52  ;;  %1429 = vadd.xlane.f32.xlu0 %v1428_v10 }
 0xfae   :  { %v1730_v11 = vpop.xlane.xlu1 %1729 }
 0xfaf   :  { %v1731_v14 = vadd.f32 %v1730_v11, %v1722_v9 }
 0xfcb   :  { %v1741_v17 = vpop.xlane.xlu0 %1740 }
 0xfcc   :  { %v1742_v2 = vadd.f32 %v1741_v17, %v1731_v14 }
 0xfce   :  { %v1743_v18 = vadd.f32 %v1742_v2, %v13424_v60 }
 0xfcf   :  { %v1430_v27 = vpop.xlane.xlu0 %1429 }
 0xfd0   :  { %v9922_v19 = vmul.f32 -1.442695, %v1743_v18 }
 0xfd2   :  { %12697 = vpow2.f32 %v9922_v19 }
 0xfd3   :  { %12699 = vrcp.f32 %v1430_v27 }
 0xfdc   :  { %v12698_v28 = vpop.eup %12697 }
 0xfdd   :  { %v1747_v37 = vadd.f32 1.0, %v12698_v28  ;;  %v12700_v30 = vpop.eup %12699 }
 0xfde   :  { %v1432_v39 = vmul.f32 %v12700_v30, %v12696_v58 }
 0xfdf   :  { %12701 = vrcp.f32 %v1747_v37 }
 0xfe9   :  { %v12702_v33 = vpop.eup %12701 }
 0xfea   :  { %v1751_v40 = vsub.f32 1.0, %v12702_v33  ;;  %v1750_v42 = vmul.f32 %v12702_v33, %v1432_v39 }
 0xfec   :  { %v1757_v45 = vmul.f32 %v1755_v51, %v1751_v40 }
 0xfee   :  { %v13583_v48 = vadd.f32 %v1757_v45, %v1750_v42 }
 0xff0   :  { %v1759_v49 = vsel %vm586_vm12, %v13583_v48, -inf }
 0xff1   :  { %1760 = vmax.xlane.f32.xlu0 %v1759_v49 }
0x107e   :  { %v1761_v46 = vpop.xlane.xlu0 %1760 }
0x107f   :  { %vm1762_vm14 = vcmp.ge.f32.partialorder %v13583_v48, %v1761_v46 }
0x1080   :  { %v1763_v52 = vsel %vm1762_vm14, %v13358_v53, 128 }
0x1081   :  { %v1764_v55 = vsel %vm586_vm12, %v1763_v52, 2147483647 }
0x1082   :  { %v1766_v26 = vshra.s32 %v1764_v55, 16  ;;  %v1765_v58 = vand.u32 65535, %v1764_v55 }
0x1084   :  { %v1768_v0 = vcvt.s32.f32 %v1766_v26  ;;  %v1767_v5 = vcvt.s32.f32 %v1765_v58 }
0x1086   :  { %1769 = vmin.xlane.f32.xlu0 %v1768_v0 }
0x1113   :  { %v1770_v59 = vpop.xlane.xlu0 %1769 }
0x1114   :  { %vm1771_vm15 = vcmp.eq.f32.partialorder %v1768_v0, %v1770_v59  ;;  %v1776_v10 = vcvt.f32.s32 %v1770_v59 }
0x1115   :  { %v1772_v6 = vsel %vm1771_vm15, %v1767_v5, inf }
0x1116   :  { %1773 = vmin.xlane.f32.xlu0 %v1772_v6  ;;  %v1777_v9 = vshll.u32 %v1776_v10, 16 }
0x11a3   :  { %v1774_v51 = vpop.xlane.xlu0 %1773 }
0x11a4   :  { %v1775_v11 = vcvt.f32.s32 %v1774_v51 }
0x11a6   :  { %v1778_v14 = vadd.s32 %v1777_v9, %v1775_v11 }
0x11a8   :  { %vm1779_vm4 = vcmp.eq.s32.totalorder %v13358_v53, %v1778_v14 }
0x11a9   :  { %10950 = vmatmul.mubr.msk.f32.vlgmr.msra.gmra.mrb[24].mxu1 %vm1779_vm4, %v15196_v57 }
0x11aa   :  { %11994 = vmatpush1.bf16.msra.mxu1 %v13083_v8  ;;  %1920 = vmatprep.mubr.f32.mxu1 %v15200_v7 }
0x11ab   :  { %11996 = vmatprep.subr.bf16.mxu1 %v13096_v12 }
0x11ae   :  { %11998 = vmatpush1.bf16.msra.mxu1 %v13105_v15 }
0x11af   :  { %12000 = vmatprep.subr.bf16.mxu1 %v13108_v16 }
0x11b2   :  { %12002 = vmatpush1.bf16.msra.mxu1 %v13123_v21 }
0x11b3   :  { %12004 = vmatprep.subr.bf16.mxu1 %v13126_v22 }
0x11b6   :  { %12006 = vmatpush1.bf16.msra.mxu1 %v13135_v25 }
0x11b7   :  { %10957 = vmatprep.subr.mxu1 %v15200_v7 }
0x127c   :  { %v13601_v17 = vpop.f32.mrb[24].mxu1 }
0x127d   :  { %v1852_v2 = vsel %vm126_vm0, %v13601_v17, %v13493_v4  ;;  %v10951_v18 = vpop.f32.mrb[25].mxu1 }
0x127e   :  { %9925 = vmatmul.mubr.msk.f32.vlgmr.msra.gmra.mrb[26].mxu1 %vm139_vm1, %v1852_v2 }
0x127f   :  { %10958 = vmatpush3.xpose.msk.msra.mxu1 %vm126_vm0, %v13200_v13  ;;  %10959 = vmatprep.mubr.msk.f32.mxu1 %vm13003_vm2, %v15200_v7 }
0x1280   :  { %10997 = vmatprep.subr.mxu1 %v15200_v7 }
0x1351   :  { %v1922_v19 = vpop.f32.mrb[26].mxu1 }
0x1352   :  { %v1923_v27 = vadd.f32 %v1922_v19, %v13159_v34  ;;  %v1924_v28 = vpop.f32.mrb[27].mxu1 }
0x1353   :  { %v1925_v37 = vadd.f32 %v1924_v28, %v13163_v35 }
0x1354   :  { %1928 = vrot.lane.b32.xlu1 %v1923_v27, %s12999_s15 }
0x1355   :  { %1949 = vrot.lane.b32.xlu0 %v1925_v37, %s13001_s25 }
0x13c6   :  { %v1929_v30 = vpop.permute.xlu1 %1928 }
0x13c7   :  { %v1931_v33 = vadd.f32 %v1929_v30, %v1923_v27  ;;  %v1950_v45 = vpop.permute.xlu0 %1949 }
0x13c9   :  { %v9926_v39 = vmul.f32 -1.442695, %v1931_v33  ;;  %v13641_v33 = vld [vmem:[%s15188_s2] sm:$0xff] }
0x13cb   :  { %12703 = vpow2.f32 %v9926_v39 }
0x13d5   :  { %v12704_v13 = vpop.eup %12703 }
0x13d6   :  { %v1935_v40 = vadd.f32 1.0, %v12704_v13 }
0x13d8   :  { %12705 = vrcp.f32 %v1935_v40 }
0x13e2   :  { %v12706_v42 = vpop.eup %12705 }
0x13e3   :  { %v1952_v49 = vmul.f32 %v12706_v42, %v1950_v45 }
0x13e5   :  { %1954 = vrot.lane.b32.xlu1 %v1952_v49, %s13002_s6 }
0x13e9   :  { %1939 = vrot.lane.b32.xlu1 %v1925_v37, %s12999_s15 }
0x1457   :  { %v1955_v46 = vpop.permute.xlu1 %1954 }
0x1458   :  { %v1957_v52 = vadd.f32 %v1955_v46, %v1923_v27 }
0x145a   :  { %12707 = vtanh.f32 %v1957_v52 }
0x145b   :  { %v1940_v26 = vpop.permute.xlu1 %1939 }
0x145c   :  { %v1942_v0 = vadd.f32 %v1940_v26, %v1923_v27 }
0x145e   :  { %v9927_v58 = vmul.f32 -1.442695, %v1942_v0 }
0x1460   :  { %12709 = vpow2.f32 %v9927_v58 }
0x1464   :  { %v12708_v55 = vpop.eup %12707 }
0x1465   :  { %1961 = vrot.lane.b32.xlu0 %v12708_v55, %s13001_s25  ;;  %v2541_v55 = vmul.f32 %v13347_v43, %v13601_v17 }
0x1467   :  { %v2542_v26 = vsel %vm892_vm8, %v2541_v55, 0.0 }
0x146a   :  { %v12710_v59 = vpop.eup %12709 }
0x146b   :  { %v1946_v5 = vadd.f32 1.0, %v12710_v59 }
0x146d   :  { %12711 = vrcp.f32 %v1946_v5 }
0x1477   :  { %v12712_v6 = vpop.eup %12711 }
0x1478   :  { %v1959_v10 = vsub.f32 1.0, %v12712_v6  ;;  %v1965_v11 = vmul.f32 %v12712_v6, %v13493_v4 }
0x14d7   :  { %v1962_v51 = vpop.permute.xlu0 %1961 }
0x14d8   :  { %v1964_v9 = vmul.f32 %v1962_v51, %v1959_v10 }
0x14da   :  { %v13620_v14 = vadd.f32 %v1965_v11, %v1964_v9 }
0x14dc   :  { %v1974_v2 = vrot.slane %v13620_v14, %v13185_v63 }
0x14de   :  { %v1982_v18 = vrot.slane %v1974_v2, %v13185_v63  ;;  %v1975_v19 = vcombine.high %v1974_v2, %v1974_v2 }
0x14e0   :  { %v1993_v27 = vrot.slane %v1982_v18, %v13152_v31  ;;  %v1989_v28 = vrot.slane %v1975_v19, %v13185_v63 }
0x14e2   :  { %1994 = vrot.lane.b32.xlu1 %v1993_v27, %s13001_s25  ;;  %v2071_v37 = vrot.slane %v1989_v28, %v13152_v31 }
0x14e4   :  { %2072 = vrot.lane.b32.xlu0 %v2071_v37, %s13001_s25  ;;  %v13698_v37 = vld [vmem:[%s15188_s2 + $0x8] sm:$0xff] }
0x1554   :  { %v1995_v30 = vpop.permute.xlu1 %1994 }
0x1555   :  { %10955 = vmatmul.mubr.msk.f32.vlgmr.msra.gmra.mrb[10].mxu0 %vm126_vm0, %v1995_v30 }
0x1556   :  { %v2073_v4 = vpop.permute.xlu0 %2072  ;;  %12010 = vmatpush3.bf16.xpose.msk.msra.mxu0 %vm13218_vm3, %v13223_v24  ;;  %10994 = vmatprep.mubr.msk.f32.mxu0 %vm13003_vm2, %v15200_v7 }
0x1557   :  { %10960 = vmatmul.mubr.msk.f32.vlgmr.msra.gmra.mrb[28].mxu1 %vm126_vm0, %v2073_v4  ;;  %12011 = vmatprep.subr.bf16.mxu0 %v15198_v23 }
0x1558   :  { %10998 = vmatpush3.msra.mxu1 %v13641_v33  ;;  %10999 = vmatprep.mubr.msk.f32.mxu1 %vm13003_vm2, %v15200_v7 }
0x1559   :  { %11002 = vmatprep.subr.mxu1 %v15200_v7 }
0x155e   :  { %12014 = vmatpush3.bf16.xpose.msk.msra.mxu0 %vm13218_vm3, %v13235_v32 }
0x155f   :  { %12015 = vmatprep.subr.bf16.mxu0 %v15198_v23 }
0x1566   :  { %12018 = vmatpush3.bf16.xpose.msk.msra.mxu0 %vm13218_vm3, %v13247_v38 }
0x1567   :  { %12019 = vmatprep.subr.bf16.mxu0 %v15198_v23 }
0x156e   :  { %12022 = vmatpush3.bf16.xpose.msk.msra.mxu0 %vm13218_vm3, %v13259_v41 }
0x156f   :  { %12023 = vmatprep.subr.bf16.mxu0 %v15198_v23 }
0x1576   :  { %12026 = vmatpush3.bf16.xpose.msk.msra.mxu0 %vm13218_vm3, %v13271_v44 }
0x1577   :  { %12027 = vmatprep.subr.bf16.mxu0 %v15198_v23 }
0x157e   :  { %12030 = vmatpush3.bf16.xpose.msk.msra.mxu0 %vm13218_vm3, %v13283_v47 }
0x157f   :  { %12031 = vmatprep.subr.bf16.mxu0 %v15198_v23 }
0x1586   :  { %12034 = vmatpush3.bf16.xpose.msk.msra.mxu0 %vm13218_vm3, %v13295_v50 }
0x1587   :  { %12035 = vmatprep.subr.bf16.mxu0 %v15198_v23 }
0x158e   :  { %12038 = vmatpush3.bf16.xpose.msk.msra.mxu0 %vm13218_vm3, %v13307_v54 }
0x158f   :  { %11052 = vmatprep.subr.mxu0 %v15200_v7 }
0x1628   :  { %v2064_v39 = vpop.f32.mrb[10].mxu0 }
0x1629   :  { %v2146_v13 = vsel %vm13318_vm5, -1e+09, %v2064_v39  ;;  %v10956_v40 = vpop.f32.mrb[11].mxu0 }
0x162a   :  { %v2142_v42 = vpop.f32.mrb[28].mxu1  ;;  %v2148_v45 = vsel %vm441_vm6, %v2146_v13, -inf  ;;  %v13741_v40 = vld [vmem:[%s15193_s7] ss:$0 sm:$0xff] }
0x162b   :  { %v2147_v49 = vsel %vm97_vm7, -1e+09, %v2142_v42  ;;  %2149 = vmax.xlane.f32.xlu1 %v2148_v45  ;;  %v10961_v46 = vpop.f32.mrb[29].mxu1  ;;  %v2545_v42 = vmul.f32 %v13741_v40, %v13620_v14 }
0x162c   :  { %v2151_v52 = vsel %vm441_vm6, %v2147_v49, -inf }
0x162d   :  { %2152 = vmax.xlane.f32.xlu0 %v2151_v52 }
0x1643   :  { %2170 = vrot.lane.b32.xlu0 %v13620_v14, %s13001_s25 }
0x1662   :  { %2543 = vadd.xlane.f32.xlu0 %v2542_v26 }
0x16b8   :  { %v2150_v0 = vpop.xlane.xlu1 %2149 }
0x16b9   :  { %v2154_v58 = vsub.f32 %v2146_v13, %v2150_v0 }
0x16ba   :  { %v2153_v59 = vpop.xlane.xlu0 %2152 }
0x16bb   :  { %v2156_v5 = vmul.f32 1.442695, %v2154_v58  ;;  %v2155_v6 = vsub.f32 %v2147_v49, %v2153_v59 }
0x16bd   :  { %12713 = vpow2.f32 %v2156_v5  ;;  %v2158_v10 = vmul.f32 1.442695, %v2155_v6 }
0x16be   :  { %v2171_v51 = vpop.permute.xlu0 %2170 }
0x16bf   :  { %12715 = vpow2.f32 %v2158_v10  ;;  %10995 = vmatmul.mubr.msk.f32.vlgmr.msra.gmra.mrb[12].mxu0 %vm126_vm0, %v2171_v51 }
0x16c0   :  { %11053 = vmatpush3.xpose.msk.msra.mxu0 %vm126_vm0, %v13641_v33  ;;  %11054 = vmatprep.mubr.msk.f32.mxu0 %vm13003_vm2, %v15200_v7 }
0x16c1   :  { %12079 = vmatprep.subr.bf16.mxu0 %v15198_v23 }
0x16c7   :  { %v12714_v43 = vpop.eup %12713 }
0x16c8   :  { %v2160_v17 = vsel %vm441_vm6, %v12714_v43, 0.0 }
0x16c9   :  { %v12716_v9 = vpop.eup %12715  ;;  %2161 = vadd.xlane.f32.xlu1 %v2160_v17 }
0x16ca   :  { %v2163_v11 = vsel %vm441_vm6, %v12716_v9, 0.0 }
0x16cd   :  { %2164 = vadd.xlane.f32.xlu1 %v2163_v11 }
0x1756   :  { %v2162_v2 = vpop.xlane.xlu1 %2161 }
0x1757   :  { %12717 = vrcp.f32 %v2162_v2 }
0x175a   :  { %v2165_v18 = vpop.xlane.xlu1 %2164 }
0x175b   :  { %12719 = vrcp.f32 %v2165_v18 }
0x1761   :  { %v12718_v19 = vpop.eup %12717 }
0x1762   :  { %v2167_v27 = vmul.f32 %v12718_v19, %v12714_v43 }
0x1764   :  { %11000 = vmatmul.mubr.msk.f32.vlgmr.msra.gmra.mrb[30].mxu1 %vm598_vm10, %v2167_v27 }
0x1765   :  { %v12720_v28 = vpop.eup %12719  ;;  %11003 = vmatpush3.msra.mxu1 %v13698_v37  ;;  %11004 = vmatprep.mubr.msk.f32.mxu1 %vm13003_vm2, %v15200_v7 }
0x1766   :  { %11007 = vmatprep.subr.mxu1 %v15200_v7  ;;  %v2169_v30 = vmul.f32 %v12720_v28, %v12716_v9 }
0x1768   :  { %11005 = vmatmul.mubr.msk.f32.vlgmr.msra.gmra.mrb[32].mxu1 %vm598_vm10, %v2169_v30 }
0x1769   :  { %11008 = vmatpush3.msk.msra.mxu1 %vm13361_vm9, %v15196_v57  ;;  %11009 = vmatprep.mubr.msk.f32.mxu1 %vm13003_vm2, %v15200_v7 }
0x176a   :  { %11012 = vmatprep.subr.mxu1 %v15200_v7 }
0x176c   :  { %11010 = vmatmul.mubr.msk.f32.vlgmr.msra.gmra.mrb[34].mxu1 %vm598_vm10, %v2167_v27 }
0x176d   :  { %11013 = vmatpush3.msk.msra.mxu1 %vm13370_vm11, %v15196_v57  ;;  %11014 = vmatprep.mubr.msk.f32.mxu1 %vm13003_vm2, %v15200_v7 }
0x176e   :  { %12039 = vmatprep.subr.bf16.mxu1 %v15198_v23 }
0x1770   :  { %11015 = vmatmul.mubr.msk.f32.vlgmr.msra.gmra.mrb[36].mxu1 %vm598_vm10, %v2169_v30  ;;  %v2544_v30 = vpop.xlane.xlu0 %2543 }
0x1771   :  { %12041 = vmatpush3.bf16.msra.mxu1 %v13223_v24  ;;  %11049 = vmatprep.mubr.msk.f32.mxu1 %vm13003_vm2, %v15200_v7 }
0x1772   :  { %12042 = vmatprep.subr.bf16.mxu1 %v15198_v23 }
0x1775   :  { %12044 = vmatpush3.bf16.msra.mxu1 %v13235_v32 }
0x1776   :  { %12045 = vmatprep.subr.bf16.mxu1 %v15198_v23 }
0x1779   :  { %12047 = vmatpush3.bf16.msra.mxu1 %v13247_v38 }
0x177a   :  { %12048 = vmatprep.subr.bf16.mxu1 %v15198_v23 }
0x177d   :  { %12050 = vmatpush3.bf16.msra.mxu1 %v13259_v41 }
0x177e   :  { %12051 = vmatprep.subr.bf16.mxu1 %v15198_v23 }
0x1781   :  { %12053 = vmatpush3.bf16.msra.mxu1 %v13271_v44 }
0x1782   :  { %12054 = vmatprep.subr.bf16.mxu1 %v15198_v23 }
0x1785   :  { %12056 = vmatpush3.bf16.msra.mxu1 %v13283_v47 }
0x1786   :  { %12057 = vmatprep.subr.bf16.mxu1 %v15198_v23 }
0x1789   :  { %12059 = vmatpush3.bf16.msra.mxu1 %v13295_v50 }
0x178a   :  { %12060 = vmatprep.subr.bf16.mxu1 %v15198_v23 }
0x178d   :  { %12062 = vmatpush3.bf16.msra.mxu1 %v13307_v54 }
0x178e   :  { %12064 = vmatprep.subr.bf16.mxu1 %v13071_v3 }
0x1792   :  { %v2240_v4 = vpop.f32.mrb[12].mxu0 }
0x1793   :  { %v10996_v39 = vpop.f32.mrb[13].mxu0  ;;  %v2244_v13 = vsel %vm586_vm12, %v2240_v4, -inf }
0x1794   :  { %2245 = vmax.xlane.f32.xlu1 %v2244_v13 }
0x17a5   :  { %2547 = vrot.lane.b32.xlu1 %v2545_v42, %s13001_s25 }
0x1821   :  { %v2246_v45 = vpop.xlane.xlu1 %2245 }
0x1822   :  { %v2247_v52 = vsub.f32 %v2240_v4, %v2246_v45 }
0x1824   :  { %v2248_v55 = vmul.f32 1.442695, %v2247_v52 }
0x1825   :  { %v2548_v49 = vpop.permute.xlu1 %2547 }
0x1826   :  { %v2550_v46 = vsel %vm892_vm8, %v2548_v49, 0.0  ;;  %12721 = vpow2.f32 %v2248_v55 }
0x1827   :  { %2551 = vadd.xlane.f32.xlu1 %v2550_v46 }
0x1830   :  { %v12722_v11 = vpop.eup %12721 }
0x1831   :  { %v2250_v27 = vsel %vm586_vm12, %v12722_v11, 0.0 }
0x1837   :  { %v2324_v26 = vpop.f32.mrb[30].mxu1 }
0x1838   :  { %v11001_v0 = vpop.f32.mrb[31].mxu1  ;;  %v2554_v6 = vmul.f32 %v2324_v26, %v13411_v1 }
0x183b   :  { %v2397_v58 = vpop.f32.mrb[32].mxu1 }
0x183c   :  { %v2555_v59 = vmul.f32 %v2397_v58, %v13411_v1  ;;  %v11006_v5 = vpop.f32.mrb[33].mxu1 }
0x183e   :  { %v2558_v10 = vrot.slane %v2555_v59, 7 }
0x183f   :  { %v2467_v51 = vpop.f32.mrb[34].mxu1 }
0x1840   :  { %v11011_v43 = vpop.f32.mrb[35].mxu1  ;;  %v2559_v17 = vsel %vm913_vm13, %v2558_v10, %v2554_v6 }
0x1841   :  { %v2561_v9 = vsel %vm892_vm8, %v2559_v17, 0.0 }
0x1842   :  { %2562 = vadd.xlane.f32.xlu0 %v2561_v9 }
0x1843   :  { %v2537_v2 = vpop.f32.mrb[36].mxu1 }
0x1844   :  { %v2576_v18 = vrot.slane %v2537_v2, 7  ;;  %v11016_v19 = vpop.f32.mrb[37].mxu1 }
0x1846   :  { %v2577_v28 = vsel %vm913_vm13, %v2576_v18, %v2467_v51  ;;  %2251 = vadd.xlane.f32.xlu0 %v2250_v27 }
0x18b4   :  { %v2552_v4 = vpop.xlane.xlu1 %2551 }
0x18b5   :  { %v2553_v39 = vadd.f32 %v2552_v4, %v2544_v30 }
0x18cf   :  { %v2563_v13 = vpop.xlane.xlu0 %2562 }
0x18d0   :  { %v2564_v42 = vadd.f32 %v2563_v13, %v2553_v39 }
0x18d2   :  { %v2565_v45 = vadd.f32 %v2564_v42, %v13424_v60 }
0x18d3   :  { %v2252_v46 = vpop.xlane.xlu0 %2251 }
0x18d4   :  { %v9955_v49 = vmul.f32 -1.442695, %v2565_v45 }
0x18d6   :  { %12723 = vpow2.f32 %v9955_v49 }
0x18d7   :  { %12725 = vrcp.f32 %v2252_v46 }
0x18e0   :  { %v12724_v52 = vpop.eup %12723 }
0x18e1   :  { %v2569_v55 = vadd.f32 1.0, %v12724_v52  ;;  %v12726_v26 = vpop.eup %12725 }
0x18e2   :  { %v2254_v58 = vmul.f32 %v12726_v26, %v12722_v11 }
0x18e3   :  { %12727 = vrcp.f32 %v2569_v55 }
0x18ed   :  { %v12728_v0 = vpop.eup %12727 }
0x18ee   :  { %v2573_v59 = vsub.f32 1.0, %v12728_v0  ;;  %v2572_v5 = vmul.f32 %v12728_v0, %v2254_v58 }
0x18f0   :  { %v2579_v6 = vmul.f32 %v2577_v28, %v2573_v59 }
0x18f2   :  { %v13754_v10 = vadd.f32 %v2579_v6, %v2572_v5 }
0x18f4   :  { %v2581_v51 = vsel %vm586_vm12, %v13754_v10, -inf }
0x18f5   :  { %2582 = vmax.xlane.f32.xlu0 %v2581_v51 }
0x1982   :  { %v2583_v43 = vpop.xlane.xlu0 %2582 }
0x1983   :  { %vm2584_vm14 = vcmp.ge.f32.partialorder %v13754_v10, %v2583_v43 }
0x1984   :  { %v2585_v17 = vsel %vm2584_vm14, %v13358_v53, 128 }
0x1985   :  { %v2586_v9 = vsel %vm586_vm12, %v2585_v17, 2147483647 }
0x1986   :  { %v2588_v2 = vshra.s32 %v2586_v9, 16  ;;  %v2587_v11 = vand.u32 65535, %v2586_v9 }
0x1988   :  { %v2590_v18 = vcvt.s32.f32 %v2588_v2  ;;  %v2589_v27 = vcvt.s32.f32 %v2587_v11 }
0x198a   :  { %2591 = vmin.xlane.f32.xlu0 %v2590_v18 }
0x1a17   :  { %v2592_v19 = vpop.xlane.xlu0 %2591 }
0x1a18   :  { %vm2593_vm15 = vcmp.eq.f32.partialorder %v2590_v18, %v2592_v19  ;;  %v2598_v30 = vcvt.f32.s32 %v2592_v19 }
0x1a19   :  { %v2594_v28 = vsel %vm2593_vm15, %v2589_v27, inf }
0x1a1a   :  { %2595 = vmin.xlane.f32.xlu1 %v2594_v28  ;;  %v2599_v39 = vshll.u32 %v2598_v30, 16 }
0x1aa7   :  { %v2596_v4 = vpop.xlane.xlu1 %2595 }
0x1aa8   :  { %v2597_v13 = vcvt.f32.s32 %v2596_v4 }
0x1aaa   :  { %v2600_v42 = vadd.s32 %v2599_v39, %v2597_v13 }
0x1aac   :  { %vm2601_vm4 = vcmp.eq.s32.totalorder %v13358_v53, %v2600_v42 }
0x1aad   :  { %11050 = vmatmul.mubr.msk.f32.vlgmr.msra.gmra.mrb[38].mxu1 %vm2601_vm4, %v15196_v57 }
0x1aae   :  { %12066 = vmatpush1.bf16.msra.mxu1 %v13083_v8  ;;  %2742 = vmatprep.mubr.f32.mxu1 %v15200_v7 }
0x1aaf   :  { %12068 = vmatprep.subr.bf16.mxu1 %v13096_v12 }
0x1ab2   :  { %12070 = vmatpush1.bf16.msra.mxu1 %v13105_v15 }
0x1ab3   :  { %12072 = vmatprep.subr.bf16.mxu1 %v13108_v16 }
0x1ab6   :  { %12074 = vmatpush1.bf16.msra.mxu1 %v13123_v21 }
0x1ab7   :  { %12076 = vmatprep.subr.bf16.mxu1 %v13126_v22 }
0x1aba   :  { %12078 = vmatpush1.bf16.msra.mxu1 %v13135_v25 }
0x1abb   :  { %11057 = vmatprep.subr.mxu1 %v15200_v7 }
0x1b80   :  { %v13772_v45 = vpop.f32.mrb[38].mxu1 }
0x1b81   :  { %v2674_v49 = vsel %vm126_vm0, %v13772_v45, %v13620_v14  ;;  %v11051_v46 = vpop.f32.mrb[39].mxu1  ;;  %v3363_v61 = vmul.f32 %v15077_v20, %v13772_v45 }
0x1b82   :  { %9958 = vmatmul.mubr.msk.f32.vlgmr.msra.gmra.mrb[40].mxu1 %vm139_vm1, %v2674_v49 }
0x1b83   :  { %11058 = vmatpush3.xpose.msk.msra.mxu1 %vm126_vm0, %v13698_v37  ;;  %11059 = vmatprep.mubr.msk.f32.mxu1 %vm13003_vm2, %v15200_v7 }
0x1b84   :  { %11097 = vmatprep.subr.mxu1 %v15200_v7 }
0x1c55   :  { %v2744_v52 = vpop.f32.mrb[40].mxu1 }
0x1c56   :  { %v2745_v55 = vadd.f32 %v2744_v52, %v13159_v34  ;;  %v2746_v26 = vpop.f32.mrb[41].mxu1 }
0x1c57   :  { %v2747_v0 = vadd.f32 %v2746_v26, %v13163_v35 }
0x1c58   :  { %2750 = vrot.lane.b32.xlu0 %v2745_v55, %s12999_s15 }
0x1c59   :  { %2771 = vrot.lane.b32.xlu1 %v2747_v0, %s13001_s25 }
0x1c5c   :  { %2761 = vrot.lane.b32.xlu0 %v2747_v0, %s12999_s15 }
0x1cca   :  { %v2751_v58 = vpop.permute.xlu0 %2750 }
0x1ccb   :  { %v2753_v59 = vadd.f32 %v2751_v58, %v2745_v55  ;;  %v2772_v17 = vpop.permute.xlu1 %2771 }
0x1ccd   :  { %v9959_v5 = vmul.f32 -1.442695, %v2753_v59 }
0x1cce   :  { %v2762_v19 = vpop.permute.xlu0 %2761 }
0x1ccf   :  { %12729 = vpow2.f32 %v9959_v5  ;;  %v2764_v27 = vadd.f32 %v2762_v19, %v2745_v55 }
0x1cd1   :  { %v9960_v28 = vmul.f32 -1.442695, %v2764_v27 }
0x1cd9   :  { %v12730_v6 = vpop.eup %12729 }
0x1cda   :  { %v2757_v51 = vadd.f32 1.0, %v12730_v6 }
0x1cdc   :  { %12731 = vrcp.f32 %v2757_v51 }
0x1ce6   :  { %v12732_v43 = vpop.eup %12731 }
0x1ce7   :  { %v2774_v9 = vmul.f32 %v12732_v43, %v2772_v17 }
0x1ce9   :  { %2776 = vrot.lane.b32.xlu1 %v2774_v9, %s13002_s6 }
0x1d5b   :  { %v2777_v2 = vpop.permute.xlu1 %2776 }
0x1d5c   :  { %v2779_v18 = vadd.f32 %v2777_v2, %v2745_v55 }
0x1d5e   :  { %12733 = vtanh.f32 %v2779_v18 }
0x1d5f   :  { %12735 = vpow2.f32 %v9960_v28 }
0x1d68   :  { %v12734_v11 = vpop.eup %12733 }
0x1d69   :  { %2783 = vrot.lane.b32.xlu1 %v12734_v11, %s13001_s25  ;;  %v12736_v30 = vpop.eup %12735 }
0x1d6a   :  { %v2768_v4 = vadd.f32 1.0, %v12736_v30 }
0x1d6c   :  { %12737 = vrcp.f32 %v2768_v4 }
0x1d76   :  { %v12738_v39 = vpop.eup %12737 }
0x1d77   :  { %v2781_v13 = vsub.f32 1.0, %v12738_v39  ;;  %v2787_v46 = vmul.f32 %v12738_v39, %v13620_v14 }
0x1ddb   :  { %v2784_v42 = vpop.permute.xlu1 %2783 }
0x1ddc   :  { %v2786_v49 = vmul.f32 %v2784_v42, %v2781_v13 }
0x1dde   :  { %v13791_v52 = vadd.f32 %v2787_v46, %v2786_v49 }
0x1de0   :  { %v2796_v26 = vrot.slane %v13791_v52, %v13185_v63 }
0x1de2   :  { %v2804_v0 = vrot.slane %v2796_v26, %v13185_v63  ;;  %v2797_v58 = vcombine.high %v2796_v26, %v2796_v26 }
0x1de4   :  { %v2815_v55 = vrot.slane %v2804_v0, %v13152_v31  ;;  %v2811_v59 = vrot.slane %v2797_v58, %v13185_v63 }
0x1de6   :  { %2816 = vrot.lane.b32.xlu0 %v2815_v55, %s13001_s25  ;;  %v2893_v5 = vrot.slane %v2811_v59, %v13152_v31 }
0x1de8   :  { %2894 = vrot.lane.b32.xlu1 %v2893_v5, %s13001_s25 }
0x1e58   :  { %v2817_v6 = vpop.permute.xlu0 %2816 }
0x1e59   :  { %11055 = vmatmul.mubr.msk.f32.vlgmr.msra.gmra.mrb[14].mxu0 %vm126_vm0, %v2817_v6 }
0x1e5a   :  { %v2895_v14 = vpop.permute.xlu1 %2894  ;;  %12082 = vmatpush3.bf16.xpose.msk.msra.mxu0 %vm13218_vm3, %v13223_v24  ;;  %11094 = vmatprep.mubr.msk.f32.mxu0 %vm13003_vm2, %v15200_v7 }
0x1e5b   :  { %11060 = vmatmul.mubr.msk.f32.vlgmr.msra.gmra.mrb[42].mxu1 %vm126_vm0, %v2895_v14  ;;  %12083 = vmatprep.subr.bf16.mxu0 %v15198_v23  ;;  %v13879_v14 = vld [vmem:[%s15187_s1 + $0x2] sm:$0x3] }
0x1e5c   :  { %11098 = vmatpush3.msra.mxu1 %v13641_v33  ;;  %11099 = vmatprep.mubr.msk.f32.mxu1 %vm13003_vm2, %v15200_v7 }
0x1e5d   :  { %11102 = vmatprep.subr.mxu1 %v15200_v7 }
0x1e62   :  { %12086 = vmatpush3.bf16.xpose.msk.msra.mxu0 %vm13218_vm3, %v13235_v32 }
0x1e63   :  { %12087 = vmatprep.subr.bf16.mxu0 %v15198_v23 }
0x1e6a   :  { %12090 = vmatpush3.bf16.xpose.msk.msra.mxu0 %vm13218_vm3, %v13247_v38 }
0x1e6b   :  { %12091 = vmatprep.subr.bf16.mxu0 %v15198_v23 }
0x1e72   :  { %12094 = vmatpush3.bf16.xpose.msk.msra.mxu0 %vm13218_vm3, %v13259_v41 }
0x1e73   :  { %12095 = vmatprep.subr.bf16.mxu0 %v15198_v23 }
0x1e7a   :  { %12098 = vmatpush3.bf16.xpose.msk.msra.mxu0 %vm13218_vm3, %v13271_v44 }
0x1e7b   :  { %12099 = vmatprep.subr.bf16.mxu0 %v15198_v23 }
0x1e82   :  { %12102 = vmatpush3.bf16.xpose.msk.msra.mxu0 %vm13218_vm3, %v13283_v47 }
0x1e83   :  { %12103 = vmatprep.subr.bf16.mxu0 %v15198_v23 }
0x1e8a   :  { %12106 = vmatpush3.bf16.xpose.msk.msra.mxu0 %vm13218_vm3, %v13295_v50 }
0x1e8b   :  { %12107 = vmatprep.subr.bf16.mxu0 %v15198_v23 }
0x1e92   :  { %12110 = vmatpush3.bf16.xpose.msk.msra.mxu0 %vm13218_vm3, %v13307_v54 }
0x1e93   :  { %11162 = vmatprep.subr.mxu0 %v15200_v7 }
0x1f2c   :  { %v2886_v51 = vpop.f32.mrb[14].mxu0 }
0x1f2d   :  { %v2968_v43 = vsel %vm13318_vm5, -1e+09, %v2886_v51  ;;  %v11056_v17 = vpop.f32.mrb[15].mxu0  ;;  %v3420_v51 = vsel %vm126_vm0, %v13879_v14, %v13791_v52 }
0x1f2e   :  { %v2964_v9 = vpop.f32.mrb[42].mxu1  ;;  %v2970_v2 = vsel %vm441_vm6, %v2968_v43, -inf }
0x1f2f   :  { %v2969_v18 = vsel %vm97_vm7, -1e+09, %v2964_v9  ;;  %2971 = vmax.xlane.f32.xlu0 %v2970_v2  ;;  %v11061_v11 = vpop.f32.mrb[43].mxu1 }
0x1f30   :  { %v2973_v19 = vsel %vm441_vm6, %v2969_v18, -inf }
0x1f31   :  { %2974 = vmax.xlane.f32.xlu1 %v2973_v19 }
0x1fbc   :  { %v2972_v27 = vpop.xlane.xlu0 %2971 }
0x1fbd   :  { %v2976_v28 = vsub.f32 %v2968_v43, %v2972_v27 }
0x1fbe   :  { %v2975_v30 = vpop.xlane.xlu1 %2974 }
0x1fbf   :  { %v2978_v4 = vmul.f32 1.442695, %v2976_v28  ;;  %v2977_v39 = vsub.f32 %v2969_v18, %v2975_v30 }
0x1fc1   :  { %12739 = vpow2.f32 %v2978_v4  ;;  %v2980_v13 = vmul.f32 1.442695, %v2977_v39 }
0x1fc3   :  { %12741 = vpow2.f32 %v2980_v13 }
0x1fcb   :  { %v12740_v42 = vpop.eup %12739 }
0x1fcc   :  { %v2982_v49 = vsel %vm441_vm6, %v12740_v42, 0.0 }
0x1fcd   :  { %v12742_v46 = vpop.eup %12741  ;;  %2983 = vadd.xlane.f32.xlu0 %v2982_v49 }
0x1fce   :  { %v2985_v26 = vsel %vm441_vm6, %v12742_v46, 0.0 }
0x1fd1   :  { %2986 = vadd.xlane.f32.xlu0 %v2985_v26 }
0x205a   :  { %v2984_v0 = vpop.xlane.xlu0 %2983 }
0x205b   :  { %12743 = vrcp.f32 %v2984_v0 }
0x205e   :  { %v2987_v58 = vpop.xlane.xlu0 %2986 }
0x205f   :  { %12745 = vrcp.f32 %v2987_v58 }
0x2065   :  { %v12744_v55 = vpop.eup %12743 }
0x2066   :  { %v2989_v59 = vmul.f32 %v12744_v55, %v12740_v42 }
0x2068   :  { %11100 = vmatmul.mubr.msk.f32.vlgmr.msra.gmra.mrb[44].mxu1 %vm598_vm10, %v2989_v59 }
0x2069   :  { %v12746_v5 = vpop.eup %12745  ;;  %11103 = vmatpush3.msra.mxu1 %v13698_v37  ;;  %11104 = vmatprep.mubr.msk.f32.mxu1 %vm13003_vm2, %v15200_v7 }
0x206a   :  { %11107 = vmatprep.subr.mxu1 %v15200_v7  ;;  %v2991_v6 = vmul.f32 %v12746_v5, %v12742_v46 }
0x206c   :  { %11105 = vmatmul.mubr.msk.f32.vlgmr.msra.gmra.mrb[46].mxu1 %vm598_vm10, %v2991_v6 }
0x206d   :  { %11108 = vmatpush3.msk.msra.mxu1 %vm13361_vm9, %v15196_v57  ;;  %11109 = vmatprep.mubr.msk.f32.mxu1 %vm13003_vm2, %v15200_v7 }
0x206e   :  { %11112 = vmatprep.subr.mxu1 %v15200_v7 }
0x2070   :  { %11110 = vmatmul.mubr.msk.f32.vlgmr.msra.gmra.mrb[48].mxu1 %vm598_vm10, %v2989_v59 }
0x2071   :  { %11113 = vmatpush3.msk.msra.mxu1 %vm13370_vm11, %v15196_v57  ;;  %11114 = vmatprep.mubr.msk.f32.mxu1 %vm13003_vm2, %v15200_v7 }
0x2072   :  { %12112 = vmatprep.subr.bf16.mxu1 %v13071_v3 }
0x2074   :  { %11115 = vmatmul.mubr.msk.f32.vlgmr.msra.gmra.mrb[50].mxu1 %vm598_vm10, %v2991_v6 }
0x2075   :  { %12114 = vmatpush1.bf16.msra.mxu1 %v13083_v8  ;;  %3488 = vmatprep.mubr.f32.mxu1 %v15200_v7 }
0x2076   :  { %12116 = vmatprep.subr.bf16.mxu1 %v13096_v12 }
0x2079   :  { %12118 = vmatpush1.bf16.msra.mxu1 %v13105_v15 }
0x207a   :  { %12120 = vmatprep.subr.bf16.mxu1 %v13108_v16 }
0x207d   :  { %12122 = vmatpush1.bf16.msra.mxu1 %v13123_v21 }
0x207e   :  { %12124 = vmatprep.subr.bf16.mxu1 %v13126_v22 }
0x2081   :  { %12126 = vmatpush1.bf16.msra.mxu1 %v13135_v25 }
0x2082   :  { %11117 = vmatprep.subr.mxu1 %v15200_v7 }
0x2084   :  { %9990 = vmatmul.mubr.msk.f32.vlgmr.msra.gmra.mrb[52].mxu1 %vm139_vm1, %v3420_v51 }
0x2085   :  { %11119 = vmatprep.mubr.msk.f32.mxu1 %vm13003_vm2, %v15200_v7 }
0x208a   :  { %11118 = vmatpush3.xpose.msk.msra.mxu1 %vm126_vm0, %v13641_v33 }
0x208b   :  { %11122 = vmatprep.subr.mxu1 %v15200_v7 }
0x213b   :  { %v3146_v43 = vpop.f32.mrb[44].mxu1 }
0x213c   :  { %v11101_v17 = vpop.f32.mrb[45].mxu1  ;;  %v3376_v11 = vmul.f32 %v3146_v43, %v13411_v1 }
0x213f   :  { %v3219_v9 = vpop.f32.mrb[46].mxu1 }
0x2140   :  { %v3377_v2 = vmul.f32 %v3219_v9, %v13411_v1  ;;  %v11106_v18 = vpop.f32.mrb[47].mxu1 }
0x2142   :  { %v3380_v19 = vrot.slane %v3377_v2, 7 }
0x2143   :  { %v3289_v27 = vpop.f32.mrb[48].mxu1 }
0x2144   :  { %v11111_v28 = vpop.f32.mrb[49].mxu1  ;;  %v13895_v30 = vsel %vm913_vm13, %v3380_v19, %v3376_v11 }
0x2147   :  { %v3359_v4 = vpop.f32.mrb[50].mxu1 }
0x2148   :  { %v3398_v39 = vrot.slane %v3359_v4, 7  ;;  %v11116_v13 = vpop.f32.mrb[51].mxu1 }
0x214a   :  { %v13898_v42 = vsel %vm913_vm13, %v3398_v39, %v3289_v27 }
0x2157   :  { %v3490_v49 = vpop.f32.mrb[52].mxu1 }
0x2158   :  { %v3491_v46 = vadd.f32 %v3490_v49, %v13159_v34  ;;  %v3492_v26 = vpop.f32.mrb[53].mxu1 }
0x2159   :  { %v3493_v0 = vadd.f32 %v3492_v26, %v13163_v35 }
0x215a   :  { %3496 = vrot.lane.b32.xlu1 %v3491_v46, %s12999_s15 }
0x215b   :  { %3517 = vrot.lane.b32.xlu0 %v3493_v0, %s13001_s25 }
0x21cc   :  { %v3497_v58 = vpop.permute.xlu1 %3496 }
0x21cd   :  { %v3499_v55 = vadd.f32 %v3497_v58, %v3491_v46  ;;  %v3518_v43 = vpop.permute.xlu0 %3517 }
0x21cf   :  { %v9991_v59 = vmul.f32 -1.442695, %v3499_v55 }
0x21d1   :  { %12747 = vpow2.f32 %v9991_v59 }
0x21db   :  { %v12748_v5 = vpop.eup %12747 }
0x21dc   :  { %v3503_v6 = vadd.f32 1.0, %v12748_v5 }
0x21de   :  { %12749 = vrcp.f32 %v3503_v6 }
0x21e8   :  { %v12750_v51 = vpop.eup %12749 }
0x21e9   :  { %v3520_v17 = vmul.f32 %v12750_v51, %v3518_v43 }
0x21eb   :  { %3522 = vrot.lane.b32.xlu1 %v3520_v17, %s13002_s6 }
0x21ef   :  { %3507 = vrot.lane.b32.xlu1 %v3493_v0, %s12999_s15 }
0x225d   :  { %v3523_v9 = vpop.permute.xlu1 %3522 }
0x225e   :  { %v3525_v2 = vadd.f32 %v3523_v9, %v3491_v46 }
0x2260   :  { %12751 = vtanh.f32 %v3525_v2 }
0x2261   :  { %v3508_v11 = vpop.permute.xlu1 %3507 }
0x2262   :  { %v3510_v19 = vadd.f32 %v3508_v11, %v3491_v46 }
0x2264   :  { %v9992_v27 = vmul.f32 -1.442695, %v3510_v19 }
0x2266   :  { %12753 = vpow2.f32 %v9992_v27 }
0x226a   :  { %v12752_v18 = vpop.eup %12751 }
0x226b   :  { %3529 = vrot.lane.b32.xlu0 %v12752_v18, %s13001_s25 }
0x2270   :  { %v12754_v28 = vpop.eup %12753 }
0x2271   :  { %v3514_v4 = vadd.f32 1.0, %v12754_v28 }
0x2273   :  { %12755 = vrcp.f32 %v3514_v4 }
0x227d   :  { %v12756_v39 = vpop.eup %12755 }
0x227e   :  { %v3527_v13 = vsub.f32 1.0, %v12756_v39  ;;  %v3533_v58 = vmul.f32 %v12756_v39, %v13791_v52 }
0x22dd   :  { %v3530_v49 = vpop.permute.xlu0 %3529 }
0x22de   :  { %v3532_v26 = vmul.f32 %v3530_v49, %v3527_v13 }
0x22e0   :  { %v13908_v0 = vadd.f32 %v3533_v58, %v3532_v26 }
0x22e2   :  { %v3542_v55 = vrot.slane %v13908_v0, %v13185_v63 }
0x22e4   :  { %v3550_v59 = vrot.slane %v3542_v55, %v13185_v63  ;;  %v3543_v5 = vcombine.high %v3542_v55, %v3542_v55 }
0x22e6   :  { %v3561_v46 = vrot.slane %v3550_v59, %v13152_v31  ;;  %v3557_v6 = vrot.slane %v3543_v5, %v13185_v63 }
0x22e8   :  { %3562 = vrot.lane.b32.xlu1 %v3561_v46, %s13001_s25  ;;  %v3639_v51 = vrot.slane %v3557_v6, %v13152_v31 }
0x22ea   :  { %3640 = vrot.lane.b32.xlu0 %v3639_v51, %s13001_s25 }
0x235a   :  { %v3563_v43 = vpop.permute.xlu1 %3562 }
0x235b   :  { %11120 = vmatmul.mubr.msk.f32.vlgmr.msra.gmra.mrb[54].mxu1 %vm126_vm0, %v3563_v43  ;;  %v4113_v43 = vmul.f32 %v13741_v40, %v13908_v0 }
0x235c   :  { %11123 = vmatpush3.xpose.msk.msra.mxu1 %vm126_vm0, %v13698_v37  ;;  %11124 = vmatprep.mubr.msk.f32.mxu1 %vm13003_vm2, %v15200_v7  ;;  %v3641_v17 = vpop.permute.xlu0 %3640 }
0x235d   :  { %12127 = vmatprep.subr.bf16.mxu1 %v15198_v23 }
0x235f   :  { %11125 = vmatmul.mubr.msk.f32.vlgmr.msra.gmra.mrb[56].mxu1 %vm126_vm0, %v3641_v17  ;;  %v4109_v17 = vmul.f32 %v13741_v40, %v13879_v14 }
0x2360   :  { %12130 = vmatpush3.bf16.xpose.msk.msra.mxu1 %vm13218_vm3, %v13223_v24  ;;  %11159 = vmatprep.mubr.msk.f32.mxu1 %vm13003_vm2, %v15200_v7 }
0x2361   :  { %12131 = vmatprep.subr.bf16.mxu1 %v15198_v23 }
0x2368   :  { %12134 = vmatpush3.bf16.xpose.msk.msra.mxu1 %vm13218_vm3, %v13235_v32 }
0x2369   :  { %12135 = vmatprep.subr.bf16.mxu1 %v15198_v23 }
0x2370   :  { %12138 = vmatpush3.bf16.xpose.msk.msra.mxu1 %vm13218_vm3, %v13247_v38 }
0x2371   :  { %12139 = vmatprep.subr.bf16.mxu1 %v15198_v23 }
0x2378   :  { %12142 = vmatpush3.bf16.xpose.msk.msra.mxu1 %vm13218_vm3, %v13259_v41 }
0x2379   :  { %12143 = vmatprep.subr.bf16.mxu1 %v15198_v23 }
0x2380   :  { %12146 = vmatpush3.bf16.xpose.msk.msra.mxu1 %vm13218_vm3, %v13271_v44 }
0x2381   :  { %12147 = vmatprep.subr.bf16.mxu1 %v15198_v23 }
0x2388   :  { %12150 = vmatpush3.bf16.xpose.msk.msra.mxu1 %vm13218_vm3, %v13283_v47 }
0x2389   :  { %12151 = vmatprep.subr.bf16.mxu1 %v15198_v23 }
0x2390   :  { %12154 = vmatpush3.bf16.xpose.msk.msra.mxu1 %vm13218_vm3, %v13295_v50 }
0x2391   :  { %12155 = vmatprep.subr.bf16.mxu1 %v15198_v23 }
0x2398   :  { %12158 = vmatpush3.bf16.xpose.msk.msra.mxu1 %vm13218_vm3, %v13307_v54 }
0x2399   :  { %12184 = vmatprep.subr.bf16.mxu1 %v13071_v3 }
0x242e   :  { %v3632_v9 = vpop.f32.mrb[54].mxu1 }
0x242f   :  { %v3714_v2 = vsel %vm13318_vm5, -1e+09, %v3632_v9  ;;  %v11121_v18 = vpop.f32.mrb[55].mxu1  ;;  %v4110_v9 = vsel %vm892_vm8, %v4109_v17, 0.0 }
0x2430   :  { %v3716_v11 = vsel %vm441_vm6, %v3714_v2, -inf }
0x2431   :  { %3717 = vmax.xlane.f32.xlu1 %v3716_v11 }
0x2432   :  { %v3710_v19 = vpop.f32.mrb[56].mxu1 }
0x2433   :  { %v3715_v27 = vsel %vm97_vm7, -1e+09, %v3710_v19  ;;  %v11126_v28 = vpop.f32.mrb[57].mxu1 }
0x2434   :  { %v3719_v4 = vsel %vm441_vm6, %v3715_v27, -inf }
0x2435   :  { %3720 = vmax.xlane.f32.xlu0 %v3719_v4 }
0x244b   :  { %3738 = vrot.lane.b32.xlu0 %v13908_v0, %s13001_s25 }
0x24be   :  { %v3718_v39 = vpop.xlane.xlu1 %3717 }
0x24bf   :  { %v3722_v13 = vsub.f32 %v3714_v2, %v3718_v39 }
0x24c1   :  { %v3724_v49 = vmul.f32 1.442695, %v3722_v13 }
0x24c2   :  { %v3721_v26 = vpop.xlane.xlu0 %3720 }
0x24c3   :  { %12757 = vpow2.f32 %v3724_v49  ;;  %v3723_v58 = vsub.f32 %v3715_v27, %v3721_v26 }
0x24c5   :  { %v3726_v55 = vmul.f32 1.442695, %v3723_v58 }
0x24c6   :  { %v3739_v59 = vpop.permute.xlu0 %3738 }
0x24c7   :  { %12759 = vpow2.f32 %v3726_v55  ;;  %11160 = vmatmul.mubr.msk.f32.vlgmr.msra.gmra.mrb[58].mxu1 %vm126_vm0, %v3739_v59 }
0x24c8   :  { %12186 = vmatpush1.bf16.msra.mxu1 %v13083_v8  ;;  %4310 = vmatprep.mubr.f32.mxu1 %v15200_v7 }
0x24c9   :  { %12188 = vmatprep.subr.bf16.mxu1 %v13096_v12 }
0x24cc   :  { %12190 = vmatpush1.bf16.msra.mxu1 %v13105_v15 }
0x24cd   :  { %v12758_v5 = vpop.eup %12757  ;;  %12192 = vmatprep.subr.bf16.mxu1 %v13108_v16 }
0x24ce   :  { %v3728_v46 = vsel %vm441_vm6, %v12758_v5, 0.0 }
0x24cf   :  { %3729 = vadd.xlane.f32.xlu1 %v3728_v46 }
0x24d0   :  { %12194 = vmatpush1.bf16.msra.mxu1 %v13123_v21 }
0x24d1   :  { %v12760_v6 = vpop.eup %12759  ;;  %12196 = vmatprep.subr.bf16.mxu1 %v13126_v22 }
0x24d2   :  { %v3731_v51 = vsel %vm441_vm6, %v12760_v6, 0.0 }
0x24d3   :  { %3732 = vadd.xlane.f32.xlu1 %v3731_v51 }
0x24d4   :  { %12198 = vmatpush1.bf16.msra.mxu1 %v13135_v25 }
0x24d5   :  { %11262 = vmatprep.subr.mxu1 %v15200_v7 }
0x24e4   :  { %2992 = vrot.lane.b32.xlu1 %v13791_v52, %s13001_s25 }
0x24e8   :  { %4115 = vrot.lane.b32.xlu1 %v4113_v43, %s13001_s25 }
0x250c   :  { %4111 = vadd.xlane.f32.xlu1 %v4110_v9 }
0x255c   :  { %v3730_v2 = vpop.xlane.xlu1 %3729 }
0x255d   :  { %12761 = vrcp.f32 %v3730_v2 }
0x2560   :  { %v3733_v18 = vpop.xlane.xlu1 %3732 }
0x2561   :  { %12763 = vrcp.f32 %v3733_v18 }
0x2564   :  { %v2993_v11 = vpop.permute.xlu1 %2992 }
0x2565   :  { %11095 = vmatmul.mubr.msk.f32.vlgmr.msra.gmra.mrb[16].mxu0 %vm126_vm0, %v2993_v11 }
0x2566   :  { %11163 = vmatpush3.msra.mxu0 %v13641_v33  ;;  %11164 = vmatprep.mubr.msk.f32.mxu0 %vm13003_vm2, %v15200_v7 }
0x2567   :  { %v12762_v19 = vpop.eup %12761  ;;  %11167 = vmatprep.subr.mxu0 %v15200_v7 }
0x2568   :  { %v3735_v27 = vmul.f32 %v12762_v19, %v12758_v5  ;;  %v4116_v4 = vpop.permute.xlu1 %4115 }
0x2569   :  { %v4118_v39 = vsel %vm892_vm8, %v4116_v4, 0.0 }
0x256a   :  { %11165 = vmatmul.mubr.msk.f32.vlgmr.msra.gmra.mrb[18].mxu0 %vm598_vm10, %v3735_v27 }
0x256b   :  { %v12764_v40 = vpop.eup %12763  ;;  %11168 = vmatpush3.msra.mxu0 %v13698_v37  ;;  %11169 = vmatprep.mubr.msk.f32.mxu0 %vm13003_vm2, %v15200_v7 }
0x256c   :  { %11172 = vmatprep.subr.mxu0 %v15200_v7  ;;  %v3737_v14 = vmul.f32 %v12764_v40, %v12760_v6 }
0x256e   :  { %11170 = vmatmul.mubr.msk.f32.vlgmr.msra.gmra.mrb[20].mxu0 %vm598_vm10, %v3737_v14 }
0x256f   :  { %11173 = vmatpush3.msk.msra.mxu0 %vm13361_vm9, %v15196_v57  ;;  %11174 = vmatprep.mubr.msk.f32.mxu0 %vm13003_vm2, %v15200_v7 }
0x2570   :  { %11177 = vmatprep.subr.mxu0 %v15200_v7 }
0x2572   :  { %11175 = vmatmul.mubr.msk.f32.vlgmr.msra.gmra.mrb[22].mxu0 %vm598_vm10, %v3735_v27 }
0x2573   :  { %11178 = vmatpush3.msk.msra.mxu0 %vm13370_vm11, %v15196_v57  ;;  %11179 = vmatprep.mubr.msk.f32.mxu0 %vm13003_vm2, %v15200_v7 }
0x2574   :  { %12159 = vmatprep.subr.bf16.mxu0 %v15198_v23 }
0x2576   :  { %11180 = vmatmul.mubr.msk.f32.vlgmr.msra.gmra.mrb[24].mxu0 %vm598_vm10, %v3737_v14 }
0x2577   :  { %12161 = vmatpush3.bf16.msra.mxu0 %v13223_v24  ;;  %11214 = vmatprep.mubr.msk.f32.mxu0 %vm13003_vm2, %v15200_v7 }
0x2578   :  { %12162 = vmatprep.subr.bf16.mxu0 %v15198_v23 }
0x257b   :  { %12164 = vmatpush3.bf16.msra.mxu0 %v13235_v32 }
0x257c   :  { %12165 = vmatprep.subr.bf16.mxu0 %v15198_v23 }
0x257f   :  { %12167 = vmatpush3.bf16.msra.mxu0 %v13247_v38 }
0x2580   :  { %12168 = vmatprep.subr.bf16.mxu0 %v15198_v23 }
0x2583   :  { %12170 = vmatpush3.bf16.msra.mxu0 %v13259_v41 }
0x2584   :  { %12171 = vmatprep.subr.bf16.mxu0 %v15198_v23 }
0x2587   :  { %12173 = vmatpush3.bf16.msra.mxu0 %v13271_v44 }
0x2588   :  { %12174 = vmatprep.subr.bf16.mxu0 %v15198_v23 }
0x258b   :  { %12176 = vmatpush3.bf16.msra.mxu0 %v13283_v47 }
0x258c   :  { %12177 = vmatprep.subr.bf16.mxu0 %v15198_v23 }
0x258f   :  { %12179 = vmatpush3.bf16.msra.mxu0 %v13295_v50 }
0x2590   :  { %12180 = vmatprep.subr.bf16.mxu0 %v15198_v23 }
0x2593   :  { %12182 = vmatpush3.bf16.msra.mxu0 %v13307_v54 }
0x2594   :  { %11217 = vmatprep.subr.mxu0 %v15200_v7 }
0x259a   :  { %v3808_v33 = vpop.f32.mrb[58].mxu1 }
0x259b   :  { %v11161_v37 = vpop.f32.mrb[59].mxu1  ;;  %v3812_v28 = vsel %vm586_vm12, %v3808_v33, -inf }
0x259c   :  { %3813 = vmax.xlane.f32.xlu0 %v3812_v28  ;;  %v4112_v28 = vpop.xlane.xlu1 %4111 }
0x25a0   :  { %4119 = vadd.xlane.f32.xlu0 %v4118_v39 }
0x2629   :  { %v3814_v13 = vpop.xlane.xlu0 %3813 }
0x262a   :  { %v3815_v49 = vsub.f32 %v3808_v33, %v3814_v13 }
0x262c   :  { %v3816_v55 = vmul.f32 1.442695, %v3815_v49 }
0x262d   :  { %v4120_v4 = vpop.xlane.xlu0 %4119 }
0x262e   :  { %12765 = vpow2.f32 %v3816_v55  ;;  %v4121_v39 = vadd.f32 %v4120_v4, %v4112_v28 }
0x2638   :  { %v14032_v26 = vpop.f32.mrb[16].mxu0  ;;  %v12766_v19 = vpop.eup %12765 }
0x2639   :  { %v11096_v58 = vpop.f32.mrb[17].mxu0  ;;  %v3818_v33 = vsel %vm586_vm12, %v12766_v19, 0.0 }
0x263d   :  { %v3892_v59 = vpop.f32.mrb[18].mxu0 }
0x263e   :  { %v11166_v5 = vpop.f32.mrb[19].mxu0  ;;  %v4122_v43 = vmul.f32 %v3892_v59, %v13411_v1 }
0x2641   :  { %v3965_v46 = vpop.f32.mrb[20].mxu0 }
0x2642   :  { %v4123_v6 = vmul.f32 %v3965_v46, %v13411_v1  ;;  %v11171_v51 = vpop.f32.mrb[21].mxu0 }
0x2644   :  { %v4126_v17 = vrot.slane %v4123_v6, 7 }
0x2645   :  { %v4035_v9 = vpop.f32.mrb[22].mxu0 }
0x2646   :  { %v11176_v2 = vpop.f32.mrb[23].mxu0  ;;  %v4127_v18 = vsel %vm913_vm13, %v4126_v17, %v4122_v43 }
0x2647   :  { %v4129_v11 = vsel %vm892_vm8, %v4127_v18, 0.0 }
0x2648   :  { %4130 = vadd.xlane.f32.xlu0 %v4129_v11 }
0x2649   :  { %v4105_v27 = vpop.f32.mrb[24].mxu0 }
0x264a   :  { %v4144_v40 = vrot.slane %v4105_v27, 7  ;;  %v11181_v14 = vpop.f32.mrb[25].mxu0 }
0x264c   :  { %v4145_v37 = vsel %vm913_vm13, %v4144_v40, %v4035_v9  ;;  %3819 = vadd.xlane.f32.xlu0 %v3818_v33 }
0x26d5   :  { %v4131_v13 = vpop.xlane.xlu0 %4130 }
0x26d6   :  { %v4132_v49 = vadd.f32 %v4131_v13, %v4121_v39 }
0x26d8   :  { %v4133_v58 = vadd.f32 %v4132_v49, %v13424_v60 }
0x26d9   :  { %v3820_v59 = vpop.xlane.xlu0 %3819 }
0x26da   :  { %v10020_v55 = vmul.f32 -1.442695, %v4133_v58 }
0x26dc   :  { %12767 = vpow2.f32 %v10020_v55 }
0x26dd   :  { %12769 = vrcp.f32 %v3820_v59 }
0x26e6   :  { %v12768_v5 = vpop.eup %12767 }
0x26e7   :  { %v4137_v46 = vadd.f32 1.0, %v12768_v5  ;;  %v12770_v6 = vpop.eup %12769  ;;  %v14053_v5 = vld [vmem:[%s15188_s2] sm:$0xff] }
0x26e8   :  { %v3822_v43 = vmul.f32 %v12770_v6, %v12766_v19 }
0x26e9   :  { %12771 = vrcp.f32 %v4137_v46 }
0x26f3   :  { %v12772_v51 = vpop.eup %12771 }
0x26f4   :  { %v4141_v17 = vsub.f32 1.0, %v12772_v51  ;;  %v4140_v9 = vmul.f32 %v12772_v51, %v3822_v43 }
0x26f6   :  { %v4147_v2 = vmul.f32 %v4145_v37, %v4141_v17 }
0x26f8   :  { %v14041_v18 = vadd.f32 %v4147_v2, %v4140_v9 }
0x26fa   :  { %15216 = vst [vmem:[#allocation7_spill] sm:$0xff] %v14041_v18  ;;  %v4149_v11 = vsel %vm586_vm12, %v14041_v18, -inf }
0x26fb   :  { %4150 = vmax.xlane.f32.xlu0 %v4149_v11 }
0x2788   :  { %v4151_v27 = vpop.xlane.xlu0 %4150 }
0x2789   :  { %vm4152_vm14 = vcmp.ge.f32.partialorder %v14041_v18, %v4151_v27 }
0x278a   :  { %v4153_v40 = vsel %vm4152_vm14, %v13358_v53, 128 }
0x278b   :  { %v4154_v14 = vsel %vm586_vm12, %v4153_v40, 2147483647 }
0x278c   :  { %v4156_v33 = vshra.s32 %v4154_v14, 16  ;;  %v4155_v19 = vand.u32 65535, %v4154_v14 }
0x278e   :  { %v4158_v28 = vcvt.s32.f32 %v4156_v33  ;;  %v4157_v39 = vcvt.s32.f32 %v4155_v19 }
0x2790   :  { %4159 = vmin.xlane.f32.xlu1 %v4158_v28 }
0x281d   :  { %v4160_v4 = vpop.xlane.xlu1 %4159 }
0x281e   :  { %vm4161_vm15 = vcmp.eq.f32.partialorder %v4158_v28, %v4160_v4  ;;  %v4166_v13 = vcvt.f32.s32 %v4160_v4 }
0x281f   :  { %v4162_v37 = vsel %vm4161_vm15, %v4157_v39, inf }
0x2820   :  { %4163 = vmin.xlane.f32.xlu0 %v4162_v37  ;;  %v4167_v58 = vshll.u32 %v4166_v13, 16 }
0x28ad   :  { %v4164_v49 = vpop.xlane.xlu0 %4163 }
0x28ae   :  { %v4165_v55 = vcvt.f32.s32 %v4164_v49 }
0x28b0   :  { %v4168_v59 = vadd.s32 %v4167_v58, %v4165_v55 }
0x28b2   :  { %vm4169_vm4 = vcmp.eq.s32.totalorder %v13358_v53, %v4168_v59 }
0x28b3   :  { %11215 = vmatmul.mubr.msk.f32.vlgmr.msra.gmra.mrb[26].mxu0 %vm4169_vm4, %v15196_v57 }
0x28b4   :  { %11218 = vmatpush3.xpose.msk.msra.mxu0 %vm126_vm0, %v14053_v5  ;;  %11219 = vmatprep.mubr.msk.f32.mxu0 %vm13003_vm2, %v15200_v7 }
0x28b5   :  { %11222 = vmatprep.subr.mxu0 %v15200_v7 }
0x2986   :  { %v14060_v46 = vpop.f32.mrb[26].mxu0 }
0x2987   :  { %v4242_v6 = vsel %vm126_vm0, %v14060_v46, %v13908_v0  ;;  %v11216_v51 = vpop.f32.mrb[27].mxu0 }
0x2988   :  { %10023 = vmatmul.mubr.msk.f32.vlgmr.msra.gmra.mrb[60].mxu1 %vm139_vm1, %v4242_v6 }
0x2989   :  { %11263 = vmatpush3.msra.mxu1 %v14053_v5  ;;  %11264 = vmatprep.mubr.msk.f32.mxu1 %vm13003_vm2, %v15200_v7 }
0x298a   :  { %11267 = vmatprep.subr.mxu1 %v15200_v7 }
0x2a5b   :  { %v4312_v43 = vpop.f32.mrb[60].mxu1 }
0x2a5c   :  { %v4313_v17 = vadd.f32 %v4312_v43, %v13159_v34  ;;  %v4314_v9 = vpop.f32.mrb[61].mxu1 }
0x2a5d   :  { %v4315_v2 = vadd.f32 %v4314_v9, %v13163_v35 }
0x2a5e   :  { %4318 = vrot.lane.b32.xlu1 %v4313_v17, %s12999_s15 }
0x2a5f   :  { %4339 = vrot.lane.b32.xlu0 %v4315_v2, %s13001_s25 }
0x2ad0   :  { %v4319_v11 = vpop.permute.xlu1 %4318 }
0x2ad1   :  { %v4321_v27 = vadd.f32 %v4319_v11, %v4313_v17  ;;  %v4340_v19 = vpop.permute.xlu0 %4339 }
0x2ad3   :  { %v10024_v40 = vmul.f32 -1.442695, %v4321_v27 }
0x2ad5   :  { %12773 = vpow2.f32 %v10024_v40 }
0x2adf   :  { %v12774_v14 = vpop.eup %12773 }
0x2ae0   :  { %v4325_v33 = vadd.f32 1.0, %v12774_v14 }
0x2ae2   :  { %12775 = vrcp.f32 %v4325_v33 }
0x2aec   :  { %v12776_v28 = vpop.eup %12775 }
0x2aed   :  { %v4342_v4 = vmul.f32 %v12776_v28, %v4340_v19 }
0x2aef   :  { %4344 = vrot.lane.b32.xlu1 %v4342_v4, %s13002_s6 }
0x2af3   :  { %4329 = vrot.lane.b32.xlu1 %v4315_v2, %s12999_s15 }
0x2b61   :  { %v4345_v39 = vpop.permute.xlu1 %4344 }
0x2b62   :  { %v4347_v37 = vadd.f32 %v4345_v39, %v4313_v17 }
0x2b64   :  { %12777 = vtanh.f32 %v4347_v37 }
0x2b65   :  { %v4330_v49 = vpop.permute.xlu1 %4329 }
0x2b66   :  { %v4332_v58 = vadd.f32 %v4330_v49, %v4313_v17 }
0x2b68   :  { %v10025_v55 = vmul.f32 -1.442695, %v4332_v58 }
0x2b6a   :  { %12779 = vpow2.f32 %v10025_v55 }
0x2b6e   :  { %v12778_v13 = vpop.eup %12777 }
0x2b6f   :  { %4351 = vrot.lane.b32.xlu0 %v12778_v13, %s13001_s25 }
0x2b74   :  { %v12780_v59 = vpop.eup %12779 }
0x2b75   :  { %v4336_v6 = vadd.f32 1.0, %v12780_v59 }
0x2b77   :  { %12781 = vrcp.f32 %v4336_v6 }
0x2b81   :  { %v12782_v51 = vpop.eup %12781 }
0x2b82   :  { %v4349_v43 = vsub.f32 1.0, %v12782_v51  ;;  %v4355_v27 = vmul.f32 %v12782_v51, %v13908_v0  ;;  %v14092_v0 = vld [vmem:[%s15188_s2 + $0x8] sm:$0xff] }
0x2be1   :  { %v4352_v9 = vpop.permute.xlu0 %4351 }
0x2be2   :  { %v4354_v11 = vmul.f32 %v4352_v9, %v4349_v43  ;;  %v14145_v43 = vld [vmem:[%s15193_s7] ss:$0 sm:$0xff] }
0x2be3   :  { %v4931_v9 = vmul.f32 %v14145_v43, %v14060_v46 }
0x2be4   :  { %v14078_v2 = vadd.f32 %v4355_v27, %v4354_v11 }
0x2be5   :  { %v4932_v11 = vsel %vm892_vm8, %v4931_v9, 0.0 }
0x2be6   :  { %v4364_v40 = vrot.slane %v14078_v2, %v13185_v63 }
0x2be8   :  { %v4372_v14 = vrot.slane %v4364_v40, %v13185_v63  ;;  %v4365_v33 = vcombine.high %v4364_v40, %v4364_v40 }
0x2bea   :  { %v4383_v17 = vrot.slane %v4372_v14, %v13152_v31  ;;  %v4379_v28 = vrot.slane %v4365_v33, %v13185_v63 }
0x2bec   :  { %4384 = vrot.lane.b32.xlu1 %v4383_v17, %s13001_s25  ;;  %v4461_v19 = vrot.slane %v4379_v28, %v13152_v31 }
0x2bee   :  { %4462 = vrot.lane.b32.xlu0 %v4461_v19, %s13001_s25 }
0x2c5e   :  { %v4385_v4 = vpop.permute.xlu1 %4384 }
0x2c5f   :  { %11220 = vmatmul.mubr.msk.f32.vlgmr.msra.gmra.mrb[28].mxu0 %vm126_vm0, %v4385_v4 }
0x2c60   :  { %11223 = vmatpush3.xpose.msk.msra.mxu0 %vm126_vm0, %v14092_v0  ;;  %11224 = vmatprep.mubr.msk.f32.mxu0 %vm13003_vm2, %v15200_v7  ;;  %v4463_v39 = vpop.permute.xlu0 %4462 }
0x2c61   :  { %12199 = vmatprep.subr.bf16.mxu0 %v15198_v23 }
0x2c63   :  { %11225 = vmatmul.mubr.msk.f32.vlgmr.msra.gmra.mrb[30].mxu0 %vm126_vm0, %v4463_v39 }
0x2c64   :  { %12202 = vmatpush3.bf16.xpose.msk.msra.mxu0 %vm13218_vm3, %v13223_v24  ;;  %11259 = vmatprep.mubr.msk.f32.mxu0 %vm13003_vm2, %v15200_v7 }
0x2c65   :  { %12203 = vmatprep.subr.bf16.mxu0 %v15198_v23 }
0x2c6c   :  { %12206 = vmatpush3.bf16.xpose.msk.msra.mxu0 %vm13218_vm3, %v13235_v32 }
0x2c6d   :  { %12207 = vmatprep.subr.bf16.mxu0 %v15198_v23 }
0x2c74   :  { %12210 = vmatpush3.bf16.xpose.msk.msra.mxu0 %vm13218_vm3, %v13247_v38 }
0x2c75   :  { %12211 = vmatprep.subr.bf16.mxu0 %v15198_v23 }
0x2c7c   :  { %12214 = vmatpush3.bf16.xpose.msk.msra.mxu0 %vm13218_vm3, %v13259_v41 }
0x2c7d   :  { %12215 = vmatprep.subr.bf16.mxu0 %v15198_v23 }
0x2c84   :  { %12218 = vmatpush3.bf16.xpose.msk.msra.mxu0 %vm13218_vm3, %v13271_v44 }
0x2c85   :  { %12219 = vmatprep.subr.bf16.mxu0 %v15198_v23 }
0x2c8c   :  { %12222 = vmatpush3.bf16.xpose.msk.msra.mxu0 %vm13218_vm3, %v13283_v47 }
0x2c8d   :  { %12223 = vmatprep.subr.bf16.mxu0 %v15198_v23 }
0x2c94   :  { %12226 = vmatpush3.bf16.xpose.msk.msra.mxu0 %vm13218_vm3, %v13295_v50 }
0x2c95   :  { %12227 = vmatprep.subr.bf16.mxu0 %v15198_v23 }
0x2c9c   :  { %12230 = vmatpush3.bf16.xpose.msk.msra.mxu0 %vm13218_vm3, %v13307_v54 }
0x2c9d   :  { %11317 = vmatprep.subr.mxu0 %v15200_v7 }
0x2d32   :  { %v4454_v37 = vpop.f32.mrb[28].mxu0 }
0x2d33   :  { %v4536_v13 = vsel %vm13318_vm5, -1e+09, %v4454_v37  ;;  %v11221_v49 = vpop.f32.mrb[29].mxu0 }
0x2d34   :  { %v4538_v58 = vsel %vm441_vm6, %v4536_v13, -inf }
0x2d35   :  { %4539 = vmax.xlane.f32.xlu1 %v4538_v58 }
0x2d36   :  { %v4532_v55 = vpop.f32.mrb[30].mxu0 }
0x2d37   :  { %v4537_v59 = vsel %vm97_vm7, -1e+09, %v4532_v55  ;;  %v11226_v6 = vpop.f32.mrb[31].mxu0 }
0x2d38   :  { %v4541_v51 = vsel %vm441_vm6, %v4537_v59, -inf }
0x2d39   :  { %4542 = vmax.xlane.f32.xlu0 %v4541_v51 }
0x2d4f   :  { %4560 = vrot.lane.b32.xlu0 %v14078_v2, %s13001_s25 }
0x2d6e   :  { %4933 = vadd.xlane.f32.xlu0 %v4932_v11 }
0x2dc2   :  { %v4540_v27 = vpop.xlane.xlu1 %4539 }
0x2dc3   :  { %v4544_v40 = vsub.f32 %v4536_v13, %v4540_v27  ;;  %v4935_v27 = vmul.f32 %v14145_v43, %v14078_v2 }
0x2dc5   :  { %v4546_v14 = vmul.f32 1.442695, %v4544_v40 }
0x2dc6   :  { %v4543_v33 = vpop.xlane.xlu0 %4542 }
0x2dc7   :  { %12783 = vpow2.f32 %v4546_v14  ;;  %v4545_v17 = vsub.f32 %v4537_v59, %v4543_v33 }
0x2dc9   :  { %v4548_v28 = vmul.f32 1.442695, %v4545_v17 }
0x2dca   :  { %v4561_v19 = vpop.permute.xlu0 %4560 }
0x2dcb   :  { %12785 = vpow2.f32 %v4548_v28  ;;  %11260 = vmatmul.mubr.msk.f32.vlgmr.msra.gmra.mrb[32].mxu0 %vm126_vm0, %v4561_v19 }
0x2dcc   :  { %11318 = vmatpush3.xpose.msk.msra.mxu0 %vm126_vm0, %v14053_v5  ;;  %11319 = vmatprep.mubr.msk.f32.mxu0 %vm13003_vm2, %v15200_v7 }
0x2dcd   :  { %12271 = vmatprep.subr.bf16.mxu0 %v15198_v23 }
0x2dd1   :  { %v12784_v46 = vpop.eup %12783 }
0x2dd2   :  { %v4550_v4 = vsel %vm441_vm6, %v12784_v46, 0.0 }
0x2dd3   :  { %4551 = vadd.xlane.f32.xlu1 %v4550_v4 }
0x2dd5   :  { %v12786_v39 = vpop.eup %12785 }
0x2dd6   :  { %v4553_v37 = vsel %vm441_vm6, %v12786_v39, 0.0 }
0x2dd7   :  { %4554 = vadd.xlane.f32.xlu1 %v4553_v37 }
0x2e60   :  { %v4552_v13 = vpop.xlane.xlu1 %4551 }
0x2e61   :  { %12787 = vrcp.f32 %v4552_v13 }
0x2e64   :  { %v4555_v49 = vpop.xlane.xlu1 %4554 }
0x2e65   :  { %12789 = vrcp.f32 %v4555_v49 }
0x2e6b   :  { %v12788_v58 = vpop.eup %12787 }
0x2e6c   :  { %v4557_v55 = vmul.f32 %v12788_v58, %v12784_v46 }
0x2e6e   :  { %11265 = vmatmul.mubr.msk.f32.vlgmr.msra.gmra.mrb[62].mxu1 %vm598_vm10, %v4557_v55 }
0x2e6f   :  { %v12790_v59 = vpop.eup %12789  ;;  %11268 = vmatpush3.msra.mxu1 %v14092_v0  ;;  %11269 = vmatprep.mubr.msk.f32.mxu1 %vm13003_vm2, %v15200_v7 }
0x2e70   :  { %11272 = vmatprep.subr.mxu1 %v15200_v7  ;;  %v4559_v6 = vmul.f32 %v12790_v59, %v12786_v39 }
0x2e72   :  { %11270 = vmatmul.mubr.msk.f32.vlgmr.msra.gmra.mrb[64].mxu1 %vm598_vm10, %v4559_v6 }
0x2e73   :  { %11273 = vmatpush3.msk.msra.mxu1 %vm13361_vm9, %v15196_v57  ;;  %11274 = vmatprep.mubr.msk.f32.mxu1 %vm13003_vm2, %v15200_v7 }
0x2e74   :  { %11277 = vmatprep.subr.mxu1 %v15200_v7 }
0x2e76   :  { %11275 = vmatmul.mubr.msk.f32.vlgmr.msra.gmra.mrb[66].mxu1 %vm598_vm10, %v4557_v55 }
0x2e77   :  { %11278 = vmatpush3.msk.msra.mxu1 %vm13370_vm11, %v15196_v57  ;;  %11279 = vmatprep.mubr.msk.f32.mxu1 %vm13003_vm2, %v15200_v7 }
0x2e78   :  { %12231 = vmatprep.subr.bf16.mxu1 %v15198_v23 }
0x2e7a   :  { %11280 = vmatmul.mubr.msk.f32.vlgmr.msra.gmra.mrb[68].mxu1 %vm598_vm10, %v4559_v6 }
0x2e7b   :  { %12233 = vmatpush3.bf16.msra.mxu1 %v13223_v24  ;;  %11314 = vmatprep.mubr.msk.f32.mxu1 %vm13003_vm2, %v15200_v7 }
0x2e7c   :  { %12234 = vmatprep.subr.bf16.mxu1 %v15198_v23 }
0x2e7f   :  { %12236 = vmatpush3.bf16.msra.mxu1 %v13235_v32 }
0x2e80   :  { %12237 = vmatprep.subr.bf16.mxu1 %v15198_v23 }
0x2e83   :  { %12239 = vmatpush3.bf16.msra.mxu1 %v13247_v38 }
0x2e84   :  { %12240 = vmatprep.subr.bf16.mxu1 %v15198_v23 }
0x2e87   :  { %12242 = vmatpush3.bf16.msra.mxu1 %v13259_v41 }
0x2e88   :  { %12243 = vmatprep.subr.bf16.mxu1 %v15198_v23 }
0x2e8b   :  { %12245 = vmatpush3.bf16.msra.mxu1 %v13271_v44 }
0x2e8c   :  { %12246 = vmatprep.subr.bf16.mxu1 %v15198_v23 }
0x2e8f   :  { %12248 = vmatpush3.bf16.msra.mxu1 %v13283_v47 }
0x2e90   :  { %12249 = vmatprep.subr.bf16.mxu1 %v15198_v23 }
0x2e93   :  { %12251 = vmatpush3.bf16.msra.mxu1 %v13295_v50 }
0x2e94   :  { %12252 = vmatprep.subr.bf16.mxu1 %v15198_v23 }
0x2e97   :  { %12254 = vmatpush3.bf16.msra.mxu1 %v13307_v54 }
0x2e98   :  { %12256 = vmatprep.subr.bf16.mxu1 %v13071_v3 }
0x2e9e   :  { %v4630_v51 = vpop.f32.mrb[32].mxu0 }
0x2e9f   :  { %v11261_v9 = vpop.f32.mrb[33].mxu0  ;;  %v4634_v11 = vsel %vm586_vm12, %v4630_v51, -inf }
0x2ea0   :  { %4635 = vmax.xlane.f32.xlu1 %v4634_v11 }
0x2eb1   :  { %4937 = vrot.lane.b32.xlu1 %v4935_v27, %s13001_s25 }
0x2f2d   :  { %v4636_v40 = vpop.xlane.xlu1 %4635 }
0x2f2e   :  { %v4637_v17 = vsub.f32 %v4630_v51, %v4636_v40 }
0x2f30   :  { %v4638_v28 = vmul.f32 1.442695, %v4637_v17 }
0x2f31   :  { %v4938_v14 = vpop.permute.xlu1 %4937 }
0x2f32   :  { %v4940_v33 = vsel %vm892_vm8, %v4938_v14, 0.0  ;;  %12791 = vpow2.f32 %v4638_v28 }
0x2f33   :  { %4941 = vadd.xlane.f32.xlu1 %v4940_v33  ;;  %v4934_v33 = vpop.xlane.xlu0 %4933 }
0x2f3c   :  { %v12792_v9 = vpop.eup %12791 }
0x2f3d   :  { %v4640_v40 = vsel %vm586_vm12, %v12792_v9, 0.0 }
0x2f41   :  { %v4714_v19 = vpop.f32.mrb[62].mxu1 }
0x2f42   :  { %v11266_v46 = vpop.f32.mrb[63].mxu1  ;;  %v4944_v13 = vmul.f32 %v4714_v19, %v13411_v1 }
0x2f45   :  { %v4787_v4 = vpop.f32.mrb[64].mxu1 }
0x2f46   :  { %v4945_v39 = vmul.f32 %v4787_v4, %v13411_v1  ;;  %v11271_v37 = vpop.f32.mrb[65].mxu1 }
0x2f48   :  { %v4948_v49 = vrot.slane %v4945_v39, 7 }
0x2f49   :  { %v4857_v58 = vpop.f32.mrb[66].mxu1 }
0x2f4a   :  { %v11276_v55 = vpop.f32.mrb[67].mxu1  ;;  %v4949_v59 = vsel %vm913_vm13, %v4948_v49, %v4944_v13 }
0x2f4b   :  { %v4951_v6 = vsel %vm892_vm8, %v4949_v59, 0.0 }
0x2f4c   :  { %4952 = vadd.xlane.f32.xlu0 %v4951_v6 }
0x2f4d   :  { %v4927_v51 = vpop.f32.mrb[68].mxu1 }
0x2f4e   :  { %v4966_v11 = vrot.slane %v4927_v51, 7  ;;  %v11281_v27 = vpop.f32.mrb[69].mxu1 }
0x2f50   :  { %v4967_v14 = vsel %vm913_vm13, %v4966_v11, %v4857_v58  ;;  %4641 = vadd.xlane.f32.xlu0 %v4640_v40 }
0x2fc0   :  { %v4942_v17 = vpop.xlane.xlu1 %4941 }
0x2fc1   :  { %v4943_v28 = vadd.f32 %v4942_v17, %v4934_v33 }
0x2fd9   :  { %v4953_v19 = vpop.xlane.xlu0 %4952 }
0x2fda   :  { %v4954_v46 = vadd.f32 %v4953_v19, %v4943_v28 }
0x2fdc   :  { %v4955_v4 = vadd.f32 %v4954_v46, %v13424_v60 }
0x2fdd   :  { %v4642_v37 = vpop.xlane.xlu0 %4641 }
0x2fde   :  { %v10053_v39 = vmul.f32 -1.442695, %v4955_v4 }
0x2fe0   :  { %12793 = vpow2.f32 %v10053_v39 }
0x2fe1   :  { %12795 = vrcp.f32 %v4642_v37 }
0x2fea   :  { %v12794_v13 = vpop.eup %12793 }
0x2feb   :  { %v4959_v49 = vadd.f32 1.0, %v12794_v13  ;;  %v12796_v55 = vpop.eup %12795 }
0x2fec   :  { %v4644_v6 = vmul.f32 %v12796_v55, %v12792_v9 }
0x2fed   :  { %12797 = vrcp.f32 %v4959_v49 }
0x2ff7   :  { %v12798_v59 = vpop.eup %12797 }
0x2ff8   :  { %v4963_v51 = vsub.f32 1.0, %v12798_v59  ;;  %v4962_v58 = vmul.f32 %v12798_v59, %v4644_v6 }
0x2ffa   :  { %v4969_v11 = vmul.f32 %v4967_v14, %v4963_v51 }
0x2ffc   :  { %v14208_v27 = vadd.f32 %v4969_v11, %v4962_v58 }
0x2ffe   :  { %15217 = vst [vmem:[#allocation8_spill] sm:$0xff] %v14208_v27  ;;  %v4971_v40 = vsel %vm586_vm12, %v14208_v27, -inf }
0x2fff   :  { %4972 = vmax.xlane.f32.xlu0 %v4971_v40 }
0x308c   :  { %v4973_v33 = vpop.xlane.xlu0 %4972 }
0x308d   :  { %vm4974_vm14 = vcmp.ge.f32.partialorder %v14208_v27, %v4973_v33 }
0x308e   :  { %v4975_v17 = vsel %vm4974_vm14, %v13358_v53, 128 }
0x308f   :  { %v4976_v28 = vsel %vm586_vm12, %v4975_v17, 2147483647 }
0x3090   :  { %v4978_v19 = vshra.s32 %v4976_v28, 16  ;;  %v4977_v9 = vand.u32 65535, %v4976_v28 }
0x3092   :  { %v4980_v46 = vcvt.s32.f32 %v4978_v19  ;;  %v4979_v39 = vcvt.s32.f32 %v4977_v9 }
0x3094   :  { %4981 = vmin.xlane.f32.xlu0 %v4980_v46 }
0x3121   :  { %v4982_v4 = vpop.xlane.xlu0 %4981 }
0x3122   :  { %vm4983_vm15 = vcmp.eq.f32.partialorder %v4980_v46, %v4982_v4  ;;  %v4988_v37 = vcvt.f32.s32 %v4982_v4 }
0x3123   :  { %v4984_v14 = vsel %vm4983_vm15, %v4979_v39, inf }
0x3124   :  { %4985 = vmin.xlane.f32.xlu1 %v4984_v14  ;;  %v4989_v49 = vshll.u32 %v4988_v37, 16 }
0x31b1   :  { %v4986_v13 = vpop.xlane.xlu1 %4985 }
0x31b2   :  { %v4987_v55 = vcvt.f32.s32 %v4986_v13 }
0x31b4   :  { %v4990_v59 = vadd.s32 %v4989_v49, %v4987_v55 }
0x31b6   :  { %vm4991_vm4 = vcmp.eq.s32.totalorder %v13358_v53, %v4990_v59 }
0x31b7   :  { %11315 = vmatmul.mubr.msk.f32.vlgmr.msra.gmra.mrb[70].mxu1 %vm4991_vm4, %v15196_v57 }
0x31b8   :  { %12258 = vmatpush1.bf16.msra.mxu1 %v13083_v8  ;;  %5132 = vmatprep.mubr.f32.mxu1 %v15200_v7 }
0x31b9   :  { %12260 = vmatprep.subr.bf16.mxu1 %v13096_v12 }
0x31bc   :  { %12262 = vmatpush1.bf16.msra.mxu1 %v13105_v15 }
0x31bd   :  { %12264 = vmatprep.subr.bf16.mxu1 %v13108_v16 }
0x31c0   :  { %12266 = vmatpush1.bf16.msra.mxu1 %v13123_v21 }
0x31c1   :  { %12268 = vmatprep.subr.bf16.mxu1 %v13126_v22 }
0x31c4   :  { %12270 = vmatpush1.bf16.msra.mxu1 %v13135_v25 }
0x31c5   :  { %11322 = vmatprep.subr.mxu1 %v15200_v7 }
0x328a   :  { %v14226_v6 = vpop.f32.mrb[70].mxu1 }
0x328b   :  { %v5064_v51 = vsel %vm126_vm0, %v14226_v6, %v14078_v2  ;;  %v11316_v58 = vpop.f32.mrb[71].mxu1 }
0x328c   :  { %10056 = vmatmul.mubr.msk.f32.vlgmr.msra.gmra.mrb[72].mxu1 %vm139_vm1, %v5064_v51 }
0x328d   :  { %11323 = vmatpush3.xpose.msk.msra.mxu1 %vm126_vm0, %v14092_v0  ;;  %11324 = vmatprep.mubr.msk.f32.mxu1 %vm13003_vm2, %v15200_v7 }
0x328e   :  { %11362 = vmatprep.subr.mxu1 %v15200_v7 }
0x335f   :  { %v5134_v11 = vpop.f32.mrb[72].mxu1 }
0x3360   :  { %v5135_v40 = vadd.f32 %v5134_v11, %v13159_v34  ;;  %v5136_v33 = vpop.f32.mrb[73].mxu1 }
0x3361   :  { %v5137_v17 = vadd.f32 %v5136_v33, %v13163_v35 }
0x3362   :  { %5140 = vrot.lane.b32.xlu0 %v5135_v40, %s12999_s15 }
0x3363   :  { %5161 = vrot.lane.b32.xlu1 %v5137_v17, %s13001_s25 }
0x3366   :  { %5151 = vrot.lane.b32.xlu0 %v5137_v17, %s12999_s15 }
0x33d4   :  { %v5141_v28 = vpop.permute.xlu0 %5140 }
0x33d5   :  { %v5143_v19 = vadd.f32 %v5141_v28, %v5135_v40  ;;  %v5162_v14 = vpop.permute.xlu1 %5161 }
0x33d7   :  { %v10057_v46 = vmul.f32 -1.442695, %v5143_v19 }
0x33d8   :  { %v5152_v59 = vpop.permute.xlu0 %5151 }
0x33d9   :  { %12799 = vpow2.f32 %v10057_v46  ;;  %v5154_v51 = vadd.f32 %v5152_v59, %v5135_v40 }
0x33db   :  { %v10058_v58 = vmul.f32 -1.442695, %v5154_v51 }
0x33e3   :  { %v12800_v9 = vpop.eup %12799 }
0x33e4   :  { %v5147_v4 = vadd.f32 1.0, %v12800_v9 }
0x33e6   :  { %12801 = vrcp.f32 %v5147_v4 }
0x33f0   :  { %v12802_v39 = vpop.eup %12801 }
0x33f1   :  { %v5164_v37 = vmul.f32 %v12802_v39, %v5162_v14 }
0x33f3   :  { %5166 = vrot.lane.b32.xlu1 %v5164_v37, %s13002_s6 }
0x3465   :  { %v5167_v13 = vpop.permute.xlu1 %5166 }
0x3466   :  { %v5169_v49 = vadd.f32 %v5167_v13, %v5135_v40 }
0x3468   :  { %12803 = vtanh.f32 %v5169_v49 }
0x3469   :  { %12805 = vpow2.f32 %v10058_v58 }
0x3472   :  { %v12804_v55 = vpop.eup %12803 }
0x3473   :  { %5173 = vrot.lane.b32.xlu1 %v12804_v55, %s13001_s25  ;;  %v12806_v11 = vpop.eup %12805 }
0x3474   :  { %v5158_v33 = vadd.f32 1.0, %v12806_v11 }
0x3476   :  { %12807 = vrcp.f32 %v5158_v33 }
0x3480   :  { %v12808_v17 = vpop.eup %12807 }
0x3481   :  { %v5171_v28 = vsub.f32 1.0, %v12808_v17  ;;  %v5177_v9 = vmul.f32 %v12808_v17, %v14078_v2 }
0x34e5   :  { %v5174_v19 = vpop.permute.xlu1 %5173 }
0x34e6   :  { %v5176_v46 = vmul.f32 %v5174_v19, %v5171_v28 }
0x34e8   :  { %v14245_v4 = vadd.f32 %v5177_v9, %v5176_v46  ;;  %v5753_v46 = vmul.f32 %v14145_v43, %v14226_v6 }
0x34ea   :  { %v5186_v39 = vrot.slane %v14245_v4, %v13185_v63  ;;  %v5754_v9 = vsel %vm892_vm8, %v5753_v46, 0.0 }
0x34ec   :  { %v5194_v14 = vrot.slane %v5186_v39, %v13185_v63  ;;  %v5187_v37 = vcombine.high %v5186_v39, %v5186_v39 }
0x34ee   :  { %v5205_v40 = vrot.slane %v5194_v14, %v13152_v31  ;;  %v5201_v13 = vrot.slane %v5187_v37, %v13185_v63 }
0x34f0   :  { %5206 = vrot.lane.b32.xlu0 %v5205_v40, %s13001_s25  ;;  %v5283_v49 = vrot.slane %v5201_v13, %v13152_v31 }
0x34f2   :  { %5284 = vrot.lane.b32.xlu1 %v5283_v49, %s13001_s25 }
0x3562   :  { %v5207_v55 = vpop.permute.xlu0 %5206 }
0x3563   :  { %11320 = vmatmul.mubr.msk.f32.vlgmr.msra.gmra.mrb[34].mxu0 %vm126_vm0, %v5207_v55 }
0x3564   :  { %v5285_v2 = vpop.permute.xlu1 %5284  ;;  %12274 = vmatpush3.bf16.xpose.msk.msra.mxu0 %vm13218_vm3, %v13223_v24  ;;  %11359 = vmatprep.mubr.msk.f32.mxu0 %vm13003_vm2, %v15200_v7 }
0x3565   :  { %11325 = vmatmul.mubr.msk.f32.vlgmr.msra.gmra.mrb[74].mxu1 %vm126_vm0, %v5285_v2  ;;  %12275 = vmatprep.subr.bf16.mxu0 %v15198_v23 }
0x3566   :  { %11363 = vmatpush3.msra.mxu1 %v14053_v5  ;;  %11364 = vmatprep.mubr.msk.f32.mxu1 %vm13003_vm2, %v15200_v7 }
0x3567   :  { %11367 = vmatprep.subr.mxu1 %v15200_v7 }
0x356c   :  { %12278 = vmatpush3.bf16.xpose.msk.msra.mxu0 %vm13218_vm3, %v13235_v32 }
0x356d   :  { %12279 = vmatprep.subr.bf16.mxu0 %v15198_v23 }
0x3574   :  { %12282 = vmatpush3.bf16.xpose.msk.msra.mxu0 %vm13218_vm3, %v13247_v38 }
0x3575   :  { %12283 = vmatprep.subr.bf16.mxu0 %v15198_v23 }
0x357c   :  { %12286 = vmatpush3.bf16.xpose.msk.msra.mxu0 %vm13218_vm3, %v13259_v41 }
0x357d   :  { %12287 = vmatprep.subr.bf16.mxu0 %v15198_v23 }
0x3584   :  { %12290 = vmatpush3.bf16.xpose.msk.msra.mxu0 %vm13218_vm3, %v13271_v44 }
0x3585   :  { %12291 = vmatprep.subr.bf16.mxu0 %v15198_v23 }
0x358c   :  { %12294 = vmatpush3.bf16.xpose.msk.msra.mxu0 %vm13218_vm3, %v13283_v47 }
0x358d   :  { %12295 = vmatprep.subr.bf16.mxu0 %v15198_v23 }
0x3594   :  { %12298 = vmatpush3.bf16.xpose.msk.msra.mxu0 %vm13218_vm3, %v13295_v50 }
0x3595   :  { %12299 = vmatprep.subr.bf16.mxu0 %v15198_v23 }
0x359c   :  { %12302 = vmatpush3.bf16.xpose.msk.msra.mxu0 %vm13218_vm3, %v13307_v54 }
0x359d   :  { %11417 = vmatprep.subr.mxu0 %v15200_v7 }
0x3636   :  { %v5276_v59 = vpop.f32.mrb[34].mxu0 }
0x3637   :  { %v5358_v51 = vsel %vm13318_vm5, -1e+09, %v5276_v59  ;;  %v11321_v58 = vpop.f32.mrb[35].mxu0 }
0x3638   :  { %v5360_v11 = vsel %vm441_vm6, %v5358_v51, -inf  ;;  %v5354_v33 = vpop.f32.mrb[74].mxu1 }
0x3639   :  { %v5359_v17 = vsel %vm97_vm7, -1e+09, %v5354_v33  ;;  %v11326_v28 = vpop.f32.mrb[75].mxu1  ;;  %5361 = vmax.xlane.f32.xlu0 %v5360_v11 }
0x363a   :  { %v5363_v19 = vsel %vm441_vm6, %v5359_v17, -inf }
0x363b   :  { %5364 = vmax.xlane.f32.xlu1 %v5363_v19 }
0x364f   :  { %5382 = vrot.lane.b32.xlu0 %v14245_v4, %s13001_s25 }
0x366e   :  { %5755 = vadd.xlane.f32.xlu0 %v5754_v9 }
0x36c6   :  { %v5362_v39 = vpop.xlane.xlu0 %5361 }
0x36c7   :  { %v5366_v14 = vsub.f32 %v5358_v51, %v5362_v39  ;;  %v5757_v39 = vmul.f32 %v14145_v43, %v14245_v4 }
0x36c8   :  { %v5365_v37 = vpop.xlane.xlu1 %5364 }
0x36c9   :  { %v5368_v40 = vmul.f32 1.442695, %v5366_v14  ;;  %v5367_v13 = vsub.f32 %v5359_v17, %v5365_v37 }
0x36ca   :  { %v5383_v49 = vpop.permute.xlu0 %5382 }
0x36cb   :  { %12809 = vpow2.f32 %v5368_v40  ;;  %v5370_v55 = vmul.f32 1.442695, %v5367_v13  ;;  %11360 = vmatmul.mubr.msk.f32.vlgmr.msra.gmra.mrb[36].mxu0 %vm126_vm0, %v5383_v49 }
0x36cc   :  { %11418 = vmatpush3.xpose.msk.msra.mxu0 %vm126_vm0, %v14053_v5  ;;  %11419 = vmatprep.mubr.msk.f32.mxu0 %vm13003_vm2, %v15200_v7 }
0x36cd   :  { %12811 = vpow2.f32 %v5370_v55  ;;  %12343 = vmatprep.subr.bf16.mxu0 %v15198_v23 }
0x36d5   :  { %v12810_v6 = vpop.eup %12809 }
0x36d6   :  { %v5372_v2 = vsel %vm441_vm6, %v12810_v6, 0.0 }
0x36d7   :  { %v12812_v59 = vpop.eup %12811  ;;  %5373 = vadd.xlane.f32.xlu1 %v5372_v2 }
0x36d8   :  { %v5375_v51 = vsel %vm441_vm6, %v12812_v59, 0.0 }
0x36db   :  { %5376 = vadd.xlane.f32.xlu1 %v5375_v51 }
0x3764   :  { %v5374_v58 = vpop.xlane.xlu1 %5373 }
0x3765   :  { %12813 = vrcp.f32 %v5374_v58 }
0x3768   :  { %v5377_v11 = vpop.xlane.xlu1 %5376 }
0x3769   :  { %12815 = vrcp.f32 %v5377_v11 }
0x376f   :  { %v12814_v33 = vpop.eup %12813 }
0x3770   :  { %v5379_v5 = vmul.f32 %v12814_v33, %v12810_v6 }
0x3772   :  { %11365 = vmatmul.mubr.msk.f32.vlgmr.msra.gmra.mrb[76].mxu1 %vm598_vm10, %v5379_v5 }
0x3773   :  { %v12816_v17 = vpop.eup %12815  ;;  %11368 = vmatpush3.msra.mxu1 %v14092_v0  ;;  %11369 = vmatprep.mubr.msk.f32.mxu1 %vm13003_vm2, %v15200_v7 }
0x3774   :  { %11372 = vmatprep.subr.mxu1 %v15200_v7  ;;  %v5381_v28 = vmul.f32 %v12816_v17, %v12812_v59 }
0x3776   :  { %11370 = vmatmul.mubr.msk.f32.vlgmr.msra.gmra.mrb[78].mxu1 %vm598_vm10, %v5381_v28 }
0x3777   :  { %11373 = vmatpush3.msk.msra.mxu1 %vm13361_vm9, %v15196_v57  ;;  %11374 = vmatprep.mubr.msk.f32.mxu1 %vm13003_vm2, %v15200_v7 }
0x3778   :  { %11377 = vmatprep.subr.mxu1 %v15200_v7 }
0x377a   :  { %11375 = vmatmul.mubr.msk.f32.vlgmr.msra.gmra.mrb[80].mxu1 %vm598_vm10, %v5379_v5 }
0x377b   :  { %11378 = vmatpush3.msk.msra.mxu1 %vm13370_vm11, %v15196_v57  ;;  %11379 = vmatprep.mubr.msk.f32.mxu1 %vm13003_vm2, %v15200_v7 }
0x377c   :  { %12303 = vmatprep.subr.bf16.mxu1 %v15198_v23 }
0x377e   :  { %11380 = vmatmul.mubr.msk.f32.vlgmr.msra.gmra.mrb[82].mxu1 %vm598_vm10, %v5381_v28 }
0x377f   :  { %12305 = vmatpush3.bf16.msra.mxu1 %v13223_v24  ;;  %11414 = vmatprep.mubr.msk.f32.mxu1 %vm13003_vm2, %v15200_v7 }
0x3780   :  { %12306 = vmatprep.subr.bf16.mxu1 %v15198_v23 }
0x3783   :  { %12308 = vmatpush3.bf16.msra.mxu1 %v13235_v32 }
0x3784   :  { %12309 = vmatprep.subr.bf16.mxu1 %v15198_v23 }
0x3787   :  { %12311 = vmatpush3.bf16.msra.mxu1 %v13247_v38 }
0x3788   :  { %12312 = vmatprep.subr.bf16.mxu1 %v15198_v23 }
0x378b   :  { %12314 = vmatpush3.bf16.msra.mxu1 %v13259_v41 }
0x378c   :  { %12315 = vmatprep.subr.bf16.mxu1 %v15198_v23 }
0x378f   :  { %12317 = vmatpush3.bf16.msra.mxu1 %v13271_v44 }
0x3790   :  { %12318 = vmatprep.subr.bf16.mxu1 %v15198_v23 }
0x3793   :  { %12320 = vmatpush3.bf16.msra.mxu1 %v13283_v47 }
0x3794   :  { %12321 = vmatprep.subr.bf16.mxu1 %v15198_v23 }
0x3797   :  { %12323 = vmatpush3.bf16.msra.mxu1 %v13295_v50 }
0x3798   :  { %12324 = vmatprep.subr.bf16.mxu1 %v15198_v23 }
0x379b   :  { %12326 = vmatpush3.bf16.msra.mxu1 %v13307_v54 }
0x379c   :  { %12328 = vmatprep.subr.bf16.mxu1 %v13071_v3 }
0x379e   :  { %v5452_v19 = vpop.f32.mrb[36].mxu0 }
0x379f   :  { %v11361_v46 = vpop.f32.mrb[37].mxu0  ;;  %v5456_v9 = vsel %vm586_vm12, %v5452_v19, -inf }
0x37a0   :  { %5457 = vmax.xlane.f32.xlu1 %v5456_v9 }
0x37b1   :  { %5759 = vrot.lane.b32.xlu1 %v5757_v39, %s13001_s25 }
0x382d   :  { %v5458_v14 = vpop.xlane.xlu1 %5457 }
0x382e   :  { %v5459_v13 = vsub.f32 %v5452_v19, %v5458_v14 }
0x3830   :  { %v5460_v49 = vmul.f32 1.442695, %v5459_v13 }
0x3831   :  { %v5760_v37 = vpop.permute.xlu1 %5759 }
0x3832   :  { %v5762_v40 = vsel %vm892_vm8, %v5760_v37, 0.0  ;;  %12817 = vpow2.f32 %v5460_v49  ;;  %v5756_v37 = vpop.xlane.xlu0 %5755 }
0x3833   :  { %5763 = vadd.xlane.f32.xlu1 %v5762_v40 }
0x383c   :  { %v12818_v28 = vpop.eup %12817 }
0x383d   :  { %v5462_v39 = vsel %vm586_vm12, %v12818_v28, 0.0 }
0x3845   :  { %v5536_v55 = vpop.f32.mrb[76].mxu1 }
0x3846   :  { %v11366_v6 = vpop.f32.mrb[77].mxu1  ;;  %v5766_v58 = vmul.f32 %v5536_v55, %v13411_v1 }
0x3849   :  { %v5609_v2 = vpop.f32.mrb[78].mxu1 }
0x384a   :  { %v5767_v59 = vmul.f32 %v5609_v2, %v13411_v1  ;;  %v11371_v51 = vpop.f32.mrb[79].mxu1 }
0x384c   :  { %v5770_v11 = vrot.slane %v5767_v59, 7 }
0x384d   :  { %v5679_v43 = vpop.f32.mrb[80].mxu1 }
0x384e   :  { %v11376_v33 = vpop.f32.mrb[81].mxu1  ;;  %v5771_v5 = vsel %vm913_vm13, %v5770_v11, %v5766_v58 }
0x384f   :  { %v5773_v17 = vsel %vm892_vm8, %v5771_v5, 0.0 }
0x3850   :  { %5774 = vadd.xlane.f32.xlu0 %v5773_v17 }
0x3851   :  { %v5749_v19 = vpop.f32.mrb[82].mxu1 }
0x3852   :  { %v5788_v46 = vrot.slane %v5749_v19, 7  ;;  %v11381_v9 = vpop.f32.mrb[83].mxu1 }
0x3854   :  { %v5789_v14 = vsel %vm913_vm13, %v5788_v46, %v5679_v43  ;;  %5463 = vadd.xlane.f32.xlu0 %v5462_v39 }
0x38c0   :  { %v5764_v40 = vpop.xlane.xlu1 %5763 }
0x38c1   :  { %v5765_v13 = vadd.f32 %v5764_v40, %v5756_v37 }
0x38dd   :  { %v5775_v49 = vpop.xlane.xlu0 %5774 }
0x38de   :  { %v5776_v55 = vadd.f32 %v5775_v49, %v5765_v13 }
0x38e0   :  { %v5777_v6 = vadd.f32 %v5776_v55, %v13424_v60 }
0x38e1   :  { %v5464_v59 = vpop.xlane.xlu0 %5463 }
0x38e2   :  { %v10086_v2 = vmul.f32 -1.442695, %v5777_v6 }
0x38e4   :  { %12819 = vpow2.f32 %v10086_v2 }
0x38e5   :  { %12821 = vrcp.f32 %v5464_v59 }
0x38ee   :  { %v12820_v51 = vpop.eup %12819 }
0x38ef   :  { %v5781_v58 = vadd.f32 1.0, %v12820_v51  ;;  %v12822_v11 = vpop.eup %12821 }
0x38f0   :  { %v5466_v5 = vmul.f32 %v12822_v11, %v12818_v28 }
0x38f1   :  { %12823 = vrcp.f32 %v5781_v58 }
0x38fb   :  { %v12824_v33 = vpop.eup %12823 }
0x38fc   :  { %v5785_v17 = vsub.f32 1.0, %v12824_v33  ;;  %v5784_v43 = vmul.f32 %v12824_v33, %v5466_v5 }
0x38fe   :  { %v5791_v19 = vmul.f32 %v5789_v14, %v5785_v17 }
0x3900   :  { %v14364_v46 = vadd.f32 %v5791_v19, %v5784_v43 }
0x3902   :  { %15218 = vst [vmem:[#allocation9_spill] sm:$0xff] %v14364_v46  ;;  %v5793_v9 = vsel %vm586_vm12, %v14364_v46, -inf }
0x3903   :  { %5794 = vmax.xlane.f32.xlu0 %v5793_v9 }
0x3990   :  { %v5795_v39 = vpop.xlane.xlu0 %5794 }
0x3991   :  { %vm5796_vm14 = vcmp.ge.f32.partialorder %v14364_v46, %v5795_v39 }
0x3992   :  { %v5797_v37 = vsel %vm5796_vm14, %v13358_v53, 128 }
0x3993   :  { %v5798_v40 = vsel %vm586_vm12, %v5797_v37, 2147483647 }
0x3994   :  { %v5800_v13 = vshra.s32 %v5798_v40, 16  ;;  %v5799_v28 = vand.u32 65535, %v5798_v40 }
0x3996   :  { %v5802_v49 = vcvt.s32.f32 %v5800_v13  ;;  %v5801_v6 = vcvt.s32.f32 %v5799_v28 }
0x3998   :  { %5803 = vmin.xlane.f32.xlu0 %v5802_v49 }
0x3a25   :  { %v5804_v55 = vpop.xlane.xlu0 %5803 }
0x3a26   :  { %vm5805_vm15 = vcmp.eq.f32.partialorder %v5802_v49, %v5804_v55  ;;  %v5810_v2 = vcvt.f32.s32 %v5804_v55 }
0x3a27   :  { %v5806_v14 = vsel %vm5805_vm15, %v5801_v6, inf }
0x3a28   :  { %5807 = vmin.xlane.f32.xlu0 %v5806_v14  ;;  %v5811_v51 = vshll.u32 %v5810_v2, 16 }
0x3ab5   :  { %v5808_v59 = vpop.xlane.xlu0 %5807 }
0x3ab6   :  { %v5809_v58 = vcvt.f32.s32 %v5808_v59 }
0x3ab8   :  { %v5812_v11 = vadd.s32 %v5811_v51, %v5809_v58 }
0x3aba   :  { %vm5813_vm4 = vcmp.eq.s32.totalorder %v13358_v53, %v5812_v11 }
0x3abb   :  { %11415 = vmatmul.mubr.msk.f32.vlgmr.msra.gmra.mrb[84].mxu1 %vm5813_vm4, %v15196_v57 }
0x3abc   :  { %12330 = vmatpush1.bf16.msra.mxu1 %v13083_v8  ;;  %5954 = vmatprep.mubr.f32.mxu1 %v15200_v7 }
0x3abd   :  { %12332 = vmatprep.subr.bf16.mxu1 %v13096_v12 }
0x3ac0   :  { %12334 = vmatpush1.bf16.msra.mxu1 %v13105_v15 }
0x3ac1   :  { %12336 = vmatprep.subr.bf16.mxu1 %v13108_v16 }
0x3ac4   :  { %12338 = vmatpush1.bf16.msra.mxu1 %v13123_v21 }
0x3ac5   :  { %12340 = vmatprep.subr.bf16.mxu1 %v13126_v22 }
0x3ac8   :  { %12342 = vmatpush1.bf16.msra.mxu1 %v13135_v25 }
0x3ac9   :  { %11422 = vmatprep.subr.mxu1 %v15200_v7 }
0x3b8e   :  { %v14382_v33 = vpop.f32.mrb[84].mxu1 }
0x3b8f   :  { %v5886_v5 = vsel %vm126_vm0, %v14382_v33, %v14245_v4  ;;  %v11416_v17 = vpop.f32.mrb[85].mxu1  ;;  %v6575_v62 = vmul.f32 %v15077_v20, %v14382_v33 }
0x3b90   :  { %10089 = vmatmul.mubr.msk.f32.vlgmr.msra.gmra.mrb[86].mxu1 %vm139_vm1, %v5886_v5 }
0x3b91   :  { %11423 = vmatpush3.xpose.msk.msra.mxu1 %vm126_vm0, %v14092_v0  ;;  %11424 = vmatprep.mubr.msk.f32.mxu1 %vm13003_vm2, %v15200_v7 }
0x3b92   :  { %11462 = vmatprep.subr.mxu1 %v15200_v7 }
0x3c63   :  { %v5956_v43 = vpop.f32.mrb[86].mxu1 }
0x3c64   :  { %v5957_v19 = vadd.f32 %v5956_v43, %v13159_v34  ;;  %v5958_v9 = vpop.f32.mrb[87].mxu1 }
0x3c65   :  { %v5959_v39 = vadd.f32 %v5958_v9, %v13163_v35 }
0x3c66   :  { %5962 = vrot.lane.b32.xlu1 %v5957_v19, %s12999_s15 }
0x3c67   :  { %5983 = vrot.lane.b32.xlu0 %v5959_v39, %s13001_s25 }
0x3cd8   :  { %v5963_v37 = vpop.permute.xlu1 %5962 }
0x3cd9   :  { %v5965_v40 = vadd.f32 %v5963_v37, %v5957_v19  ;;  %v5984_v55 = vpop.permute.xlu0 %5983 }
0x3cdb   :  { %v10090_v13 = vmul.f32 -1.442695, %v5965_v40 }
0x3cdd   :  { %12825 = vpow2.f32 %v10090_v13 }
0x3ce7   :  { %v12826_v0 = vpop.eup %12825 }
0x3ce8   :  { %v5969_v49 = vadd.f32 1.0, %v12826_v0 }
0x3cea   :  { %12827 = vrcp.f32 %v5969_v49 }
0x3cf4   :  { %v12828_v28 = vpop.eup %12827 }
0x3cf5   :  { %v5986_v6 = vmul.f32 %v12828_v28, %v5984_v55 }
0x3cf7   :  { %5988 = vrot.lane.b32.xlu1 %v5986_v6, %s13002_s6 }
0x3cfb   :  { %5973 = vrot.lane.b32.xlu1 %v5959_v39, %s12999_s15 }
0x3d69   :  { %v5989_v14 = vpop.permute.xlu1 %5988 }
0x3d6a   :  { %v5991_v2 = vadd.f32 %v5989_v14, %v5957_v19 }
0x3d6c   :  { %12829 = vtanh.f32 %v5991_v2  ;;  %v14422_v2 = vld [vmem:[%s15188_s2] sm:$0xff] }
0x3d6d   :  { %v5974_v51 = vpop.permute.xlu1 %5973 }
0x3d6e   :  { %v5976_v58 = vadd.f32 %v5974_v51, %v5957_v19 }
0x3d70   :  { %v10091_v11 = vmul.f32 -1.442695, %v5976_v58 }
0x3d72   :  { %12831 = vpow2.f32 %v10091_v11 }
0x3d76   :  { %v12830_v59 = vpop.eup %12829 }
0x3d77   :  { %5995 = vrot.lane.b32.xlu0 %v12830_v59, %s13001_s25 }
0x3d7c   :  { %v12832_v5 = vpop.eup %12831 }
0x3d7d   :  { %v5980_v17 = vadd.f32 1.0, %v12832_v5 }
0x3d7f   :  { %12833 = vrcp.f32 %v5980_v17 }
0x3d89   :  { %v12834_v43 = vpop.eup %12833 }
0x3d8a   :  { %v5993_v9 = vsub.f32 1.0, %v12834_v43  ;;  %v5999_v13 = vmul.f32 %v12834_v43, %v14245_v4 }
0x3de9   :  { %v5996_v37 = vpop.permute.xlu0 %5995 }
0x3dea   :  { %v5998_v40 = vmul.f32 %v5996_v37, %v5993_v9 }
0x3dec   :  { %v14401_v39 = vadd.f32 %v5999_v13, %v5998_v40 }
0x3dee   :  { %v6008_v0 = vrot.slane %v14401_v39, %v13185_v63 }
0x3df0   :  { %v6016_v49 = vrot.slane %v6008_v0, %v13185_v63  ;;  %v6009_v28 = vcombine.high %v6008_v0, %v6008_v0 }
0x3df2   :  { %v6027_v19 = vrot.slane %v6016_v49, %v13152_v31  ;;  %v6023_v55 = vrot.slane %v6009_v28, %v13185_v63 }
0x3df4   :  { %6028 = vrot.lane.b32.xlu1 %v6027_v19, %s13001_s25  ;;  %v6105_v6 = vrot.slane %v6023_v55, %v13152_v31 }
0x3df6   :  { %6106 = vrot.lane.b32.xlu0 %v6105_v6, %s13001_s25 }
0x3e66   :  { %v6029_v14 = vpop.permute.xlu1 %6028 }
0x3e67   :  { %11420 = vmatmul.mubr.msk.f32.vlgmr.msra.gmra.mrb[38].mxu0 %vm126_vm0, %v6029_v14 }
0x3e68   :  { %v6107_v4 = vpop.permute.xlu0 %6106  ;;  %12346 = vmatpush3.bf16.xpose.msk.msra.mxu0 %vm13218_vm3, %v13223_v24  ;;  %11459 = vmatprep.mubr.msk.f32.mxu0 %vm13003_vm2, %v15200_v7 }
0x3e69   :  { %11425 = vmatmul.mubr.msk.f32.vlgmr.msra.gmra.mrb[88].mxu1 %vm126_vm0, %v6107_v4  ;;  %12347 = vmatprep.subr.bf16.mxu0 %v15198_v23 }
0x3e6a   :  { %11463 = vmatpush3.msra.mxu1 %v14422_v2  ;;  %11464 = vmatprep.mubr.msk.f32.mxu1 %vm13003_vm2, %v15200_v7 }
0x3e6b   :  { %11467 = vmatprep.subr.mxu1 %v15200_v7 }
0x3e70   :  { %12350 = vmatpush3.bf16.xpose.msk.msra.mxu0 %vm13218_vm3, %v13235_v32 }
0x3e71   :  { %12351 = vmatprep.subr.bf16.mxu0 %v15198_v23 }
0x3e78   :  { %12354 = vmatpush3.bf16.xpose.msk.msra.mxu0 %vm13218_vm3, %v13247_v38 }
0x3e79   :  { %12355 = vmatprep.subr.bf16.mxu0 %v15198_v23 }
0x3e80   :  { %12358 = vmatpush3.bf16.xpose.msk.msra.mxu0 %vm13218_vm3, %v13259_v41 }
0x3e81   :  { %12359 = vmatprep.subr.bf16.mxu0 %v15198_v23 }
0x3e88   :  { %12362 = vmatpush3.bf16.xpose.msk.msra.mxu0 %vm13218_vm3, %v13271_v44 }
0x3e89   :  { %12363 = vmatprep.subr.bf16.mxu0 %v15198_v23 }
0x3e90   :  { %12366 = vmatpush3.bf16.xpose.msk.msra.mxu0 %vm13218_vm3, %v13283_v47 }
0x3e91   :  { %12367 = vmatprep.subr.bf16.mxu0 %v15198_v23 }
0x3e98   :  { %12370 = vmatpush3.bf16.xpose.msk.msra.mxu0 %vm13218_vm3, %v13295_v50 }
0x3e99   :  { %12371 = vmatprep.subr.bf16.mxu0 %v15198_v23 }
0x3ea0   :  { %12374 = vmatpush3.bf16.xpose.msk.msra.mxu0 %vm13218_vm3, %v13307_v54 }
0x3ea1   :  { %11527 = vmatprep.subr.mxu0 %v15200_v7 }
0x3f3a   :  { %v6098_v59 = vpop.f32.mrb[38].mxu0 }
0x3f3b   :  { %v6180_v51 = vsel %vm13318_vm5, -1e+09, %v6098_v59  ;;  %v11421_v58 = vpop.f32.mrb[39].mxu0 }
0x3f3c   :  { %v6182_v11 = vsel %vm441_vm6, %v6180_v51, -inf  ;;  %v6176_v5 = vpop.f32.mrb[88].mxu1 }
0x3f3d   :  { %v6181_v17 = vsel %vm97_vm7, -1e+09, %v6176_v5  ;;  %v11426_v43 = vpop.f32.mrb[89].mxu1  ;;  %6183 = vmax.xlane.f32.xlu1 %v6182_v11  ;;  %v14468_v5 = vld [vmem:[%s15188_s2 + $0x8] sm:$0xff] }
0x3f3e   :  { %v6185_v9 = vsel %vm441_vm6, %v6181_v17, -inf  ;;  %v14499_v43 = vld [vmem:[%s15187_s1 + $0x4] sm:$0x3] }
0x3f3f   :  { %6186 = vmax.xlane.f32.xlu0 %v6185_v9  ;;  %v6631_v9 = vsel %vm126_vm0, %v14499_v43, %v14401_v39 }
0x3fca   :  { %v6184_v37 = vpop.xlane.xlu1 %6183 }
0x3fcb   :  { %v6188_v40 = vsub.f32 %v6180_v51, %v6184_v37 }
0x3fcc   :  { %v6187_v13 = vpop.xlane.xlu0 %6186 }
0x3fcd   :  { %v6190_v0 = vmul.f32 1.442695, %v6188_v40  ;;  %v6189_v49 = vsub.f32 %v6181_v17, %v6187_v13 }
0x3fcf   :  { %12835 = vpow2.f32 %v6190_v0  ;;  %v6192_v28 = vmul.f32 1.442695, %v6189_v49 }
0x3fd1   :  { %12837 = vpow2.f32 %v6192_v28 }
0x3fd9   :  { %v12836_v19 = vpop.eup %12835 }
0x3fda   :  { %v6194_v55 = vsel %vm441_vm6, %v12836_v19, 0.0 }
0x3fdb   :  { %v12838_v6 = vpop.eup %12837  ;;  %6195 = vadd.xlane.f32.xlu0 %v6194_v55 }
0x3fdc   :  { %v6197_v14 = vsel %vm441_vm6, %v12838_v6, 0.0 }
0x3fdd   :  { %6198 = vadd.xlane.f32.xlu1 %v6197_v14 }
0x4068   :  { %v6196_v4 = vpop.xlane.xlu0 %6195 }
0x4069   :  { %12839 = vrcp.f32 %v6196_v4 }
0x406a   :  { %v6199_v59 = vpop.xlane.xlu1 %6198 }
0x406b   :  { %12841 = vrcp.f32 %v6199_v59 }
0x4073   :  { %v12840_v58 = vpop.eup %12839 }
0x4074   :  { %v6201_v51 = vmul.f32 %v12840_v58, %v12836_v19 }
0x4075   :  { %v12842_v11 = vpop.eup %12841 }
0x4076   :  { %11465 = vmatmul.mubr.msk.f32.vlgmr.msra.gmra.mrb[90].mxu1 %vm598_vm10, %v6201_v51  ;;  %v6203_v17 = vmul.f32 %v12842_v11, %v12838_v6 }
0x4077   :  { %11468 = vmatpush3.msra.mxu1 %v14468_v5  ;;  %11469 = vmatprep.mubr.msk.f32.mxu1 %vm13003_vm2, %v15200_v7 }
0x4078   :  { %11472 = vmatprep.subr.mxu1 %v15200_v7 }
0x407a   :  { %11470 = vmatmul.mubr.msk.f32.vlgmr.msra.gmra.mrb[92].mxu1 %vm598_vm10, %v6203_v17 }
0x407b   :  { %11473 = vmatpush3.msk.msra.mxu1 %vm13361_vm9, %v15196_v57  ;;  %11474 = vmatprep.mubr.msk.f32.mxu1 %vm13003_vm2, %v15200_v7 }
0x407c   :  { %11477 = vmatprep.subr.mxu1 %v15200_v7 }
0x407e   :  { %11475 = vmatmul.mubr.msk.f32.vlgmr.msra.gmra.mrb[94].mxu1 %vm598_vm10, %v6201_v51 }
0x407f   :  { %11478 = vmatpush3.msk.msra.mxu1 %vm13370_vm11, %v15196_v57  ;;  %11479 = vmatprep.mubr.msk.f32.mxu1 %vm13003_vm2, %v15200_v7 }
0x4080   :  { %12376 = vmatprep.subr.bf16.mxu1 %v13071_v3 }
0x4082   :  { %11480 = vmatmul.mubr.msk.f32.vlgmr.msra.gmra.mrb[96].mxu1 %vm598_vm10, %v6203_v17 }
0x4083   :  { %12378 = vmatpush1.bf16.msra.mxu1 %v13083_v8  ;;  %6699 = vmatprep.mubr.f32.mxu1 %v15200_v7 }
0x4084   :  { %12380 = vmatprep.subr.bf16.mxu1 %v13096_v12 }
0x4087   :  { %12382 = vmatpush1.bf16.msra.mxu1 %v13105_v15 }
0x4088   :  { %12384 = vmatprep.subr.bf16.mxu1 %v13108_v16 }
0x408b   :  { %12386 = vmatpush1.bf16.msra.mxu1 %v13123_v21 }
0x408c   :  { %12388 = vmatprep.subr.bf16.mxu1 %v13126_v22 }
0x408f   :  { %12390 = vmatpush1.bf16.msra.mxu1 %v13135_v25 }
0x4090   :  { %11482 = vmatprep.subr.mxu1 %v15200_v7 }
0x4092   :  { %10121 = vmatmul.mubr.msk.f32.vlgmr.msra.gmra.mrb[98].mxu1 %vm139_vm1, %v6631_v9 }
0x4093   :  { %11484 = vmatprep.mubr.msk.f32.mxu1 %vm13003_vm2, %v15200_v7 }
0x4098   :  { %11483 = vmatpush3.xpose.msk.msra.mxu1 %vm126_vm0, %v14422_v2 }
0x4099   :  { %11487 = vmatprep.subr.mxu1 %v15200_v7 }
0x4149   :  { %v6358_v37 = vpop.f32.mrb[90].mxu1 }
0x414a   :  { %v11466_v40 = vpop.f32.mrb[91].mxu1  ;;  %v6588_v28 = vmul.f32 %v6358_v37, %v13411_v1 }
0x414d   :  { %v6431_v13 = vpop.f32.mrb[92].mxu1 }
0x414e   :  { %v6589_v0 = vmul.f32 %v6431_v13, %v13411_v1  ;;  %v11471_v49 = vpop.f32.mrb[93].mxu1 }
0x4150   :  { %v6592_v19 = vrot.slane %v6589_v0, 7 }
0x4151   :  { %v6501_v55 = vpop.f32.mrb[94].mxu1 }
0x4152   :  { %v11476_v6 = vpop.f32.mrb[95].mxu1  ;;  %v14515_v14 = vsel %vm913_vm13, %v6592_v19, %v6588_v28 }
0x4155   :  { %v6571_v4 = vpop.f32.mrb[96].mxu1 }
0x4156   :  { %v6610_v59 = vrot.slane %v6571_v4, 7  ;;  %v11481_v58 = vpop.f32.mrb[97].mxu1 }
0x4158   :  { %v14518_v51 = vsel %vm913_vm13, %v6610_v59, %v6501_v55 }
0x4159   :  { %15219 = vst [vmem:[#allocation10_spill] sm:$0xff] %v14518_v51 }
0x4165   :  { %v6701_v11 = vpop.f32.mrb[98].mxu1 }
0x4166   :  { %v6702_v17 = vadd.f32 %v6701_v11, %v13159_v34  ;;  %v6703_v9 = vpop.f32.mrb[99].mxu1 }
0x4167   :  { %v6704_v40 = vadd.f32 %v6703_v9, %v13163_v35 }
0x4168   :  { %6707 = vrot.lane.b32.xlu0 %v6702_v17, %s12999_s15 }
0x4169   :  { %6728 = vrot.lane.b32.xlu1 %v6704_v40, %s13001_s25 }
0x416c   :  { %6718 = vrot.lane.b32.xlu0 %v6704_v40, %s12999_s15 }
0x41da   :  { %v6708_v37 = vpop.permute.xlu0 %6707 }
0x41db   :  { %v6710_v13 = vadd.f32 %v6708_v37, %v6702_v17  ;;  %v6729_v55 = vpop.permute.xlu1 %6728 }
0x41dd   :  { %v10122_v0 = vmul.f32 -1.442695, %v6710_v13 }
0x41de   :  { %v6719_v11 = vpop.permute.xlu0 %6718 }
0x41df   :  { %12843 = vpow2.f32 %v10122_v0  ;;  %v6721_v9 = vadd.f32 %v6719_v11, %v6702_v17 }
0x41e1   :  { %v10123_v40 = vmul.f32 -1.442695, %v6721_v9 }
0x41e9   :  { %v12844_v49 = vpop.eup %12843 }
0x41ea   :  { %v6714_v28 = vadd.f32 1.0, %v12844_v49 }
0x41ec   :  { %12845 = vrcp.f32 %v6714_v28 }
0x41f6   :  { %v12846_v19 = vpop.eup %12845 }
0x41f7   :  { %v6731_v6 = vmul.f32 %v12846_v19, %v6729_v55 }
0x41f9   :  { %6733 = vrot.lane.b32.xlu1 %v6731_v6, %s13002_s6 }
0x426b   :  { %v6734_v4 = vpop.permute.xlu1 %6733 }
0x426c   :  { %v6736_v59 = vadd.f32 %v6734_v4, %v6702_v17 }
0x426e   :  { %12847 = vtanh.f32 %v6736_v59 }
0x426f   :  { %12849 = vpow2.f32 %v10123_v40 }
0x4278   :  { %v12848_v58 = vpop.eup %12847 }
0x4279   :  { %6740 = vrot.lane.b32.xlu1 %v12848_v58, %s13001_s25  ;;  %v12850_v37 = vpop.eup %12849 }
0x427a   :  { %v6725_v13 = vadd.f32 1.0, %v12850_v37 }
0x427c   :  { %12851 = vrcp.f32 %v6725_v13 }
0x4286   :  { %v12852_v0 = vpop.eup %12851 }
0x4287   :  { %v6738_v49 = vsub.f32 1.0, %v12852_v0  ;;  %v6744_v19 = vmul.f32 %v12852_v0, %v14401_v39 }
0x42eb   :  { %v6741_v28 = vpop.permute.xlu1 %6740 }
0x42ec   :  { %v6743_v57 = vmul.f32 %v6741_v28, %v6738_v49 }
0x42ee   :  { %v14528_v55 = vadd.f32 %v6744_v19, %v6743_v57 }
0x42f0   :  { %v6753_v6 = vrot.slane %v14528_v55, %v13185_v63 }
0x42f2   :  { %v6761_v4 = vrot.slane %v6753_v6, %v13185_v63  ;;  %v6754_v59 = vcombine.high %v6753_v6, %v6753_v6 }
0x42f4   :  { %v6772_v17 = vrot.slane %v6761_v4, %v13152_v31  ;;  %v6768_v58 = vrot.slane %v6754_v59, %v13185_v63 }
0x42f6   :  { %6773 = vrot.lane.b32.xlu0 %v6772_v17, %s13001_s25  ;;  %v6850_v11 = vrot.slane %v6768_v58, %v13152_v31 }
0x42f8   :  { %6851 = vrot.lane.b32.xlu1 %v6850_v11, %s13001_s25 }
0x4368   :  { %v6774_v9 = vpop.permute.xlu0 %6773 }
0x4369   :  { %11485 = vmatmul.mubr.msk.f32.vlgmr.msra.gmra.mrb[100].mxu1 %vm126_vm0, %v6774_v9 }
0x436a   :  { %11488 = vmatpush3.xpose.msk.msra.mxu1 %vm126_vm0, %v14468_v5  ;;  %11489 = vmatprep.mubr.msk.f32.mxu1 %vm13003_vm2, %v15200_v7  ;;  %v6852_v57 = vpop.permute.xlu1 %6851 }
0x436b   :  { %12391 = vmatprep.subr.bf16.mxu1 %v15198_v23 }
0x436d   :  { %11490 = vmatmul.mubr.msk.f32.vlgmr.msra.gmra.mrb[102].mxu1 %vm126_vm0, %v6852_v57 }
0x436e   :  { %12394 = vmatpush3.bf16.xpose.msk.msra.mxu1 %vm13218_vm3, %v13223_v24  ;;  %11524 = vmatprep.mubr.msk.f32.mxu1 %vm13003_vm2, %v15200_v7 }
0x436f   :  { %12395 = vmatprep.subr.bf16.mxu1 %v15198_v23 }
0x4376   :  { %12398 = vmatpush3.bf16.xpose.msk.msra.mxu1 %vm13218_vm3, %v13235_v32 }
0x4377   :  { %12399 = vmatprep.subr.bf16.mxu1 %v15198_v23 }
0x437e   :  { %12402 = vmatpush3.bf16.xpose.msk.msra.mxu1 %vm13218_vm3, %v13247_v38 }
0x437f   :  { %12403 = vmatprep.subr.bf16.mxu1 %v15198_v23 }
0x4386   :  { %12406 = vmatpush3.bf16.xpose.msk.msra.mxu1 %vm13218_vm3, %v13259_v41 }
0x4387   :  { %12407 = vmatprep.subr.bf16.mxu1 %v15198_v23 }
0x438e   :  { %12410 = vmatpush3.bf16.xpose.msk.msra.mxu1 %vm13218_vm3, %v13271_v44 }
0x438f   :  { %12411 = vmatprep.subr.bf16.mxu1 %v15198_v23 }
0x4396   :  { %12414 = vmatpush3.bf16.xpose.msk.msra.mxu1 %vm13218_vm3, %v13283_v47 }
0x4397   :  { %12415 = vmatprep.subr.bf16.mxu1 %v15198_v23 }
0x439e   :  { %12418 = vmatpush3.bf16.xpose.msk.msra.mxu1 %vm13218_vm3, %v13295_v50 }
0x439f   :  { %12419 = vmatprep.subr.bf16.mxu1 %v15198_v23 }
0x43a6   :  { %12422 = vmatpush3.bf16.xpose.msk.msra.mxu1 %vm13218_vm3, %v13307_v54 }
0x43a7   :  { %12448 = vmatprep.subr.bf16.mxu1 %v13071_v3 }
0x443c   :  { %v6843_v40 = vpop.f32.mrb[100].mxu1 }
0x443d   :  { %v6925_v37 = vsel %vm13318_vm5, -1e+09, %v6843_v40  ;;  %v11486_v13 = vpop.f32.mrb[101].mxu1 }
0x443e   :  { %v6927_v0 = vsel %vm441_vm6, %v6925_v37, -inf }
0x443f   :  { %6928 = vmax.xlane.f32.xlu0 %v6927_v0 }
0x4440   :  { %v6921_v49 = vpop.f32.mrb[102].mxu1 }
0x4441   :  { %v6926_v28 = vsel %vm97_vm7, -1e+09, %v6921_v49  ;;  %v11491_v19 = vpop.f32.mrb[103].mxu1  ;;  %v14604_v49 = vld [vmem:[%s15193_s7] ss:$0 sm:$0xff]  ;;  %s13008_s7 = smov [#allocation3]  }
0x4442   :  { %v6930_v6 = vsel %vm441_vm6, %v6926_v28, -inf  ;;  %v7320_v19 = vmul.f32 %v14604_v49, %v14499_v43 }
0x4443   :  { %6931 = vmax.xlane.f32.xlu1 %v6930_v6 }
0x4444   :  { %v7321_v6 = vsel %vm892_vm8, %v7320_v19, 0.0 }
0x4455   :  { %6949 = vrot.lane.b32.xlu0 %v14528_v55, %s13001_s25 }
0x44cc   :  { %v6929_v4 = vpop.xlane.xlu0 %6928 }
0x44cd   :  { %v6933_v59 = vsub.f32 %v6925_v37, %v6929_v4 }
0x44cf   :  { %v6935_v17 = vmul.f32 1.442695, %v6933_v59 }
0x44d0   :  { %v6950_v58 = vpop.permute.xlu0 %6949  ;;  %v6932_v11 = vpop.xlane.xlu1 %6931 }
0x44d1   :  { %12853 = vpow2.f32 %v6935_v17  ;;  %v6934_v9 = vsub.f32 %v6926_v28, %v6932_v11  ;;  %11525 = vmatmul.mubr.msk.f32.vlgmr.msra.gmra.mrb[104].mxu1 %vm126_vm0, %v6950_v58  ;;  %v7324_v28 = vmul.f32 %v14604_v49, %v14528_v55 }
0x44d2   :  { %12450 = vmatpush1.bf16.msra.mxu1 %v13083_v8  ;;  %7521 = vmatprep.mubr.f32.mxu1 %v15200_v7 }
0x44d3   :  { %v6937_v57 = vmul.f32 1.442695, %v6934_v9  ;;  %12452 = vmatprep.subr.bf16.mxu1 %v13096_v12 }
0x44d5   :  { %12855 = vpow2.f32 %v6937_v57  ;;  %v15220_v57 = vmov 1.0  }
0x44d6   :  { %12454 = vmatpush1.bf16.msra.mxu1 %v13105_v15 }
0x44d7   :  { %12456 = vmatprep.subr.bf16.mxu1 %v13108_v16 }
0x44da   :  { %12458 = vmatpush1.bf16.msra.mxu1 %v13123_v21 }
0x44db   :  { %v12854_v40 = vpop.eup %12853  ;;  %12460 = vmatprep.subr.bf16.mxu1 %v13126_v22 }
0x44dc   :  { %v6939_v37 = vsel %vm441_vm6, %v12854_v40, 0.0 }
0x44dd   :  { %6940 = vadd.xlane.f32.xlu1 %v6939_v37 }
0x44de   :  { %12462 = vmatpush1.bf16.msra.mxu1 %v13135_v25 }
0x44df   :  { %v12856_v13 = vpop.eup %12855  ;;  %11627 = vmatprep.subr.mxu1 %v15200_v7 }
0x44e0   :  { %v6942_v0 = vsel %vm441_vm6, %v12856_v13, 0.0 }
0x44e1   :  { %6943 = vadd.xlane.f32.xlu1 %v6942_v0 }
0x44f2   :  { %6204 = vrot.lane.b32.xlu1 %v14401_v39, %s13001_s25 }
0x44f6   :  { %7326 = vrot.lane.b32.xlu1 %v7324_v28, %s13001_s25 }
0x451a   :  { %7322 = vadd.xlane.f32.xlu1 %v7321_v6 }
0x456a   :  { %v6941_v4 = vpop.xlane.xlu1 %6940 }
0x456b   :  { %12857 = vrcp.f32 %v6941_v4 }
0x456e   :  { %v6944_v59 = vpop.xlane.xlu1 %6943 }
0x456f   :  { %12859 = vrcp.f32 %v6944_v59 }
0x4572   :  { %v6205_v17 = vpop.permute.xlu1 %6204 }
0x4573   :  { %11460 = vmatmul.mubr.msk.f32.vlgmr.msra.gmra.mrb[40].mxu0 %vm126_vm0, %v6205_v17 }
0x4574   :  { %11528 = vmatpush3.msra.mxu0 %v14422_v2  ;;  %11529 = vmatprep.mubr.msk.f32.mxu0 %vm13003_vm2, %v15200_v7 }
0x4575   :  { %v12858_v58 = vpop.eup %12857  ;;  %11532 = vmatprep.subr.mxu0 %v15200_v7 }
0x4576   :  { %v6946_v11 = vmul.f32 %v12858_v58, %v12854_v40  ;;  %v7327_v0 = vpop.permute.xlu1 %7326 }
0x4577   :  { %v7329_v28 = vsel %vm892_vm8, %v7327_v0, 0.0 }
0x4578   :  { %11530 = vmatmul.mubr.msk.f32.vlgmr.msra.gmra.mrb[42].mxu0 %vm598_vm10, %v6946_v11 }
0x4579   :  { %v12860_v43 = vpop.eup %12859  ;;  %11533 = vmatpush3.msra.mxu0 %v14468_v5  ;;  %11534 = vmatprep.mubr.msk.f32.mxu0 %vm13003_vm2, %v15200_v7 }
0x457a   :  { %v6948_v9 = vmul.f32 %v12860_v43, %v12856_v13  ;;  %11537 = vmatprep.subr.mxu0 %v15200_v7 }
0x457c   :  { %11535 = vmatmul.mubr.msk.f32.vlgmr.msra.gmra.mrb[44].mxu0 %vm598_vm10, %v6948_v9 }
0x457d   :  { %11538 = vmatpush3.msk.msra.mxu0 %vm13361_vm9, %v15220_v57  ;;  %11539 = vmatprep.mubr.msk.f32.mxu0 %vm13003_vm2, %v15200_v7 }
0x457e   :  { %11542 = vmatprep.subr.mxu0 %v15200_v7 }
0x4580   :  { %11540 = vmatmul.mubr.msk.f32.vlgmr.msra.gmra.mrb[46].mxu0 %vm598_vm10, %v6946_v11 }
0x4581   :  { %11543 = vmatpush3.msk.msra.mxu0 %vm13370_vm11, %v15220_v57  ;;  %11544 = vmatprep.mubr.msk.f32.mxu0 %vm13003_vm2, %v15200_v7 }
0x4582   :  { %12423 = vmatprep.subr.bf16.mxu0 %v15198_v23 }
0x4584   :  { %11545 = vmatmul.mubr.msk.f32.vlgmr.msra.gmra.mrb[48].mxu0 %vm598_vm10, %v6948_v9 }
0x4585   :  { %12425 = vmatpush3.bf16.msra.mxu0 %v13223_v24  ;;  %11579 = vmatprep.mubr.msk.f32.mxu0 %vm13003_vm2, %v15200_v7 }
0x4586   :  { %12426 = vmatprep.subr.bf16.mxu0 %v15198_v23 }
0x4589   :  { %12428 = vmatpush3.bf16.msra.mxu0 %v13235_v32 }
0x458a   :  { %12429 = vmatprep.subr.bf16.mxu0 %v15198_v23 }
0x458d   :  { %12431 = vmatpush3.bf16.msra.mxu0 %v13247_v38 }
0x458e   :  { %12432 = vmatprep.subr.bf16.mxu0 %v15198_v23 }
0x4591   :  { %12434 = vmatpush3.bf16.msra.mxu0 %v13259_v41 }
0x4592   :  { %12435 = vmatprep.subr.bf16.mxu0 %v15198_v23 }
0x4595   :  { %12437 = vmatpush3.bf16.msra.mxu0 %v13271_v44 }
0x4596   :  { %12438 = vmatprep.subr.bf16.mxu0 %v15198_v23 }
0x4599   :  { %12440 = vmatpush3.bf16.msra.mxu0 %v13283_v47 }
0x459a   :  { %12441 = vmatprep.subr.bf16.mxu0 %v15198_v23 }
0x459d   :  { %12443 = vmatpush3.bf16.msra.mxu0 %v13295_v50 }
0x459e   :  { %12444 = vmatprep.subr.bf16.mxu0 %v15198_v23 }
0x45a1   :  { %12446 = vmatpush3.bf16.msra.mxu0 %v13307_v54 }
0x45a2   :  { %11582 = vmatprep.subr.mxu0 %v15200_v7 }
0x45a4   :  { %v7019_v40 = vpop.f32.mrb[104].mxu1 }
0x45a5   :  { %v11526_v37 = vpop.f32.mrb[105].mxu1  ;;  %v7023_v13 = vsel %vm586_vm12, %v7019_v40, -inf }
0x45a6   :  { %7024 = vmax.xlane.f32.xlu0 %v7023_v13 }
0x45aa   :  { %7330 = vadd.xlane.f32.xlu0 %v7329_v28 }
0x4633   :  { %v7025_v19 = vpop.xlane.xlu0 %7024 }
0x4634   :  { %v7026_v6 = vsub.f32 %v7019_v40, %v7025_v19 }
0x4636   :  { %v7027_v17 = vmul.f32 1.442695, %v7026_v6 }
0x4638   :  { %12861 = vpow2.f32 %v7027_v17 }
0x4642   :  { %v12862_v28 = vpop.eup %12861 }
0x4643   :  { %v7029_v17 = vsel %vm586_vm12, %v12862_v28, 0.0 }
0x4646   :  { %v14657_v4 = vpop.f32.mrb[40].mxu0 }
0x4647   :  { %v11461_v59 = vpop.f32.mrb[41].mxu0 }
0x464b   :  { %v7103_v58 = vpop.f32.mrb[42].mxu0 }
0x464c   :  { %v11531_v11 = vpop.f32.mrb[43].mxu0  ;;  %v7333_v23 = vmul.f32 %v7103_v58, %v13411_v1 }
0x464f   :  { %v7176_v43 = vpop.f32.mrb[44].mxu0 }
0x4650   :  { %v7334_v9 = vmul.f32 %v7176_v43, %v13411_v1  ;;  %v11536_v37 = vpop.f32.mrb[45].mxu0  ;;  %v7323_v43 = vpop.xlane.xlu1 %7322 }
0x4651   :  { %v7331_v37 = vpop.xlane.xlu0 %7330 }
0x4652   :  { %v7337_v7 = vrot.slane %v7334_v9, 7  ;;  %v7332_v58 = vadd.f32 %v7331_v37, %v7323_v43 }
0x4653   :  { %v7246_v13 = vpop.f32.mrb[46].mxu0 }
0x4654   :  { %v11541_v18 = vpop.f32.mrb[47].mxu0  ;;  %v7338_v0 = vsel %vm913_vm13, %v7337_v7, %v7333_v23 }
0x4655   :  { %v7340_v40 = vsel %vm892_vm8, %v7338_v0, 0.0 }
0x4656   :  { %7341 = vadd.xlane.f32.xlu0 %v7340_v40 }
0x4657   :  { %v7316_v19 = vpop.f32.mrb[48].mxu0 }
0x4658   :  { %v7355_v6 = vrot.slane %v7316_v19, 7  ;;  %v11546_v59 = vpop.f32.mrb[49].mxu0 }
0x465a   :  { %v7356_v11 = vsel %vm913_vm13, %v7355_v6, %v7246_v13  ;;  %7030 = vadd.xlane.f32.xlu0 %v7029_v17 }
0x46e3   :  { %v7342_v9 = vpop.xlane.xlu0 %7341 }
0x46e4   :  { %v7343_v36 = vadd.f32 %v7342_v9, %v7332_v58 }
0x46e6   :  { %v7344_v18 = vadd.f32 %v7343_v36, %v13424_v60 }
0x46e7   :  { %v7031_v23 = vpop.xlane.xlu0 %7030 }
0x46e8   :  { %v10151_v7 = vmul.f32 -1.442695, %v7344_v18 }
0x46ea   :  { %12863 = vpow2.f32 %v10151_v7 }
0x46eb   :  { %12865 = vrcp.f32 %v7031_v23 }
0x46f4   :  { %v12864_v0 = vpop.eup %12863 }
0x46f5   :  { %v7348_v40 = vadd.f32 1.0, %v12864_v0  ;;  %v12866_v19 = vpop.eup %12865 }
0x46f6   :  { %v7033_v46 = vmul.f32 %v12866_v19, %v12862_v28 }
0x46f7   :  { %12867 = vrcp.f32 %v7348_v40 }
0x4701   :  { %v12868_v59 = vpop.eup %12867 }
0x4702   :  { %v7352_v51 = vsub.f32 1.0, %v12868_v59  ;;  %v7351_v13 = vmul.f32 %v12868_v59, %v7033_v46  ;;  %v15222_v59 = vmov 0.0  }
0x4704   :  { %v7358_v6 = vmul.f32 %v7356_v11, %v7352_v51 }
0x4706   :  { %v14666_v17 = vadd.f32 %v7358_v6, %v7351_v13 }
0x4708   :  { %15221 = vst [vmem:[#allocation11_spill] sm:$0xff] %v14666_v17  ;;  %v7360_v43 = vsel %vm586_vm12, %v14666_v17, -inf }
0x4709   :  { %7361 = vmax.xlane.f32.xlu0 %v7360_v43 }
0x4796   :  { %v7362_v36 = vpop.xlane.xlu0 %7361 }
0x4797   :  { %vm7363_vm14 = vcmp.ge.f32.partialorder %v14666_v17, %v7362_v36 }
0x4798   :  { %v7364_v37 = vsel %vm7363_vm14, %v13358_v53, 128 }
0x4799   :  { %v7365_v58 = vsel %vm586_vm12, %v7364_v37, 2147483647 }
0x479a   :  { %v7367_v9 = vshra.s32 %v7365_v58, 16  ;;  %v7366_v28 = vand.u32 65535, %v7365_v58 }
0x479c   :  { %v7369_v18 = vcvt.s32.f32 %v7367_v9  ;;  %v7368_v46 = vcvt.s32.f32 %v7366_v28 }
0x479e   :  { %7370 = vmin.xlane.f32.xlu0 %v7369_v18 }
0x482b   :  { %v7371_v7 = vpop.xlane.xlu0 %7370 }
0x482c   :  { %vm7372_vm15 = vcmp.eq.f32.partialorder %v7369_v18, %v7371_v7  ;;  %v7377_v11 = vcvt.f32.s32 %v7371_v7 }
0x482d   :  { %v7373_v51 = vsel %vm7372_vm15, %v7368_v46, inf }
0x482e   :  { %7374 = vmin.xlane.f32.xlu1 %v7373_v51  ;;  %v7378_v0 = vshll.u32 %v7377_v11, 16 }
0x48bb   :  { %v7375_v23 = vpop.xlane.xlu1 %7374 }
0x48bc   :  { %v7376_v40 = vcvt.f32.s32 %v7375_v23 }
0x48be   :  { %v7379_v19 = vadd.s32 %v7378_v0, %v7376_v40 }
0x48c0   :  { %vm7380_vm4 = vcmp.eq.s32.totalorder %v13358_v53, %v7379_v19 }
0x48c1   :  { %11580 = vmatmul.mubr.msk.f32.vlgmr.msra.gmra.mrb[50].mxu0 %vm7380_vm4, %v15220_v57 }
0x48c2   :  { %11583 = vmatpush3.xpose.msk.msra.mxu0 %vm126_vm0, %v14422_v2  ;;  %11584 = vmatprep.mubr.msk.f32.mxu0 %vm13003_vm2, %v15222_v59 }
0x48c3   :  { %11587 = vmatprep.subr.mxu0 %v15222_v59 }
0x4994   :  { %v14680_v13 = vpop.f32.mrb[50].mxu0 }
0x4995   :  { %v7453_v6 = vsel %vm126_vm0, %v14680_v13, %v14528_v55  ;;  %v11581_v43 = vpop.f32.mrb[51].mxu0 }
0x4996   :  { %10154 = vmatmul.mubr.msk.f32.vlgmr.msra.gmra.mrb[106].mxu1 %vm139_vm1, %v7453_v6 }
0x4997   :  { %11628 = vmatpush3.msra.mxu1 %v14422_v2  ;;  %11629 = vmatprep.mubr.msk.f32.mxu1 %vm13003_vm2, %v15222_v59 }
0x4998   :  { %11632 = vmatprep.subr.mxu1 %v15222_v59 }
0x4a69   :  { %v7523_v36 = vpop.f32.mrb[106].mxu1 }
0x4a6a   :  { %v7524_v37 = vadd.f32 %v7523_v36, %v13159_v34  ;;  %v7525_v58 = vpop.f32.mrb[107].mxu1 }
0x4a6b   :  { %v7526_v9 = vadd.f32 %v7525_v58, %v13163_v35 }
0x4a6c   :  { %7529 = vrot.lane.b32.xlu0 %v7524_v37, %s12999_s15 }
0x4a6d   :  { %7550 = vrot.lane.b32.xlu1 %v7526_v9, %s13001_s25 }
0x4a70   :  { %7540 = vrot.lane.b32.xlu0 %v7526_v9, %s12999_s15 }
0x4ade   :  { %v7530_v18 = vpop.permute.xlu0 %7529 }
0x4adf   :  { %v7532_v28 = vadd.f32 %v7530_v18, %v7524_v37  ;;  %v7551_v23 = vpop.permute.xlu1 %7550 }
0x4ae1   :  { %v10155_v7 = vmul.f32 -1.442695, %v7532_v28 }
0x4ae2   :  { %v7541_v43 = vpop.permute.xlu0 %7540 }
0x4ae3   :  { %12869 = vpow2.f32 %v10155_v7  ;;  %v7543_v36 = vadd.f32 %v7541_v43, %v7524_v37 }
0x4ae5   :  { %v10156_v58 = vmul.f32 -1.442695, %v7543_v36 }
0x4aed   :  { %v12870_v46 = vpop.eup %12869 }
0x4aee   :  { %v7536_v51 = vadd.f32 1.0, %v12870_v46 }
0x4af0   :  { %12871 = vrcp.f32 %v7536_v51 }
0x4afa   :  { %v12872_v11 = vpop.eup %12871 }
0x4afb   :  { %v7553_v0 = vmul.f32 %v12872_v11, %v7551_v23 }
0x4afd   :  { %7555 = vrot.lane.b32.xlu1 %v7553_v0, %s13002_s6 }
0x4b6f   :  { %v7556_v40 = vpop.permute.xlu1 %7555 }
0x4b70   :  { %v7558_v19 = vadd.f32 %v7556_v40, %v7524_v37 }
0x4b72   :  { %12873 = vtanh.f32 %v7558_v19 }
0x4b73   :  { %12875 = vpow2.f32 %v10156_v58 }
0x4b7c   :  { %v12874_v6 = vpop.eup %12873 }
0x4b7d   :  { %7562 = vrot.lane.b32.xlu1 %v12874_v6, %s13001_s25  ;;  %v12876_v9 = vpop.eup %12875 }
0x4b7e   :  { %v7547_v18 = vadd.f32 1.0, %v12876_v9 }
0x4b80   :  { %12877 = vrcp.f32 %v7547_v18 }
0x4b8a   :  { %v12878_v28 = vpop.eup %12877 }
0x4b8b   :  { %v7560_v7 = vsub.f32 1.0, %v12878_v28  ;;  %v7566_v11 = vmul.f32 %v12878_v28, %v14528_v55  ;;  %v15223_v55 = vmov 0.0|0.0  }
0x4bef   :  { %v7563_v46 = vpop.permute.xlu1 %7562 }
0x4bf0   :  { %v7565_v51 = vmul.f32 %v7563_v46, %v7560_v7 }
0x4bf2   :  { %v14698_v23 = vadd.f32 %v7566_v11, %v7565_v51 }
0x4bf4   :  { %v7575_v0 = vrot.slane %v14698_v23, %v13185_v63 }
0x4bf6   :  { %v7583_v40 = vrot.slane %v7575_v0, %v13185_v63  ;;  %v7576_v19 = vcombine.high %v7575_v0, %v7575_v0 }
0x4bf8   :  { %v7594_v37 = vrot.slane %v7583_v40, %v13152_v31  ;;  %v7590_v6 = vrot.slane %v7576_v19, %v13185_v63  ;;  %v8142_v40 = vmul.f32 %v14604_v49, %v14680_v13 }
0x4bfa   :  { %7595 = vrot.lane.b32.xlu0 %v7594_v37, %s13001_s25  ;;  %v7672_v43 = vrot.slane %v7590_v6, %v13152_v31  ;;  %v8143_v19 = vsel %vm892_vm8, %v8142_v40, 0.0 }
0x4bfc   :  { %7673 = vrot.lane.b32.xlu1 %v7672_v43, %s13001_s25 }
0x4c6c   :  { %v7596_v36 = vpop.permute.xlu0 %7595 }
0x4c6d   :  { %11585 = vmatmul.mubr.msk.f32.vlgmr.msra.gmra.mrb[52].mxu0 %vm126_vm0, %v7596_v36 }
0x4c6e   :  { %11588 = vmatpush3.xpose.msk.msra.mxu0 %vm126_vm0, %v14468_v5  ;;  %11589 = vmatprep.mubr.msk.f32.mxu0 %vm13003_vm2, %v15222_v59  ;;  %v7674_v58 = vpop.permute.xlu1 %7673 }
0x4c6f   :  { %12463 = vmatprep.subr.bf16.mxu0 %v15223_v55 }
0x4c71   :  { %11590 = vmatmul.mubr.msk.f32.vlgmr.msra.gmra.mrb[54].mxu0 %vm126_vm0, %v7674_v58 }
0x4c72   :  { %12466 = vmatpush3.bf16.xpose.msk.msra.mxu0 %vm13218_vm3, %v13223_v24  ;;  %11624 = vmatprep.mubr.msk.f32.mxu0 %vm13003_vm2, %v15222_v59 }
0x4c73   :  { %12467 = vmatprep.subr.bf16.mxu0 %v15223_v55 }
0x4c7a   :  { %12470 = vmatpush3.bf16.xpose.msk.msra.mxu0 %vm13218_vm3, %v13235_v32 }
0x4c7b   :  { %12471 = vmatprep.subr.bf16.mxu0 %v15223_v55 }
0x4c82   :  { %12474 = vmatpush3.bf16.xpose.msk.msra.mxu0 %vm13218_vm3, %v13247_v38 }
0x4c83   :  { %12475 = vmatprep.subr.bf16.mxu0 %v15223_v55 }
0x4c8a   :  { %12478 = vmatpush3.bf16.xpose.msk.msra.mxu0 %vm13218_vm3, %v13259_v41 }
0x4c8b   :  { %12479 = vmatprep.subr.bf16.mxu0 %v15223_v55 }
0x4c92   :  { %12482 = vmatpush3.bf16.xpose.msk.msra.mxu0 %vm13218_vm3, %v13271_v44 }
0x4c93   :  { %12483 = vmatprep.subr.bf16.mxu0 %v15223_v55 }
0x4c9a   :  { %12486 = vmatpush3.bf16.xpose.msk.msra.mxu0 %vm13218_vm3, %v13283_v47 }
0x4c9b   :  { %12487 = vmatprep.subr.bf16.mxu0 %v15223_v55 }
0x4ca2   :  { %12490 = vmatpush3.bf16.xpose.msk.msra.mxu0 %vm13218_vm3, %v13295_v50 }
0x4ca3   :  { %12491 = vmatprep.subr.bf16.mxu0 %v15223_v55 }
0x4caa   :  { %12494 = vmatpush3.bf16.xpose.msk.msra.mxu0 %vm13218_vm3, %v13307_v54 }
0x4cab   :  { %11682 = vmatprep.subr.mxu0 %v15222_v59 }
0x4d40   :  { %v7665_v9 = vpop.f32.mrb[52].mxu0 }
0x4d41   :  { %v7747_v18 = vsel %vm13318_vm5, -1e+09, %v7665_v9  ;;  %v11586_v28 = vpop.f32.mrb[53].mxu0 }
0x4d42   :  { %v7749_v7 = vsel %vm441_vm6, %v7747_v18, -inf }
0x4d43   :  { %7750 = vmax.xlane.f32.xlu0 %v7749_v7 }
0x4d44   :  { %v7743_v46 = vpop.f32.mrb[54].mxu0 }
0x4d45   :  { %v7748_v51 = vsel %vm97_vm7, -1e+09, %v7743_v46  ;;  %v11591_v11 = vpop.f32.mrb[55].mxu0 }
0x4d46   :  { %v7752_v0 = vsel %vm441_vm6, %v7748_v51, -inf }
0x4d47   :  { %7753 = vmax.xlane.f32.xlu1 %v7752_v0 }
0x4d59   :  { %7771 = vrot.lane.b32.xlu0 %v14698_v23, %s13001_s25 }
0x4d78   :  { %8144 = vadd.xlane.f32.xlu0 %v8143_v19 }
0x4dd0   :  { %v7751_v37 = vpop.xlane.xlu0 %7750 }
0x4dd1   :  { %v7755_v6 = vsub.f32 %v7747_v18, %v7751_v37 }
0x4dd3   :  { %v7757_v43 = vmul.f32 1.442695, %v7755_v6 }
0x4dd4   :  { %v7772_v36 = vpop.permute.xlu0 %7771  ;;  %v7754_v58 = vpop.xlane.xlu1 %7753 }
0x4dd5   :  { %12879 = vpow2.f32 %v7757_v43  ;;  %v7756_v9 = vsub.f32 %v7748_v51, %v7754_v58  ;;  %11625 = vmatmul.mubr.msk.f32.vlgmr.msra.gmra.mrb[56].mxu0 %vm126_vm0, %v7772_v36  ;;  %v8146_v36 = vmul.f32 %v14604_v49, %v14698_v23 }
0x4dd6   :  { %11683 = vmatpush3.xpose.msk.msra.mxu0 %vm126_vm0, %v14422_v2  ;;  %11684 = vmatprep.mubr.msk.f32.mxu0 %vm13003_vm2, %v15222_v59 }
0x4dd7   :  { %v7759_v28 = vmul.f32 1.442695, %v7756_v9  ;;  %12535 = vmatprep.subr.bf16.mxu0 %v15223_v55 }
0x4dd9   :  { %12881 = vpow2.f32 %v7759_v28 }
0x4ddf   :  { %v12880_v13 = vpop.eup %12879 }
0x4de0   :  { %v7761_v18 = vsel %vm441_vm6, %v12880_v13, 0.0 }
0x4de1   :  { %7762 = vadd.xlane.f32.xlu1 %v7761_v18 }
0x4de3   :  { %v12882_v7 = vpop.eup %12881 }
0x4de4   :  { %v7764_v46 = vsel %vm441_vm6, %v12882_v7, 0.0 }
0x4de5   :  { %7765 = vadd.xlane.f32.xlu1 %v7764_v46 }
0x4e6e   :  { %v7763_v51 = vpop.xlane.xlu1 %7762 }
0x4e6f   :  { %12883 = vrcp.f32 %v7763_v51 }
0x4e72   :  { %v7766_v11 = vpop.xlane.xlu1 %7765 }
0x4e73   :  { %12885 = vrcp.f32 %v7766_v11 }
0x4e79   :  { %v12884_v2 = vpop.eup %12883 }
0x4e7a   :  { %v7768_v0 = vmul.f32 %v12884_v2, %v12880_v13 }
0x4e7c   :  { %11630 = vmatmul.mubr.msk.f32.vlgmr.msra.gmra.mrb[108].mxu1 %vm598_vm10, %v7768_v0 }
0x4e7d   :  { %v12886_v40 = vpop.eup %12885  ;;  %11633 = vmatpush3.msra.mxu1 %v14468_v5  ;;  %11634 = vmatprep.mubr.msk.f32.mxu1 %vm13003_vm2, %v15222_v59 }
0x4e7e   :  { %v7770_v19 = vmul.f32 %v12886_v40, %v12882_v7  ;;  %11637 = vmatprep.subr.mxu1 %v15222_v59 }
0x4e80   :  { %11635 = vmatmul.mubr.msk.f32.vlgmr.msra.gmra.mrb[110].mxu1 %vm598_vm10, %v7770_v19 }
0x4e81   :  { %11638 = vmatpush3.msk.msra.mxu1 %vm13361_vm9, %v15220_v57  ;;  %11639 = vmatprep.mubr.msk.f32.mxu1 %vm13003_vm2, %v15222_v59 }
0x4e82   :  { %11642 = vmatprep.subr.mxu1 %v15222_v59 }
0x4e84   :  { %11640 = vmatmul.mubr.msk.f32.vlgmr.msra.gmra.mrb[112].mxu1 %vm598_vm10, %v7768_v0 }
0x4e85   :  { %11643 = vmatpush3.msk.msra.mxu1 %vm13370_vm11, %v15220_v57  ;;  %11644 = vmatprep.mubr.msk.f32.mxu1 %vm13003_vm2, %v15222_v59 }
0x4e86   :  { %12495 = vmatprep.subr.bf16.mxu1 %v15223_v55 }
0x4e88   :  { %11645 = vmatmul.mubr.msk.f32.vlgmr.msra.gmra.mrb[114].mxu1 %vm598_vm10, %v7770_v19 }
0x4e89   :  { %12497 = vmatpush3.bf16.msra.mxu1 %v13223_v24  ;;  %11679 = vmatprep.mubr.msk.f32.mxu1 %vm13003_vm2, %v15222_v59 }
0x4e8a   :  { %12498 = vmatprep.subr.bf16.mxu1 %v15223_v55 }
0x4e8d   :  { %12500 = vmatpush3.bf16.msra.mxu1 %v13235_v32 }
0x4e8e   :  { %12501 = vmatprep.subr.bf16.mxu1 %v15223_v55 }
0x4e91   :  { %12503 = vmatpush3.bf16.msra.mxu1 %v13247_v38 }
0x4e92   :  { %12504 = vmatprep.subr.bf16.mxu1 %v15223_v55 }
0x4e95   :  { %12506 = vmatpush3.bf16.msra.mxu1 %v13259_v41 }
0x4e96   :  { %12507 = vmatprep.subr.bf16.mxu1 %v15223_v55 }
0x4e99   :  { %12509 = vmatpush3.bf16.msra.mxu1 %v13271_v44 }
0x4e9a   :  { %12510 = vmatprep.subr.bf16.mxu1 %v15223_v55 }
0x4e9d   :  { %12512 = vmatpush3.bf16.msra.mxu1 %v13283_v47 }
0x4e9e   :  { %12513 = vmatprep.subr.bf16.mxu1 %v15223_v55 }
0x4ea1   :  { %12515 = vmatpush3.bf16.msra.mxu1 %v13295_v50 }
0x4ea2   :  { %12516 = vmatprep.subr.bf16.mxu1 %v15223_v55 }
0x4ea5   :  { %12518 = vmatpush3.bf16.msra.mxu1 %v13307_v54 }
0x4ea6   :  { %12520 = vmatprep.subr.bf16.mxu1 %v13071_v3 }
0x4ea8   :  { %v7841_v37 = vpop.f32.mrb[56].mxu0 }
0x4ea9   :  { %v11626_v6 = vpop.f32.mrb[57].mxu0  ;;  %v7845_v43 = vsel %vm586_vm12, %v7841_v37, -inf }
0x4eaa   :  { %7846 = vmax.xlane.f32.xlu1 %v7845_v43 }
0x4ebb   :  { %8148 = vrot.lane.b32.xlu1 %v8146_v36, %s13001_s25 }
0x4f37   :  { %v7847_v58 = vpop.xlane.xlu1 %7846 }
0x4f38   :  { %v7848_v13 = vsub.f32 %v7841_v37, %v7847_v58 }
0x4f3a   :  { %v7849_v18 = vmul.f32 1.442695, %v7848_v13 }
0x4f3b   :  { %v8149_v9 = vpop.permute.xlu1 %8148 }
0x4f3c   :  { %v8151_v28 = vsel %vm892_vm8, %v8149_v9, 0.0  ;;  %12887 = vpow2.f32 %v7849_v18 }
0x4f3d   :  { %8152 = vadd.xlane.f32.xlu1 %v8151_v28 }
0x4f46   :  { %v12888_v9 = vpop.eup %12887 }
0x4f47   :  { %v7851_v13 = vsel %vm586_vm12, %v12888_v9, 0.0 }
0x4f4f   :  { %v7925_v7 = vpop.f32.mrb[108].mxu1 }
0x4f50   :  { %v11631_v46 = vpop.f32.mrb[109].mxu1  ;;  %v8155_v0 = vmul.f32 %v7925_v7, %v13411_v1 }
0x4f51   :  { %v8145_v46 = vpop.xlane.xlu0 %8144 }
0x4f53   :  { %v7998_v51 = vpop.f32.mrb[110].mxu1 }
0x4f54   :  { %v8156_v11 = vmul.f32 %v7998_v51, %v13411_v1  ;;  %v11636_v2 = vpop.f32.mrb[111].mxu1 }
0x4f56   :  { %v8159_v40 = vrot.slane %v8156_v11, 7 }
0x4f57   :  { %v8068_v19 = vpop.f32.mrb[112].mxu1 }
0x4f58   :  { %v11641_v6 = vpop.f32.mrb[113].mxu1  ;;  %v8160_v43 = vsel %vm913_vm13, %v8159_v40, %v8155_v0 }
0x4f59   :  { %v8162_v36 = vsel %vm892_vm8, %v8160_v43, 0.0 }
0x4f5a   :  { %8163 = vadd.xlane.f32.xlu0 %v8162_v36 }
0x4f5b   :  { %v8138_v37 = vpop.f32.mrb[114].mxu1 }
0x4f5c   :  { %v8177_v58 = vrot.slane %v8138_v37, 7  ;;  %v11646_v28 = vpop.f32.mrb[115].mxu1 }
0x4f5e   :  { %v8178_v18 = vsel %vm913_vm13, %v8177_v58, %v8068_v19  ;;  %7852 = vadd.xlane.f32.xlu0 %v7851_v13 }
0x4fca   :  { %v8153_v51 = vpop.xlane.xlu1 %8152 }
0x4fcb   :  { %v8154_v7 = vadd.f32 %v8153_v51, %v8145_v46 }
0x4fe7   :  { %v8164_v11 = vpop.xlane.xlu0 %8163 }
0x4fe8   :  { %v8165_v2 = vadd.f32 %v8164_v11, %v8154_v7 }
0x4fea   :  { %v8166_v6 = vadd.f32 %v8165_v2, %v13424_v60 }
0x4feb   :  { %v7853_v40 = vpop.xlane.xlu0 %7852 }
0x4fec   :  { %v10184_v0 = vmul.f32 -1.442695, %v8166_v6 }
0x4fee   :  { %12889 = vpow2.f32 %v10184_v0 }
0x4fef   :  { %12891 = vrcp.f32 %v7853_v40 }
0x4ff8   :  { %v12890_v43 = vpop.eup %12889 }
0x4ff9   :  { %v8170_v36 = vadd.f32 1.0, %v12890_v43  ;;  %v12892_v37 = vpop.eup %12891 }
0x4ffa   :  { %v7855_v17 = vmul.f32 %v12892_v37, %v12888_v9 }
0x4ffb   :  { %12893 = vrcp.f32 %v8170_v36 }
0x5005   :  { %v12894_v28 = vpop.eup %12893 }
0x5006   :  { %v8174_v27 = vsub.f32 1.0, %v12894_v28  ;;  %v8173_v19 = vmul.f32 %v12894_v28, %v7855_v17 }
0x5008   :  { %v8180_v58 = vmul.f32 %v8178_v18, %v8174_v27 }
0x500a   :  { %v14818_v13 = vadd.f32 %v8180_v58, %v8173_v19 }
0x500c   :  { %v8182_v46 = vsel %vm586_vm12, %v14818_v13, -inf }
0x500d   :  { %8183 = vmax.xlane.f32.xlu0 %v8182_v46 }
0x509a   :  { %v8184_v51 = vpop.xlane.xlu0 %8183 }
0x509b   :  { %vm8185_vm14 = vcmp.ge.f32.partialorder %v14818_v13, %v8184_v51 }
0x509c   :  { %v8186_v7 = vsel %vm8185_vm14, %v13358_v53, 128 }
0x509d   :  { %v8187_v11 = vsel %vm586_vm12, %v8186_v7, 2147483647 }
0x509e   :  { %v8189_v2 = vshra.s32 %v8187_v11, 16  ;;  %v8188_v9 = vand.u32 65535, %v8187_v11 }
0x50a0   :  { %v8191_v6 = vcvt.s32.f32 %v8189_v2  ;;  %v8190_v17 = vcvt.s32.f32 %v8188_v9 }
0x50a2   :  { %8192 = vmin.xlane.f32.xlu0 %v8191_v6 }
0x512f   :  { %v8193_v0 = vpop.xlane.xlu0 %8192 }
0x5130   :  { %vm8194_vm15 = vcmp.eq.f32.partialorder %v8191_v6, %v8193_v0  ;;  %v8199_v18 = vcvt.f32.s32 %v8193_v0 }
0x5131   :  { %v8195_v27 = vsel %vm8194_vm15, %v8190_v17, inf }
0x5132   :  { %8196 = vmin.xlane.f32.xlu0 %v8195_v27  ;;  %v8200_v43 = vshll.u32 %v8199_v18, 16 }
0x51bf   :  { %v8197_v40 = vpop.xlane.xlu0 %8196 }
0x51c0   :  { %v8198_v36 = vcvt.f32.s32 %v8197_v40 }
0x51c2   :  { %v8201_v37 = vadd.s32 %v8200_v43, %v8198_v36 }
0x51c4   :  { %vm8202_vm4 = vcmp.eq.s32.totalorder %v13358_v53, %v8201_v37 }
0x51c5   :  { %11680 = vmatmul.mubr.msk.f32.vlgmr.msra.gmra.mrb[116].mxu1 %vm8202_vm4, %v15220_v57 }
0x51c6   :  { %12522 = vmatpush1.bf16.msra.mxu1 %v13083_v8  ;;  %8343 = vmatprep.mubr.f32.mxu1 %v15222_v59 }
0x51c7   :  { %12524 = vmatprep.subr.bf16.mxu1 %v13096_v12 }
0x51ca   :  { %12526 = vmatpush1.bf16.msra.mxu1 %v13105_v15 }
0x51cb   :  { %12528 = vmatprep.subr.bf16.mxu1 %v13108_v16 }
0x51ce   :  { %12530 = vmatpush1.bf16.msra.mxu1 %v13123_v21 }
0x51cf   :  { %12532 = vmatprep.subr.bf16.mxu1 %v13126_v22 }
0x51d2   :  { %12534 = vmatpush1.bf16.msra.mxu1 %v13135_v25 }
0x51d3   :  { %11687 = vmatprep.subr.mxu1 %v15222_v59 }
0x5298   :  { %v14836_v28 = vpop.f32.mrb[116].mxu1 }
0x5299   :  { %v8275_v19 = vsel %vm126_vm0, %v14836_v28, %v14698_v23  ;;  %v11681_v58 = vpop.f32.mrb[117].mxu1 }
0x529a   :  { %10187 = vmatmul.mubr.msk.f32.vlgmr.msra.gmra.mrb[118].mxu1 %vm139_vm1, %v8275_v19 }
0x529b   :  { %11688 = vmatpush3.xpose.msk.msra.mxu1 %vm126_vm0, %v14468_v5  ;;  %11689 = vmatprep.mubr.msk.f32.mxu1 %vm13003_vm2, %v15222_v59 }
0x529c   :  { %11727 = vmatprep.subr.mxu1 %v15222_v59 }
0x536d   :  { %v8345_v46 = vpop.f32.mrb[118].mxu1 }
0x536e   :  { %v8346_v51 = vadd.f32 %v8345_v46, %v13159_v34  ;;  %v8347_v7 = vpop.f32.mrb[119].mxu1 }
0x536f   :  { %v8348_v11 = vadd.f32 %v8347_v7, %v13163_v35 }
0x5370   :  { %8351 = vrot.lane.b32.xlu1 %v8346_v51, %s12999_s15 }
0x5371   :  { %8372 = vrot.lane.b32.xlu0 %v8348_v11, %s13001_s25 }
0x53e2   :  { %v8352_v2 = vpop.permute.xlu1 %8351 }
0x53e3   :  { %v8354_v6 = vadd.f32 %v8352_v2, %v8346_v51  ;;  %v8373_v27 = vpop.permute.xlu0 %8372 }
0x53e5   :  { %v10188_v9 = vmul.f32 -1.442695, %v8354_v6 }
0x53e7   :  { %12895 = vpow2.f32 %v10188_v9 }
0x53f1   :  { %v12896_v5 = vpop.eup %12895 }
0x53f2   :  { %v8358_v0 = vadd.f32 1.0, %v12896_v5 }
0x53f4   :  { %12897 = vrcp.f32 %v8358_v0 }
0x53fe   :  { %v12898_v17 = vpop.eup %12897 }
0x53ff   :  { %v8375_v18 = vmul.f32 %v12898_v17, %v8373_v27 }
0x5401   :  { %8377 = vrot.lane.b32.xlu1 %v8375_v18, %s13002_s6 }
0x5405   :  { %8362 = vrot.lane.b32.xlu1 %v8348_v11, %s12999_s15 }
0x5473   :  { %v8378_v40 = vpop.permute.xlu1 %8377 }
0x5474   :  { %v8380_v43 = vadd.f32 %v8378_v40, %v8346_v51 }
0x5476   :  { %12899 = vtanh.f32 %v8380_v43 }
0x5477   :  { %v8363_v37 = vpop.permute.xlu1 %8362 }
0x5478   :  { %v8365_v19 = vadd.f32 %v8363_v37, %v8346_v51  ;;  %v14876_v37 = vld [vmem:[%s15188_s2] sm:$0xff] }
0x547a   :  { %v10189_v58 = vmul.f32 -1.442695, %v8365_v19 }
0x547c   :  { %12901 = vpow2.f32 %v10189_v58 }
0x5480   :  { %v12900_v36 = vpop.eup %12899 }
0x5481   :  { %8384 = vrot.lane.b32.xlu0 %v12900_v36, %s13001_s25 }
0x5486   :  { %v12902_v46 = vpop.eup %12901 }
0x5487   :  { %v8369_v7 = vadd.f32 1.0, %v12902_v46 }
0x5489   :  { %12903 = vrcp.f32 %v8369_v7 }
0x5493   :  { %v12904_v2 = vpop.eup %12903 }
0x5494   :  { %v8382_v6 = vsub.f32 1.0, %v12904_v2  ;;  %v8388_v0 = vmul.f32 %v12904_v2, %v14698_v23 }
0x54f3   :  { %v8385_v9 = vpop.permute.xlu0 %8384 }
0x54f4   :  { %v8387_v5 = vmul.f32 %v8385_v9, %v8382_v6 }
0x54f6   :  { %v14855_v11 = vadd.f32 %v8388_v0, %v8387_v5  ;;  %v8964_v0 = vmul.f32 %v14604_v49, %v14836_v28 }
0x54f8   :  { %v8397_v17 = vrot.slane %v14855_v11, %v13185_v63 }
0x54fa   :  { %v8405_v27 = vrot.slane %v8397_v17, %v13185_v63  ;;  %v8398_v18 = vcombine.high %v8397_v17, %v8397_v17  ;;  %v8965_v17 = vsel %vm892_vm8, %v8964_v0, 0.0  ;;  %v14933_v0 = vld [vmem:[%s15188_s2 + $0x8] sm:$0xff] }
0x54fc   :  { %v8416_v51 = vrot.slane %v8405_v27, %v13152_v31  ;;  %v8412_v40 = vrot.slane %v8398_v18, %v13185_v63 }
0x54fe   :  { %8417 = vrot.lane.b32.xlu1 %v8416_v51, %s13001_s25  ;;  %v8494_v43 = vrot.slane %v8412_v40, %v13152_v31 }
0x5500   :  { %8495 = vrot.lane.b32.xlu0 %v8494_v43, %s13001_s25 }
0x5570   :  { %v8418_v36 = vpop.permute.xlu1 %8417 }
0x5571   :  { %11685 = vmatmul.mubr.msk.f32.vlgmr.msra.gmra.mrb[58].mxu0 %vm126_vm0, %v8418_v36 }
0x5572   :  { %v8496_v23 = vpop.permute.xlu0 %8495  ;;  %12538 = vmatpush3.bf16.xpose.msk.msra.mxu0 %vm13218_vm3, %v13223_v24  ;;  %11724 = vmatprep.mubr.msk.f32.mxu0 %vm13003_vm2, %v15222_v59 }
0x5573   :  { %11690 = vmatmul.mubr.msk.f32.vlgmr.msra.gmra.mrb[120].mxu1 %vm126_vm0, %v8496_v23  ;;  %12539 = vmatprep.subr.bf16.mxu0 %v15223_v55 }
0x5574   :  { %11728 = vmatpush3.msra.mxu1 %v14876_v37  ;;  %11729 = vmatprep.mubr.msk.f32.mxu1 %vm13003_vm2, %v15222_v59 }
0x5575   :  { %11732 = vmatprep.subr.mxu1 %v15222_v59 }
0x557a   :  { %12542 = vmatpush3.bf16.xpose.msk.msra.mxu0 %vm13218_vm3, %v13235_v32 }
0x557b   :  { %12543 = vmatprep.subr.bf16.mxu0 %v15223_v55 }
0x5582   :  { %12546 = vmatpush3.bf16.xpose.msk.msra.mxu0 %vm13218_vm3, %v13247_v38 }
0x5583   :  { %12547 = vmatprep.subr.bf16.mxu0 %v15223_v55 }
0x558a   :  { %12550 = vmatpush3.bf16.xpose.msk.msra.mxu0 %vm13218_vm3, %v13259_v41 }
0x558b   :  { %12551 = vmatprep.subr.bf16.mxu0 %v15223_v55 }
0x5592   :  { %12554 = vmatpush3.bf16.xpose.msk.msra.mxu0 %vm13218_vm3, %v13271_v44 }
0x5593   :  { %12555 = vmatprep.subr.bf16.mxu0 %v15223_v55 }
0x559a   :  { %12558 = vmatpush3.bf16.xpose.msk.msra.mxu0 %vm13218_vm3, %v13283_v47 }
0x559b   :  { %12559 = vmatprep.subr.bf16.mxu0 %v15223_v55 }
0x55a2   :  { %12562 = vmatpush3.bf16.xpose.msk.msra.mxu0 %vm13218_vm3, %v13295_v50 }
0x55a3   :  { %12563 = vmatprep.subr.bf16.mxu0 %v15223_v55 }
0x55aa   :  { %12566 = vmatpush3.bf16.xpose.msk.msra.mxu0 %vm13218_vm3, %v13307_v54 }
0x55ab   :  { %11782 = vmatprep.subr.mxu0 %v15222_v59 }
0x5644   :  { %v8487_v19 = vpop.f32.mrb[58].mxu0 }
0x5645   :  { %v8569_v58 = vsel %vm13318_vm5, -1e+09, %v8487_v19  ;;  %v11686_v46 = vpop.f32.mrb[59].mxu0 }
0x5646   :  { %v8571_v7 = vsel %vm441_vm6, %v8569_v58, -inf  ;;  %v8565_v2 = vpop.f32.mrb[120].mxu1 }
0x5647   :  { %v8570_v6 = vsel %vm97_vm7, -1e+09, %v8565_v2  ;;  %v11691_v9 = vpop.f32.mrb[121].mxu1  ;;  %8572 = vmax.xlane.f32.xlu1 %v8571_v7 }
0x5648   :  { %v8574_v5 = vsel %vm441_vm6, %v8570_v6, -inf }
0x5649   :  { %8575 = vmax.xlane.f32.xlu0 %v8574_v5 }
0x565f   :  { %8593 = vrot.lane.b32.xlu0 %v14855_v11, %s13001_s25 }
0x567e   :  { %8966 = vadd.xlane.f32.xlu0 %v8965_v17 }
0x56d4   :  { %v8573_v27 = vpop.xlane.xlu1 %8572 }
0x56d5   :  { %v8577_v18 = vsub.f32 %v8569_v58, %v8573_v27 }
0x56d6   :  { %v8576_v51 = vpop.xlane.xlu0 %8575 }
0x56d7   :  { %v8579_v40 = vmul.f32 1.442695, %v8577_v18  ;;  %v8578_v43 = vsub.f32 %v8570_v6, %v8576_v51 }
0x56d9   :  { %12905 = vpow2.f32 %v8579_v40  ;;  %v8581_v36 = vmul.f32 1.442695, %v8578_v43  ;;  %v8968_v40 = vmul.f32 %v14604_v49, %v14855_v11 }
0x56da   :  { %v8594_v23 = vpop.permute.xlu0 %8593 }
0x56db   :  { %12907 = vpow2.f32 %v8581_v36  ;;  %11725 = vmatmul.mubr.msk.f32.vlgmr.msra.gmra.mrb[60].mxu0 %vm126_vm0, %v8594_v23 }
0x56dc   :  { %11783 = vmatpush3.xpose.msk.msra.mxu0 %vm126_vm0, %v14876_v37  ;;  %11784 = vmatprep.mubr.msk.f32.mxu0 %vm13003_vm2, %v15222_v59 }
0x56dd   :  { %12607 = vmatprep.subr.bf16.mxu0 %v15223_v55 }
0x56e3   :  { %v12906_v28 = vpop.eup %12905 }
0x56e4   :  { %v8583_v19 = vsel %vm441_vm6, %v12906_v28, 0.0 }
0x56e5   :  { %v12908_v58 = vpop.eup %12907  ;;  %8584 = vadd.xlane.f32.xlu1 %v8583_v19 }
0x56e6   :  { %v8586_v46 = vsel %vm441_vm6, %v12908_v58, 0.0 }
0x56e9   :  { %8587 = vadd.xlane.f32.xlu1 %v8586_v46 }
0x5772   :  { %v8585_v7 = vpop.xlane.xlu1 %8584 }
0x5773   :  { %12909 = vrcp.f32 %v8585_v7 }
0x5776   :  { %v8588_v2 = vpop.xlane.xlu1 %8587 }
0x5777   :  { %12911 = vrcp.f32 %v8588_v2 }
0x577d   :  { %v12910_v6 = vpop.eup %12909 }
0x577e   :  { %v8590_v9 = vmul.f32 %v12910_v6, %v12906_v28 }
0x5780   :  { %11730 = vmatmul.mubr.msk.f32.vlgmr.msra.gmra.mrb[122].mxu1 %vm598_vm10, %v8590_v9 }
0x5781   :  { %v12912_v5 = vpop.eup %12911  ;;  %11733 = vmatpush3.msra.mxu1 %v14933_v0  ;;  %11734 = vmatprep.mubr.msk.f32.mxu1 %vm13003_vm2, %v15222_v59 }
0x5782   :  { %v8592_v17 = vmul.f32 %v12912_v5, %v12908_v58  ;;  %11737 = vmatprep.subr.mxu1 %v15222_v59 }
0x5784   :  { %11735 = vmatmul.mubr.msk.f32.vlgmr.msra.gmra.mrb[124].mxu1 %vm598_vm10, %v8592_v17 }
0x5785   :  { %11738 = vmatpush3.msk.msra.mxu1 %vm13361_vm9, %v15220_v57  ;;  %11739 = vmatprep.mubr.msk.f32.mxu1 %vm13003_vm2, %v15222_v59 }
0x5786   :  { %11742 = vmatprep.subr.mxu1 %v15222_v59 }
0x5788   :  { %11740 = vmatmul.mubr.msk.f32.vlgmr.msra.gmra.mrb[126].mxu1 %vm598_vm10, %v8590_v9 }
0x5789   :  { %11743 = vmatpush3.msk.msra.mxu1 %vm13370_vm11, %v15220_v57  ;;  %11744 = vmatprep.mubr.msk.f32.mxu1 %vm13003_vm2, %v15222_v59 }
0x578a   :  { %12567 = vmatprep.subr.bf16.mxu1 %v15223_v55 }
0x578c   :  { %11745 = vmatmul.mubr.msk.f32.vlgmr.msra.gmra.mrb[128].mxu1 %vm598_vm10, %v8592_v17 }
0x578d   :  { %12569 = vmatpush3.bf16.msra.mxu1 %v13223_v24  ;;  %11779 = vmatprep.mubr.msk.f32.mxu1 %vm13003_vm2, %v15222_v59 }
0x578e   :  { %12570 = vmatprep.subr.bf16.mxu1 %v15223_v55 }
0x5791   :  { %12572 = vmatpush3.bf16.msra.mxu1 %v13235_v32 }
0x5792   :  { %12573 = vmatprep.subr.bf16.mxu1 %v15223_v55 }
0x5795   :  { %12575 = vmatpush3.bf16.msra.mxu1 %v13247_v38 }
0x5796   :  { %12576 = vmatprep.subr.bf16.mxu1 %v15223_v55 }
0x5799   :  { %12578 = vmatpush3.bf16.msra.mxu1 %v13259_v41 }
0x579a   :  { %12579 = vmatprep.subr.bf16.mxu1 %v15223_v55 }
0x579d   :  { %12581 = vmatpush3.bf16.msra.mxu1 %v13271_v44 }
0x579e   :  { %12582 = vmatprep.subr.bf16.mxu1 %v15223_v55 }
0x57a1   :  { %12584 = vmatpush3.bf16.msra.mxu1 %v13283_v47 }
0x57a2   :  { %12585 = vmatprep.subr.bf16.mxu1 %v15223_v55 }
0x57a5   :  { %12587 = vmatpush3.bf16.msra.mxu1 %v13295_v50 }
0x57a6   :  { %12588 = vmatprep.subr.bf16.mxu1 %v15223_v55 }
0x57a9   :  { %12590 = vmatpush3.bf16.msra.mxu1 %v13307_v54 }
0x57aa   :  { %12592 = vmatprep.subr.bf16.mxu1 %v13071_v3 }
0x57ae   :  { %v8663_v27 = vpop.f32.mrb[60].mxu0 }
0x57af   :  { %v11726_v18 = vpop.f32.mrb[61].mxu0  ;;  %v8667_v51 = vsel %vm586_vm12, %v8663_v27, -inf }
0x57b0   :  { %8668 = vmax.xlane.f32.xlu1 %v8667_v51 }
0x57c1   :  { %8970 = vrot.lane.b32.xlu1 %v8968_v40, %s13001_s25 }
0x583d   :  { %v8669_v43 = vpop.xlane.xlu1 %8668 }
0x583e   :  { %v8670_v28 = vsub.f32 %v8663_v27, %v8669_v43 }
0x5840   :  { %v8671_v19 = vmul.f32 1.442695, %v8670_v28  ;;  %v8967_v28 = vpop.xlane.xlu0 %8966 }
0x5841   :  { %v8971_v36 = vpop.permute.xlu1 %8970 }
0x5842   :  { %v8973_v23 = vsel %vm892_vm8, %v8971_v36, 0.0  ;;  %12913 = vpow2.f32 %v8671_v19 }
0x5843   :  { %8974 = vadd.xlane.f32.xlu1 %v8973_v23 }
0x584c   :  { %v12914_v51 = vpop.eup %12913 }
0x584d   :  { %v8673_v36 = vsel %vm586_vm12, %v12914_v51, 0.0 }
0x5853   :  { %v8747_v58 = vpop.f32.mrb[122].mxu1 }
0x5854   :  { %v11731_v3 = vpop.f32.mrb[123].mxu1  ;;  %v8977_v6 = vmul.f32 %v8747_v58, %v13411_v1 }
0x5857   :  { %v8820_v46 = vpop.f32.mrb[124].mxu1 }
0x5858   :  { %v8978_v7 = vmul.f32 %v8820_v46, %v13411_v1  ;;  %v11736_v2 = vpop.f32.mrb[125].mxu1 }
0x585a   :  { %v8981_v9 = vrot.slane %v8978_v7, 7 }
0x585b   :  { %v8890_v49 = vpop.f32.mrb[126].mxu1 }
0x585c   :  { %v11741_v5 = vpop.f32.mrb[127].mxu1  ;;  %v8982_v17 = vsel %vm913_vm13, %v8981_v9, %v8977_v6 }
0x585d   :  { %v8984_v18 = vsel %vm892_vm8, %v8982_v17, 0.0 }
0x585e   :  { %8985 = vadd.xlane.f32.xlu0 %v8984_v18 }
0x585f   :  { %v8960_v27 = vpop.f32.mrb[128].mxu1 }
0x5860   :  { %v8999_v40 = vrot.slane %v8960_v27, 7  ;;  %v11746_v43 = vpop.f32.mrb[129].mxu1 }
0x5862   :  { %v9000_v23 = vsel %vm913_vm13, %v8999_v40, %v8890_v49  ;;  %8674 = vadd.xlane.f32.xlu0 %v8673_v36 }
0x58d0   :  { %v8975_v19 = vpop.xlane.xlu1 %8974 }
0x58d1   :  { %v8976_v58 = vadd.f32 %v8975_v19, %v8967_v28 }
0x58eb   :  { %v8986_v3 = vpop.xlane.xlu0 %8985 }
0x58ec   :  { %v8987_v46 = vadd.f32 %v8986_v3, %v8976_v58 }
0x58ee   :  { %v8988_v7 = vadd.f32 %v8987_v46, %v13424_v60 }
0x58ef   :  { %v8675_v6 = vpop.xlane.xlu0 %8674 }
0x58f0   :  { %v10217_v2 = vmul.f32 -1.442695, %v8988_v7 }
0x58f2   :  { %12915 = vpow2.f32 %v10217_v2 }
0x58f3   :  { %12917 = vrcp.f32 %v8675_v6 }
0x58fc   :  { %v12916_v9 = vpop.eup %12915 }
0x58fd   :  { %v8992_v5 = vadd.f32 1.0, %v12916_v9  ;;  %v12918_v17 = vpop.eup %12917 }
0x58fe   :  { %v8677_v27 = vmul.f32 %v12918_v17, %v12914_v51 }
0x58ff   :  { %12919 = vrcp.f32 %v8992_v5 }
0x5909   :  { %v12920_v18 = vpop.eup %12919 }
0x590a   :  { %v8996_v43 = vsub.f32 1.0, %v12920_v18  ;;  %v8995_v49 = vmul.f32 %v12920_v18, %v8677_v27 }
0x590c   :  { %v9002_v40 = vmul.f32 %v9000_v23, %v8996_v43 }
0x590e   :  { %v14984_v36 = vadd.f32 %v9002_v40, %v8995_v49 }
0x5910   :  { %v9004_v28 = vsel %vm586_vm12, %v14984_v36, -inf }
0x5911   :  { %9005 = vmax.xlane.f32.xlu0 %v9004_v28 }
0x599e   :  { %v9006_v19 = vpop.xlane.xlu0 %9005 }
0x599f   :  { %vm9007_vm14 = vcmp.ge.f32.partialorder %v14984_v36, %v9006_v19 }
0x59a0   :  { %v9008_v58 = vsel %vm9007_vm14, %v13358_v53, 128 }
0x59a1   :  { %v9009_v3 = vsel %vm586_vm12, %v9008_v58, 2147483647 }
0x59a2   :  { %v9011_v46 = vshra.s32 %v9009_v3, 16  ;;  %v9010_v51 = vand.u32 65535, %v9009_v3 }
0x59a4   :  { %v9013_v7 = vcvt.s32.f32 %v9011_v46  ;;  %v9012_v6 = vcvt.s32.f32 %v9010_v51 }
0x59a6   :  { %9014 = vmin.xlane.f32.xlu0 %v9013_v7 }
0x5a33   :  { %v9015_v2 = vpop.xlane.xlu0 %9014 }
0x5a34   :  { %vm9016_vm15 = vcmp.eq.f32.partialorder %v9013_v7, %v9015_v2  ;;  %v9021_v9 = vcvt.f32.s32 %v9015_v2 }
0x5a35   :  { %v9017_v23 = vsel %vm9016_vm15, %v9012_v6, inf }
0x5a36   :  { %9018 = vmin.xlane.f32.xlu1 %v9017_v23  ;;  %v9022_v17 = vshll.u32 %v9021_v9, 16 }
0x5ac3   :  { %v9019_v5 = vpop.xlane.xlu1 %9018 }
0x5ac4   :  { %v9020_v18 = vcvt.f32.s32 %v9019_v5 }
0x5ac6   :  { %v9023_v27 = vadd.s32 %v9022_v17, %v9020_v18 }
0x5ac8   :  { %vm9024_vm4 = vcmp.eq.s32.totalorder %v13358_v53, %v9023_v27 }
0x5ac9   :  { %11780 = vmatmul.mubr.msk.f32.vlgmr.msra.gmra.mrb[130].mxu1 %vm9024_vm4, %v15220_v57 }
0x5aca   :  { %12594 = vmatpush1.bf16.msra.mxu1 %v13083_v8  ;;  %9165 = vmatprep.mubr.f32.mxu1 %v15222_v59 }
0x5acb   :  { %12596 = vmatprep.subr.bf16.mxu1 %v13096_v12 }
0x5ace   :  { %12598 = vmatpush1.bf16.msra.mxu1 %v13105_v15 }
0x5acf   :  { %12600 = vmatprep.subr.bf16.mxu1 %v13108_v16 }
0x5ad2   :  { %12602 = vmatpush1.bf16.msra.mxu1 %v13123_v21 }
0x5ad3   :  { %12604 = vmatprep.subr.bf16.mxu1 %v13126_v22 }
0x5ad6   :  { %12606 = vmatpush1.bf16.msra.mxu1 %v13135_v25 }
0x5ad7   :  { %11787 = vmatprep.subr.mxu1 %v15222_v59 }
0x5b9c   :  { %v15002_v53 = vpop.f32.mrb[130].mxu1 }
0x5b9d   :  { %v9097_v8 = vsel %vm126_vm0, %v15002_v53, %v14855_v11  ;;  %v11781_v43 = vpop.f32.mrb[131].mxu1 }
0x5b9e   :  { %10220 = vmatmul.mubr.msk.f32.vlgmr.msra.gmra.mrb[132].mxu1 %vm139_vm1, %v9097_v8  ;;  %vm3415_vm1 = vcmask 1045504  }
0x5b9f   :  { %11788 = vmatpush3.xpose.msk.msra.mxu1 %vm126_vm0, %v14933_v0  ;;  %11789 = vmatprep.mubr.msk.f32.mxu1 %vm13003_vm2, %v15222_v59 }
0x5ba0   :  { %11827 = vmatprep.subr.mxu1 %v15222_v59 }
0x5c71   :  { %v9167_v12 = vpop.f32.mrb[132].mxu1 }
0x5c72   :  { %v9168_v15 = vadd.f32 %v9167_v12, %v13159_v34  ;;  %v9169_v16 = vpop.f32.mrb[133].mxu1 }
0x5c73   :  { %v9170_v21 = vadd.f32 %v9169_v16, %v13163_v35 }
0x5c74   :  { %9173 = vrot.lane.b32.xlu0 %v9168_v15, %s12999_s15 }
0x5c75   :  { %9194 = vrot.lane.b32.xlu1 %v9170_v21, %s13001_s25 }
0x5c78   :  { %9184 = vrot.lane.b32.xlu0 %v9170_v21, %s12999_s15 }
0x5ce6   :  { %v9174_v22 = vpop.permute.xlu0 %9173 }
0x5ce7   :  { %v9176_v25 = vadd.f32 %v9174_v22, %v9168_v15  ;;  %v9195_v58 = vpop.permute.xlu1 %9194 }
0x5ce9   :  { %v10221_v49 = vmul.f32 -1.442695, %v9176_v25 }
0x5cea   :  { %v9185_v7 = vpop.permute.xlu0 %9184 }
0x5ceb   :  { %12921 = vpow2.f32 %v10221_v49  ;;  %v9187_v51 = vadd.f32 %v9185_v7, %v9168_v15  ;;  %v6278_v7 = vsel %vm586_vm12, %v14657_v4, -inf }
0x5ced   :  { %v10222_v2 = vmul.f32 -1.442695, %v9187_v51 }
0x5cf5   :  { %v12922_v40 = vpop.eup %12921 }
0x5cf6   :  { %v9180_v28 = vadd.f32 1.0, %v12922_v40 }
0x5cf8   :  { %12923 = vrcp.f32 %v9180_v28 }
0x5d02   :  { %v12924_v19 = vpop.eup %12923 }
0x5d03   :  { %v9197_v3 = vmul.f32 %v12924_v19, %v9195_v58 }
0x5d05   :  { %9199 = vrot.lane.b32.xlu1 %v9197_v3, %s13002_s6 }
0x5d77   :  { %v9200_v34 = vpop.permute.xlu1 %9199 }
0x5d78   :  { %v9202_v35 = vadd.f32 %v9200_v34, %v9168_v15 }
0x5d7a   :  { %12925 = vtanh.f32 %v9202_v35 }
0x5d7b   :  { %12927 = vpow2.f32 %v10222_v2 }
0x5d84   :  { %v12926_v46 = vpop.eup %12925 }
0x5d85   :  { %9206 = vrot.lane.b32.xlu1 %v12926_v46, %s13001_s25  ;;  %v12928_v6 = vpop.eup %12927  ;;  %v3066_v46 = vsel %vm586_vm12, %v14032_v26, -inf }
0x5d86   :  { %v9191_v23 = vadd.f32 1.0, %v12928_v6 }
0x5d88   :  { %12929 = vrcp.f32 %v9191_v23 }
0x5d92   :  { %v12930_v9 = vpop.eup %12929 }
0x5d93   :  { %v9204_v5 = vsub.f32 1.0, %v12930_v9  ;;  %v9210_v27 = vmul.f32 %v12930_v9, %v14855_v11 }
0x5df7   :  { %v9207_v17 = vpop.permute.xlu1 %9206 }
0x5df8   :  { %v9209_v18 = vmul.f32 %v9207_v17, %v9204_v5 }
0x5dfa   :  { %v9211_v8 = vadd.f32 %v9210_v27, %v9209_v18  ;;  %v6579_v18 = vmul.f32 %v15077_v20, %v14401_v39 }
0x5dfc   :  { %v9219_v43 = vrot.slane %v9211_v8, %v13185_v63 }
0x5dfe   :  { %v9220_v12 = vcombine.high %v9219_v43, %v9219_v43  ;;  %v9227_v16 = vrot.slane %v9219_v43, %v13185_v63  ;;  %v6595_v43 = vsel %vm892_vm8, %v14515_v14, 0.0 }
0x5e00   :  { %v9238_v21 = vrot.slane %v9227_v16, %v13152_v31  ;;  %v9234_v15 = vrot.slane %v9220_v12, %v13185_v63 }
0x5e02   :  { %9239 = vrot.lane.b32.xlu0 %v9238_v21, %s13001_s25  ;;  %v9316_v22 = vrot.slane %v9234_v15, %v13152_v31 }
0x5e04   :  { %9317 = vrot.lane.b32.xlu1 %v9316_v22, %s13001_s25 }
0x5e74   :  { %v9240_v25 = vpop.permute.xlu0 %9239 }
0x5e75   :  { %11785 = vmatmul.mubr.msk.f32.vlgmr.msra.gmra.mrb[62].mxu0 %vm126_vm0, %v9240_v25  ;;  %v9786_v25 = vmul.f32 %v15077_v20, %v15002_v53  ;;  %v3383_v53 = vsel %vm892_vm8, %v13895_v30, 0.0 }
0x5e76   :  { %v9318_v11 = vpop.permute.xlu1 %9317  ;;  %12610 = vmatpush3.bf16.xpose.msk.msra.mxu0 %vm13218_vm3, %v13223_v24  ;;  %11824 = vmatprep.mubr.msk.f32.mxu0 %vm13003_vm2, %v15222_v59 }
0x5e77   :  { %11790 = vmatmul.mubr.msk.f32.vlgmr.msra.gmra.mrb[134].mxu1 %vm126_vm0, %v9318_v11  ;;  %12611 = vmatprep.subr.bf16.mxu0 %v15223_v55  ;;  %v9787_v14 = vsel %vm892_vm8, %v9786_v25, 0.0 }
0x5e78   :  { %11828 = vmatpush3.msra.mxu1 %v14876_v37  ;;  %11829 = vmatprep.mubr.msk.f32.mxu1 %vm13003_vm2, %v15222_v59  ;;  %v6576_v37 = vsel %vm892_vm8, %v6575_v62, 0.0 }
0x5e79   :  { %11832 = vmatprep.subr.mxu1 %v15222_v59 }
0x5e7e   :  { %12614 = vmatpush3.bf16.xpose.msk.msra.mxu0 %vm13218_vm3, %v13235_v32 }
0x5e7f   :  { %12615 = vmatprep.subr.bf16.mxu0 %v15223_v55 }
0x5e86   :  { %12618 = vmatpush3.bf16.xpose.msk.msra.mxu0 %vm13218_vm3, %v13247_v38 }
0x5e87   :  { %12619 = vmatprep.subr.bf16.mxu0 %v15223_v55 }
0x5e8e   :  { %12622 = vmatpush3.bf16.xpose.msk.msra.mxu0 %vm13218_vm3, %v13259_v41 }
0x5e8f   :  { %12623 = vmatprep.subr.bf16.mxu0 %v15223_v55 }
0x5e96   :  { %12626 = vmatpush3.bf16.xpose.msk.msra.mxu0 %vm13218_vm3, %v13271_v44 }
0x5e97   :  { %12627 = vmatprep.subr.bf16.mxu0 %v15223_v55 }
0x5e9e   :  { %12630 = vmatpush3.bf16.xpose.msk.msra.mxu0 %vm13218_vm3, %v13283_v47 }
0x5e9f   :  { %12631 = vmatprep.subr.bf16.mxu0 %v15223_v55 }
0x5ea6   :  { %12634 = vmatpush3.bf16.xpose.msk.msra.mxu0 %vm13218_vm3, %v13295_v50  ;;  %v3367_v50 = vmul.f32 %v15077_v20, %v13791_v52 }
0x5ea7   :  { %12635 = vmatprep.subr.bf16.mxu0 %v15223_v55  ;;  %v3364_v55 = vsel %vm892_vm8, %v3363_v61, 0.0 }
0x5eae   :  { %12638 = vmatpush3.bf16.xpose.msk.msra.mxu0 %vm13218_vm3, %v13307_v54  ;;  %v9790_v54 = vmul.f32 %v15077_v20, %v9211_v8 }
0x5f48   :  { %v9309_v31 = vpop.f32.mrb[62].mxu0 }
0x5f49   :  { %v9391_v63 = vsel %vm13318_vm5, -1e+09, %v9309_v31  ;;  %v11786_v24 = vpop.f32.mrb[63].mxu0 }
0x5f4a   :  { %v9393_v32 = vsel %vm441_vm6, %v9391_v63, -inf  ;;  %v9387_v38 = vpop.f32.mrb[134].mxu1 }
0x5f4b   :  { %v9392_v41 = vsel %vm97_vm7, -1e+09, %v9387_v38  ;;  %v11791_v44 = vpop.f32.mrb[135].mxu1  ;;  %9394 = vmax.xlane.f32.xlu0 %v9393_v32 }
0x5f4c   :  { %v9396_v47 = vsel %vm441_vm6, %v9392_v41, -inf }
0x5f4d   :  { %9397 = vmax.xlane.f32.xlu1 %v9396_v47 }
0x5f61   :  { %9415 = vrot.lane.b32.xlu0 %v9211_v8, %s13001_s25 }
0x5f65   :  { %3369 = vrot.lane.b32.xlu0 %v3367_v50, %s13001_s25 }
0x5f69   :  { %9792 = vrot.lane.b32.xlu0 %v9790_v54, %s13001_s25 }
0x5f88   :  { %3365 = vadd.xlane.f32.xlu0 %v3364_v55 }
0x5f8c   :  { %6577 = vadd.xlane.f32.xlu0 %v6576_v37 }
0x5fd8   :  { %v9395_v49 = vpop.xlane.xlu0 %9394 }
0x5fd9   :  { %v9399_v52 = vsub.f32 %v9391_v63, %v9395_v49 }
0x5fda   :  { %v9398_v40 = vpop.xlane.xlu1 %9397 }
0x5fdb   :  { %v9401_v28 = vmul.f32 1.442695, %v9399_v52  ;;  %v9400_v19 = vsub.f32 %v9392_v41, %v9398_v40 }
0x5fdc   :  { %v9416_v58 = vpop.permute.xlu0 %9415 }
0x5fdd   :  { %12931 = vpow2.f32 %v9401_v28  ;;  %v9403_v3 = vmul.f32 1.442695, %v9400_v19  ;;  %11825 = vmatmul.mubr.msk.f32.vlgmr.msra.gmra.mrb[64].mxu0 %vm126_vm0, %v9416_v58  ;;  %vm3413_vm0 = vcmask 1043456  }
0x5fdf   :  { %12933 = vpow2.f32 %v9403_v3 }
0x5fe7   :  { %v12932_v45 = vpop.eup %12931 }
0x5fe8   :  { %v9405_v33 = vsel %vm441_vm6, %v12932_v45, 0.0 }
0x5fe9   :  { %v12934_v34 = vpop.eup %12933  ;;  %9406 = vadd.xlane.f32.xlu1 %v9405_v33 }
0x5fea   :  { %v9408_v35 = vsel %vm441_vm6, %v12934_v34, 0.0 }
0x5fed   :  { %9409 = vadd.xlane.f32.xlu1 %v9408_v35 }
0x5ff1   :  { %3067 = vmax.xlane.f32.xlu1 %v3066_v46 }
0x5ff5   :  { %6279 = vmax.xlane.f32.xlu1 %v6278_v7 }
0x6076   :  { %v9407_v51 = vpop.xlane.xlu1 %9406 }
0x6077   :  { %12935 = vrcp.f32 %v9407_v51 }
0x607a   :  { %v9410_v2 = vpop.xlane.xlu1 %9409 }
0x607b   :  { %12937 = vrcp.f32 %v9410_v2 }
0x607e   :  { %v3068_v27 = vpop.xlane.xlu1 %3067 }
0x607f   :  { %v3069_v8 = vsub.f32 %v14032_v26, %v3068_v27 }
0x6081   :  { %v12936_v6 = vpop.eup %12935  ;;  %v3070_v29 = vmul.f32 1.442695, %v3069_v8 }
0x6082   :  { %v9412_v23 = vmul.f32 %v12936_v6, %v12932_v45  ;;  %v6280_v16 = vpop.xlane.xlu1 %6279 }
0x6083   :  { %12939 = vpow2.f32 %v3070_v29  ;;  %v6281_v38 = vsub.f32 %v14657_v4, %v6280_v16 }
0x6084   :  { %11830 = vmatmul.mubr.msk.f32.vlgmr.msra.gmra.mrb[136].mxu1 %vm598_vm10, %v9412_v23 }
0x6085   :  { %v12938_v9 = vpop.eup %12937  ;;  %11833 = vmatpush3.msra.mxu1 %v14933_v0  ;;  %11834 = vmatprep.mubr.msk.f32.mxu1 %vm13003_vm2, %v15222_v59  ;;  %v6282_v41 = vmul.f32 1.442695, %v6281_v38 }
0x6086   :  { %v9414_v5 = vmul.f32 %v12938_v9, %v12934_v34  ;;  %11837 = vmatprep.subr.mxu1 %v15222_v59 }
0x6088   :  { %11835 = vmatmul.mubr.msk.f32.vlgmr.msra.gmra.mrb[138].mxu1 %vm598_vm10, %v9414_v5 }
0x6089   :  { %11838 = vmatpush3.msk.msra.mxu1 %vm13361_vm9, %v15220_v57  ;;  %11839 = vmatprep.mubr.msk.f32.mxu1 %vm13003_vm2, %v15222_v59 }
0x608a   :  { %11842 = vmatprep.subr.mxu1 %v15222_v59 }
0x608c   :  { %11840 = vmatmul.mubr.msk.f32.vlgmr.msra.gmra.mrb[140].mxu1 %vm598_vm10, %v9412_v23 }
0x608d   :  { %11843 = vmatpush3.msk.msra.mxu1 %vm13370_vm11, %v15220_v57  ;;  %11844 = vmatprep.mubr.msk.f32.mxu1 %vm13003_vm2, %v15222_v59  ;;  %v3370_v57 = vpop.permute.xlu0 %3369  ;;  %v15124_v12 = vpop.eup %12939 }
0x608e   :  { %v3372_v59 = vsel %vm892_vm8, %v3370_v57, 0.0  ;;  %v3072_v39 = vsel %vm586_vm12, %v15124_v12, 0.0 }
0x6090   :  { %11845 = vmatmul.mubr.msk.f32.vlgmr.msra.gmra.mrb[142].mxu1 %vm598_vm10, %v9414_v5 }
0x6091   :  { %v9793_v31 = vpop.permute.xlu0 %9792 }
0x6092   :  { %v9795_v63 = vsel %vm892_vm8, %v9793_v31, 0.0 }
0x6095   :  { %v3366_v3 = vpop.xlane.xlu0 %3365 }
0x60b0   :  { %v9485_v0 = vpop.f32.mrb[64].mxu0 }
0x60b1   :  { %v11826_v17 = vpop.f32.mrb[65].mxu0  ;;  %v9489_v56 = vsel %vm586_vm12, %v9485_v0, -inf }
0x60b2   :  { %9490 = vmax.xlane.f32.xlu1 %v9489_v56 }
0x60c3   :  { %6581 = vrot.lane.b32.xlu1 %v6579_v18, %s13001_s25  ;;  %s9845_s25 = sshll.u32 %s13008_s7, 4  ;;  %s9846_s25 = int_to_ptr.vmem [resolvable:$true] %s9845_s25 }
0x60c4   :  { %s12975_s6 = scalar_lea.vmem %s9846_s25, 384  ;;  %p12980_p1 = scmp.lt.s32.totalorder %s9846_s25, %s9846_s25 }
0x60c5   :  { %p12976_p0 = scmp.ne.s32.totalorder %s9846_s25, %s12975_s6  ;;  %p12981_p2 = scmp.lt.s32.totalorder %s12975_s6, %s12975_s6 }
0x60c7   :  { %p12982_p3 = por %p12981_p2, %p12980_p1 }
0x60c9   :  { %p12983_p4 = pnand %p12982_p3, %p12976_p0 }
0x60e7   :  { %3373 = vadd.xlane.f32.xlu1 %v3372_v59 }
0x60eb   :  { %6596 = vadd.xlane.f32.xlu1 %v6595_v43 }
0x60ef   :  { %3073 = vadd.xlane.f32.xlu1 %v3072_v39 }
0x613f   :  { %v9491_v21 = vpop.xlane.xlu1 %9490 }
0x6140   :  { %v9492_v15 = vsub.f32 %v9485_v0, %v9491_v21 }
0x6142   :  { %v9493_v26 = vmul.f32 1.442695, %v9492_v15 }
0x6143   :  { %v6582_v22 = vpop.permute.xlu1 %6581 }
0x6144   :  { %12941 = vpow2.f32 %v9493_v26  ;;  %v6584_v11 = vsel %vm892_vm8, %v6582_v22, 0.0 }
0x6145   :  { %6585 = vadd.xlane.f32.xlu0 %v6584_v11  ;;  %12943 = vpow2.f32 %v6282_v41 }
0x6149   :  { %9788 = vadd.xlane.f32.xlu0 %v9787_v14 }
0x614d   :  { %9796 = vadd.xlane.f32.xlu0 %v9795_v63 }
0x614e   :  { %v15133_v24 = vpop.eup %12941 }
0x614f   :  { %v9495_v32 = vsel %vm586_vm12, %v15133_v24, 0.0  ;;  %v12944_v52 = vpop.eup %12943 }
0x6150   :  { %9496 = vadd.xlane.f32.xlu1 %v9495_v32  ;;  %v6284_v19 = vsel %vm586_vm12, %v12944_v52, 0.0  ;;  %v3404_v32 = vrot.slane %v13583_v48, 6  ;;  %v15227_v48 = vld [vmem:[#allocation6_spill] sm:$0xff] }
0x6151   :  { %3384 = vadd.xlane.f32.xlu0 %v3383_v53 }
0x6157   :  { %v9569_v44 = vpop.f32.mrb[136].mxu1 }
0x6158   :  { %v11831_v47 = vpop.f32.mrb[137].mxu1  ;;  %v9799_v61 = vmul.f32 %v9569_v44, %v13411_v1  ;;  %v3407_v44 = vrot.slane %v13754_v10, 4 }
0x6159   :  { %v15224_v47 = vld [vmem:[#allocation8_spill] sm:$0xff] }
0x615b   :  { %v9642_v20 = vpop.f32.mrb[138].mxu1 }
0x615c   :  { %v9800_v50 = vmul.f32 %v9642_v20, %v13411_v1  ;;  %v11836_v54 = vpop.f32.mrb[139].mxu1  ;;  %v6578_v1 = vpop.xlane.xlu0 %6577  ;;  %v6616_v20 = vrot.slane %v15224_v47, 6 }
0x615e   :  { %v9803_v62 = vrot.slane %v9800_v50, 7 }
0x615f   :  { %v9712_v55 = vpop.f32.mrb[140].mxu1 }
0x6160   :  { %v11841_v37 = vpop.f32.mrb[141].mxu1  ;;  %v9804_v4 = vsel %vm913_vm13, %v9803_v62, %v9799_v61 }
0x6161   :  { %v9806_v49 = vsel %vm892_vm8, %v9804_v4, 0.0  ;;  %v3412_v4 = vsel %vm586_vm12, %v15227_v48, %v3404_v32 }
0x6162   :  { %9807 = vadd.xlane.f32.xlu0 %v9806_v49  ;;  %v3414_v10 = vsel %vm3413_vm0, %v3412_v4, %v3407_v44 }
0x6163   :  { %v9782_v30 = vpop.f32.mrb[142].mxu1 }
0x6164   :  { %v9821_v40 = vrot.slane %v9782_v30, 7  ;;  %v11846_v28 = vpop.f32.mrb[143].mxu1 }
0x6166   :  { %v15146_v58 = vsel %vm913_vm13, %v9821_v40, %v9712_v55  ;;  %6285 = vadd.xlane.f32.xlu0 %v6284_v19  ;;  %v15226_v55 = vld [vmem:[#allocation9_spill] sm:$0xff] }
0x6167   :  { %v6619_v37 = vrot.slane %v15226_v55, 4 }
0x6174   :  { %v3374_v45 = vpop.xlane.xlu1 %3373 }
0x6175   :  { %v3375_v23 = vadd.f32 %v3374_v45, %v3366_v3 }
0x6178   :  { %v6597_v35 = vpop.xlane.xlu1 %6596 }
0x617c   :  { %v3074_v18 = vpop.xlane.xlu1 %3073 }
0x61d2   :  { %v6586_v33 = vpop.xlane.xlu0 %6585 }
0x61d3   :  { %v6587_v34 = vadd.f32 %v6586_v33, %v6578_v1 }
0x61d5   :  { %v6598_v46 = vadd.f32 %v6597_v35, %v6587_v34  ;;  %v9827_v35 = vrot.slane %v14818_v13, 6 }
0x61d6   :  { %v9789_v7 = vpop.xlane.xlu0 %9788 }
0x61d7   :  { %v6599_v51 = vadd.f32 %v6598_v46, %v13424_v60 }
0x61d9   :  { %v10119_v6 = vmul.f32 -1.442695, %v6599_v51  ;;  %v9830_v51 = vrot.slane %v14984_v36, 4 }
0x61da   :  { %v9797_v2 = vpop.xlane.xlu0 %9796 }
0x61db   :  { %12945 = vpow2.f32 %v10119_v6  ;;  %v9798_v8 = vadd.f32 %v9797_v2, %v9789_v7  ;;  %v15229_v6 = vld [vmem:[#allocation11_spill] sm:$0xff] }
0x61dd   :  { %v9497_v11 = vpop.xlane.xlu1 %9496 }
0x61de   :  { %v3385_v9 = vpop.xlane.xlu0 %3384 }
0x61df   :  { %v3386_v5 = vadd.f32 %v3385_v9, %v3375_v23  ;;  %v9835_v23 = vsel %vm586_vm12, %v15229_v6, %v9827_v35 }
0x61e1   :  { %v3387_v0 = vadd.f32 %v3386_v5, %v13424_v60  ;;  %v9836_v5 = vsel %vm3413_vm0, %v9835_v23, %v9830_v51 }
0x61e3   :  { %v9988_v17 = vmul.f32 -1.442695, %v3387_v0 }
0x61e5   :  { %12947 = vpow2.f32 %v9988_v17  ;;  %v12946_v56 = vpop.eup %12945 }
0x61e6   :  { %v6603_v27 = vadd.f32 1.0, %v12946_v56  ;;  %12949 = vrcp.f32 %v3074_v18 }
0x61e8   :  { %12951 = vrcp.f32 %v6603_v27 }
0x61ef   :  { %v12948_v29 = vpop.eup %12947  ;;  %v9808_v57 = vpop.xlane.xlu0 %9807 }
0x61f0   :  { %v3391_v59 = vadd.f32 1.0, %v12948_v29  ;;  %v9809_v43 = vadd.f32 %v9808_v57, %v9798_v8  ;;  %v12950_v15 = vpop.eup %12949 }
0x61f1   :  { %v3076_v25 = vmul.f32 %v12950_v15, %v15124_v12  ;;  %v15225_v12 = vld [vmem:[#allocation10_spill] sm:$0xff] }
0x61f2   :  { %12953 = vrcp.f32 %v3391_v59  ;;  %v9810_v39 = vadd.f32 %v9809_v43, %v13424_v60  ;;  %v12952_v26 = vpop.eup %12951 }
0x61f3   :  { %v6286_v16 = vpop.xlane.xlu0 %6285  ;;  %v6607_v31 = vsub.f32 1.0, %v12952_v26 }
0x61f4   :  { %v10250_v21 = vmul.f32 -1.442695, %v9810_v39  ;;  %12955 = vrcp.f32 %v6286_v16 }
0x61f5   :  { %v6613_v61 = vmul.f32 %v15225_v12, %v6607_v31 }
0x61f6   :  { %12957 = vpow2.f32 %v10250_v21 }
0x61f7   :  { %12959 = vrcp.f32 %v9497_v11 }
0x61fc   :  { %v12954_v22 = vpop.eup %12953 }
0x61fd   :  { %v3395_v14 = vsub.f32 1.0, %v12954_v22  ;;  %v3394_v38 = vmul.f32 %v12954_v22, %v3076_v25 }
0x61fe   :  { %v12956_v63 = vpop.eup %12955 }
0x61ff   :  { %v6288_v53 = vmul.f32 %v12956_v63, %v12944_v52  ;;  %v3401_v41 = vmul.f32 %v13898_v42, %v3395_v14  ;;  %v15228_v52 = vld [vmem:[#allocation7_spill] sm:$0xff] }
0x6200   :  { %v12958_v60 = vpop.eup %12957  ;;  %v6624_v30 = vsel %vm586_vm12, %v15228_v52, %v6616_v20 }
0x6201   :  { %v9814_v50 = vadd.f32 1.0, %v12958_v60  ;;  %v6606_v54 = vmul.f32 %v12952_v26, %v6288_v53  ;;  %v3402_v62 = vadd.f32 %v3401_v41, %v3394_v38  ;;  %v6625_v19 = vsel %vm3413_vm0, %v6624_v30, %v6619_v37  ;;  %v12960_v1 = vpop.eup %12959 }
0x6202   :  { %v9499_v33 = vmul.f32 %v12960_v1, %v15133_v24 }
0x6203   :  { %12961 = vrcp.f32 %v9814_v50  ;;  %v6614_v42 = vadd.f32 %v6613_v61, %v6606_v54  ;;  %v3410_v49 = vrot.slane %v3402_v62, 2 }
0x6205   :  { %v6622_v40 = vrot.slane %v6614_v42, 2  ;;  %v3416_v28 = vsel %vm3415_vm1, %v3414_v10, %v3410_v49 }
0x6206   :  { %3417 = vst [vmem:[#allocation3] sm:$0xff] %v3416_v28 }
0x6207   :  { %v6626_v3 = vsel %vm3415_vm1, %v6625_v19, %v6622_v40 }
0x6208   :  { %6628 = vst [vmem:[#allocation3 + $0x8] sm:$0xff] %v6626_v3 }
0x620d   :  { %v12962_v45 = vpop.eup %12961 }
0x620e   :  { %v9818_v34 = vsub.f32 1.0, %v12962_v45  ;;  %v9817_v46 = vmul.f32 %v12962_v45, %v9499_v33 }
0x6210   :  { %v9824_v7 = vmul.f32 %v15146_v58, %v9818_v34 }
0x6212   :  { %v9825_v2 = vadd.f32 %v9824_v7, %v9817_v46 }
0x6214   :  { %v9833_v9 = vrot.slane %v9825_v2, 2 }
0x6216   :  { %v9837_v24 = vsel %vm3415_vm1, %v9836_v5, %v9833_v9 }
0x6217   :  { %9839 = vst [vmem:[#allocation3 + $0x10] sm:$0xff] %v9837_v24 }
0x6218   :  { %12986 = shalt.err (!%p12983_p4)
}
0x6219   :  { %s12987_s26 = scalar_lea.hbm %s15195_s9, 384 }
0x621a   :  { %p12988_p5 = scmp.ne.s32.totalorder %s15195_s9, %s12987_s26  ;;  %p12991_p6 = scmp.lt.u32.totalorder %s12987_s26, %s15195_s9 }
0x621c   :  { %p12993_p7 = pnand %p12991_p6, %p12988_p5 }
0x621e   :  { %12996 = shalt.err (!%p12993_p7)
}
0x621f   :  { %s13009_s10 = smov 128   ;;  %s13010_s11 = smov 8  }
0x6220   :  { %9851 = dma.vmem_to_hbm [thread:$0]  %s9846_s25, 384, %s15195_s9, [#allocation4], %s13009_s10, %s13009_s10, %s13010_s11  }
0x6221   :  { %12997 = dma.done.wait [#allocation4], 384  }
0x6222   :  { %12998 = vsyncadd [#allocation4], 4294966912 }
0x6223   :  { %9855 = vsyncpa [#allocation4], 1 }

</bundles_post_ra>
